<compile_context>
chip_gen: v6e
topology: v6e:2x2x1
jax: 0.10.0
libtpu: 0.0.40
codegen_flags: <defaults>
</compile_context>

<pallas_src>
import jax
import jax.numpy as jnp
from jax.experimental import pallas as pl
from jax.experimental.pallas import tpu as pltpu


def make_block_encoder_kernel(Bt, Ho, Wo, C, Cp, n_groups, eps=1e-5):
    """Builds the per-grid-step kernel. All sizes are static Python ints."""
    S = Ho * Wo
    M = Bt * S                      # matmul M dimension (rows) per grid step
    G = C // n_groups               # channels per group (== 1 for GroupNorm(32, 32))
    inv_count = 1.0 / float(S * G)

    def group_norm_silu(h2d, gamma, beta):
        # h2d: (M, Cp) f32.  Per-image, per-channel sums via XLU sublane reductions.
        # Padded lanes (>= C) are exactly zero, so they normalize to zero (beta pad = 0).
        h = h2d.reshape(Bt, S, Cp)
        s1 = jnp.sum(h, axis=1, keepdims=True)          # (Bt, 1, Cp)
        s2 = jnp.sum(h * h, axis=1, keepdims=True)      # (Bt, 1, Cp)
        if G == 1:
            gs1, gs2 = s1, s2                           # groups == channels (this config)
        else:
            # general case: segmented sum over consecutive G-channel groups (real lanes
            # only), broadcast back, re-pad padded lanes with zeros.
            def seg(s):
                sc = s[..., :C].reshape(Bt, n_groups, G)
                g = jnp.broadcast_to(jnp.sum(sc, axis=-1, keepdims=True),
                                     (Bt, n_groups, G)).reshape(Bt, 1, C)
                return jnp.pad(g, ((0, 0), (0, 0), (0, Cp - C)))
            gs1, gs2 = seg(s1), seg(s2)
        mean = gs1 * inv_count
        var = gs2 * inv_count - mean * mean             # biased var (matches torch GN)
        y = (h - mean) * jax.lax.rsqrt(var + eps) * gamma + beta
        y = y * jax.nn.sigmoid(y)                       # SiLU (EUP)
        return y.reshape(M, Cp)

    def residual_conv(pad_ref, w_ref, b_ref):
        # K-fused 3x3 conv: 9 lane-aligned bf16 tap slabs -> (M, 9*Cp), one MXU matmul.
        taps = [pad_ref[:, dy:dy + Ho, dx:dx + Wo, :].reshape(M, Cp)
                for dy in range(3) for dx in range(3)]
        patches = jnp.concatenate(taps, axis=-1)        # (M, 9*Cp) bf16, aligned concat
        return jnp.dot(patches, w_ref[...],
                       preferred_element_type=jnp.float32) + b_ref[...]

    def kernel(p_ref, w1_ref, b1_ref, g1_ref, be1_ref, wr1_ref, br1_ref,
               g2_ref, be2_ref, wr2_ref, br2_ref, o_ref, pad_ref):
        # ---- conv1 (strided): one (M, KKCp) @ (KKCp, Cp) matmul, f32 accumulation ----
        h0 = jnp.dot(p_ref[...].reshape(M, -1), w1_ref[...],
                     preferred_element_type=jnp.float32) + b1_ref[...]   # residue

        # ---- re-zero only the 1-wide border of the bf16 halo scratch (interior is
        #      fully rewritten below before any tap is read); done every step so it
        #      stays correct under megacore grid splitting. ----
        zrow = jnp.zeros((Bt, 1, Wo + 2, Cp), jnp.bfloat16)
        zcol = jnp.zeros((Bt, Ho + 2, 1, Cp), jnp.bfloat16)
        pad_ref[:, 0:1, :, :] = zrow
        pad_ref[:, Ho + 1:Ho + 2, :, :] = zrow
        pad_ref[:, :, 0:1, :] = zcol
        pad_ref[:, :, Wo + 1:Wo + 2, :] = zcol

        # ---- VAEResidualBlock: GN+SiLU -> conv_1 -> GN+SiLU -> conv_2 -> + residue ----
        t = group_norm_silu(h0, g1_ref[...], be1_ref[...])
        pad_ref[:, 1:1 + Ho, 1:1 + Wo, :] = t.astype(jnp.bfloat16).reshape(Bt, Ho, Wo, Cp)
        h1 = residual_conv(pad_ref, wr1_ref, br1_ref)

        t = group_norm_silu(h1, g2_ref[...], be2_ref[...])
        pad_ref[:, 1:1 + Ho, 1:1 + Wo, :] = t.astype(jnp.bfloat16).reshape(Bt, Ho, Wo, Cp)
        h2 = residual_conv(pad_ref, wr2_ref, br2_ref)

        # residual_layer is Identity (in_channels == out_channels); lane-dense 2D store.
        o_ref[...] = (h2 + h0).reshape(Bt, S, Cp)

    return kernel


def block_encoder_forward(x_nchw, params, *, kernel_size, stride, padding, n_groups=32):
    N, Cin, H, W = x_nchw.shape
    k, st, p = kernel_size, stride, padding
    Cout = params["w1"].shape[0]
    Ho = (H + 2 * p - k) // st + 1
    Wo = (W + 2 * p - k) // st + 1
    S = Ho * Wo
    KKC = k * k * Cin
    KKCp = pl.cdiv(KKC, 128) * 128          # lane-padded contraction dim for conv1
    Cp = pl.cdiv(Cout, 128) * 128           # lane-padded channel dim, used end-to-end

    # ---- pick how many images share one grid step (raise matmul M = Bt*S).  Target
    #      M >= 128 while keeping >= 2 grid steps when N allows (v7x has 2 TCs and the
    #      batch axis is "parallel"); v5e/v6e lose nothing from grid >= 2. ----
    Bt = 1
    while (Bt * 2 <= N and N % (Bt * 2) == 0
           and Bt * S < 128 and N // (Bt * 2) >= 2):
        Bt *= 2
    assert N % Bt == 0

    # --- wrapper-side layout glue: NCHW -> NHWC, pad, im2col for conv1, lane-pad, bf16 ---
    x = jnp.transpose(x_nchw, (0, 2, 3, 1)).astype(jnp.float32)
    xp = jnp.pad(x, ((0, 0), (p, p), (p, p), (0, 0)))
    cols = []
    for ky in range(k):
        for kx in range(k):
            cols.append(xp[:, ky:ky + st * (Ho - 1) + 1:st,
                           kx:kx + st * (Wo - 1) + 1:st, :])      # (N, Ho, Wo, Cin)
    patches = jnp.concatenate(cols, axis=-1).reshape(N, S, KKC)
    patches = jnp.pad(patches, ((0, 0), (0, 0), (0, KKCp - KKC))).astype(jnp.bfloat16)

    # conv1 weight: (O, I, kh, kw) -> (kh*kw*I, O), zero-pad rows to KKCp / cols to Cp.
    w1c = jnp.transpose(params["w1"], (2, 3, 1, 0)).reshape(KKC, Cout)
    w1c = jnp.pad(w1c, ((0, KKCp - KKC), (0, Cp - Cout))).astype(jnp.bfloat16)

    def resid_to_cols(w):  # (O=C, I=C, 3, 3) -> (9*Cp, Cp) bf16, per-tap lane-aligned
        wt = jnp.transpose(w, (2, 3, 1, 0))                       # (3, 3, I, O)
        wt = jnp.pad(wt, ((0, 0), (0, 0), (0, Cp - Cout), (0, Cp - Cout)))
        return wt.reshape(9 * Cp, Cp).astype(jnp.bfloat16)

    wr1c = resid_to_cols(params["wr1"])
    wr2c = resid_to_cols(params["wr2"])

    def pad_vec(v):        # (C,) -> (1, Cp) f32, zero-padded lanes
        return jnp.pad(v.reshape(1, Cout).astype(jnp.float32),
                       ((0, 0), (0, Cp - Cout)))

    b1, br1, br2 = pad_vec(params["b1"]), pad_vec(params["br1"]), pad_vec(params["br2"])
    g1, be1 = pad_vec(params["gn1_w"]), pad_vec(params["gn1_b"])
    g2, be2 = pad_vec(params["gn2_w"]), pad_vec(params["gn2_b"])

    kernel = make_block_encoder_kernel(Bt, Ho, Wo, Cout, Cp, n_groups)

    def full(arr):         # grid-invariant operand, fetched once
        n = arr.ndim
        return pl.BlockSpec(arr.shape, lambda b, _n=n: (0,) * _n)

    grid_spec = pltpu.PrefetchScalarGridSpec(
        num_scalar_prefetch=0,
        grid=(N // Bt,),
        in_specs=[
            pl.BlockSpec((Bt, S, KKCp), lambda b: (b, 0, 0)),
            full(w1c), full(b1), full(g1), full(be1),
            full(wr1c), full(br1), full(g2), full(be2),
            full(wr2c), full(br2),
        ],
        out_specs=pl.BlockSpec((Bt, S, Cp), lambda b: (b, 0, 0)),
        scratch_shapes=[pltpu.VMEM((Bt, Ho + 2, Wo + 2, Cp), jnp.bfloat16)],
    )

    M_total = N * S
    flops = 2 * M_total * KKCp * Cp + 2 * (2 * M_total * 9 * Cp * Cp)
    transcendentals = 2 * M_total * Cp                       # two SiLU sigmoids / element
    bytes_accessed = (patches.size * 2
                      + (w1c.size + wr1c.size + wr2c.size) * 2
                      + (b1.size + br1.size + br2.size
                         + g1.size + be1.size + g2.size + be2.size) * 4
                      + N * S * Cp * 4)

    out_padded = pl.pallas_call(
        kernel,
        out_shape=jax.ShapeDtypeStruct((N, S, Cp), jnp.float32),
        grid_spec=grid_spec,
        compiler_params=pltpu.CompilerParams(dimension_semantics=("parallel",)),
        cost_estimate=pl.CostEstimate(flops=flops, transcendentals=transcendentals,
                                      bytes_accessed=bytes_accessed),
    )(patches, w1c, b1, g1, be1, wr1c, br1, g2, be2, wr2c, br2)

    # wrapper-side: drop padded channel lanes, restore (Ho, Wo), back to NCHW.
    out = out_padded[:, :, :Cout].reshape(N, Ho, Wo, Cout)
    return jnp.transpose(out, (0, 3, 1, 2))


# ---- pure-JAX f32 reference (mirrors the PyTorch module, NCHW) ----
def reference_forward(x, params, *, kernel_size, stride, padding, n_groups=32, eps=1e-5):
    def conv2d(x, w, b, s, p):
        y = jax.lax.conv_general_dilated(
            x, w, window_strides=(s, s), padding=[(p, p), (p, p)],
            dimension_numbers=("NCHW", "OIHW", "NCHW"))
        return y + b[None, :, None, None]

    def group_norm(x, gamma, beta):
        N, C, H, W = x.shape
        xg = x.reshape(N, n_groups, -1)
        mean = xg.mean(axis=-1, keepdims=True)
        var = xg.var(axis=-1, keepdims=True)
        xn = ((xg - mean) / jnp.sqrt(var + eps)).reshape(N, C, H, W)
        return xn * gamma[None, :, None, None] + beta[None, :, None, None]

    h = conv2d(x, params["w1"], params["b1"], stride, padding)
    r = h
    h = jax.nn.silu(group_norm(h, params["gn1_w"], params["gn1_b"]))
    h = conv2d(h, params["wr1"], params["br1"], 1, 1)
    h = jax.nn.silu(group_norm(h, params["gn2_w"], params["gn2_b"]))
    h = conv2d(h, params["wr2"], params["br2"], 1, 1)
    return h + r


if __name__ == "__main__":
    IN_C, OUT_C, K, STRIDE, PAD = 4, 32, 3, 2, 1
    N, H, W = 4, 16, 16          # N=4 -> Bt=2 images/step (M=128) with 2 grid steps
    N_GROUPS = 32                # nn.GroupNorm(32, C) inside VAEResidualBlock

    key = jax.random.PRNGKey(0)
    ks = jax.random.split(key, 11)
    params = {
        "w1":    0.2  * jax.random.normal(ks[0], (OUT_C, IN_C, K, K), jnp.float32),
        "b1":    0.1  * jax.random.normal(ks[1], (OUT_C,), jnp.float32),
        "gn1_w": 1.0 + 0.1 * jax.random.normal(ks[2], (OUT_C,), jnp.float32),
        "gn1_b": 0.1  * jax.random.normal(ks[3], (OUT_C,), jnp.float32),
        "wr1":   0.1  * jax.random.normal(ks[4], (OUT_C, OUT_C, 3, 3), jnp.float32),
        "br1":   0.05 * jax.random.normal(ks[5], (OUT_C,), jnp.float32),
        "gn2_w": 1.0 + 0.1 * jax.random.normal(ks[6], (OUT_C,), jnp.float32),
        "gn2_b": 0.1  * jax.random.normal(ks[7], (OUT_C,), jnp.float32),
        "wr2":   0.1  * jax.random.normal(ks[8], (OUT_C, OUT_C, 3, 3), jnp.float32),
        "br2":   0.05 * jax.random.normal(ks[9], (OUT_C,), jnp.float32),
    }
    x = jax.random.normal(ks[10], (N, IN_C, H, W), jnp.float32)

    out = block_encoder_forward(x, params, kernel_size=K, stride=STRIDE,
                                padding=PAD, n_groups=N_GROUPS)
    out = jax.block_until_ready(out)

    ref = reference_forward(x, params, kernel_size=K, stride=STRIDE,
                            padding=PAD, n_groups=N_GROUPS)
    assert out.shape == (N, OUT_C, H // STRIDE, W // STRIDE), out.shape
    err = float(jnp.max(jnp.abs(out - ref)))
    scale = float(jnp.max(jnp.abs(ref)))
    # bf16 MXU operands (f32 accumulation) across three chained convs + two group norms
    # give ~1e-2 relative error vs the pure-f32 reference; allow 4e-2 of the output scale.
    assert err < 4e-2 * scale, f"max abs error {err} (ref scale {scale})"
    print("KERNEL_OK")
</pallas_src>

<mosaic_0001>
module attributes {stable_mosaic.version = 11 : i64} {
  func.func @kernel(%arg0: i32, %arg1: memref<2x64x128xbf16, #tpu.memory_space<vmem>>, %arg2: memref<128x128xbf16, #tpu.memory_space<vmem>>, %arg3: memref<1x128xf32, #tpu.memory_space<vmem>>, %arg4: memref<1x128xf32, #tpu.memory_space<vmem>>, %arg5: memref<1x128xf32, #tpu.memory_space<vmem>>, %arg6: memref<1152x128xbf16, #tpu.memory_space<vmem>>, %arg7: memref<1x128xf32, #tpu.memory_space<vmem>>, %arg8: memref<1x128xf32, #tpu.memory_space<vmem>>, %arg9: memref<1x128xf32, #tpu.memory_space<vmem>>, %arg10: memref<1152x128xbf16, #tpu.memory_space<vmem>>, %arg11: memref<1x128xf32, #tpu.memory_space<vmem>>, %arg12: memref<2x64x128xf32, #tpu.memory_space<vmem>>, %arg13: memref<2x10x10x128xbf16, #tpu.memory_space<vmem>>) attributes {dimension_semantics = [#tpu.dimension_semantics<parallel>], iteration_bounds = array<i64: 2>, scalar_prefetch = 0 : i64, scratch_operands = 1 : i64, tpu.core_type = #tpu.core_type<tc>, window_params = [{transform_indices = @transform_0, window_bounds = array<i64: 2, 64, 128>}, {pipeline_mode = #tpu.pipeline_mode<synchronous>, transform_indices = @transform_1, window_bounds = array<i64: 128, 128>}, {pipeline_mode = #tpu.pipeline_mode<synchronous>, transform_indices = @transform_2, window_bounds = array<i64: 1, 128>}, {pipeline_mode = #tpu.pipeline_mode<synchronous>, transform_indices = @transform_3, window_bounds = array<i64: 1, 128>}, {pipeline_mode = #tpu.pipeline_mode<synchronous>, transform_indices = @transform_4, window_bounds = array<i64: 1, 128>}, {pipeline_mode = #tpu.pipeline_mode<synchronous>, transform_indices = @transform_5, window_bounds = array<i64: 1152, 128>}, {pipeline_mode = #tpu.pipeline_mode<synchronous>, transform_indices = @transform_6, window_bounds = array<i64: 1, 128>}, {pipeline_mode = #tpu.pipeline_mode<synchronous>, transform_indices = @transform_7, window_bounds = array<i64: 1, 128>}, {pipeline_mode = #tpu.pipeline_mode<synchronous>, transform_indices = @transform_8, window_bounds = array<i64: 1, 128>}, {pipeline_mode = #tpu.pipeline_mode<synchronous>, transform_indices = @transform_9, window_bounds = array<i64: 1152, 128>}, {pipeline_mode = #tpu.pipeline_mode<synchronous>, transform_indices = @transform_10, window_bounds = array<i64: 1, 128>}, {transform_indices = @transform_11, window_bounds = array<i64: 2, 64, 128>}]} {
    %c0 = arith.constant 0 : index
    %c0_0 = arith.constant 0 : index
    %c0_1 = arith.constant 0 : index
    %0 = vector.load %arg1[%c0, %c0_0, %c0_1] : memref<2x64x128xbf16, #tpu.memory_space<vmem>>, vector<2x64x128xbf16>
    %1 = vector.shape_cast %0 : vector<2x64x128xbf16> to vector<128x128xbf16>
    %c0_2 = arith.constant 0 : index
    %c0_3 = arith.constant 0 : index
    %2 = vector.load %arg2[%c0_2, %c0_3] : memref<128x128xbf16, #tpu.memory_space<vmem>>, vector<128x128xbf16>
    %cst = arith.constant dense<0.000000e+00> : vector<128x128xf32>
    %3 = tpu.matmul %1, %2, %cst {dimension_numbers = #tpu.dot_dimension_numbers<[1], [0], [0], [1], [0, 0, 1, 1], [], []>} : vector<128x128xbf16>, vector<128x128xbf16>, vector<128x128xf32> -> vector<128x128xf32>
    %c0_4 = arith.constant 0 : index
    %c0_5 = arith.constant 0 : index
    %4 = vector.load %arg3[%c0_4, %c0_5] : memref<1x128xf32, #tpu.memory_space<vmem>>, vector<1x128xf32>
    %5 = vector.broadcast %4 : vector<1x128xf32> to vector<128x128xf32>
    %6 = arith.addf %3, %5 : vector<128x128xf32>
    %cst_6 = arith.constant 0.000000e+00 : bf16
    %7 = vector.broadcast %cst_6 : bf16 to vector<2x1x10x128xbf16>
    %cst_7 = arith.constant 0.000000e+00 : bf16
    %8 = vector.broadcast %cst_7 : bf16 to vector<2x10x1x128xbf16>
    %c0_8 = arith.constant 0 : index
    %c0_9 = arith.constant 0 : index
    %c0_10 = arith.constant 0 : index
    %c0_11 = arith.constant 0 : index
    %9 = vector.load %arg13[%c0_8, %c0_9, %c0_10, %c0_11] : memref<2x10x10x128xbf16, #tpu.memory_space<vmem>>, vector<2x1x10x128xbf16>
    tpu.vector_store %arg13[%c0_8, %c0_9, %c0_10, %c0_11], %7 {strides = array<i32>} : memref<2x10x10x128xbf16, #tpu.memory_space<vmem>>, vector<2x1x10x128xbf16>,
    %c0_12 = arith.constant 0 : index
    %c9 = arith.constant 9 : index
    %c0_13 = arith.constant 0 : index
    %c0_14 = arith.constant 0 : index
    %10 = vector.load %arg13[%c0_12, %c9, %c0_13, %c0_14] : memref<2x10x10x128xbf16, #tpu.memory_space<vmem>>, vector<2x1x10x128xbf16>
    tpu.vector_store %arg13[%c0_12, %c9, %c0_13, %c0_14], %7 {strides = array<i32>} : memref<2x10x10x128xbf16, #tpu.memory_space<vmem>>, vector<2x1x10x128xbf16>,
    %c0_15 = arith.constant 0 : index
    %c0_16 = arith.constant 0 : index
    %c0_17 = arith.constant 0 : index
    %c0_18 = arith.constant 0 : index
    %11 = vector.load %arg13[%c0_15, %c0_16, %c0_17, %c0_18] : memref<2x10x10x128xbf16, #tpu.memory_space<vmem>>, vector<2x10x1x128xbf16>
    tpu.vector_store %arg13[%c0_15, %c0_16, %c0_17, %c0_18], %8 {strides = array<i32>} : memref<2x10x10x128xbf16, #tpu.memory_space<vmem>>, vector<2x10x1x128xbf16>,
    %c0_19 = arith.constant 0 : index
    %c0_20 = arith.constant 0 : index
    %c9_21 = arith.constant 9 : index
    %c0_22 = arith.constant 0 : index
    %12 = vector.load %arg13[%c0_19, %c0_20, %c9_21, %c0_22] : memref<2x10x10x128xbf16, #tpu.memory_space<vmem>>, vector<2x10x1x128xbf16>
    tpu.vector_store %arg13[%c0_19, %c0_20, %c9_21, %c0_22], %8 {strides = array<i32>} : memref<2x10x10x128xbf16, #tpu.memory_space<vmem>>, vector<2x10x1x128xbf16>,
    %c0_23 = arith.constant 0 : index
    %c0_24 = arith.constant 0 : index
    %13 = vector.load %arg4[%c0_23, %c0_24] : memref<1x128xf32, #tpu.memory_space<vmem>>, vector<1x128xf32>
    %c0_25 = arith.constant 0 : index
    %c0_26 = arith.constant 0 : index
    %14 = vector.load %arg5[%c0_25, %c0_26] : memref<1x128xf32, #tpu.memory_space<vmem>>, vector<1x128xf32>
    %15 = vector.shape_cast %6 : vector<128x128xf32> to vector<2x64x128xf32>
    %cst_27 = arith.constant dense<0.000000e+00> : vector<2x128xf32>
    %16 = vector.multi_reduction <add>, %15, %cst_27 [1] : vector<2x64x128xf32> to vector<2x128xf32>
    %17 = vector.shape_cast %16 : vector<2x128xf32> to vector<2x1x128xf32>
    %18 = arith.mulf %15, %15 : vector<2x64x128xf32>
    %cst_28 = arith.constant dense<0.000000e+00> : vector<2x128xf32>
    %19 = vector.multi_reduction <add>, %18, %cst_28 [1] : vector<2x64x128xf32> to vector<2x128xf32>
    %20 = vector.shape_cast %19 : vector<2x128xf32> to vector<2x1x128xf32>
    %cst_29 = arith.constant 1.562500e-02 : f32
    %21 = vector.broadcast %cst_29 : f32 to vector<2x1x128xf32>
    %22 = arith.mulf %17, %21 : vector<2x1x128xf32>
    %cst_30 = arith.constant 1.562500e-02 : f32
    %23 = vector.broadcast %cst_30 : f32 to vector<2x1x128xf32>
    %24 = arith.mulf %20, %23 : vector<2x1x128xf32>
    %25 = arith.mulf %22, %22 : vector<2x1x128xf32>
    %26 = arith.subf %24, %25 : vector<2x1x128xf32>
    %27 = vector.broadcast %22 : vector<2x1x128xf32> to vector<2x64x128xf32>
    %28 = arith.subf %15, %27 : vector<2x64x128xf32>
    %cst_31 = arith.constant 9.99999974E-6 : f32
    %29 = vector.broadcast %cst_31 : f32 to vector<2x1x128xf32>
    %30 = arith.addf %26, %29 : vector<2x1x128xf32>
    %31 = math.rsqrt %30 : vector<2x1x128xf32>
    %32 = vector.broadcast %31 : vector<2x1x128xf32> to vector<2x64x128xf32>
    %33 = arith.mulf %28, %32 : vector<2x64x128xf32>
    %34 = vector.shape_cast %13 : vector<1x128xf32> to vector<1x1x128xf32>
    %35 = vector.broadcast %34 : vector<1x1x128xf32> to vector<2x64x128xf32>
    %36 = arith.mulf %33, %35 : vector<2x64x128xf32>
    %37 = vector.shape_cast %14 : vector<1x128xf32> to vector<1x1x128xf32>
    %38 = vector.broadcast %37 : vector<1x1x128xf32> to vector<2x64x128xf32>
    %39 = arith.addf %36, %38 : vector<2x64x128xf32>
    %40 = arith.negf %39 : vector<2x64x128xf32>
    %41 = math.exp %40 : vector<2x64x128xf32>
    %cst_32 = arith.constant 1.000000e+00 : f32
    %42 = vector.broadcast %cst_32 : f32 to vector<2x64x128xf32>
    %43 = arith.addf %42, %41 : vector<2x64x128xf32>
    %44 = arith.divf %42, %43 : vector<2x64x128xf32>
    %45 = arith.mulf %39, %44 : vector<2x64x128xf32>
    %46 = vector.shape_cast %45 : vector<2x64x128xf32> to vector<128x128xf32>
    %47 = arith.truncf %46 : vector<128x128xf32> to vector<128x128xbf16>
    %48 = vector.shape_cast %47 : vector<128x128xbf16> to vector<2x8x8x128xbf16>
    %c0_33 = arith.constant 0 : index
    %c1 = arith.constant 1 : index
    %c1_34 = arith.constant 1 : index
    %c0_35 = arith.constant 0 : index
    %49 = vector.load %arg13[%c0_33, %c1, %c1_34, %c0_35] : memref<2x10x10x128xbf16, #tpu.memory_space<vmem>>, vector<2x8x8x128xbf16>
    tpu.vector_store %arg13[%c0_33, %c1, %c1_34, %c0_35], %48 {strides = array<i32>} : memref<2x10x10x128xbf16, #tpu.memory_space<vmem>>, vector<2x8x8x128xbf16>,
    %c0_36 = arith.constant 0 : index
    %c0_37 = arith.constant 0 : index
    %c0_38 = arith.constant 0 : index
    %c0_39 = arith.constant 0 : index
    %50 = vector.load %arg13[%c0_36, %c0_37, %c0_38, %c0_39] : memref<2x10x10x128xbf16, #tpu.memory_space<vmem>>, vector<2x8x8x128xbf16>
    %51 = vector.shape_cast %50 : vector<2x8x8x128xbf16> to vector<128x128xbf16>
    %c0_40 = arith.constant 0 : index
    %c0_41 = arith.constant 0 : index
    %c1_42 = arith.constant 1 : index
    %c0_43 = arith.constant 0 : index
    %52 = vector.load %arg13[%c0_40, %c0_41, %c1_42, %c0_43] : memref<2x10x10x128xbf16, #tpu.memory_space<vmem>>, vector<2x8x8x128xbf16>
    %53 = vector.shape_cast %52 : vector<2x8x8x128xbf16> to vector<128x128xbf16>
    %c0_44 = arith.constant 0 : index
    %c0_45 = arith.constant 0 : index
    %c2 = arith.constant 2 : index
    %c0_46 = arith.constant 0 : index
    %54 = vector.load %arg13[%c0_44, %c0_45, %c2, %c0_46] : memref<2x10x10x128xbf16, #tpu.memory_space<vmem>>, vector<2x8x8x128xbf16>
    %55 = vector.shape_cast %54 : vector<2x8x8x128xbf16> to vector<128x128xbf16>
    %c0_47 = arith.constant 0 : index
    %c1_48 = arith.constant 1 : index
    %c0_49 = arith.constant 0 : index
    %c0_50 = arith.constant 0 : index
    %56 = vector.load %arg13[%c0_47, %c1_48, %c0_49, %c0_50] : memref<2x10x10x128xbf16, #tpu.memory_space<vmem>>, vector<2x8x8x128xbf16>
    %57 = vector.shape_cast %56 : vector<2x8x8x128xbf16> to vector<128x128xbf16>
    %c0_51 = arith.constant 0 : index
    %c1_52 = arith.constant 1 : index
    %c1_53 = arith.constant 1 : index
    %c0_54 = arith.constant 0 : index
    %58 = vector.load %arg13[%c0_51, %c1_52, %c1_53, %c0_54] : memref<2x10x10x128xbf16, #tpu.memory_space<vmem>>, vector<2x8x8x128xbf16>
    %59 = vector.shape_cast %58 : vector<2x8x8x128xbf16> to vector<128x128xbf16>
    %c0_55 = arith.constant 0 : index
    %c1_56 = arith.constant 1 : index
    %c2_57 = arith.constant 2 : index
    %c0_58 = arith.constant 0 : index
    %60 = vector.load %arg13[%c0_55, %c1_56, %c2_57, %c0_58] : memref<2x10x10x128xbf16, #tpu.memory_space<vmem>>, vector<2x8x8x128xbf16>
    %61 = vector.shape_cast %60 : vector<2x8x8x128xbf16> to vector<128x128xbf16>
    %c0_59 = arith.constant 0 : index
    %c2_60 = arith.constant 2 : index
    %c0_61 = arith.constant 0 : index
    %c0_62 = arith.constant 0 : index
    %62 = vector.load %arg13[%c0_59, %c2_60, %c0_61, %c0_62] : memref<2x10x10x128xbf16, #tpu.memory_space<vmem>>, vector<2x8x8x128xbf16>
    %63 = vector.shape_cast %62 : vector<2x8x8x128xbf16> to vector<128x128xbf16>
    %c0_63 = arith.constant 0 : index
    %c2_64 = arith.constant 2 : index
    %c1_65 = arith.constant 1 : index
    %c0_66 = arith.constant 0 : index
    %64 = vector.load %arg13[%c0_63, %c2_64, %c1_65, %c0_66] : memref<2x10x10x128xbf16, #tpu.memory_space<vmem>>, vector<2x8x8x128xbf16>
    %65 = vector.shape_cast %64 : vector<2x8x8x128xbf16> to vector<128x128xbf16>
    %c0_67 = arith.constant 0 : index
    %c2_68 = arith.constant 2 : index
    %c2_69 = arith.constant 2 : index
    %c0_70 = arith.constant 0 : index
    %66 = vector.load %arg13[%c0_67, %c2_68, %c2_69, %c0_70] : memref<2x10x10x128xbf16, #tpu.memory_space<vmem>>, vector<2x8x8x128xbf16>
    %67 = vector.shape_cast %66 : vector<2x8x8x128xbf16> to vector<128x128xbf16>
    %68 = tpu.concatenate %51, %53, %55, %57, %59, %61, %63, %65, %67 in 1 : vector<128x128xbf16>, vector<128x128xbf16>, vector<128x128xbf16>, vector<128x128xbf16>, vector<128x128xbf16>, vector<128x128xbf16>, vector<128x128xbf16>, vector<128x128xbf16>, vector<128x128xbf16> -> vector<128x1152xbf16>
    %c0_71 = arith.constant 0 : index
    %c0_72 = arith.constant 0 : index
    %69 = vector.load %arg6[%c0_71, %c0_72] : memref<1152x128xbf16, #tpu.memory_space<vmem>>, vector<1152x128xbf16>
    %cst_73 = arith.constant dense<0.000000e+00> : vector<128x128xf32>
    %70 = tpu.matmul %68, %69, %cst_73 {dimension_numbers = #tpu.dot_dimension_numbers<[1], [0], [0], [1], [0, 0, 1, 1], [], []>} : vector<128x1152xbf16>, vector<1152x128xbf16>, vector<128x128xf32> -> vector<128x128xf32>
    %c0_74 = arith.constant 0 : index
    %c0_75 = arith.constant 0 : index
    %71 = vector.load %arg7[%c0_74, %c0_75] : memref<1x128xf32, #tpu.memory_space<vmem>>, vector<1x128xf32>
    %72 = vector.broadcast %71 : vector<1x128xf32> to vector<128x128xf32>
    %73 = arith.addf %70, %72 : vector<128x128xf32>
    %c0_76 = arith.constant 0 : index
    %c0_77 = arith.constant 0 : index
    %74 = vector.load %arg8[%c0_76, %c0_77] : memref<1x128xf32, #tpu.memory_space<vmem>>, vector<1x128xf32>
    %c0_78 = arith.constant 0 : index
    %c0_79 = arith.constant 0 : index
    %75 = vector.load %arg9[%c0_78, %c0_79] : memref<1x128xf32, #tpu.memory_space<vmem>>, vector<1x128xf32>
    %76 = vector.shape_cast %73 : vector<128x128xf32> to vector<2x64x128xf32>
    %cst_80 = arith.constant dense<0.000000e+00> : vector<2x128xf32>
    %77 = vector.multi_reduction <add>, %76, %cst_80 [1] : vector<2x64x128xf32> to vector<2x128xf32>
    %78 = vector.shape_cast %77 : vector<2x128xf32> to vector<2x1x128xf32>
    %79 = arith.mulf %76, %76 : vector<2x64x128xf32>
    %cst_81 = arith.constant dense<0.000000e+00> : vector<2x128xf32>
    %80 = vector.multi_reduction <add>, %79, %cst_81 [1] : vector<2x64x128xf32> to vector<2x128xf32>
    %81 = vector.shape_cast %80 : vector<2x128xf32> to vector<2x1x128xf32>
    %cst_82 = arith.constant 1.562500e-02 : f32
    %82 = vector.broadcast %cst_82 : f32 to vector<2x1x128xf32>
    %83 = arith.mulf %78, %82 : vector<2x1x128xf32>
    %cst_83 = arith.constant 1.562500e-02 : f32
    %84 = vector.broadcast %cst_83 : f32 to vector<2x1x128xf32>
    %85 = arith.mulf %81, %84 : vector<2x1x128xf32>
    %86 = arith.mulf %83, %83 : vector<2x1x128xf32>
    %87 = arith.subf %85, %86 : vector<2x1x128xf32>
    %88 = vector.broadcast %83 : vector<2x1x128xf32> to vector<2x64x128xf32>
    %89 = arith.subf %76, %88 : vector<2x64x128xf32>
    %cst_84 = arith.constant 9.99999974E-6 : f32
    %90 = vector.broadcast %cst_84 : f32 to vector<2x1x128xf32>
    %91 = arith.addf %87, %90 : vector<2x1x128xf32>
    %92 = math.rsqrt %91 : vector<2x1x128xf32>
    %93 = vector.broadcast %92 : vector<2x1x128xf32> to vector<2x64x128xf32>
    %94 = arith.mulf %89, %93 : vector<2x64x128xf32>
    %95 = vector.shape_cast %74 : vector<1x128xf32> to vector<1x1x128xf32>
    %96 = vector.broadcast %95 : vector<1x1x128xf32> to vector<2x64x128xf32>
    %97 = arith.mulf %94, %96 : vector<2x64x128xf32>
    %98 = vector.shape_cast %75 : vector<1x128xf32> to vector<1x1x128xf32>
    %99 = vector.broadcast %98 : vector<1x1x128xf32> to vector<2x64x128xf32>
    %100 = arith.addf %97, %99 : vector<2x64x128xf32>
    %101 = arith.negf %100 : vector<2x64x128xf32>
    %102 = math.exp %101 : vector<2x64x128xf32>
    %cst_85 = arith.constant 1.000000e+00 : f32
    %103 = vector.broadcast %cst_85 : f32 to vector<2x64x128xf32>
    %104 = arith.addf %103, %102 : vector<2x64x128xf32>
    %105 = arith.divf %103, %104 : vector<2x64x128xf32>
    %106 = arith.mulf %100, %105 : vector<2x64x128xf32>
    %107 = vector.shape_cast %106 : vector<2x64x128xf32> to vector<128x128xf32>
    %108 = arith.truncf %107 : vector<128x128xf32> to vector<128x128xbf16>
    %109 = vector.shape_cast %108 : vector<128x128xbf16> to vector<2x8x8x128xbf16>
    %c0_86 = arith.constant 0 : index
    %c1_87 = arith.constant 1 : index
    %c1_88 = arith.constant 1 : index
    %c0_89 = arith.constant 0 : index
    %110 = vector.load %arg13[%c0_86, %c1_87, %c1_88, %c0_89] : memref<2x10x10x128xbf16, #tpu.memory_space<vmem>>, vector<2x8x8x128xbf16>
    tpu.vector_store %arg13[%c0_86, %c1_87, %c1_88, %c0_89], %109 {strides = array<i32>} : memref<2x10x10x128xbf16, #tpu.memory_space<vmem>>, vector<2x8x8x128xbf16>,
    %c0_90 = arith.constant 0 : index
    %c0_91 = arith.constant 0 : index
    %c0_92 = arith.constant 0 : index
    %c0_93 = arith.constant 0 : index
    %111 = vector.load %arg13[%c0_90, %c0_91, %c0_92, %c0_93] : memref<2x10x10x128xbf16, #tpu.memory_space<vmem>>, vector<2x8x8x128xbf16>
    %112 = vector.shape_cast %111 : vector<2x8x8x128xbf16> to vector<128x128xbf16>
    %c0_94 = arith.constant 0 : index
    %c0_95 = arith.constant 0 : index
    %c1_96 = arith.constant 1 : index
    %c0_97 = arith.constant 0 : index
    %113 = vector.load %arg13[%c0_94, %c0_95, %c1_96, %c0_97] : memref<2x10x10x128xbf16, #tpu.memory_space<vmem>>, vector<2x8x8x128xbf16>
    %114 = vector.shape_cast %113 : vector<2x8x8x128xbf16> to vector<128x128xbf16>
    %c0_98 = arith.constant 0 : index
    %c0_99 = arith.constant 0 : index
    %c2_100 = arith.constant 2 : index
    %c0_101 = arith.constant 0 : index
    %115 = vector.load %arg13[%c0_98, %c0_99, %c2_100, %c0_101] : memref<2x10x10x128xbf16, #tpu.memory_space<vmem>>, vector<2x8x8x128xbf16>
    %116 = vector.shape_cast %115 : vector<2x8x8x128xbf16> to vector<128x128xbf16>
    %c0_102 = arith.constant 0 : index
    %c1_103 = arith.constant 1 : index
    %c0_104 = arith.constant 0 : index
    %c0_105 = arith.constant 0 : index
    %117 = vector.load %arg13[%c0_102, %c1_103, %c0_104, %c0_105] : memref<2x10x10x128xbf16, #tpu.memory_space<vmem>>, vector<2x8x8x128xbf16>
    %118 = vector.shape_cast %117 : vector<2x8x8x128xbf16> to vector<128x128xbf16>
    %c0_106 = arith.constant 0 : index
    %c1_107 = arith.constant 1 : index
    %c1_108 = arith.constant 1 : index
    %c0_109 = arith.constant 0 : index
    %119 = vector.load %arg13[%c0_106, %c1_107, %c1_108, %c0_109] : memref<2x10x10x128xbf16, #tpu.memory_space<vmem>>, vector<2x8x8x128xbf16>
    %120 = vector.shape_cast %119 : vector<2x8x8x128xbf16> to vector<128x128xbf16>
    %c0_110 = arith.constant 0 : index
    %c1_111 = arith.constant 1 : index
    %c2_112 = arith.constant 2 : index
    %c0_113 = arith.constant 0 : index
    %121 = vector.load %arg13[%c0_110, %c1_111, %c2_112, %c0_113] : memref<2x10x10x128xbf16, #tpu.memory_space<vmem>>, vector<2x8x8x128xbf16>
    %122 = vector.shape_cast %121 : vector<2x8x8x128xbf16> to vector<128x128xbf16>
    %c0_114 = arith.constant 0 : index
    %c2_115 = arith.constant 2 : index
    %c0_116 = arith.constant 0 : index
    %c0_117 = arith.constant 0 : index
    %123 = vector.load %arg13[%c0_114, %c2_115, %c0_116, %c0_117] : memref<2x10x10x128xbf16, #tpu.memory_space<vmem>>, vector<2x8x8x128xbf16>
    %124 = vector.shape_cast %123 : vector<2x8x8x128xbf16> to vector<128x128xbf16>
    %c0_118 = arith.constant 0 : index
    %c2_119 = arith.constant 2 : index
    %c1_120 = arith.constant 1 : index
    %c0_121 = arith.constant 0 : index
    %125 = vector.load %arg13[%c0_118, %c2_119, %c1_120, %c0_121] : memref<2x10x10x128xbf16, #tpu.memory_space<vmem>>, vector<2x8x8x128xbf16>
    %126 = vector.shape_cast %125 : vector<2x8x8x128xbf16> to vector<128x128xbf16>
    %c0_122 = arith.constant 0 : index
    %c2_123 = arith.constant 2 : index
    %c2_124 = arith.constant 2 : index
    %c0_125 = arith.constant 0 : index
    %127 = vector.load %arg13[%c0_122, %c2_123, %c2_124, %c0_125] : memref<2x10x10x128xbf16, #tpu.memory_space<vmem>>, vector<2x8x8x128xbf16>
    %128 = vector.shape_cast %127 : vector<2x8x8x128xbf16> to vector<128x128xbf16>
    %129 = tpu.concatenate %112, %114, %116, %118, %120, %122, %124, %126, %128 in 1 : vector<128x128xbf16>, vector<128x128xbf16>, vector<128x128xbf16>, vector<128x128xbf16>, vector<128x128xbf16>, vector<128x128xbf16>, vector<128x128xbf16>, vector<128x128xbf16>, vector<128x128xbf16> -> vector<128x1152xbf16>
    %c0_126 = arith.constant 0 : index
    %c0_127 = arith.constant 0 : index
    %130 = vector.load %arg10[%c0_126, %c0_127] : memref<1152x128xbf16, #tpu.memory_space<vmem>>, vector<1152x128xbf16>
    %cst_128 = arith.constant dense<0.000000e+00> : vector<128x128xf32>
    %131 = tpu.matmul %129, %130, %cst_128 {dimension_numbers = #tpu.dot_dimension_numbers<[1], [0], [0], [1], [0, 0, 1, 1], [], []>} : vector<128x1152xbf16>, vector<1152x128xbf16>, vector<128x128xf32> -> vector<128x128xf32>
    %c0_129 = arith.constant 0 : index
    %c0_130 = arith.constant 0 : index
    %132 = vector.load %arg11[%c0_129, %c0_130] : memref<1x128xf32, #tpu.memory_space<vmem>>, vector<1x128xf32>
    %133 = vector.broadcast %132 : vector<1x128xf32> to vector<128x128xf32>
    %134 = arith.addf %131, %133 : vector<128x128xf32>
    %135 = arith.addf %134, %6 : vector<128x128xf32>
    %136 = vector.shape_cast %135 : vector<128x128xf32> to vector<2x64x128xf32>
    %c0_131 = arith.constant 0 : index
    %c0_132 = arith.constant 0 : index
    %c0_133 = arith.constant 0 : index
    %137 = vector.load %arg12[%c0_131, %c0_132, %c0_133] : memref<2x64x128xf32, #tpu.memory_space<vmem>>, vector<2x64x128xf32>
    tpu.vector_store %arg12[%c0_131, %c0_132, %c0_133], %136 {strides = array<i32>} : memref<2x64x128xf32, #tpu.memory_space<vmem>>, vector<2x64x128xf32>,
    return
  }
  func.func @transform_0(%arg0: i32) -> (i32, i32, i32) {
    %c0_i32 = arith.constant 0 : i32
    %c0_i32_0 = arith.constant 0 : i32
    %c0_i32_1 = arith.constant 0 : i32
    return %arg0, %c0_i32, %c0_i32_0 : i32, i32, i32
  }
  func.func @transform_1(%arg0: i32) -> (i32, i32) {
    %c0_i32 = arith.constant 0 : i32
    %c0_i32_0 = arith.constant 0 : i32
    %c0_i32_1 = arith.constant 0 : i32
    return %c0_i32, %c0_i32_0 : i32, i32
  }
  func.func @transform_2(%arg0: i32) -> (i32, i32) {
    %c0_i32 = arith.constant 0 : i32
    %c0_i32_0 = arith.constant 0 : i32
    %c0_i32_1 = arith.constant 0 : i32
    return %c0_i32, %c0_i32_0 : i32, i32
  }
  func.func @transform_3(%arg0: i32) -> (i32, i32) {
    %c0_i32 = arith.constant 0 : i32
    %c0_i32_0 = arith.constant 0 : i32
    %c0_i32_1 = arith.constant 0 : i32
    return %c0_i32, %c0_i32_0 : i32, i32
  }
  func.func @transform_4(%arg0: i32) -> (i32, i32) {
    %c0_i32 = arith.constant 0 : i32
    %c0_i32_0 = arith.constant 0 : i32
    %c0_i32_1 = arith.constant 0 : i32
    return %c0_i32, %c0_i32_0 : i32, i32
  }
  func.func @transform_5(%arg0: i32) -> (i32, i32) {
    %c0_i32 = arith.constant 0 : i32
    %c0_i32_0 = arith.constant 0 : i32
    %c0_i32_1 = arith.constant 0 : i32
    return %c0_i32, %c0_i32_0 : i32, i32
  }
  func.func @transform_6(%arg0: i32) -> (i32, i32) {
    %c0_i32 = arith.constant 0 : i32
    %c0_i32_0 = arith.constant 0 : i32
    %c0_i32_1 = arith.constant 0 : i32
    return %c0_i32, %c0_i32_0 : i32, i32
  }
  func.func @transform_7(%arg0: i32) -> (i32, i32) {
    %c0_i32 = arith.constant 0 : i32
    %c0_i32_0 = arith.constant 0 : i32
    %c0_i32_1 = arith.constant 0 : i32
    return %c0_i32, %c0_i32_0 : i32, i32
  }
  func.func @transform_8(%arg0: i32) -> (i32, i32) {
    %c0_i32 = arith.constant 0 : i32
    %c0_i32_0 = arith.constant 0 : i32
    %c0_i32_1 = arith.constant 0 : i32
    return %c0_i32, %c0_i32_0 : i32, i32
  }
  func.func @transform_9(%arg0: i32) -> (i32, i32) {
    %c0_i32 = arith.constant 0 : i32
    %c0_i32_0 = arith.constant 0 : i32
    %c0_i32_1 = arith.constant 0 : i32
    return %c0_i32, %c0_i32_0 : i32, i32
  }
  func.func @transform_10(%arg0: i32) -> (i32, i32) {
    %c0_i32 = arith.constant 0 : i32
    %c0_i32_0 = arith.constant 0 : i32
    %c0_i32_1 = arith.constant 0 : i32
    return %c0_i32, %c0_i32_0 : i32, i32
  }
  func.func @transform_11(%arg0: i32) -> (i32, i32, i32) {
    %c0_i32 = arith.constant 0 : i32
    %c0_i32_0 = arith.constant 0 : i32
    %c0_i32_1 = arith.constant 0 : i32
    return %arg0, %c0_i32, %c0_i32_0 : i32, i32, i32
  }
}

</mosaic_0001>

<bundles_post_ra>
// kernel: tpu_custom_call.1
= control target key start
LH: loop header
LB: loop body
LE: loop exit
PB: predicated region body
PF: predicated region fallthrough
CT: control target
= control target key end

     0   :  { %s12064_s0 = inlined_call_operand.hbm [shape: bf16[4,64,128], index: 0, kind: input, shape index: {}]   ;;  %s12065_s1 = inlined_call_operand.hbm [shape: bf16[128,128], index: 1, kind: input, shape index: {}]   ;;  %s12066_s2 = inlined_call_operand.vmem [shape: f32[1,128], index: 2, kind: input, shape index: {}]   ;;  %s12067_s3 = inlined_call_operand.vmem [shape: f32[1,128], index: 3, kind: input, shape index: {}]   ;;  %s12068_s4 = inlined_call_operand.vmem [shape: f32[1,128], index: 4, kind: input, shape index: {}]   ;;  %s12069_s5 = inlined_call_operand.hbm [shape: bf16[1152,128], index: 5, kind: input, shape index: {}]   ;;  %s12070_s6 = inlined_call_operand.vmem [shape: f32[1,128], index: 6, kind: input, shape index: {}]   ;;  %s12071_s7 = inlined_call_operand.vmem [shape: f32[1,128], index: 7, kind: input, shape index: {}]   ;;  %s12072_s8 = inlined_call_operand.vmem [shape: f32[1,128], index: 8, kind: input, shape index: {}]   ;;  %s12073_s9 = inlined_call_operand.hbm [shape: bf16[1152,128], index: 9, kind: input, shape index: {}]   ;;  %s12074_s10 = inlined_call_operand.vmem [shape: f32[1,128], index: 10, kind: input, shape index: {}]   ;;  %s12075_s11 = inlined_call_operand.hbm [shape: f32[4,64,128], index: 11, kind: output, shape index: {}]  }
   0x1   :  { %12123 = sst [smem:[#allocation58_spill]] %s12065_s1 }
   0x2   :  { %12124 = sst [smem:[#allocation59_spill]] %s12069_s5 }
   0x3   :  { %12125 = sst [smem:[#allocation60_spill]] %s12073_s9 }
   0x4   :  { %16 = vsyncpa [#allocation4], 0 }
   0x5   :  { %18 = vsyncpa [#allocation4 + $0x1], 0 }
   0x6   :  { %19 = vsyncpa [#allocation7], 0 }
   0x7   :  { %20 = vsyncpa [#allocation10], 0 }
   0x8   :  { %21 = vsyncpa [#allocation5], 0 }
   0x9   :  { %23 = vsyncpa [#allocation5 + $0x1], 0  ;;  %s9023_s17 = smov 0   ;;  %s9025_s18 = smov 0  }
   0xa   :  { %s9027_s19 = smov 0   ;;  %s9029_s20 = smov 0  }
   0xb LB: > { %12126 = sst [smem:[#allocation16_spill]] %s8947_s19  ;;  %s9044_s21 = sadd.s32 4294967295, %s8951_s20   ;;  %s8951_s20 = sphi %s9029_s20, %s12357_s20   ;;  %s8947_s19 = sphi %s9027_s19, %s12354_s19   ;;  %s8943_s18 = sphi %s9025_s18, %s12356_s18   ;;  %s8939_s17 = sphi %s9023_s17, %s12355_s17  }
   0xc   : > { %s7141_s22 = sadd.s32 4294967294, %s8951_s20   ;;  %p49_p0 = scmp.ne.s32.totalorder %s8943_s18, %s8939_s17 }
   0xd   : > { %p12076_p1 = scmp.eq.s32.totalorder %s9044_s21, 0  ;;  %p283_p2 = scmp.eq.s32.totalorder %s9044_s21, 1 }
   0xe   : > { %p289_p3 = scmp.eq.s32.totalorder %s7141_s22, 1  ;;  %p7142_p5 = scmp.ge.s32.totalorder %s8951_s20, 1 }
   0xf   : > { %p9053_p4 = por %p12076_p1, %p49_p0  ;;  %p296_p7 = scmp.lt.s32.totalorder %s8951_s20, 3 }
  0x10   : > { %p9058_p6 = por %p289_p3, %p49_p0  ;;  %s8953_s26 = smov [#allocation6]  }
  0x11   : > { %s12127_s23 = scalar_select %p9053_p4, 1, 0 }
  0x12   : > { %s12128_s24 = scalar_select %p9058_p6, 1, 0 }
  0x13   : > { %p9063_p8 = pnand %p7142_p5, %p296_p7  ;;  %s308_s27 = sshll.u32 %s8953_s26, 4  ;;  %s309_s27 = int_to_ptr.vmem [resolvable:$true] %s308_s27 }
  0x14   : > { %s8954_s29 = smov [#allocation8]   ;;  %s8955_s12 = smov [#allocation9]  }
  0x15   : > { %s12129_s25 = scalar_select %p9063_p8, 1, 0 }
  0x16   : > { %p8358_p9 = pneg %p9063_p8  ;;  %s330_s30 = sshll.u32 %s8954_s29, 4  ;;  %s331_s30 = int_to_ptr.vmem [resolvable:$true] %s330_s30 }
  0x17   : > { %s352_s13 = sshll.u32 %s8955_s12, 4  ;;  %s8784_s14 = scalar_lea.vmem %s309_s27, 1024  ;;  %s353_s13 = int_to_ptr.vmem [resolvable:$true] %s352_s13 }
  0x18   : > { %p9072_p11 = pnand %p8358_p9, %p12076_p1  ;;  %p8785_p13 = scmp.ne.s32.totalorder %s309_s27, %s8784_s14 }
  0x19   : > { %p8792_p5 = scmp.lt.s32.totalorder %s309_s27, %s309_s27  ;;  %p8793_p7 = scmp.lt.s32.totalorder %s8784_s14, %s8784_s14 }
  0x1a   : > { %p8775_p12 = pneg %p9072_p11 }
  0x1b   : > { %p8794_p9 = por %p8793_p7, %p8792_p5 }
  0x1c   : > { %p8787_p0 = pnand %p8785_p13, %p8775_p12 }
  0x1e   : > { %p8788_p3 = pneg %p8787_p0 }
  0x20   : > { %p8795_p10 = pnand %p8794_p9, %p8788_p3 }
  0x22   : > { %8798 = shalt.err (!%p8795_p10)
}
  0x23   : > { %s12077_s15 = smov 64   ;;  %s12078_s16 = smov 4  }
  0x24   : > { %s12131_s1 = sld [smem:[#allocation58_spill]]  ;;  %s8810_s29 = scalar_lea.vmem %s331_s30, 9216 }
  0x25   : > { %p8811_p13 = scmp.ne.s32.totalorder %s331_s30, %s8810_s29  ;;  %p8818_p3 = scmp.lt.s32.totalorder %s331_s30, %s331_s30 }
  0x26   : > { %p8819_p10 = scmp.lt.s32.totalorder %s8810_s29, %s8810_s29 }
  0x27   : > { %p8813_p0 = pnand %p8811_p13, %p8775_p12 }
  0x28   : > { %p8820_p7 = por %p8819_p10, %p8818_p3 }
  0x29   : > { %p8814_p5 = pneg %p8813_p0 }
  0x2a   : > { %8361 = dma.hbm_to_vmem [thread:$0]  (!%p9072_p11), %s12131_s1, 1024, %s309_s27, [#allocation7], %s12077_s15, %s12077_s15, %s12078_s16  }
  0x2b   : > { %p8821_p9 = pnand %p8820_p7, %p8814_p5 }
  0x2d   : > { %8824 = shalt.err (!%p8821_p9)
}
  0x2e   : > { %s12132_s5 = sld [smem:[#allocation59_spill]]  ;;  %s8836_s27 = scalar_lea.vmem %s353_s13, 9216 }
  0x2f   : > { %p8837_p1 = scmp.ne.s32.totalorder %s353_s13, %s8836_s27  ;;  %p8844_p3 = scmp.lt.s32.totalorder %s353_s13, %s353_s13 }
  0x30   : > { %p8845_p5 = scmp.lt.s32.totalorder %s8836_s27, %s8836_s27 }
  0x31   : > { %p8839_p13 = pnand %p8837_p1, %p8775_p12 }
  0x32   : > { %p8846_p10 = por %p8845_p5, %p8844_p3 }
  0x33   : > { %p8840_p0 = pneg %p8839_p13 }
  0x34   : > { %8364 = dma.hbm_to_vmem [thread:$0]  (!%p9072_p11), %s12132_s5, 9216, %s331_s30, [#allocation7], %s12077_s15, %s12077_s15, %s12078_s16  }
  0x35   : > { %p8847_p7 = pnand %p8846_p10, %p8840_p0 }
  0x37   : > { %8850 = shalt.err (!%p8847_p7)
}
  0x38   : > { %s12133_s9 = sld [smem:[#allocation60_spill]]  ;;  %s9112_s30 = sadd.s32 1, %s8951_s20  }
  0x39   : > { %s33_s28 = ssub.s32 %s8951_s20, %s9112_s30  ;;  %s36_s29 = sadd.s32 1, %s8947_s19 }
  0x3a   : > { %p34_p1 = scmp.eq.s32.totalorder %s33_s28, 0  ;;  %p43_p12 = scmp.ne.s32.totalorder %s8947_s19, %s8943_s18 }
  0x3b   : > { %p44_p9 = scmp.eq.s32.totalorder %s8951_s20, 0  ;;  %p8379_p13 = scmp.lt.s32.totalorder %s8951_s20, 2 }
  0x3c   : > { %s9122_s12 = scalar_select %p34_p1, %s8947_s19, %s36_s29  }
  0x3d   : > { %p45_p0 = por %p44_p9, %p43_p12  ;;  %p9126_p3 = por %p283_p2, %p43_p12 }
  0x3e   : > { %8367 = dma.hbm_to_vmem [thread:$0]  (!%p9072_p11), %s12133_s9, 9216, %s353_s13, [#allocation10], %s12077_s15, %s12077_s15, %s12078_s16  }
  0x3f   : > { %12134 = sst [smem:[#allocation17_spill]] %s9122_s12  ;;  %s369_s27 = sand.u32 1, %s8947_s19  }
  0x40   : > { %s12135_s14 = scalar_select %p9126_p3, 1, 0 }
  0x41   : > { %s7635_s22 = sshll.u32 %s8951_s20, 10  ;;  %s7147_s13 = sshll.u32 %s369_s27, 6 }
  0x42   : > { %s9135_s16 = scalar_lea.hbm %s12064_s0, %s7635_s22  ;;  %s373_s28 = scalar_lea.vmem [#allocation3], %s7147_s13 }
  0x43   : > { %s381_s29 = sshll.u32 %s373_s28, 4  ;;  %p9137_p11 = pnand %p8379_p13, %p45_p0  ;;  %s9141_s29 = int_to_ptr.vmem [resolvable:$true] %s381_s29 }
  0x44   : > { %s9143_s5 = scalar_lea.sflag [#allocation4], %s369_s27  ;;  %s8851_s9 = scalar_lea.hbm %s9135_s16, 1024 }
  0x45   : > { %p8852_p2 = scmp.ne.s32.totalorder %s9135_s16, %s8851_s9  ;;  %p8853_p5 = pneg %p9137_p11 }
  0x46   : > { %s8856_s13 = scalar_lea.hbm %s12064_s0, 2048  ;;  %p8857_p1 = scmp.lt.s32.totalorder %s9135_s16, %s12064_s0 }
  0x47   : > { %p8854_p10 = pnand %p8853_p5, %p8852_p2  ;;  %p8858_p12 = scmp.lt.s32.totalorder %s8856_s13, %s8851_s9 }
  0x49   : > { %p8855_p7 = pneg %p8854_p10  ;;  %p8859_p9 = por %p8858_p12, %p8857_p1 }
  0x4b   : > { %p8860_p13 = pnand %p8859_p9, %p8855_p7 }
  0x4d   : > { %8863 = shalt.err (!%p8860_p13)
}
  0x4e   : > { %s8864_s27 = scalar_lea.vmem %s9141_s29, 1024  ;;  %s8958_s12 = smov [#allocation3]  }
  0x4f   : > { %p8865_p0 = scmp.ne.s32.totalorder %s9141_s29, %s8864_s27  ;;  %s8869_s19 = sshll.u32 %s8958_s12, 4  ;;  %s8870_s19 = int_to_ptr.vmem [resolvable:$false] %s8869_s19 }
  0x50   : > { %s8871_s15 = scalar_lea.vmem %s8870_s19, 2048  ;;  %p8872_p10 = scmp.lt.s32.totalorder %s9141_s29, %s8870_s19 }
  0x51   : > { %p8867_p6 = pnand %p8865_p0, %p8853_p5  ;;  %p8873_p3 = scmp.lt.s32.totalorder %s8871_s15, %s8864_s27 }
  0x53   : > { %p8868_p2 = pneg %p8867_p6  ;;  %p8874_p4 = por %p8873_p3, %p8872_p10 }
  0x55   : > { %p8875_p8 = pnand %p8874_p4, %p8868_p2 }
  0x57   : > { %8878 = shalt.err (!%p8875_p8)
}
  0x58   : > { %s12137_s9 = smov 4   ;;  %s12138_s22 = smov 64  }
  0x59   : > { %8371 = dma.hbm_to_vmem [thread:$0]  (!%p9137_p11), %s9135_s16, 1024, %s9141_s29, %s9143_s5, %s12138_s22, %s12138_s22, %s12137_s9  }
  0x5a   : > { %p12139_p6 = scmp.ne.s32.totalorder %s12129_s25, 0 }
  0x5c   : > { %393 = sbr.rel (%p12139_p6) target bundleno = 1358 (0x54e), region = 64 }
  0x61   : > { %s9170_s12 = sand.u32 1, %s8943_s18   ;;  %p12140_p4 = scmp.ne.s32.totalorder %s12127_s23, 0 }
  0x62   : > { %s7152_s19 = sshll.u32 %s9170_s12, 6  ;;  %s396_s13 = scalar_lea.sflag [#allocation4], %s9170_s12 }
  0x63   : > { %s9174_s26 = scalar_lea.vmem [#allocation3], %s7152_s19 }
  0x64   : > { %8922 = dma.done.wait (%p12140_p4), %s396_s13, 1024  }
  0x65   : > { %8924 = vsyncadd (%p12140_p4), %s396_s13, 4294966272  ;;  %p12141_p8 = scmp.eq.s32.totalorder %s9044_s21, 0 }
  0x67   : > { %8926 = dma.done.wait (%p12141_p8), [#allocation7], 10240   ;;  %p12142_p3 = pmov %p12141_p8 }
  0x69   : > { %8928 = vsyncadd (%p12142_p3), [#allocation7], 4294957056  ;;  %p12143_p11 = pmov %p12142_p3 }
  0x6a   : > { %p12144_p5 = pmov %p12142_p3 }
  0x6b   : > { %8930 = dma.done.wait (%p12143_p11), [#allocation10], 9216  }
  0x6c   : > { %8932 = vsyncadd (%p12144_p5), [#allocation10], 4294958080  ;;  %v8424_v0 = vld [vmem:[#allocation6 + $0x38] sm:$0xff]   ;;  %v8425_v1 = vld [vmem:[#allocation6 + $0x30] sm:$0xff]   ;;  %vm694_vm0 = vcmask 1040384   ;;  %v12145_v17 = vmov 0 }
  0x6d   : > { %8230 = vmatprep.subr.bf16.mxu0 %v8424_v0  ;;  %v8426_v2 = vld [vmem:[#allocation6 + $0x28] sm:$0xff]   ;;  %v8427_v3 = vld [vmem:[#allocation6 + $0x20] sm:$0xff]   ;;  %v8428_v5 = vld [vmem:[#allocation6 + $0x18] sm:$0xff]   ;;  %vm695_vm1 = vsmask.f32 256  ;;  %v12148_v20 = vmov 0 }
  0x6e   : > { %8231 = vmatpush3.bf16.msra.mxu0 %v8424_v0  ;;  %v8432_v4 = vld [vmem:[%s9174_s26] sm:$0xff]   ;;  %v8429_v6 = vld [vmem:[#allocation6 + $0x10] sm:$0xff]   ;;  %v8430_v7 = vld [vmem:[#allocation6 + $0x8] sm:$0xff]   ;;  %vm757_vm3 = vsmask.f32 7938  ;;  %v8959_v39 = vmov 0  }
  0x6f   : > { %8232 = vmatprep.subr.bf16.mxu0 %v8425_v1  ;;  %8246 = vmatprep.mubr.bf16.mxu0 %v8432_v4  ;;  %v8431_v8 = vld [vmem:[#allocation6] sm:$0xff]   ;;  %v8433_v9 = vld [vmem:[%s9174_s26 + $0x8] sm:$0xff]   ;;  %v8434_v10 = vld [vmem:[%s9174_s26 + $0x10] sm:$0xff]   ;;  %685 = vst [vmem:[#allocation2] sm:$0xf] %v8959_v39  ;;  %vm1298_vm5 = vcmask 1043456  }
  0x70   : > { %v8435_v11 = vld [vmem:[%s9174_s26 + $0x18] sm:$0xff]   ;;  %v8436_v12 = vld [vmem:[%s9174_s26 + $0x20] sm:$0xff]   ;;  %v8437_v13 = vld [vmem:[%s9174_s26 + $0x28] sm:$0xff]   ;;  %686 = vst [vmem:[#allocation2 + $0x4] sm:$0x1] %v8959_v39  ;;  %vm1703_vm6 = vcmask 1042432  }
  0x71   : > { %v8438_v14 = vld [vmem:[%s9174_s26 + $0x30] sm:$0xff]   ;;  %v8439_v15 = vld [vmem:[%s9174_s26 + $0x38] sm:$0xff]   ;;  %vm9196_vm2 = vmand %vm694_vm0, %vm695_vm1  ;;  %687 = vst [vmem:[#allocation2 + $0x50] sm:$0xf] %v8959_v39  ;;  %vm1704_vm7 = vcmask 1046532   ;;  %s7156_s1 = sshll.u32 %s9170_s12, 7 }
  0x72   : > { %8233 = vmatpush3.bf16.msra.mxu0 %v8425_v1  ;;  %v715_v16 = vld [vmem:[#allocation2 + $0x30] sm:$0x1]  ;;  %v12146_v17 = vsel %vm9196_vm2, 4294967295, %v12145_v17  ;;  %v777_v18 = vld [vmem:[#allocation2 + $0x34] sm:$0x1]  ;;  %vm9203_vm4 = vmand %vm694_vm0, %vm757_vm3  ;;  %s11969_s5 = scalar_lea.vmem [#allocation11], %s7156_s1 }
  0x73   : > { %8234 = vmatprep.subr.bf16.mxu0 %v8426_v2  ;;  %12147 = vst [vmem:[#allocation18_spill] sm:$0xff] %v12146_v17  ;;  %v716_v19 = vsel %vm9196_vm2, 0, %v715_v16  ;;  %v12149_v20 = vsel %vm9203_vm4, 4294967295, %v12148_v20  ;;  %v778_v21 = vsel %vm9203_vm4, 0, %v777_v18  ;;  %v8440_v22 = vld [vmem:[#allocation8 + $0xf8] sm:$0xff]   ;;  %v8442_v24 = vld [vmem:[#allocation8 + $0xf0] sm:$0xff]   ;;  %vm9538_vm8 = vmand %vm1298_vm5, %vm757_vm3 }
  0x74   : > { %12150 = vst [vmem:[#allocation19_spill] sm:$0xff] %v12149_v20  ;;  %717 = vst [vmem:[#allocation2 + $0x30] sm:$0x1] %v716_v19  ;;  %v8441_v23 = vld [vmem:[#allocation8 + $0xb8] sm:$0xff]   ;;  %v8443_v25 = vld [vmem:[#allocation8 + $0xb0] sm:$0xff]   ;;  %s7669_s23 = sshll.u32 %s9044_s21, 11 }
  0x75   : > { %779 = vst [vmem:[#allocation2 + $0x34] sm:$0x1] %v778_v21  ;;  %v8444_v26 = vld [vmem:[#allocation8 + $0x78] sm:$0xff]   ;;  %v8446_v28 = vld [vmem:[#allocation8 + $0xe8] sm:$0xff]   ;;  %v703_v31 = vld [vmem:[#allocation2 + $0x10] sm:$0x1]  ;;  %s12015_s21 = scalar_lea.hbm %s12075_s11, %s7669_s23 }
  0x76   : > { %8235 = vmatpush3.bf16.msra.mxu0 %v8426_v2  ;;  %v8445_v27 = vld [vmem:[#allocation8 + $0x38] sm:$0xff]   ;;  %7686 = vmatprep.subr.bf16.mxu1 %v8444_v26  ;;  %v8447_v29 = vld [vmem:[#allocation8 + $0xa8] sm:$0xff]   ;;  %v8448_v33 = vld [vmem:[#allocation8 + $0x70] sm:$0xff]   ;;  %v704_v35 = vsel %vm9196_vm2, 0, %v703_v31  ;;  %688 = vst [vmem:[#allocation2 + $0x54] sm:$0x1] %v8959_v39 }
  0x77   : > { %8236 = vmatprep.subr.bf16.mxu0 %v8427_v3  ;;  %7687 = vmatpush3.bf16.msra.mxu1 %v8445_v27  ;;  %v700_v30 = vld [vmem:[#allocation2 + $0x8] sm:$0x1]  ;;  %v762_v32 = vld [vmem:[#allocation2 + $0xc] sm:$0x1]  ;;  %v8449_v37 = vld [vmem:[#allocation8 + $0x30] sm:$0xff]   ;;  %s7039_s25 = sshll.u32 %s11969_s5, 4  ;;  %s12017_s25 = int_to_ptr.vmem [resolvable:$true] %s7039_s25 }
  0x78   : > { %v701_v34 = vsel %vm9196_vm2, 0, %v700_v30  ;;  %v763_v36 = vsel %vm9203_vm4, 0, %v762_v32  ;;  %v8450_v38 = vld [vmem:[#allocation8 + $0xe0] sm:$0xff]   ;;  %705 = vst [vmem:[#allocation2 + $0x10] sm:$0x1] %v704_v35  ;;  %7688 = vmatprep.subr.bf16.mxu1 %v8448_v33  ;;  %v8452_v46 = vld [vmem:[#allocation8 + $0x68] sm:$0xff]   ;;  %vm9568_vm11 = vmor %vm1703_vm6, %vm1704_vm7 }
  0x79   : > { %702 = vst [vmem:[#allocation2 + $0x8] sm:$0x1] %v701_v34  ;;  %764 = vst [vmem:[#allocation2 + $0xc] sm:$0x1] %v763_v36  ;;  %v706_v40 = vld [vmem:[#allocation2 + $0x18] sm:$0x1] }
  0x7a   : > { %8237 = vmatpush3.bf16.msra.mxu0 %v8427_v3  ;;  %690 = vst [vmem:[#allocation2 + $0x48] sm:$0xf] %v8959_v39  ;;  %691 = vst [vmem:[#allocation2 + $0x4c] sm:$0x1] %v8959_v39  ;;  %v8451_v41 = vld [vmem:[#allocation8 + $0xa0] sm:$0xff]   ;;  %v707_v42 = vsel %vm9196_vm2, 0, %v706_v40 }
  0x7b   : > { %8238 = vmatprep.subr.bf16.mxu0 %v8428_v5  ;;  %692 = vst [vmem:[#allocation2 + $0x98] sm:$0xf] %v8959_v39  ;;  %693 = vst [vmem:[#allocation2 + $0x9c] sm:$0x1] %v8959_v39  ;;  %v709_v43 = vld [vmem:[#allocation2 + $0x20] sm:$0x1]  ;;  %7689 = vmatpush3.bf16.msra.mxu1 %v8449_v37 }
  0x7c   : > { %708 = vst [vmem:[#allocation2 + $0x18] sm:$0x1] %v707_v42  ;;  %v710_v44 = vsel %vm9196_vm2, 0, %v709_v43  ;;  %v765_v45 = vld [vmem:[#allocation2 + $0x14] sm:$0x1]  ;;  %v8453_v49 = vld [vmem:[#allocation8 + $0x28] sm:$0xff]   ;;  %7690 = vmatprep.subr.bf16.mxu1 %v8452_v46 }
  0x7d   : > { %711 = vst [vmem:[#allocation2 + $0x20] sm:$0x1] %v710_v44  ;;  %v766_v47 = vsel %vm9203_vm4, 0, %v765_v45  ;;  %v768_v48 = vld [vmem:[#allocation2 + $0x1c] sm:$0x1]  ;;  %v8456_v57 = vld [vmem:[#allocation8 + $0x60] sm:$0xff]  }
  0x7e   : > { %8239 = vmatpush3.bf16.msra.mxu0 %v8428_v5  ;;  %v8454_v50 = vld [vmem:[#allocation8 + $0xd8] sm:$0xff]   ;;  %767 = vst [vmem:[#allocation2 + $0x14] sm:$0x1] %v766_v47  ;;  %v769_v51 = vsel %vm9203_vm4, 0, %v768_v48  ;;  %v745_v52 = vld [vmem:[#allocation2 + $0x80] sm:$0x1] }
  0x7f   : > { %8240 = vmatprep.subr.bf16.mxu0 %v8429_v6  ;;  %v807_v53 = vld [vmem:[#allocation2 + $0x84] sm:$0x1]  ;;  %770 = vst [vmem:[#allocation2 + $0x1c] sm:$0x1] %v769_v51  ;;  %v746_v54 = vsel %vm9196_vm2, 0, %v745_v52  ;;  %7691 = vmatpush3.bf16.msra.mxu1 %v8453_v49  ;;  %v8455_v56 = vld [vmem:[#allocation8 + $0x98] sm:$0xff]  }
  0x80   : > { %v808_v55 = vsel %vm9203_vm4, 0, %v807_v53  ;;  %747 = vst [vmem:[#allocation2 + $0x80] sm:$0x1] %v746_v54  ;;  %v8457_v58 = vld [vmem:[#allocation8 + $0x20] sm:$0xff]   ;;  %v8458_v59 = vld [vmem:[#allocation8 + $0xd0] sm:$0xff]   ;;  %7692 = vmatprep.subr.bf16.mxu1 %v8456_v57  ;;  %v8460_v1 = vld [vmem:[#allocation8 + $0x58] sm:$0xff]  }
  0x81   : > { %809 = vst [vmem:[#allocation2 + $0x84] sm:$0x1] %v808_v55  ;;  %v759_v60 = vld [vmem:[#allocation2 + $0x4] sm:$0x1]  ;;  %v8459_v61 = vld [vmem:[#allocation8 + $0x90] sm:$0xff]   ;;  %v8461_v2 = vld [vmem:[#allocation8 + $0x18] sm:$0xff]  }
  0x82   : > { %8241 = vmatpush3.bf16.msra.mxu0 %v8429_v6  ;;  %v760_v62 = vsel %vm9203_vm4, 0, %v759_v60  ;;  %v712_v63 = vld [vmem:[#allocation2 + $0x28] sm:$0x1]  ;;  %v697_v4 = vld [vmem:[#allocation2] sm:$0x1]  ;;  %s7025_s28 = scalar_lea.sflag [#allocation5], %s9170_s12 }
  0x83   : > { %8242 = vmatprep.subr.bf16.mxu0 %v8430_v7  ;;  %7693 = vmatpush3.bf16.msra.mxu1 %v8457_v58  ;;  %761 = vst [vmem:[#allocation2 + $0x4] sm:$0x1] %v760_v62  ;;  %v713_v0 = vsel %vm9196_vm2, 0, %v712_v63  ;;  %v8462_v3 = vld [vmem:[#allocation8 + $0xc8] sm:$0xff]   ;;  %v698_v6 = vsel %vm9196_vm2, 0, %v697_v4  ;;  %s8879_s27 = scalar_lea.vmem %s12017_s25, 2048 }
  0x84   : > { %714 = vst [vmem:[#allocation2 + $0x28] sm:$0x1] %v713_v0  ;;  %7694 = vmatprep.subr.bf16.mxu1 %v8460_v1  ;;  %v8463_v5 = vld [vmem:[#allocation8 + $0x88] sm:$0xff]   ;;  %699 = vst [vmem:[#allocation2] sm:$0x1] %v698_v6  ;;  %p8880_p7 = scmp.ne.s32.totalorder %s12017_s25, %s8879_s27  ;;  %p12350_p1 = scmp.ne.s32.totalorder %s12135_s14, 0 }
  0x85   : > { %v8469_v16 = vld [vmem:[#allocation8 + $0x48] sm:$0xff]   ;;  %v721_v19 = vld [vmem:[#allocation2 + $0x40] sm:$0x1]  ;;  %v780_v30 = vld [vmem:[#allocation2 + $0x3c] sm:$0x1]  ;;  %s8960_s15 = smov [#allocation11]  }
  0x86   : > { %8243 = vmatpush3.bf16.msra.mxu0 %v8430_v7  ;;  %v771_v7 = vld [vmem:[#allocation2 + $0x24] sm:$0x1]  ;;  %v8470_v21 = vld [vmem:[#allocation8 + $0x8] sm:$0xff]   ;;  %v9244_v27 = vld [vmem:[%s12066_s2] ss:$0 sm:$0xff]  ;;  %v781_v32 = vsel %vm9203_vm4, 0, %v780_v30  ;;  %p8881_p12 = pnand %p8880_p7, %p12350_p1 }
  0x87   : > { %8244 = vmatprep.subr.bf16.mxu0 %v8431_v8  ;;  %7695 = vmatpush3.bf16.msra.mxu1 %v8461_v2  ;;  %782 = vst [vmem:[#allocation2 + $0x3c] sm:$0x1] %v781_v32  ;;  %v730_v4 = vld [vmem:[#allocation2 + $0x58] sm:$0x1]  ;;  %vm1428_vm9 = vsmask.f32 3328 }
  0x88   : > { %vm1429_vm10 = vsmask.f32 7440  ;;  %v8482_v20 = vld [vmem:[#allocation8 + $0x168] sm:$0xff]   ;;  %p8882_p9 = pneg %p8881_p12  ;;  %s8883_s9 = sshll.u32 %s8960_s15, 4  ;;  %s8884_s9 = int_to_ptr.vmem [resolvable:$false] %s8883_s9 }
  0x89   : > { %vm9601_vm12 = vmor %vm1428_vm9, %vm1429_vm10  ;;  %s8885_s22 = scalar_lea.vmem %s8884_s9, 4096  ;;  %p8886_p13 = scmp.lt.s32.totalorder %s12017_s25, %s8884_s9 }
  0x8a   : > { %8245 = vmatpush3.bf16.msra.mxu0 %v8431_v8  ;;  %v774_v8 = vld [vmem:[#allocation2 + $0x2c] sm:$0x1]  ;;  %p8887_p0 = scmp.lt.s32.totalorder %s8885_s22, %s8879_s27 }
  0x8b   : > { %7750 = vmatprep.subr.bf16.mxu0 %v8440_v22  ;;  %v722_v22 = vsel %vm9196_vm2, 0, %v721_v19 }
  0x8c   : > { %723 = vst [vmem:[#allocation2 + $0x40] sm:$0x1] %v722_v22  ;;  %p8888_p2 = por %p8887_p0, %p8886_p13 }
  0x8d   : > { %8247 = vmatmul.mubr.bf16.vlgmr.msra.gmra.mxu0 %v8433_v9  ;;  %v8464_v9 = vld [vmem:[#allocation8 + $0x50] sm:$0xff]  }
  0x8e   : > { %8250 = vmatprep.mubr.bf16.mxu0 %v8434_v10  ;;  %7751 = vmatpush3.bf16.msra.mxu0 %v8441_v23  ;;  %v772_v10 = vsel %vm9203_vm4, 0, %v771_v7  ;;  %v8472_v23 = vld [vmem:[#allocation8 + $0x40] sm:$0xff]   ;;  %p8889_p10 = pnand %p8888_p2, %p8882_p9 }
  0x8f   : > { %7752 = vmatprep.subr.bf16.mxu0 %v8442_v24  ;;  %773 = vst [vmem:[#allocation2 + $0x24] sm:$0x1] %v772_v10  ;;  %7696 = vmatprep.subr.bf16.mxu1 %v8464_v9  ;;  %v8473_v24 = vld [vmem:[#allocation8] sm:$0xff]  }
  0x92   : > { %7753 = vmatpush3.bf16.msra.mxu0 %v8443_v25 }
  0x93   : > { %7754 = vmatprep.subr.bf16.mxu0 %v8446_v28 }
  0x95   : > { %8251 = vmatmul.mubr.bf16.gmra.mxu0 %v8435_v11  ;;  %v775_v11 = vsel %vm9203_vm4, 0, %v774_v8 }
  0x96   : > { %8254 = vmatprep.mubr.bf16.mxu0 %v8436_v12  ;;  %7755 = vmatpush3.bf16.msra.mxu0 %v8447_v29  ;;  %v8465_v12 = vld [vmem:[#allocation8 + $0x10] sm:$0xff]   ;;  %776 = vst [vmem:[#allocation2 + $0x2c] sm:$0x1] %v775_v11  ;;  %v8474_v29 = vld [vmem:[#allocation8 + $0x178] sm:$0xff]   ;;  %v731_v11 = vsel %vm9196_vm2, 0, %v730_v4 }
  0x97   : > { %7756 = vmatprep.subr.bf16.mxu0 %v8450_v38  ;;  %7697 = vmatpush3.bf16.msra.mxu1 %v8465_v12  ;;  %732 = vst [vmem:[#allocation2 + $0x58] sm:$0x1] %v731_v11  ;;  %v795_v11 = vld [vmem:[#allocation2 + $0x64] sm:$0x1] }
  0x98   : > { %7698 = vmatprep.subr.bf16.mxu1 %v8469_v16 }
  0x9a   : > { %7757 = vmatpush3.bf16.msra.mxu0 %v8451_v41 }
  0x9b   : > { %7758 = vmatprep.subr.bf16.mxu0 %v8454_v50  ;;  %7699 = vmatpush3.bf16.msra.mxu1 %v8470_v21 }
  0x9c   : > { %7700 = vmatprep.subr.bf16.mxu1 %v8472_v23 }
  0x9d   : > { %8255 = vmatmul.mubr.bf16.gmra.mxu0 %v8437_v13  ;;  %v8466_v13 = vld [vmem:[#allocation8 + $0xc0] sm:$0xff]  }
  0x9e   : > { %8258 = vmatprep.mubr.bf16.mxu0 %v8438_v14  ;;  %7759 = vmatpush3.bf16.msra.mxu0 %v8455_v56  ;;  %v8467_v14 = vld [vmem:[#allocation8 + $0x80] sm:$0xff]  }
  0x9f   : > { %7760 = vmatprep.subr.bf16.mxu0 %v8458_v59  ;;  %7701 = vmatpush3.bf16.msra.mxu1 %v8473_v24 }
  0xa0   : > { %7814 = vmatprep.subr.bf16.mxu1 %v8474_v29 }
  0xa2   : > { %7761 = vmatpush3.bf16.msra.mxu0 %v8459_v61 }
  0xa3   : > { %7762 = vmatprep.subr.bf16.mxu0 %v8462_v3 }
  0xa5   : > { %8259 = vmatmul.mubr.bf16.gmra.mxu0 %v8439_v15  ;;  %v718_v15 = vld [vmem:[#allocation2 + $0x38] sm:$0x1] }
  0xa6   : > { %7763 = vmatpush3.bf16.msra.mxu0 %v8463_v5  ;;  %v719_v18 = vsel %vm9196_vm2, 0, %v718_v15  ;;  %v733_v5 = vld [vmem:[#allocation2 + $0x60] sm:$0x1] }
  0xa7   : > { %7764 = vmatprep.subr.bf16.mxu0 %v8466_v13  ;;  %720 = vst [vmem:[#allocation2 + $0x38] sm:$0x1] %v719_v18  ;;  %v734_v12 = vsel %vm9196_vm2, 0, %v733_v5 }
  0xa8   : > { %735 = vst [vmem:[#allocation2 + $0x60] sm:$0x1] %v734_v12 }
  0xaa   : > { %7765 = vmatpush3.bf16.msra.mxu0 %v8467_v14 }
 0x14d   : > { %v8248_v25 = vpop.f32.mrf.mxu0 }
 0x14e   : > { %v9252_v34 = vadd.f32 %v8248_v25, %v9244_v27 }
 0x14f   : > { %v622_v26 = vpop.f32.mrf.mxu0 }
 0x150   : > { %v9247_v31 = vadd.f32 %v9244_v27, %v622_v26  ;;  %12152 = vst [vmem:[#allocation21_spill] sm:$0xff] %v9252_v34  ;;  %v849_v42 = vmul.f32 %v9252_v34, %v9252_v34 }
 0x151   : > { %v8249_v28 = vpop.f32.mrf.mxu0 }
 0x152   : > { %12151 = vst [vmem:[#allocation20_spill] sm:$0xff] %v9247_v31  ;;  %v847_v37 = vmul.f32 %v9247_v31, %v9247_v31  ;;  %v9260_v38 = vadd.f32 %v8249_v28, %v9244_v27 }
 0x153   : > { %v625_v33 = vpop.f32.mrf.mxu0 }
 0x154   : > { %v9255_v35 = vadd.f32 %v9244_v27, %v625_v33  ;;  %12154 = vst [vmem:[#allocation23_spill] sm:$0xff] %v9260_v38  ;;  %v850_v47 = vmul.f32 %v9260_v38, %v9260_v38 }
 0x155   : > { %v8252_v36 = vpop.f32.mrf.mxu0 }
 0x156   : > { %12153 = vst [vmem:[#allocation22_spill] sm:$0xff] %v9255_v35  ;;  %v821_v39 = vadd.f32 %v9255_v35, %v9247_v31  ;;  %v848_v40 = vmul.f32 %v9255_v35, %v9255_v35  ;;  %v9276_v50 = vadd.f32 %v8252_v36, %v9244_v27 }
 0x157   : > { %v638_v41 = vpop.f32.mrf.mxu0 }
 0x158   : > { %v822_v43 = vadd.f32 %v821_v39, %v9252_v34  ;;  %v863_v44 = vadd.f32 %v848_v40, %v847_v37  ;;  %v9270_v45 = vadd.f32 %v9244_v27, %v638_v41  ;;  %12156 = vst [vmem:[#allocation25_spill] sm:$0xff] %v9276_v50  ;;  %v853_v62 = vmul.f32 %v9276_v50, %v9276_v50 }
 0x159   : > { %v8253_v46 = vpop.f32.mrf.mxu0 }
 0x15a   : > { %12155 = vst [vmem:[#allocation24_spill] sm:$0xff] %v9270_v45  ;;  %v864_v48 = vadd.f32 %v863_v44, %v849_v42  ;;  %v823_v49 = vadd.f32 %v822_v43, %v9260_v38  ;;  %v851_v53 = vmul.f32 %v9270_v45, %v9270_v45  ;;  %v9285_v58 = vadd.f32 %v8253_v46, %v9244_v27  ;;  %v792_v44 = vld [vmem:[#allocation2 + $0x5c] sm:$0x1]  ;;  %v736_v46 = vld [vmem:[#allocation2 + $0x68] sm:$0x1] }
 0x15b   : > { %v641_v51 = vpop.f32.mrf.mxu0 }
 0x15c   : > { %v824_v52 = vadd.f32 %v823_v49, %v9270_v45  ;;  %v865_v54 = vadd.f32 %v864_v48, %v850_v47  ;;  %v9282_v55 = vadd.f32 %v9244_v27, %v641_v51  ;;  %12158 = vst [vmem:[#allocation27_spill] sm:$0xff] %v9285_v58  ;;  %v854_v6 = vmul.f32 %v9285_v58, %v9285_v58  ;;  %v739_v47 = vld [vmem:[#allocation2 + $0x70] sm:$0x1] }
 0x15d   : > { %v8256_v56 = vpop.f32.mrf.mxu0 }
 0x15e   : > { %12157 = vst [vmem:[#allocation26_spill] sm:$0xff] %v9282_v55  ;;  %v866_v57 = vadd.f32 %v865_v54, %v851_v53  ;;  %v825_v59 = vadd.f32 %v824_v52, %v9282_v55  ;;  %v852_v60 = vmul.f32 %v9282_v55, %v9282_v55  ;;  %v9297_v2 = vadd.f32 %v8256_v56, %v9244_v27 }
 0x15f   : > { %v654_v61 = vpop.f32.mrf.mxu0  ;;  %v793_v56 = vsel %vm9203_vm4, 0, %v792_v44 }
 0x160   : > { %v826_v63 = vadd.f32 %v825_v59, %v9276_v50  ;;  %v867_v0 = vadd.f32 %v866_v57, %v852_v60  ;;  %v9294_v1 = vadd.f32 %v9244_v27, %v654_v61  ;;  %12160 = vst [vmem:[#allocation29_spill] sm:$0xff] %v9297_v2  ;;  %v857_v18 = vmul.f32 %v9297_v2, %v9297_v2 }
 0x161   : > { %v8257_v3 = vpop.f32.mrf.mxu0  ;;  %v737_v57 = vsel %vm9196_vm2, 0, %v736_v46  ;;  %794 = vst [vmem:[#allocation2 + $0x5c] sm:$0x1] %v793_v56 }
 0x162   : > { %12159 = vst [vmem:[#allocation28_spill] sm:$0xff] %v9294_v1  ;;  %v827_v7 = vadd.f32 %v826_v63, %v9285_v58  ;;  %v868_v8 = vadd.f32 %v867_v0, %v853_v62  ;;  %v9303_v9 = vadd.f32 %v8257_v3, %v9244_v27  ;;  %v855_v15 = vmul.f32 %v9294_v1, %v9294_v1 }
 0x163   : > { %v657_v10 = vpop.f32.mrf.mxu0  ;;  %738 = vst [vmem:[#allocation2 + $0x68] sm:$0x1] %v737_v57  ;;  %v740_v62 = vsel %vm9196_vm2, 0, %v739_v47  ;;  %v748_v57 = vld [vmem:[#allocation2 + $0x88] sm:$0x1] }
 0x164   : > { %12161 = vst [vmem:[#allocation30_spill] sm:$0xff] %v9303_v9  ;;  %v828_v13 = vrot.slane %v827_v7, 4  ;;  %v869_v14 = vadd.f32 %v868_v8, %v854_v6  ;;  %v9312_v16 = vadd.f32 %v9244_v27, %v657_v10  ;;  %v858_v25 = vmul.f32 %v9303_v9, %v9303_v9  ;;  %741 = vst [vmem:[#allocation2 + $0x70] sm:$0x1] %v740_v62 }
 0x165   : > { %v8260_v19 = vpop.f32.mrf.mxu0 }
 0x166   : > { %12162 = vst [vmem:[#allocation31_spill] sm:$0xff] %v9312_v16  ;;  %v829_v21 = vadd.f32 %v828_v13, %v827_v7  ;;  %v870_v22 = vrot.slane %v869_v14, 4  ;;  %v834_v23 = vadd.f32 %v9312_v16, %v9294_v1  ;;  %v856_v24 = vmul.f32 %v9312_v16, %v9312_v16  ;;  %v798_v13 = vld [vmem:[#allocation2 + $0x6c] sm:$0x1] }
 0x167   : > { %v670_v26 = vpop.f32.mrf.mxu0  ;;  %v9331_v53 = vadd.f32 %v8260_v19, %v9244_v27  ;;  %v727_v19 = vld [vmem:[#allocation2 + $0x50] sm:$0x1] }
 0x168   : > { %v830_v28 = vrot.slane %v829_v21, 2  ;;  %v871_v29 = vadd.f32 %v870_v22, %v869_v14  ;;  %v835_v30 = vadd.f32 %v834_v23, %v9297_v2  ;;  %v876_v32 = vadd.f32 %v856_v24, %v855_v15  ;;  %v742_v14 = vld [vmem:[#allocation2 + $0x78] sm:$0x1] }
 0x169   : > { %v9324_v33 = vadd.f32 %v9244_v27, %v670_v26  ;;  %v8261_v36 = vpop.f32.mrf.mxu0  ;;  %12164 = vst [vmem:[#allocation33_spill] sm:$0xff] %v9331_v53  ;;  %v861_v6 = vmul.f32 %v9331_v53, %v9331_v53  ;;  %v728_v23 = vsel %vm9196_vm2, 0, %v727_v19 }
 0x16a   : > { %v831_v37 = vadd.f32 %v830_v28, %v829_v21  ;;  %v872_v39 = vrot.slane %v871_v29, 2  ;;  %v877_v40 = vadd.f32 %v876_v32, %v857_v18  ;;  %v836_v41 = vadd.f32 %v835_v30, %v9303_v9  ;;  %v789_v21 = vld [vmem:[#allocation2 + $0x54] sm:$0x1]  ;;  %729 = vst [vmem:[#allocation2 + $0x50] sm:$0x1] %v728_v23 }
 0x16b   : > { %12163 = vst [vmem:[#allocation32_spill] sm:$0xff] %v9324_v33  ;;  %v859_v42 = vmul.f32 %v9324_v33, %v9324_v33  ;;  %v673_v43 = vpop.f32.mrf.mxu0  ;;  %v9343_v63 = vadd.f32 %v8261_v36, %v9244_v27  ;;  %v790_v24 = vsel %vm9203_vm4, 0, %v789_v21  ;;  %v743_v30 = vsel %vm9196_vm2, 0, %v742_v14 }
 0x16c   : > { %v832_v48 = vrot.slane %v831_v37, 1  ;;  %v873_v49 = vadd.f32 %v872_v39, %v871_v29  ;;  %v837_v51 = vadd.f32 %v836_v41, %v9324_v33  ;;  %v878_v52 = vadd.f32 %v877_v40, %v858_v25  ;;  %791 = vst [vmem:[#allocation2 + $0x54] sm:$0x1] %v790_v24  ;;  %744 = vst [vmem:[#allocation2 + $0x78] sm:$0x1] %v743_v30 }
 0x16d   : > { %v9334_v54 = vadd.f32 %v9244_v27, %v673_v43  ;;  %12166 = vst [vmem:[#allocation35_spill] sm:$0xff] %v9343_v63  ;;  %v862_v12 = vmul.f32 %v9343_v63, %v9343_v63  ;;  %v796_v25 = vsel %vm9203_vm4, 0, %v795_v11  ;;  %v799_v29 = vsel %vm9203_vm4, 0, %v798_v13 }
 0x16e   : > { %v833_v59 = vadd.f32 %v832_v48, %v831_v37  ;;  %v874_v60 = vrot.slane %v873_v49, 1  ;;  %v879_v61 = vadd.f32 %v878_v52, %v859_v42  ;;  %797 = vst [vmem:[#allocation2 + $0x64] sm:$0x1] %v796_v25  ;;  %800 = vst [vmem:[#allocation2 + $0x6c] sm:$0x1] %v799_v29  ;;  %v8489_v48 = vld [vmem:[#allocation8 + $0x1f8] sm:$0xff]  }
 0x16f   : > { %12165 = vst [vmem:[#allocation34_spill] sm:$0xff] %v9334_v54  ;;  %v838_v0 = vadd.f32 %v837_v51, %v9334_v54  ;;  %v860_v3 = vmul.f32 %v9334_v54, %v9334_v54  ;;  %v804_v51 = vld [vmem:[#allocation2 + $0x7c] sm:$0x1]  ;;  %7878 = vmatprep.subr.bf16.mxu0 %v8489_v48 }
 0x170   : > { %v875_v4 = vadd.f32 %v874_v60, %v873_v49  ;;  %v9348_v5 = vmul.f32 0.015625, %v833_v59  ;;  %v801_v49 = vld [vmem:[#allocation2 + $0x74] sm:$0x1]  ;;  %v805_v60 = vsel %vm9203_vm4, 0, %v804_v51  ;;  %v810_v51 = vld [vmem:[#allocation2 + $0x8c] sm:$0x1] }
 0x171   : > { %v839_v7 = vadd.f32 %v838_v0, %v9331_v53  ;;  %v880_v8 = vadd.f32 %v879_v61, %v860_v3  ;;  %v802_v56 = vsel %vm9203_vm4, 0, %v801_v49  ;;  %v749_v61 = vsel %vm9196_vm2, 0, %v748_v57  ;;  %806 = vst [vmem:[#allocation2 + $0x7c] sm:$0x1] %v805_v60 }
 0x172   : > { %v891_v10 = vmul.f32 0.015625, %v875_v4  ;;  %v893_v27 = vmul.f32 %v9348_v5, %v9348_v5  ;;  %803 = vst [vmem:[#allocation2 + $0x74] sm:$0x1] %v802_v56  ;;  %v897_v62 = vsub.f32 %v9247_v31, %v9348_v5  ;;  %v898_v0 = vsub.f32 %v9255_v35, %v9348_v5  ;;  %750 = vst [vmem:[#allocation2 + $0x88] sm:$0x1] %v749_v61 }
 0x173   : > { %v840_v18 = vadd.f32 %v839_v7, %v9343_v63  ;;  %v881_v22 = vadd.f32 %v880_v8, %v861_v6  ;;  %v902_v3 = vsub.f32 %v9282_v55, %v9348_v5  ;;  %v9387_v7 = vld [vmem:[%s12067_s3] ss:$0 sm:$0xff]  ;;  %v899_v8 = vsub.f32 %v9252_v34, %v9348_v5 }
 0x174   : > { %v895_v15 = vsub.f32 %v891_v10, %v893_v27  ;;  %v900_v10 = vsub.f32 %v9260_v38, %v9348_v5  ;;  %v901_v27 = vsub.f32 %v9270_v45, %v9348_v5  ;;  %v904_v13 = vsub.f32 %v9285_v58, %v9348_v5 }
 0x175   : > { %v841_v28 = vrot.slane %v840_v18, 4  ;;  %v882_v32 = vadd.f32 %v881_v22, %v862_v12  ;;  %v903_v12 = vsub.f32 %v9276_v50, %v9348_v5 }
 0x176   : > { %v913_v26 = vadd.f32 1e-05, %v895_v15 }
 0x177   : > { %v842_v36 = vadd.f32 %v841_v28, %v840_v18  ;;  %v883_v37 = vrot.slane %v882_v32, 4  ;;  %v9402_v18 = vld [vmem:[%s12068_s4] ss:$0 sm:$0xff] }
 0x178   : > { %8632 = vrsqrt.f32 %v913_v26 }
 0x179   : > { %v843_v39 = vrot.slane %v842_v36, 2  ;;  %v884_v40 = vadd.f32 %v883_v37, %v882_v32 }
 0x17b   : > { %v844_v41 = vadd.f32 %v843_v39, %v842_v36  ;;  %v885_v42 = vrot.slane %v884_v40, 2 }
 0x17d   : > { %v845_v43 = vrot.slane %v844_v41, 1  ;;  %v886_v44 = vadd.f32 %v885_v42, %v884_v40 }
 0x17f   : > { %v846_v46 = vadd.f32 %v845_v43, %v844_v41  ;;  %v887_v47 = vrot.slane %v886_v44, 1 }
 0x181   : > { %v9368_v52 = vmul.f32 0.015625, %v846_v46  ;;  %v888_v59 = vadd.f32 %v887_v47, %v886_v44  ;;  %v751_v44 = vld [vmem:[#allocation2 + $0x90] sm:$0x1] }
 0x183   : > { %v894_v4 = vmul.f32 %v9368_v52, %v9368_v52  ;;  %v892_v11 = vmul.f32 0.015625, %v888_v59 }
 0x185   : > { %v8633_v6 = vpop.eup %8632  ;;  %v896_v19 = vsub.f32 %v892_v11, %v894_v4  ;;  %v811_v4 = vsel %vm9203_vm4, 0, %v810_v51 }
 0x186   : > { %v917_v14 = vmul.f32 %v8633_v6, %v897_v62  ;;  %v922_v15 = vmul.f32 %v8633_v6, %v902_v3  ;;  %v918_v21 = vmul.f32 %v8633_v6, %v898_v0  ;;  %v919_v22 = vmul.f32 %v8633_v6, %v899_v8  ;;  %812 = vst [vmem:[#allocation2 + $0x8c] sm:$0x1] %v811_v4 }
 0x187   : > { %v920_v23 = vmul.f32 %v8633_v6, %v900_v10  ;;  %v921_v26 = vmul.f32 %v8633_v6, %v901_v27  ;;  %v923_v28 = vmul.f32 %v8633_v6, %v903_v12  ;;  %v914_v29 = vadd.f32 1e-05, %v896_v19 }
 0x188   : > { %v944_v24 = vmul.f32 %v9387_v7, %v922_v15  ;;  %v939_v25 = vmul.f32 %v9387_v7, %v917_v14  ;;  %v940_v5 = vmul.f32 %v9387_v7, %v918_v21  ;;  %v941_v30 = vmul.f32 %v9387_v7, %v919_v22 }
 0x189   : > { %v942_v32 = vmul.f32 %v9387_v7, %v920_v23  ;;  %v943_v39 = vmul.f32 %v9387_v7, %v921_v26  ;;  %v924_v40 = vmul.f32 %v8633_v6, %v904_v13  ;;  %8634 = vrsqrt.f32 %v914_v29 }
 0x18a   : > { %v9410_v36 = vadd.f32 %v9402_v18, %v944_v24  ;;  %v9413_v37 = vadd.f32 %v9402_v18, %v939_v25  ;;  %v9417_v41 = vadd.f32 %v9402_v18, %v940_v5  ;;  %v9420_v42 = vadd.f32 %v9402_v18, %v941_v30 }
 0x18b   : > { %v9423_v43 = vadd.f32 %v9402_v18, %v942_v32  ;;  %v9428_v48 = vadd.f32 %v9402_v18, %v943_v39  ;;  %v945_v49 = vmul.f32 %v9387_v7, %v923_v28  ;;  %v946_v59 = vmul.f32 %v9387_v7, %v924_v40 }
 0x18c   : > { %v7181_v46 = vmul.f32 -1.442695, %v9410_v36  ;;  %v7176_v47 = vmul.f32 -1.442695, %v9413_v37  ;;  %v7177_v56 = vmul.f32 -1.442695, %v9417_v41  ;;  %v907_v10 = vsub.f32 %v9297_v2, %v9368_v52 }
 0x18d   : > { %v7178_v57 = vmul.f32 -1.442695, %v9420_v42  ;;  %v7179_v60 = vmul.f32 -1.442695, %v9423_v43  ;;  %v7180_v61 = vmul.f32 -1.442695, %v9428_v48  ;;  %v9437_v62 = vadd.f32 %v9402_v18, %v945_v49 }
 0x18e   : > { %8636 = vpow2.f32 %v7181_v46  ;;  %v9440_v0 = vadd.f32 %v9402_v18, %v946_v59  ;;  %v752_v3 = vsel %vm9196_vm2, 0, %v751_v44  ;;  %v910_v27 = vsub.f32 %v9334_v54, %v9368_v52 }
 0x18f   : > { %8638 = vpow2.f32 %v7176_v47  ;;  %v7182_v6 = vmul.f32 -1.442695, %v9437_v62  ;;  %753 = vst [vmem:[#allocation2 + $0x90] sm:$0x1] %v752_v3  ;;  %v908_v12 = vsub.f32 %v9303_v9, %v9368_v52  ;;  %v909_v13 = vsub.f32 %v9324_v33, %v9368_v52 }
 0x190   : > { %8640 = vpow2.f32 %v7177_v56  ;;  %v7183_v8 = vmul.f32 -1.442695, %v9440_v0  ;;  %v911_v14 = vsub.f32 %v9331_v53, %v9368_v52  ;;  %v912_v15 = vsub.f32 %v9343_v63, %v9368_v52  ;;  %v9472_v56 = vld [vmem:[#allocation2] sm:$0xf]  ;;  %v1309_v63 = vld [vmem:[#allocation2 + $0x14] sm:$0x1] }
 0x191   : > { %8642 = vpow2.f32 %v7178_v57  ;;  %v905_v28 = vsub.f32 %v9294_v1, %v9368_v52  ;;  %v906_v47 = vsub.f32 %v9312_v16, %v9368_v52 }
 0x192   : > { %8644 = vpow2.f32 %v7179_v60 }
 0x193   : > { %8646 = vpow2.f32 %v7180_v61 }
 0x194   : > { %8648 = vpow2.f32 %v7182_v6 }
 0x195   : > { %8650 = vpow2.f32 %v7183_v8 }
 0x196   : > { %v8635_v11 = vpop.eup %8634 }
 0x197   : > { %v930_v19 = vmul.f32 %v8635_v11, %v910_v27  ;;  %v927_v21 = vmul.f32 %v8635_v11, %v907_v10  ;;  %v928_v22 = vmul.f32 %v8635_v11, %v908_v12  ;;  %v929_v23 = vmul.f32 %v8635_v11, %v909_v13 }
 0x198   : > { %v931_v24 = vmul.f32 %v8635_v11, %v911_v14  ;;  %v932_v25 = vmul.f32 %v8635_v11, %v912_v15  ;;  %v925_v57 = vmul.f32 %v8635_v11, %v905_v28  ;;  %v926_v8 = vmul.f32 %v8635_v11, %v906_v47  ;;  %v783_v14 = vld [vmem:[#allocation2 + $0x44] sm:$0x1]  ;;  %v1404_v47 = vld [vmem:[#allocation2 + $0x50] sm:$0xf] }
 0x199   : > { %v952_v29 = vmul.f32 %v9387_v7, %v930_v19  ;;  %v949_v5 = vmul.f32 %v9387_v7, %v927_v21  ;;  %v950_v39 = vmul.f32 %v9387_v7, %v928_v22  ;;  %v951_v40 = vmul.f32 %v9387_v7, %v929_v23 }
 0x19a   : > { %v953_v44 = vmul.f32 %v9387_v7, %v931_v24  ;;  %v1432_v12 = vshrl.u32 %v9472_v56, 16  ;;  %v1435_v13 = vshll.u32 %v9472_v56, 16  ;;  %v947_v21 = vmul.f32 %v9387_v7, %v925_v57 }
 0x19b   : > { %v8637_v26 = vpop.eup %8636  ;;  %v9470_v49 = vadd.f32 %v9402_v18, %v952_v29  ;;  %v9475_v61 = vadd.f32 %v9402_v18, %v949_v5  ;;  %v9478_v3 = vadd.f32 %v9402_v18, %v950_v39  ;;  %v9485_v22 = vadd.f32 %v9402_v18, %v951_v40  ;;  %v724_v39 = vld [vmem:[#allocation2 + $0x48] sm:$0x1]  ;;  %v786_v40 = vld [vmem:[#allocation2 + $0x4c] sm:$0x1] }
 0x19c   : > { %v8639_v30 = vpop.eup %8638  ;;  %v1030_v32 = vadd.f32 1.0, %v8637_v26  ;;  %v954_v11 = vmul.f32 %v9387_v7, %v932_v25  ;;  %v9489_v24 = vadd.f32 %v9402_v18, %v953_v44  ;;  %v948_v28 = vmul.f32 %v9387_v7, %v926_v8 }
 0x19d   : > { %v8641_v46 = vpop.eup %8640  ;;  %v1025_v51 = vadd.f32 1.0, %v8639_v30  ;;  %v7189_v6 = vmul.f32 -1.442695, %v9470_v49  ;;  %12167 = vst [vmem:[#allocation36_spill] sm:$0xff] %v9485_v22  ;;  %v784_v29 = vsel %vm9203_vm4, 0, %v783_v14  ;;  %v1434_v5 = vrot.slane %v1432_v12, 4 }
 0x19e   : > { %v8643_v59 = vpop.eup %8642  ;;  %8652 = vrcp.f32 %v1030_v32  ;;  %v1026_v60 = vadd.f32 1.0, %v8641_v46  ;;  %12168 = vst [vmem:[#allocation37_spill] sm:$0xff] %v9489_v24  ;;  %v1437_v30 = vrot.slane %v1435_v13, 5  ;;  %v9495_v32 = vadd.f32 %v9402_v18, %v954_v11  ;;  %785 = vst [vmem:[#allocation2 + $0x44] sm:$0x1] %v784_v29 }
 0x19f   : > { %v8645_v4 = vpop.eup %8644  ;;  %8654 = vrcp.f32 %v1025_v51  ;;  %v1027_v52 = vadd.f32 1.0, %v8643_v59  ;;  %v725_v25 = vsel %vm9196_vm2, 0, %v724_v39  ;;  %v787_v44 = vsel %vm9203_vm4, 0, %v786_v40  ;;  %v9504_v51 = vld [vmem:[#allocation2 + $0x4] sm:$0x1] }
 0x1a0   : > { %v8647_v10 = vpop.eup %8646  ;;  %8656 = vrcp.f32 %v1026_v60  ;;  %v1028_v27 = vadd.f32 1.0, %v8645_v4  ;;  %12169 = vst [vmem:[#allocation38_spill] sm:$0xff] %v9495_v32  ;;  %v9502_v46 = vadd.f32 %v9402_v18, %v947_v21  ;;  %726 = vst [vmem:[#allocation2 + $0x48] sm:$0x1] %v725_v25  ;;  %v9507_v57 = vadd.f32 %v9402_v18, %v948_v28  ;;  %v9509_v59 = vld [vmem:[#allocation2] sm:$0xe] }
 0x1a1   : > { %v8649_v15 = vpop.eup %8648  ;;  %8658 = vpow2.f32 %v7189_v6  ;;  %v1029_v19 = vadd.f32 1.0, %v8647_v10  ;;  %788 = vst [vmem:[#allocation2 + $0x4c] sm:$0x1] %v787_v44  ;;  %v1438_v60 = vor.u32 %v1437_v30, %v1434_v5  ;;  %v1441_v4 = vshll.u32 %v9504_v51, 16  ;;  %v9512_v6 = vld [vmem:[#allocation2 + $0x54] sm:$0x1] }
 0x1a2   : > { %8660 = vrcp.f32 %v1027_v52  ;;  %v1031_v23 = vadd.f32 1.0, %v8649_v15  ;;  %v8651_v26 = vpop.eup %8650  ;;  %v1544_v52 = vshrl.u32 %v1404_v47, 16  ;;  %v7184_v8 = vmul.f32 -1.442695, %v9502_v46  ;;  %v1330_v29 = vld [vmem:[#allocation2 + $0x30] sm:$0xf] }
 0x1a3   : > { %8662 = vrcp.f32 %v1028_v27  ;;  %v1032_v7 = vadd.f32 1.0, %v8651_v26  ;;  %v1547_v10 = vshll.u32 %v1404_v47, 16  ;;  %v9515_v27 = vld [vmem:[#allocation2 + $0x50] sm:$0xe]  ;;  %v7185_v18 = vmul.f32 -1.442695, %v9507_v57 }
 0x1a4   : > { %8664 = vrcp.f32 %v1029_v19  ;;  %v9521_v21 = vrot.slane %v1438_v60, 4  ;;  %v9526_v28 = vrot.slane %v1544_v52, 4  ;;  %v1303_v19 = vld [vmem:[#allocation2 + $0xc] sm:$0x1] }
 0x1a5   : > { %8666 = vrcp.f32 %v1031_v23  ;;  %v9523_v23 = vrot.slane %v1441_v4, 5 }
 0x1a6   : > { %8668 = vrcp.f32 %v1032_v7 }
 0x1a7   : > { %8670 = vpow2.f32 %v7184_v8 }
 0x1a8   : > { %8672 = vpow2.f32 %v7185_v18  ;;  %v1333_v18 = vld [vmem:[#allocation2 + $0x34] sm:$0x1] }
 0x1ab   : > { %v8653_v12 = vpop.eup %8652 }
 0x1ac   : > { %v8655_v14 = vpop.eup %8654  ;;  %v1078_v15 = vmul.f32 %v8653_v12, %v9410_v36  ;;  %v9531_v36 = vrot.slane %v1547_v10, 5 }
 0x1ad   : > { %v8657_v11 = vpop.eup %8656  ;;  %v1073_v26 = vmul.f32 %v8655_v14, %v9413_v37 }
 0x1ae   : > { %v8659_v30 = vpop.eup %8658  ;;  %v7641_v39 = vpack.c.bf16 %v1078_v15, %v1078_v15  ;;  %v1074_v40 = vmul.f32 %v8657_v11, %v9417_v41 }
 0x1af   : > { %v8661_v25 = vpop.eup %8660  ;;  %v1038_v44 = vadd.f32 1.0, %v8659_v30  ;;  %v7636_v7 = vpack.c.bf16 %v1073_v26, %v1073_v26 }
 0x1b0   : > { %v8663_v37 = vpop.eup %8662  ;;  %v1178_v60 = vshrl.u32 %v7641_v39, 16  ;;  %v1181_v4 = vshll.u32 %v7641_v39, 16  ;;  %v7637_v52 = vpack.c.bf16 %v1074_v40, %v1074_v40  ;;  %v1075_v12 = vmul.f32 %v8661_v25, %v9420_v42  ;;  %v1300_v40 = vld [vmem:[#allocation2 + $0x8] sm:$0xf]  ;;  %v1306_v25 = vld [vmem:[#allocation2 + $0x10] sm:$0xf] }
 0x1b1   : > { %v8665_v14 = vpop.eup %8664  ;;  %8674 = vrcp.f32 %v1038_v44  ;;  %v1138_v15 = vshrl.u32 %v7636_v7, 16  ;;  %v1141_v41 = vshll.u32 %v7636_v7, 16  ;;  %v1076_v8 = vmul.f32 %v8663_v37, %v9423_v43 }
 0x1b2   : > { %v8667_v10 = vpop.eup %8666  ;;  %v1180_v11 = vrot.slane %v1178_v60, 7  ;;  %v1146_v26 = vshrl.u32 %v7637_v52, 16  ;;  %v1149_v30 = vshll.u32 %v7637_v52, 16  ;;  %v7638_v5 = vpack.c.bf16 %v1075_v12, %v1075_v12 }
 0x1b3   : > { %v12170_v39 = vmov 0  ;;  %v1140_v42 = vrot.slane %v1138_v15, 7  ;;  %v7639_v44 = vpack.c.bf16 %v1076_v8, %v1076_v8  ;;  %v1077_v7 = vmul.f32 %v8665_v14, %v9428_v48 }
 0x1b4   : > { %v12171_v39 = vsel %vm9538_vm8, 4294967295, %v12170_v39  ;;  %v1079_v43 = vmul.f32 %v8667_v10, %v9437_v62  ;;  %v1183_v37 = vor.u32 %v1181_v4, %v1180_v11  ;;  %v1184_v60 = vrot.slane %v1180_v11, 4  ;;  %v8669_v4 = vpop.eup %8668  ;;  %v1312_v11 = vld [vmem:[#allocation2 + $0x18] sm:$0xf] }
 0x1b5   : > { %12172 = vst [vmem:[#allocation39_spill] sm:$0xff] %v12171_v39  ;;  %v1148_v13 = vrot.slane %v1146_v26, 7  ;;  %v1154_v52 = vshrl.u32 %v7638_v5, 16  ;;  %v1143_v12 = vor.u32 %v1141_v41, %v1140_v42  ;;  %v1144_v47 = vrot.slane %v1140_v42, 4  ;;  %v1315_v26 = vld [vmem:[#allocation2 + $0x1c] sm:$0x1] }
 0x1b6   : > { %v1157_v54 = vshll.u32 %v7638_v5, 16  ;;  %v1162_v55 = vshrl.u32 %v7639_v44, 16  ;;  %v1331_v15 = vsel %vm9538_vm8, %v1183_v37, %v1330_v29  ;;  %v1334_v48 = vsel %vm9196_vm2, %v1184_v60, %v1333_v18  ;;  %v1321_v42 = vld [vmem:[#allocation2 + $0x24] sm:$0x1] }
 0x1b7   : > { %v1151_v14 = vor.u32 %v1149_v30, %v1148_v13  ;;  %v1152_v62 = vrot.slane %v1148_v13, 4  ;;  %1332 = vst [vmem:[#allocation2 + $0x30] sm:$0xf] %v1331_v15  ;;  %1335 = vst [vmem:[#allocation2 + $0x34] sm:$0x1] %v1334_v48  ;;  %v1301_v41 = vsel %vm9538_vm8, %v1143_v12, %v1300_v40  ;;  %v1304_v5 = vsel %vm9196_vm2, %v1144_v47, %v1303_v19  ;;  %v8671_v12 = vpop.eup %8670 }
 0x1b8   : > { %v1156_v8 = vrot.slane %v1154_v52, 7  ;;  %v1164_v10 = vrot.slane %v1162_v55, 7  ;;  %1302 = vst [vmem:[#allocation2 + $0x8] sm:$0xf] %v1301_v41  ;;  %1305 = vst [vmem:[#allocation2 + $0xc] sm:$0x1] %v1304_v5  ;;  %v7640_v30 = vpack.c.bf16 %v1077_v7, %v1077_v7  ;;  %v8673_v48 = vpop.eup %8672 }
 0x1b9   : > { %v1307_v29 = vsel %vm9538_vm8, %v1151_v14, %v1306_v25  ;;  %v1165_v18 = vshll.u32 %v7639_v44, 16  ;;  %v1310_v13 = vsel %vm9196_vm2, %v1152_v62, %v1309_v63  ;;  %v1318_v19 = vld [vmem:[#allocation2 + $0x20] sm:$0xf]  ;;  %v7186_v55 = vmul.f32 -1.442695, %v9475_v61 }
 0x1ba   : > { %1308 = vst [vmem:[#allocation2 + $0x10] sm:$0xf] %v1307_v29  ;;  %v1159_v40 = vor.u32 %v1157_v54, %v1156_v8  ;;  %v1160_v37 = vrot.slane %v1156_v8, 4  ;;  %v1168_v60 = vrot.slane %v1164_v10, 4  ;;  %1311 = vst [vmem:[#allocation2 + $0x14] sm:$0x1] %v1310_v13  ;;  %v1080_v25 = vmul.f32 %v8669_v4, %v9440_v0 }
 0x1bb   : > { %v1167_v47 = vor.u32 %v1165_v18, %v1164_v10  ;;  %v1170_v52 = vshrl.u32 %v7640_v30, 16  ;;  %v7187_v44 = vmul.f32 -1.442695, %v9478_v3  ;;  %v7188_v15 = vmul.f32 -1.442695, %v9485_v22 }
 0x1bc   : > { %v1313_v63 = vsel %vm9538_vm8, %v1159_v40, %v1312_v11  ;;  %v1316_v7 = vsel %vm9196_vm2, %v1160_v37, %v1315_v26  ;;  %v1322_v54 = vsel %vm9196_vm2, %v1168_v60, %v1321_v42  ;;  %v12173_v14 = vmov 0  ;;  %v1324_v41 = vld [vmem:[#allocation2 + $0x28] sm:$0xf]  ;;  %v1327_v5 = vld [vmem:[#allocation2 + $0x2c] sm:$0x1] }
 0x1bd   : > { %v12174_v14 = vsel %vm9568_vm11, 4294967295, %v12173_v14  ;;  %1314 = vst [vmem:[#allocation2 + $0x18] sm:$0xf] %v1313_v63  ;;  %v1319_v0 = vsel %vm9538_vm8, %v1167_v47, %v1318_v19  ;;  %1317 = vst [vmem:[#allocation2 + $0x1c] sm:$0x1] %v1316_v7  ;;  %v1172_v62 = vrot.slane %v1170_v52, 7  ;;  %v9574_v8 = vpack.c.bf16 %v1079_v43, %v1079_v43 }
 0x1be   : > { %12175 = vst [vmem:[#allocation40_spill] sm:$0xff] %v12174_v14  ;;  %v1173_v4 = vshll.u32 %v7640_v30, 16  ;;  %1323 = vst [vmem:[#allocation2 + $0x24] sm:$0x1] %v1322_v54  ;;  %v1550_v10 = vor.u32 %v9531_v36, %v9526_v28  ;;  %v12176_v11 = vshll.u32 %v9512_v6, 16  ;;  %v8675_v26 = vpop.eup %8674  ;;  %v9584_v40 = vpack.c.bf16 %v1080_v25, %v1080_v25 }
 0x1bf   : > { %1320 = vst [vmem:[#allocation2 + $0x20] sm:$0xf] %v1319_v0  ;;  %v7190_v18 = vmul.f32 -1.442695, %v9489_v24  ;;  %v7191_v13 = vmul.f32 -1.442695, %v9495_v32  ;;  %8676 = vpow2.f32 %v7186_v55  ;;  %v1086_v43 = vmul.f32 %v8675_v26, %v9470_v49 }
 0x1c0   : > { %v9580_v29 = vrot.slane %v12176_v11, 5  ;;  %v1175_v42 = vor.u32 %v1173_v4, %v1172_v62  ;;  %v1176_v30 = vrot.slane %v1172_v62, 4  ;;  %v9587_v37 = vld [vmem:[#allocation2 + $0x8] sm:$0xf]  ;;  %v9589_v60 = vld [vmem:[#allocation2 + $0xc] sm:$0x1]  ;;  %8678 = vpow2.f32 %v7187_v44 }
 0x1c1   : > { %v1656_v28 = vld [vmem:[#allocation2 + $0x8] sm:$0xe]  ;;  %v12177_v36 = vrot.slane %v9504_v51, 5  ;;  %v12178_v19 = vrot.slane %v9509_v59, 9  ;;  %v9597_v52 = vld [vmem:[#allocation2 + $0x10] sm:$0xf]  ;;  %8680 = vpow2.f32 %v7188_v15  ;;  %v7649_v25 = vpack.c.bf16 %v1086_v43, %v1086_v43 }
 0x1c2   : > { %v12179_v55 = vmov 0  ;;  %v1325_v49 = vsel %vm9538_vm8, %v1175_v42, %v1324_v41  ;;  %v1328_v51 = vsel %vm9196_vm2, %v1176_v30, %v1327_v5  ;;  %v1186_v59 = vshrl.u32 %v9574_v8, 16  ;;  %v9619_v15 = vld [vmem:[#allocation2 + $0x8] sm:$0xf]  ;;  %v1378_v11 = vld [vmem:[#allocation2 + $0x80] sm:$0xf] }
 0x1c3   : > { %v1709_v47 = vsel %vm9568_vm11, %v12178_v19, %v12177_v36  ;;  %v12180_v55 = vsel %vm9601_vm12, 4294967295, %v12179_v55  ;;  %v7280_v44 = vcombine.low %v9587_v37, %v9597_v52  ;;  %1326 = vst [vmem:[#allocation2 + $0x28] sm:$0xf] %v1325_v49  ;;  %1329 = vst [vmem:[#allocation2 + $0x2c] sm:$0x1] %v1328_v51  ;;  %v9612_v63 = vrot.slane %v1550_v10, 4 }
 0x1c4   : > { %12181 = vst [vmem:[#allocation41_spill] sm:$0xff] %v12180_v55  ;;  %8682 = vpow2.f32 %v7190_v18  ;;  %v7209_v7 = vrot.slane %v1656_v28, 9  ;;  %v1712_v54 = vrot.slane %v9589_v60, 5  ;;  %v1242_v4 = vshrl.u32 %v7649_v25, 16  ;;  %v9617_v41 = vld [vmem:[#allocation2 + $0x18] sm:$0xf] }
 0x1c5   : > { %3555 = vmatprep.mubr.bf16.mxu0 %v7280_v44  ;;  %v1033_v10 = vadd.f32 1.0, %v8671_v12  ;;  %8684 = vpow2.f32 %v7191_v13  ;;  %v1381_v18 = vld [vmem:[#allocation2 + $0x84] sm:$0x1]  ;;  %v9629_v30 = vrot.slane %v1186_v59, 7  ;;  %v9632_v28 = vadd.f32 1.0, %v8673_v48  ;;  %v8491_v36 = vld [vmem:[#allocation8 + $0x1b8] sm:$0xff]  }
 0x1c6   : > { %v1713_v26 = vsel %vm9568_vm11, %v7209_v7, %v1712_v54  ;;  %v9627_v42 = vld [vmem:[#allocation2 + $0x20] sm:$0xf]  ;;  %v1244_v19 = vrot.slane %v1242_v4, 7  ;;  %v1245_v49 = vshll.u32 %v7649_v25, 16  ;;  %v1803_v51 = vshrl.u32 %v9587_v37, 16  ;;  %v8492_v44 = vld [vmem:[#allocation8 + $0x1f0] sm:$0xff]  }
 0x1c7   : > { %v7272_v12 = vcombine.low %v1709_v47, %v1713_v26  ;;  %v9635_v13 = vld [vmem:[#allocation2 + $0x10] sm:$0xf]  ;;  %v7281_v7 = vcombine.low %v9617_v41, %v9627_v42  ;;  %v1446_v59 = vshrl.u32 %v9619_v15, 16  ;;  %v1449_v54 = vshll.u32 %v9619_v15, 16  ;;  %v1414_v48 = vld [vmem:[#allocation2 + $0x14] sm:$0x1] }
 0x1c8   : > { %v8493_v43 = vld [vmem:[#allocation8 + $0x1b0] sm:$0xff]   ;;  %v1247_v0 = vor.u32 %v1245_v49, %v1244_v19  ;;  %v1248_v4 = vrot.slane %v1244_v19, 4  ;;  %v1455_v25 = vshll.u32 %v9589_v60, 16  ;;  %v9643_v47 = vld [vmem:[#allocation2 + $0x18] sm:$0xf]  ;;  %8686 = vrcp.f32 %v1033_v10  ;;  %v8497_v10 = vld [vmem:[#allocation8 + $0x1e8] sm:$0xff]  }
 0x1c9   : > { %3556 = vmatmul.mubr.bf16.vlgmr.msra.gmra.mxu0 %v7272_v12  ;;  %v1415_v26 = vld [vmem:[#allocation2 + $0x1c] sm:$0x1]  ;;  %v1448_v62 = vrot.slane %v1446_v59, 4  ;;  %v1451_v5 = vrot.slane %v1449_v54, 5  ;;  %v1460_v58 = vshrl.u32 %v9635_v13, 16  ;;  %v1463_v33 = vshll.u32 %v9635_v13, 16 }
 0x1ca   : > { %3563 = vmatprep.mubr.bf16.mxu0 %v7281_v7  ;;  %v1657_v45 = vld [vmem:[#allocation2 + $0x10] sm:$0xe]  ;;  %7879 = vmatpush3.bf16.msra.mxu0 %v8491_v36  ;;  %v1379_v49 = vsel %vm9538_vm8, %v1247_v0, %v1378_v11  ;;  %v1382_v19 = vsel %vm9196_vm2, %v1248_v4, %v1381_v18  ;;  %v1817_v60 = vshrl.u32 %v9597_v52, 16  ;;  %v1457_v12 = vrot.slane %v1455_v25, 5  ;;  %v1658_v50 = vld [vmem:[#allocation2 + $0x18] sm:$0xe] }
 0x1cb   : > { %7880 = vmatprep.subr.bf16.mxu0 %v8492_v44  ;;  %1380 = vst [vmem:[#allocation2 + $0x80] sm:$0xf] %v1379_v49  ;;  %1383 = vst [vmem:[#allocation2 + $0x84] sm:$0x1] %v1382_v19  ;;  %v1452_v7 = vor.u32 %v1451_v5, %v1448_v62  ;;  %v1462_v59 = vrot.slane %v1460_v58, 4  ;;  %v1465_v54 = vrot.slane %v1463_v33, 5  ;;  %8688 = vrcp.f32 %v9632_v28 }
 0x1cc   : > { %v1474_v53 = vshrl.u32 %v9643_v47, 16  ;;  %v9653_v36 = vpop.eup %8676  ;;  %v1469_v16 = vshll.u32 %v1414_v48, 16  ;;  %v1477_v0 = vshll.u32 %v9643_v47, 16  ;;  %v1483_v11 = vshll.u32 %v1415_v26, 16  ;;  %v8499_v62 = vld [vmem:[#allocation8 + $0x1a8] sm:$0xff]   ;;  %v8500_v58 = vld [vmem:[#allocation8 + $0x1e0] sm:$0xff]  }
 0x1cd   : > { %v7210_v18 = vrot.slane %v1657_v45, 9  ;;  %v9656_v4 = vpop.eup %8678  ;;  %v1453_v25 = vrot.slane %v1452_v7, 4  ;;  %v1466_v44 = vor.u32 %v1465_v54, %v1462_v59  ;;  %v1716_v49 = vrot.slane %v1414_v48, 5  ;;  %v8476_v19 = vld [vmem:[#allocation8 + $0x138] sm:$0xff]   ;;  %v9661_v31 = vld [vmem:[#allocation2 + $0x30] sm:$0xf] }
 0x1ce   : > { %v1476_v35 = vrot.slane %v1474_v53, 4  ;;  %7881 = vmatpush3.bf16.msra.mxu0 %v8493_v43  ;;  %v9658_v33 = vpop.eup %8680  ;;  %v1820_v5 = vshll.u32 %v9597_v52, 16  ;;  %v1479_v9 = vrot.slane %v1477_v0, 5  ;;  %v7211_v38 = vrot.slane %v1658_v50, 9  ;;  %v9671_v59 = vld [vmem:[#allocation2 + $0x28] sm:$0xf] }
 0x1cf   : > { %v1720_v1 = vrot.slane %v1415_v26, 5  ;;  %7882 = vmatprep.subr.bf16.mxu0 %v8497_v10  ;;  %v9665_v7 = vrot.slane %v1803_v51, 4  ;;  %v1458_v53 = vsel %vm9601_vm12, %v1453_v25, %v1457_v12  ;;  %v1467_v43 = vrot.slane %v1466_v44, 4  ;;  %v9673_v52 = vld [vmem:[#allocation2 + $0x20] sm:$0xf]  ;;  %v8478_v12 = vld [vmem:[#allocation8 + $0x170] sm:$0xff]  }
 0x1d0   : > { %v1717_v48 = vsel %vm9568_vm11, %v7210_v18, %v1716_v49  ;;  %v12182_v50 = vsel %vm9601_vm12, %v9521_v21, %v9523_v23  ;;  %v1471_v10 = vrot.slane %v1469_v16, 5  ;;  %v1480_v51 = vor.u32 %v1479_v9, %v1476_v35  ;;  %v9682_v0 = vld [vmem:[#allocation2 + $0x28] sm:$0xf]  ;;  %v8501_v25 = vld [vmem:[#allocation8 + $0x1a0] sm:$0xff]   ;;  %v1417_v9 = vld [vmem:[#allocation2 + $0x2c] sm:$0x1] }
 0x1d1   : > { %v9663_v45 = vpop.eup %8682  ;;  %v7264_v26 = vcombine.low %v12182_v50, %v1458_v53  ;;  %v1721_v54 = vsel %vm9568_vm11, %v7211_v38, %v1720_v1  ;;  %v9686_v44 = vrot.slane %v1817_v60, 4  ;;  %v7256_v49 = vcombine.low %v9472_v56, %v9619_v15  ;;  %v1416_v21 = vld [vmem:[#allocation2 + $0x24] sm:$0x1]  ;;  %v1659_v23 = vld [vmem:[#allocation2 + $0x20] sm:$0xe]  ;;  %v8505_v60 = vld [vmem:[#allocation8 + $0x1d8] sm:$0xff]  }
 0x1d2   : > { %v9684_v18 = vpop.eup %8684  ;;  %v1485_v2 = vrot.slane %v1483_v11, 5  ;;  %v7273_v34 = vcombine.low %v1717_v48, %v1721_v54  ;;  %7883 = vmatpush3.bf16.msra.mxu0 %v8499_v62  ;;  %v1472_v35 = vsel %vm9601_vm12, %v1467_v43, %v1471_v10  ;;  %v1481_v38 = vrot.slane %v1480_v51, 4  ;;  %v1660_v62 = vld [vmem:[#allocation2 + $0x28] sm:$0xe]  ;;  %v8480_v48 = vld [vmem:[#allocation8 + $0x130] sm:$0xff]   ;;  %v8507_v32 = vld [vmem:[#allocation8 + $0x198] sm:$0xff]  }
 0x1d3   : > { %3458 = vmatprep.mubr.bf16.mxu1 %v7264_v26  ;;  %v7282_v1 = vcombine.low %v9671_v59, %v9661_v31  ;;  %v1488_v16 = vshrl.u32 %v9673_v52, 16  ;;  %7884 = vmatprep.subr.bf16.mxu0 %v8500_v58  ;;  %v9695_v53 = vrot.slane %v1820_v5, 5  ;;  %v1491_v56 = vshll.u32 %v9673_v52, 16  ;;  %v1336_v5 = vld [vmem:[#allocation2 + $0x38] sm:$0xf] }
 0x1d4   : > { %3459 = vmatmul.mubr.bf16.vlgmr.msra.gmra.mxu1 %v7256_v49  ;;  %3564 = vmatmul.mubr.bf16.gmra.mxu0 %v7273_v34  ;;  %v1502_v15 = vshrl.u32 %v9682_v0, 16  ;;  %v1505_v11 = vshll.u32 %v9682_v0, 16  ;;  %v1486_v43 = vsel %vm9601_vm12, %v1481_v38, %v1485_v2  ;;  %v1497_v58 = vshll.u32 %v1416_v21, 16 }
 0x1d5   : > { %7815 = vmatpush3.bf16.msra.mxu1 %v8476_v19  ;;  %3571 = vmatprep.mubr.bf16.mxu0 %v7282_v1  ;;  %v1490_v50 = vrot.slane %v1488_v16, 4  ;;  %v7212_v26 = vrot.slane %v1659_v23, 9  ;;  %v9702_v10 = vpop.eup %8686  ;;  %v7265_v34 = vcombine.low %v1472_v35, %v1486_v43  ;;  %v7257_v51 = vcombine.low %v9635_v13, %v9643_v47  ;;  %v1339_v19 = vld [vmem:[#allocation2 + $0x3c] sm:$0x1]  ;;  %v8508_v23 = vld [vmem:[#allocation8 + $0x1d0] sm:$0xff]  }
 0x1d6   : > { %7816 = vmatprep.subr.bf16.mxu1 %v8478_v12  ;;  %v1493_v54 = vrot.slane %v1491_v56, 5  ;;  %v1504_v49 = vrot.slane %v1502_v15, 4  ;;  %7885 = vmatpush3.bf16.msra.mxu0 %v8501_v25  ;;  %v1507_v2 = vrot.slane %v1505_v11, 5  ;;  %v1511_v38 = vshll.u32 %v1417_v9, 16  ;;  %v9716_v11 = vld [vmem:[#allocation2 + $0x30] sm:$0xf] }
 0x1d7   : > { %v1724_v1 = vrot.slane %v1416_v21, 5  ;;  %v7213_v16 = vrot.slane %v1660_v62, 9  ;;  %7886 = vmatprep.subr.bf16.mxu0 %v8505_v60  ;;  %3466 = vmatprep.mubr.bf16.mxu1 %v7265_v34  ;;  %v1728_v22 = vrot.slane %v1417_v9, 5  ;;  %v12183_v12 = vshll.u32 %v9574_v8, 16  ;;  %v8484_v60 = vld [vmem:[#allocation8 + $0x128] sm:$0xff]  }
 0x1d8   : > { %v1494_v24 = vor.u32 %v1493_v54, %v1490_v50  ;;  %v1192_v13 = vrot.slane %v9629_v30, 4  ;;  %v1499_v47 = vrot.slane %v1497_v58, 5  ;;  %v1508_v56 = vor.u32 %v1507_v2, %v1504_v49  ;;  %v1342_v62 = vld [vmem:[#allocation2 + $0x40] sm:$0xf]  ;;  %v8509_v50 = vld [vmem:[#allocation8 + $0x190] sm:$0xff]  }
 0x1d9   : > { %v1191_v35 = vor.u32 %v12183_v12, %v9629_v30  ;;  %7817 = vmatpush3.bf16.msra.mxu1 %v8480_v48  ;;  %v1725_v25 = vsel %vm9568_vm11, %v7212_v26, %v1724_v1  ;;  %v12184_v21 = vshrl.u32 %v9584_v40, 16  ;;  %v1729_v8 = vsel %vm9568_vm11, %v7213_v16, %v1728_v22  ;;  %v8486_v48 = vld [vmem:[#allocation8 + $0x160] sm:$0xff]   ;;  %v8513_v22 = vld [vmem:[#allocation8 + $0x1c8] sm:$0xff]  }
 0x1da   : > { %v1495_v9 = vrot.slane %v1494_v24, 4  ;;  %7818 = vmatprep.subr.bf16.mxu1 %v8482_v20  ;;  %v1340_v43 = vsel %vm9196_vm2, %v1192_v13, %v1339_v19  ;;  %7887 = vmatpush3.bf16.msra.mxu0 %v8507_v32  ;;  %v1509_v58 = vrot.slane %v1508_v56, 4  ;;  %v1513_v26 = vrot.slane %v1511_v38, 5  ;;  %v8514_v1 = vld [vmem:[#allocation8 + $0x188] sm:$0xff]  }
 0x1db   : > { %v9714_v15 = vrot.slane %v12184_v21, 7  ;;  %v1337_v30 = vsel %vm9538_vm8, %v1191_v35, %v1336_v5  ;;  %v7274_v34 = vcombine.low %v1725_v25, %v1729_v8  ;;  %v12185_v24 = vshll.u32 %v9584_v40, 16  ;;  %1341 = vst [vmem:[#allocation2 + $0x3c] sm:$0x1] %v1340_v43  ;;  %7888 = vmatprep.subr.bf16.mxu0 %v8508_v23  ;;  %v9742_v23 = vld [vmem:[#allocation2 + $0x34] sm:$0x1] }
 0x1dc   : > { %1338 = vst [vmem:[#allocation2 + $0x38] sm:$0xf] %v1337_v30  ;;  %v1823_v20 = vor.u32 %v9695_v53, %v9686_v44  ;;  %3467 = vmatmul.mubr.bf16.gmra.mxu1 %v7257_v51  ;;  %v1500_v5 = vsel %vm9601_vm12, %v1495_v9, %v1499_v47  ;;  %v1516_v32 = vshrl.u32 %v9716_v11, 16  ;;  %v1519_v49 = vshll.u32 %v9716_v11, 16  ;;  %v8488_v53 = vld [vmem:[#allocation8 + $0x120] sm:$0xff]   ;;  %v8494_v51 = vld [vmem:[#allocation8 + $0x158] sm:$0xff]  }
 0x1dd   : > { %v1199_v54 = vor.u32 %v12185_v24, %v9714_v15  ;;  %v12186_v19 = vshll.u32 %v9587_v37, 16  ;;  %v1514_v38 = vsel %vm9601_vm12, %v1509_v58, %v1513_v26  ;;  %3572 = vmatmul.mubr.bf16.gmra.mxu0 %v7274_v34  ;;  %7819 = vmatpush3.bf16.msra.mxu1 %v8484_v60  ;;  %v1661_v35 = vld [vmem:[#allocation2 + $0x30] sm:$0xe]  ;;  %v1081_v47 = vmul.f32 %v9702_v10, %v9502_v46  ;;  %v8515_v25 = vld [vmem:[#allocation8 + $0x1c0] sm:$0xff]   ;;  %v8496_v46 = vld [vmem:[#allocation8 + $0x118] sm:$0xff]  }
 0x1de   : > { %v7266_v16 = vcombine.low %v1500_v5, %v1514_v38  ;;  %v1518_v37 = vrot.slane %v1516_v32, 4  ;;  %v1521_v12 = vrot.slane %v1519_v49, 5  ;;  %7820 = vmatprep.subr.bf16.mxu1 %v8486_v48  ;;  %7889 = vmatpush3.bf16.msra.mxu0 %v8509_v50  ;;  %v1035_v56 = vadd.f32 1.0, %v9653_v36  ;;  %v8502_v50 = vld [vmem:[#allocation8 + $0x150] sm:$0xff]  }
 0x1df   : > { %v9735_v2 = vrot.slane %v12186_v19, 5  ;;  %v1343_v44 = vsel %vm9538_vm8, %v1199_v54, %v1342_v62  ;;  %7890 = vmatprep.subr.bf16.mxu0 %v8513_v22  ;;  %v9749_v21 = vrot.slane %v1823_v20, 4  ;;  %v1036_v8 = vadd.f32 1.0, %v9656_v4  ;;  %v8516_v4 = vld [vmem:[#allocation8 + $0x180] sm:$0xff]  }
 0x1e0   : > { %1344 = vst [vmem:[#allocation2 + $0x40] sm:$0xf] %v1343_v44  ;;  %3474 = vmatprep.mubr.bf16.mxu1 %v7266_v16  ;;  %v7214_v30 = vrot.slane %v1661_v35, 9  ;;  %v1732_v62 = vrot.slane %v9742_v23, 5  ;;  %v7644_v28 = vpack.c.bf16 %v1081_v47, %v1081_v47  ;;  %8690 = vrcp.f32 %v1035_v56 }
 0x1e1   : > { %7821 = vmatpush3.bf16.msra.mxu1 %v8488_v53  ;;  %v7258_v10 = vcombine.low %v9673_v52, %v9682_v0  ;;  %v1522_v48 = vor.u32 %v1521_v12, %v1518_v37  ;;  %8692 = vrcp.f32 %v1036_v8  ;;  %v12187_v54 = vrot.slane %v9512_v6, 5  ;;  %v8504_v53 = vld [vmem:[#allocation8 + $0x110] sm:$0xff]   ;;  %v8510_v37 = vld [vmem:[#allocation8 + $0x148] sm:$0xff]  }
 0x1e2   : > { %7822 = vmatprep.subr.bf16.mxu1 %v8494_v51  ;;  %7891 = vmatpush3.bf16.msra.mxu0 %v8514_v1  ;;  %v1419_v34 = vld [vmem:[#allocation2 + $0x3c] sm:$0x1]  ;;  %v12188_v22 = vrot.slane %v9515_v27, 9  ;;  %v1525_v0 = vshll.u32 %v9742_v23, 16  ;;  %v1202_v49 = vshrl.u32 %v7644_v28, 16  ;;  %v1733_v6 = vsel %vm9568_vm11, %v7214_v30, %v1732_v62 }
 0x1e3   : > { %v9758_v43 = vld [vmem:[#allocation2 + $0x38] sm:$0xf]  ;;  %7892 = vmatprep.subr.bf16.mxu0 %v8515_v25  ;;  %v1736_v32 = vrot.slane %v1419_v34, 5  ;;  %v1037_v44 = vadd.f32 1.0, %v9658_v33  ;;  %v1523_v1 = vrot.slane %v1522_v48, 4  ;;  %v1539_v23 = vshll.u32 %v1419_v34, 16 }
 0x1e4   : > { %v9761_v26 = vld [vmem:[#allocation2 + $0x38] sm:$0xf]  ;;  %v1530_v24 = vshrl.u32 %v9758_v43, 16  ;;  %v9770_v52 = vsel %vm9568_vm11, %v12188_v22, %v12187_v54  ;;  %3475 = vmatmul.mubr.bf16.gmra.mxu1 %v7258_v10  ;;  %v1533_v20 = vshll.u32 %v9758_v43, 16  ;;  %v1204_v47 = vrot.slane %v1202_v49, 7  ;;  %v8512_v10 = vld [vmem:[#allocation8 + $0x108] sm:$0xff]  }
 0x1e5   : > { %v1662_v5 = vld [vmem:[#allocation2 + $0x38] sm:$0xe]  ;;  %7823 = vmatpush3.bf16.msra.mxu1 %v8496_v46  ;;  %v1205_v56 = vshll.u32 %v7644_v28, 16  ;;  %v1527_v8 = vrot.slane %v1525_v0, 5  ;;  %v1351_v46 = vld [vmem:[#allocation2 + $0x5c] sm:$0x1]  ;;  %8694 = vrcp.f32 %v1037_v44 }
 0x1e6   : > { %v1532_v38 = vrot.slane %v1530_v24, 4  ;;  %v7215_v27 = vrot.slane %v1662_v5, 9  ;;  %v1535_v16 = vrot.slane %v1533_v20, 5  ;;  %7824 = vmatprep.subr.bf16.mxu1 %v8502_v50  ;;  %7893 = vmatpush3.bf16.msra.mxu0 %v8516_v4  ;;  %v1348_v25 = vld [vmem:[#allocation2 + $0x58] sm:$0xf]  ;;  %v8517_v48 = vld [vmem:[#allocation8 + $0x140] sm:$0xff]   ;;  %v1556_v4 = vsel %vm9601_vm12, %v9612_v63, %v9580_v29 }
 0x1e7   : > { %v9774_v19 = vld [vmem:[#allocation2 + $0x40] sm:$0xf]  ;;  %v1207_v50 = vor.u32 %v1205_v56, %v1204_v47  ;;  %v1208_v34 = vrot.slane %v1204_v47, 4  ;;  %v1039_v28 = vadd.f32 1.0, %v9663_v45  ;;  %v1528_v22 = vsel %vm9601_vm12, %v1523_v1, %v1527_v8  ;;  %v9796_v5 = vld [vmem:[#allocation2 + $0x10] sm:$0xf] }
 0x1e8   : > { %v7283_v51 = vcombine.low %v9761_v26, %v9774_v19  ;;  %v1737_v35 = vsel %vm9568_vm11, %v7215_v27, %v1736_v32  ;;  %v1536_v30 = vor.u32 %v1535_v16, %v1532_v38  ;;  %v9789_v24 = vld [vmem:[#allocation2 + $0x80] sm:$0xf]  ;;  %v1541_v20 = vrot.slane %v1539_v23, 5  ;;  %v9798_v32 = vld [vmem:[#allocation2 + $0x18] sm:$0xf]  ;;  %v8689_v27 = vpop.eup %8688 }
 0x1e9   : > { %v7275_v62 = vcombine.low %v1733_v6, %v1737_v35  ;;  %12189 = vst [vmem:[#allocation42_spill] sm:$0xff] %v9789_v24  ;;  %7825 = vmatpush3.bf16.msra.mxu1 %v8504_v53  ;;  %v9792_v54 = vld [vmem:[#allocation2 + $0x80] sm:$0xf]  ;;  %v1200_v49 = vrot.slane %v9714_v15, 4  ;;  %v1349_v38 = vsel %vm9538_vm8, %v1207_v50, %v1348_v25  ;;  %v1352_v45 = vsel %vm9196_vm2, %v1208_v34, %v1351_v46  ;;  %v9820_v8 = vld [vmem:[#allocation8 + $0x238] sm:$0xff]  }
 0x1ea   : > { %3579 = vmatprep.mubr.bf16.mxu0 %v7283_v51  ;;  %v1537_v0 = vrot.slane %v1536_v30, 4  ;;  %7826 = vmatprep.subr.bf16.mxu1 %v8510_v37  ;;  %v1040_v6 = vadd.f32 1.0, %v9684_v18  ;;  %1350 = vst [vmem:[#allocation2 + $0x58] sm:$0xf] %v1349_v38  ;;  %1353 = vst [vmem:[#allocation2 + $0x5c] sm:$0x1] %v1352_v45  ;;  %v1082_v16 = vmul.f32 %v8689_v27, %v9507_v57  ;;  %8696 = vrcp.f32 %v1039_v28 }
 0x1eb   : > { %3580 = vmatmul.mubr.bf16.gmra.mxu0 %v7275_v62  ;;  %v1628_v51 = vshrl.u32 %v9792_v54, 16  ;;  %v1631_v15 = vshll.u32 %v9792_v54, 16  ;;  %v9813_v37 = vld [vmem:[#allocation2 + $0x84] sm:$0x1]  ;;  %v7259_v25 = vcombine.low %v9716_v11, %v9758_v43  ;;  %v9826_v50 = vld [vmem:[#allocation2 + $0x80] sm:$0xe] }
 0x1ec   : > { %v1542_v53 = vsel %vm9601_vm12, %v1537_v0, %v1541_v20  ;;  %v8519_v18 = vld [vmem:[#allocation8 + $0x100] sm:$0xff]   ;;  %v7645_v46 = vpack.c.bf16 %v1082_v16, %v1082_v16  ;;  %8698 = vrcp.f32 %v1040_v6  ;;  %v1637_v34 = vshll.u32 %v9813_v37, 16  ;;  %v1366_v35 = vld [vmem:[#allocation2 + $0x70] sm:$0xf] }
 0x1ed   : > { %v7267_v1 = vcombine.low %v1528_v22, %v1542_v53  ;;  %7827 = vmatpush3.bf16.msra.mxu1 %v8512_v10  ;;  %v8691_v47 = vpop.eup %8690  ;;  %v9829_v43 = vrot.slane %v1628_v51, 4  ;;  %v1345_v28 = vld [vmem:[#allocation2 + $0x44] sm:$0x1]  ;;  %v2172_v38 = vshrl.u32 %v9796_v5, 16  ;;  %v7222_v6 = vrot.slane %v9826_v50, 9 }
 0x1ee   : > { %7828 = vmatprep.subr.bf16.mxu1 %v8517_v48  ;;  %v8693_v30 = vpop.eup %8692  ;;  %v1083_v10 = vmul.f32 %v8691_v47, %v9475_v61  ;;  %v9831_v48 = vrot.slane %v1631_v15, 5  ;;  %v1210_v0 = vshrl.u32 %v7645_v46, 16  ;;  %v1213_v45 = vshll.u32 %v7645_v46, 16  ;;  %v1354_v51 = vld [vmem:[#allocation2 + $0x60] sm:$0xf] }
 0x1ef   : > { %3482 = vmatprep.mubr.bf16.mxu1 %v7267_v1  ;;  %v1084_v11 = vmul.f32 %v8693_v30, %v9478_v3  ;;  %v9838_v3 = vld [vmem:[#allocation2 + $0x14] sm:$0x1]  ;;  %v2175_v27 = vshll.u32 %v9796_v5, 16  ;;  %v9852_v61 = vrot.slane %v2172_v38, 4  ;;  %v1357_v56 = vld [vmem:[#allocation2 + $0x64] sm:$0x1] }
 0x1f0   : > { %3483 = vmatmul.mubr.bf16.gmra.mxu1 %v7259_v25  ;;  %v7646_v20 = vpack.c.bf16 %v1083_v10, %v1083_v10  ;;  %v1212_v53 = vrot.slane %v1210_v0, 7  ;;  %v1634_v46 = vor.u32 %v9831_v48, %v9829_v43  ;;  %v9850_v10 = vrot.slane %v1637_v34, 5  ;;  %v1363_v34 = vld [vmem:[#allocation2 + $0x6c] sm:$0x1] }
 0x1f1   : > { %7829 = vmatpush3.bf16.msra.mxu1 %v8519_v18  ;;  %v9842_v15 = vld [vmem:[#allocation2 + $0x58] sm:$0xf]  ;;  %v7647_v1 = vpack.c.bf16 %v1084_v11, %v1084_v11  ;;  %v1346_v18 = vsel %vm9196_vm2, %v1200_v49, %v1345_v28  ;;  %v1421_v47 = vld [vmem:[#allocation2 + $0x5c] sm:$0x1]  ;;  %v2181_v11 = vshll.u32 %v9838_v3, 16 }
 0x1f2   : > { %8262 = vmatprep.subr.bf16.mxu1 %v9820_v8  ;;  %v1218_v16 = vshrl.u32 %v7646_v20, 16  ;;  %v1558_v25 = vshrl.u32 %v9842_v15, 16  ;;  %v1561_v30 = vshll.u32 %v9842_v15, 16  ;;  %1347 = vst [vmem:[#allocation2 + $0x44] sm:$0x1] %v1346_v18  ;;  %v1215_v0 = vor.u32 %v1213_v45, %v1212_v53  ;;  %v8695_v33 = vpop.eup %8694 }
 0x1f3   : > { %v1567_v23 = vshll.u32 %v1421_v47, 16  ;;  %v1664_v44 = vld [vmem:[#allocation2 + $0x58] sm:$0xe]  ;;  %v1216_v22 = vrot.slane %v1212_v53, 4  ;;  %v1221_v43 = vshll.u32 %v7646_v20, 16  ;;  %v1226_v48 = vshrl.u32 %v7647_v1, 16 }
 0x1f4   : > { %v1560_v49 = vrot.slane %v1558_v25, 4  ;;  %v1563_v28 = vrot.slane %v1561_v30, 5  ;;  %v1220_v62 = vrot.slane %v1218_v16, 7  ;;  %v1355_v12 = vsel %vm9538_vm8, %v1215_v0, %v1354_v51  ;;  %v1360_v3 = vld [vmem:[#allocation2 + $0x68] sm:$0xf] }
 0x1f5   : > { %v9857_v18 = vrot.slane %v2175_v27, 5  ;;  %1356 = vst [vmem:[#allocation2 + $0x60] sm:$0xf] %v1355_v12  ;;  %v7217_v38 = vrot.slane %v1664_v44, 9  ;;  %v1744_v58 = vrot.slane %v1421_v47, 5  ;;  %v1569_v53 = vrot.slane %v1567_v23, 5 }
 0x1f6   : > { %v1564_v45 = vor.u32 %v1563_v28, %v1560_v49  ;;  %v1224_v36 = vrot.slane %v1220_v62, 4  ;;  %v1223_v25 = vor.u32 %v1221_v43, %v1220_v62  ;;  %v1228_v30 = vrot.slane %v1226_v48, 7  ;;  %v12190_v27 = vld [vmem:[#allocation36_spill] sm:$0xff]  ;;  %v9872_v28 = vld [vmem:[#allocation2 + $0x20] sm:$0xf] }
 0x1f7   : > { %v1229_v16 = vshll.u32 %v7647_v1, 16  ;;  %v1358_v51 = vsel %vm9196_vm2, %v1216_v22, %v1357_v56  ;;  %v1085_v0 = vmul.f32 %v8695_v33, %v12190_v27  ;;  %v1369_v12 = vld [vmem:[#allocation2 + $0x74] sm:$0x1]  ;;  %v8697_v49 = vpop.eup %8696  ;;  %v2186_v62 = vshrl.u32 %v9798_v32, 16  ;;  %v9874_v43 = vld [vmem:[#allocation2 + $0x28] sm:$0xf] }
 0x1f8   : > { %v1565_v9 = vrot.slane %v1564_v45, 4  ;;  %v1364_v20 = vsel %vm9196_vm2, %v1224_v36, %v1363_v34  ;;  %v1232_v47 = vrot.slane %v1228_v30, 4  ;;  %v1361_v23 = vsel %vm9538_vm8, %v1223_v25, %v1360_v3  ;;  %1359 = vst [vmem:[#allocation2 + $0x64] sm:$0x1] %v1358_v51  ;;  %v9876_v48 = vld [vmem:[#allocation2 + $0x58] sm:$0xf] }
 0x1f9   : > { %v1231_v44 = vor.u32 %v1229_v16, %v1228_v30  ;;  %1365 = vst [vmem:[#allocation2 + $0x6c] sm:$0x1] %v1364_v20  ;;  %v8699_v1 = vpop.eup %8698  ;;  %v1745_v36 = vsel %vm9568_vm11, %v7217_v38, %v1744_v58  ;;  %1362 = vst [vmem:[#allocation2 + $0x68] sm:$0xf] %v1361_v23  ;;  %v7648_v33 = vpack.c.bf16 %v1085_v0, %v1085_v0  ;;  %v1764_v22 = vrot.slane %v9813_v37, 5  ;;  %v12192_v30 = vld [vmem:[#allocation37_spill] sm:$0xff] }
 0x1fa   : > { %v1570_v56 = vsel %vm9601_vm12, %v1565_v9, %v1569_v53  ;;  %12191 = vst [vmem:[#allocation36_spill] sm:$0xff] %v9876_v48  ;;  %v1370_v58 = vsel %vm9196_vm2, %v1232_v47, %v1369_v12  ;;  %v2178_v37 = vor.u32 %v9857_v18, %v9852_v61  ;;  %v8768_v45 = vld [vmem:[#allocation2 + $0x50] sm:$0xf]  ;;  %v9890_v53 = vrot.slane %v1634_v46, 4  ;;  %v9892_v25 = vld [vmem:[#allocation2 + $0x1c] sm:$0x1] }
 0x1fb   : > { %v7268_v34 = vcombine.low %v1556_v4, %v1570_v56  ;;  %v1367_v9 = vsel %vm9538_vm8, %v1231_v44, %v1366_v35  ;;  %v7260_v38 = vcombine.low %v8768_v45, %v9842_v15  ;;  %v1234_v3 = vshrl.u32 %v7648_v33, 16  ;;  %1371 = vst [vmem:[#allocation2 + $0x74] sm:$0x1] %v1370_v58  ;;  %v12193_v51 = vld [vmem:[#allocation38_spill] sm:$0xff]  ;;  %v9913_v27 = vld [vmem:[#allocation2 + $0x38] sm:$0xf] }
 0x1fc   : > { %1368 = vst [vmem:[#allocation2 + $0x70] sm:$0xf] %v1367_v9  ;;  %v9894_v29 = vrot.slane %v2181_v11, 5  ;;  %v9896_v63 = vld [vmem:[#allocation2 + $0x60] sm:$0xf]  ;;  %v7276_v4 = vcombine.low %v9770_v52, %v1745_v36  ;;  %v9901_v61 = vrot.slane %v2186_v62, 4  ;;  %v1087_v16 = vmul.f32 %v8697_v49, %v12192_v30 }
 0x1fd   : > { %3490 = vmatprep.mubr.bf16.mxu1 %v7268_v34  ;;  %v9899_v35 = vld [vmem:[#allocation2 + $0x60] sm:$0xf]  ;;  %v7284_v46 = vcombine.low %v9876_v48, %v9896_v63  ;;  %v1088_v20 = vmul.f32 %v8699_v1, %v12193_v51  ;;  %v9911_v52 = vld [vmem:[#allocation2 + $0x30] sm:$0xf]  ;;  %v1236_v12 = vrot.slane %v1234_v3, 7  ;;  %v1237_v44 = vshll.u32 %v7648_v33, 16 }
 0x1fe   : > { %3491 = vmatmul.mubr.bf16.gmra.mxu1 %v7260_v38  ;;  %v1572_v11 = vshrl.u32 %v9899_v35, 16  ;;  %v1575_v0 = vshll.u32 %v9899_v35, 16  ;;  %v1372_v47 = vld [vmem:[#allocation2 + $0x78] sm:$0xf]  ;;  %v9916_v23 = vrot.slane %v2178_v37, 4  ;;  %v9933_v37 = vsel %vm9568_vm11, %v7222_v6, %v1764_v22 }
 0x1ff   : > { %3587 = vmatprep.mubr.bf16.mxu0 %v7284_v46  ;;  %v1422_v36 = vld [vmem:[#allocation2 + $0x64] sm:$0x1]  ;;  %v1665_v58 = vld [vmem:[#allocation2 + $0x60] sm:$0xe]  ;;  %v1239_v45 = vor.u32 %v1237_v44, %v1236_v12  ;;  %v9939_v30 = vpack.c.bf16 %v1088_v20, %v1088_v20  ;;  %v1375_v22 = vld [vmem:[#allocation2 + $0x7c] sm:$0x1] }
 0x200   : > { %v1574_v49 = vrot.slane %v1572_v11, 4  ;;  %3588 = vmatmul.mubr.bf16.gmra.mxu0 %v7276_v4  ;;  %v9921_v34 = vld [vmem:[#allocation2 + $0x68] sm:$0xf]  ;;  %v1423_v3 = vld [vmem:[#allocation2 + $0x6c] sm:$0x1]  ;;  %v1577_v4 = vrot.slane %v1575_v0, 5  ;;  %v9937_v11 = vpack.c.bf16 %v1087_v16, %v1087_v16 }
 0x201   : > { %v9923_v9 = vld [vmem:[#allocation2 + $0x68] sm:$0xf]  ;;  %v1581_v46 = vshll.u32 %v1422_v36, 16  ;;  %v1373_v6 = vsel %vm9538_vm8, %v1239_v45, %v1372_v47  ;;  %v7218_v62 = vrot.slane %v1665_v58, 9  ;;  %v1595_v40 = vshll.u32 %v1423_v3, 16 }
 0x202   : > { %v1586_v44 = vshrl.u32 %v9923_v9, 16  ;;  %v1589_v50 = vshll.u32 %v9923_v9, 16  ;;  %v1666_v56 = vld [vmem:[#allocation2 + $0x68] sm:$0xe]  ;;  %v1578_v0 = vor.u32 %v1577_v4, %v1574_v49  ;;  %1374 = vst [vmem:[#allocation2 + $0x78] sm:$0xf] %v1373_v6 }
 0x203   : > { %v9941_v51 = vld [vmem:[#allocation2 + $0x70] sm:$0xf]  ;;  %v1583_v15 = vrot.slane %v1581_v46, 5  ;;  %v1748_v45 = vrot.slane %v1422_v36, 5  ;;  %v7219_v33 = vrot.slane %v1666_v56, 9  ;;  %v1752_v57 = vrot.slane %v1423_v3, 5 }
 0x204   : > { %v7285_v20 = vcombine.low %v9921_v34, %v9941_v51  ;;  %v9954_v38 = vld [vmem:[#allocation2 + $0x70] sm:$0xf]  ;;  %v1588_v60 = vrot.slane %v1586_v44, 4  ;;  %v1591_v13 = vrot.slane %v1589_v50, 5  ;;  %v1579_v47 = vrot.slane %v1578_v0, 4 }
 0x205   : > { %v1597_v16 = vrot.slane %v1595_v40, 5  ;;  %v1240_v18 = vrot.slane %v1236_v12, 4  ;;  %v1424_v48 = vld [vmem:[#allocation2 + $0x74] sm:$0x1]  ;;  %v1600_v49 = vshrl.u32 %v9954_v38, 16  ;;  %v1749_v4 = vsel %vm9568_vm11, %v7218_v62, %v1748_v45 }
 0x206   : > { %3595 = vmatprep.mubr.bf16.mxu0 %v7285_v20  ;;  %v1592_v1 = vor.u32 %v1591_v13, %v1588_v60  ;;  %v1584_v58 = vsel %vm9601_vm12, %v1579_v47, %v1583_v15  ;;  %v1753_v46 = vsel %vm9568_vm11, %v7219_v33, %v1752_v57  ;;  %v1603_v36 = vshll.u32 %v9954_v38, 16  ;;  %v9964_v56 = vld [vmem:[#allocation2 + $0x40] sm:$0xf]  ;;  %v9966_v3 = vld [vmem:[#allocation2 + $0x48] sm:$0xf] }
 0x207   : > { %v7277_v13 = vcombine.low %v1749_v4, %v1753_v46  ;;  %v1376_v60 = vsel %vm9196_vm2, %v1240_v18, %v1375_v22  ;;  %v1602_v12 = vrot.slane %v1600_v49, 4  ;;  %v1667_v44 = vld [vmem:[#allocation2 + $0x70] sm:$0xe]  ;;  %v1609_v50 = vshll.u32 %v1424_v48, 16  ;;  %v1387_v22 = vld [vmem:[#allocation2 + $0x8c] sm:$0x1] }
 0x208   : > { %v1593_v40 = vrot.slane %v1592_v1, 4  ;;  %1377 = vst [vmem:[#allocation2 + $0x7c] sm:$0x1] %v1376_v60  ;;  %v1605_v62 = vrot.slane %v1603_v36, 5  ;;  %v1250_v57 = vshrl.u32 %v9937_v11, 16  ;;  %v1253_v18 = vshll.u32 %v9937_v11, 16 }
 0x209   : > { %3596 = vmatmul.mubr.bf16.gmra.mxu0 %v7277_v13  ;;  %v9975_v1 = vld [vmem:[#allocation2 + $0x78] sm:$0xf]  ;;  %v7261_v45 = vcombine.low %v9899_v35, %v9923_v9  ;;  %v7220_v4 = vrot.slane %v1667_v44, 9  ;;  %v1611_v13 = vrot.slane %v1609_v50, 5  ;;  %v1258_v60 = vshrl.u32 %v9939_v30, 16 }
 0x20a   : > { %v1598_v6 = vsel %vm9601_vm12, %v1593_v40, %v1597_v16  ;;  %12194 = vst [vmem:[#allocation37_spill] sm:$0xff] %v9975_v1  ;;  %v9977_v20 = vld [vmem:[#allocation2 + $0x78] sm:$0xf]  ;;  %v7286_v47 = vcombine.low %v9975_v1, %v9789_v24  ;;  %v1606_v16 = vor.u32 %v1605_v62, %v1602_v12  ;;  %v1756_v40 = vrot.slane %v1424_v48, 5  ;;  %v1384_v44 = vld [vmem:[#allocation2 + $0x88] sm:$0xf] }
 0x20b   : > { %v7269_v0 = vcombine.low %v1584_v58, %v1598_v6  ;;  %v1668_v49 = vld [vmem:[#allocation2 + $0x78] sm:$0xe]  ;;  %v1614_v46 = vshrl.u32 %v9977_v20, 16  ;;  %v1617_v36 = vshll.u32 %v9977_v20, 16  ;;  %v1252_v58 = vrot.slane %v1250_v57, 7 }
 0x20c   : > { %3603 = vmatprep.mubr.bf16.mxu0 %v7286_v47  ;;  %v1607_v6 = vrot.slane %v1606_v16, 4  ;;  %v7221_v9 = vrot.slane %v1668_v49, 9  ;;  %v9990_v15 = vrot.slane %v1258_v60, 7  ;;  %v1261_v48 = vshll.u32 %v9939_v30, 16  ;;  %v1786_v30 = vld [vmem:[#allocation2 + $0xc] sm:$0x1] }
 0x20d   : > { %3498 = vmatprep.mubr.bf16.mxu1 %v7269_v0  ;;  %v1616_v33 = vrot.slane %v1614_v46, 4  ;;  %v1619_v35 = vrot.slane %v1617_v36, 5  ;;  %v1255_v12 = vor.u32 %v1253_v18, %v1252_v58  ;;  %v1256_v62 = vrot.slane %v1252_v58, 4  ;;  %v2026_v60 = vld [vmem:[#allocation2 + $0x8] sm:$0xe] }
 0x20e   : > { %3499 = vmatmul.mubr.bf16.gmra.mxu1 %v7261_v45  ;;  %12195 = vst [vmem:[#allocation38_spill] sm:$0xff] %v9990_v15  ;;  %v1757_v57 = vsel %vm9568_vm11, %v7220_v4, %v1756_v40  ;;  %v1390_v45 = vld [vmem:[#allocation2 + $0x90] sm:$0xf]  ;;  %v12196_v16 = vshll.u32 %v9798_v32, 16  ;;  %v1612_v18 = vsel %vm9601_vm12, %v1607_v6, %v1611_v13  ;;  %v1263_v58 = vor.u32 %v1261_v48, %v9990_v15  ;;  %v2029_v24 = vld [vmem:[#allocation2 + $0x20] sm:$0xe] }
 0x20f   : > { %v1425_v47 = vld [vmem:[#allocation2 + $0x7c] sm:$0x1]  ;;  %v1620_v50 = vor.u32 %v1619_v35, %v1616_v33  ;;  %v1385_v33 = vsel %vm9538_vm8, %v1255_v12, %v1384_v44  ;;  %v1388_v4 = vsel %vm9196_vm2, %v1256_v62, %v1387_v22  ;;  %v1787_v35 = vld [vmem:[#allocation2 + $0x14] sm:$0x1]  ;;  %v12197_v48 = vshll.u32 %v9892_v25, 16 }
 0x210   : > { %v2191_v46 = vrot.slane %v12196_v16, 5  ;;  %v1623_v49 = vshll.u32 %v1425_v47, 16  ;;  %v1760_v36 = vrot.slane %v1425_v47, 5  ;;  %v2027_v16 = vld [vmem:[#allocation2 + $0x10] sm:$0xe]  ;;  %v1391_v6 = vsel %vm9538_vm8, %v1263_v58, %v1390_v45 }
 0x211   : > { %v1621_v11 = vrot.slane %v1620_v50, 4  ;;  %1386 = vst [vmem:[#allocation2 + $0x88] sm:$0xf] %v1385_v33  ;;  %1389 = vst [vmem:[#allocation2 + $0x8c] sm:$0x1] %v1388_v4  ;;  %v2197_v47 = vrot.slane %v12197_v48, 5 }
 0x212   : > { %v2192_v40 = vor.u32 %v2191_v46, %v9901_v61  ;;  %v1625_v0 = vrot.slane %v1623_v49, 5  ;;  %v1761_v13 = vsel %vm9568_vm11, %v7221_v9, %v1760_v36  ;;  %1392 = vst [vmem:[#allocation2 + $0x90] sm:$0xf] %v1391_v6  ;;  %v1812_v22 = vshll.u32 %v1786_v30, 16  ;;  %v10016_v25 = vld [vmem:[#allocation2 + $0x24] sm:$0x1] }
 0x213   : > { %v7278_v44 = vcombine.low %v1757_v57, %v1761_v13  ;;  %v7224_v62 = vrot.slane %v2026_v60, 9  ;;  %v1826_v50 = vshll.u32 %v1787_v35, 16  ;;  %v2076_v46 = vrot.slane %v1786_v30, 5  ;;  %12198 = vst [vmem:[#allocation43_spill] sm:$0xff] %v10016_v25  ;;  %v10024_v30 = vld [vmem:[#allocation2 + $0x60] sm:$0xf] }
 0x214   : > { %v2193_v12 = vrot.slane %v2192_v40, 4  ;;  %v1626_v61 = vsel %vm9601_vm12, %v1621_v11, %v1625_v0  ;;  %v7225_v49 = vrot.slane %v2027_v16, 9  ;;  %v2080_v58 = vrot.slane %v1787_v35, 5  ;;  %v10026_v33 = vld [vmem:[#allocation2 + $0x68] sm:$0xf] }
 0x215   : > { %v7270_v45 = vcombine.low %v1612_v18, %v1626_v61  ;;  %3604 = vmatmul.mubr.bf16.gmra.mxu0 %v7278_v44  ;;  %v7262_v57 = vcombine.low %v9954_v38, %v9977_v20  ;;  %v2200_v11 = vshrl.u32 %v9872_v28, 16  ;;  %v2203_v0 = vshll.u32 %v9872_v28, 16  ;;  %v10039_v20 = vld [vmem:[#allocation2 + $0x2c] sm:$0x1]  ;;  %v10041_v35 = vld [vmem:[#allocation2 + $0x70] sm:$0xf] }
 0x216   : > { %v2198_v60 = vsel %vm9601_vm12, %v2193_v12, %v2197_v47  ;;  %v10029_v4 = vrot.slane %v1812_v22, 5  ;;  %v10033_v40 = vsel %vm9568_vm11, %v7224_v62, %v2076_v46  ;;  %v10037_v38 = vsel %vm9568_vm11, %v7225_v49, %v2080_v58  ;;  %12199 = vst [vmem:[#allocation44_spill] sm:$0xff] %v10039_v20  ;;  %v10044_v47 = vld [vmem:[#allocation2 + $0x78] sm:$0xf]  ;;  %v10074_v46 = vld [vmem:[#allocation2 + $0x1c] sm:$0x1] }
 0x217   : > { %3506 = vmatprep.mubr.bf16.mxu1 %v7270_v45  ;;  %v1828_v16 = vrot.slane %v1826_v50, 5  ;;  %v2202_v13 = vrot.slane %v2200_v11, 4  ;;  %v2205_v6 = vrot.slane %v2203_v0, 5  ;;  %v2209_v48 = vshll.u32 %v10016_v25, 16  ;;  %v10076_v58 = vld [vmem:[#allocation2 + $0x24] sm:$0x1] }
 0x218   : > { %3507 = vmatmul.mubr.bf16.gmra.mxu1 %v7262_v57  ;;  %v10046_v44 = vld [vmem:[#allocation2 + $0x88] sm:$0xf]  ;;  %v12200_v22 = vsel %vm9601_vm12, %v9916_v23, %v9894_v29  ;;  %v2214_v61 = vshrl.u32 %v9874_v43, 16  ;;  %v2217_v50 = vshll.u32 %v9874_v43, 16  ;;  %v1427_v45 = vld [vmem:[#allocation2 + $0x8c] sm:$0x1] }
 0x219   : > { %v10048_v12 = vld [vmem:[#allocation2 + $0x88] sm:$0xf]  ;;  %v7312_v62 = vcombine.low %v12200_v22, %v2198_v60  ;;  %v10059_v49 = vld [vmem:[#allocation2 + $0x90] sm:$0xf]  ;;  %v2206_v57 = vor.u32 %v2205_v6, %v2202_v13  ;;  %v2223_v11 = vshll.u32 %v10039_v20, 16  ;;  %v1829_v29 = vsel %vm9601_vm12, %v9749_v21, %v1828_v16 }
 0x21a   : > { %12201 = vst [vmem:[#allocation45_spill] sm:$0xff] %v10059_v49  ;;  %v7287_v60 = vcombine.low %v10046_v44, %v10059_v49  ;;  %v1642_v0 = vshrl.u32 %v10048_v12, 16  ;;  %v1670_v22 = vld [vmem:[#allocation2 + $0x88] sm:$0xe]  ;;  %v1645_v36 = vshll.u32 %v10048_v12, 16  ;;  %v1651_v13 = vshll.u32 %v1427_v45, 16 }
 0x21b   : > { %v7223_v6 = vrot.slane %v1670_v22, 9  ;;  %v1768_v9 = vrot.slane %v1427_v45, 5  ;;  %v2207_v16 = vrot.slane %v2206_v57, 4  ;;  %v2211_v23 = vrot.slane %v2209_v48, 5  ;;  %v2028_v20 = vld [vmem:[#allocation2 + $0x18] sm:$0xe] }
 0x21c   : > { %3611 = vmatprep.mubr.bf16.mxu0 %v7287_v60  ;;  %v1644_v21 = vrot.slane %v1642_v0, 4  ;;  %v2216_v39 = vrot.slane %v2214_v61, 4  ;;  %v2002_v25 = vshll.u32 %v10046_v44, 16  ;;  %v1647_v49 = vrot.slane %v1645_v36, 5 }
 0x21d   : > { %v1769_v18 = vsel %vm9568_vm11, %v7223_v6, %v1768_v9  ;;  %v2219_v15 = vrot.slane %v2217_v50, 5  ;;  %v1653_v22 = vrot.slane %v1651_v13, 5  ;;  %v7263_v1 = vcombine.low %v9792_v54, %v10048_v12 }
 0x21e   : > { %v7279_v45 = vcombine.low %v9933_v37, %v1769_v18  ;;  %v2212_v57 = vsel %vm9601_vm12, %v2207_v16, %v2211_v23  ;;  %v1648_v48 = vor.u32 %v1647_v49, %v1644_v21  ;;  %v2225_v60 = vrot.slane %v2223_v11, 5 }
 0x21f   : > { %v2220_v61 = vor.u32 %v2219_v15, %v2216_v39  ;;  %v12202_v36 = vor.u32 %v9735_v2, %v9665_v7  ;;  %v7226_v9 = vrot.slane %v2028_v20, 9  ;;  %v2084_v50 = vrot.slane %v10074_v46, 5  ;;  %v10094_v39 = vld [vmem:[#allocation2 + $0x34] sm:$0x1]  ;;  %v10107_v20 = vld [vmem:[#allocation2 + $0x3c] sm:$0x1] }
 0x220   : > { %3612 = vmatmul.mubr.bf16.gmra.mxu0 %v7279_v45  ;;  %v7227_v13 = vrot.slane %v2029_v24, 9  ;;  %v2088_v37 = vrot.slane %v10076_v58, 5  ;;  %v1649_v18 = vrot.slane %v1648_v48, 4  ;;  %v2228_v15 = vshrl.u32 %v9911_v52, 16 }
 0x221   : > { %v1810_v0 = vrot.slane %v12202_v36, 4  ;;  %3749 = vmatprep.mubr.bf16.mxu0 %v7312_v62  ;;  %v2221_v54 = vrot.slane %v2220_v61, 4  ;;  %v10101_v2 = vsel %vm9568_vm11, %v7226_v9, %v2084_v50  ;;  %v2231_v62 = vshll.u32 %v9911_v52, 16 }
 0x222   : > { %v10105_v24 = vsel %vm9568_vm11, %v7227_v13, %v2088_v37  ;;  %v12203_v23 = vsel %vm9601_vm12, %v9890_v53, %v9850_v10  ;;  %v2237_v45 = vshll.u32 %v10094_v39, 16  ;;  %v2242_v48 = vshrl.u32 %v9913_v27, 16  ;;  %v2030_v13 = vld [vmem:[#allocation2 + $0x28] sm:$0xe] }
 0x223   : > { %v1815_v12 = vsel %vm9601_vm12, %v1810_v0, %v10029_v4  ;;  %v1654_v4 = vsel %vm9601_vm12, %v1649_v18, %v1653_v22  ;;  %v2226_v49 = vsel %vm9601_vm12, %v2221_v54, %v2225_v60  ;;  %v7297_v11 = vcombine.low %v10101_v2, %v10105_v24  ;;  %v10127_v0 = vld [vmem:[#allocation2 + $0x2c] sm:$0x1] }
 0x224   : > { %v10097_v7 = vcombine.low %v1815_v12, %v1829_v29  ;;  %v2230_v29 = vrot.slane %v2228_v15, 4  ;;  %v7271_v6 = vcombine.low %v12203_v23, %v1654_v4  ;;  %v7313_v21 = vcombine.low %v2212_v57, %v2226_v49 }
 0x225   : > { %v2233_v16 = vrot.slane %v2231_v62, 5  ;;  %v2245_v22 = vshll.u32 %v9913_v27, 16  ;;  %v2251_v61 = vshll.u32 %v10107_v20, 16  ;;  %v12204_v60 = vshrl.u32 %v9617_v41, 16  ;;  %v2031_v62 = vld [vmem:[#allocation2 + $0x30] sm:$0xe] }
 0x226   : > { %3514 = vmatprep.mubr.bf16.mxu1 %v7271_v6  ;;  %v2239_v50 = vrot.slane %v2237_v45, 5  ;;  %v12205_v10 = vshll.u32 %v9617_v41, 16  ;;  %v1840_v57 = vshll.u32 %v10074_v46, 16  ;;  %v2244_v37 = vrot.slane %v2242_v48, 4  ;;  %v10142_v6 = vld [vmem:[#allocation2 + $0x34] sm:$0x1] }
 0x227   : > { %v1833_v36 = vrot.slane %v12204_v60, 4  ;;  %v2234_v9 = vor.u32 %v2233_v16, %v2230_v29  ;;  %3515 = vmatmul.mubr.bf16.gmra.mxu1 %v7263_v1  ;;  %v2247_v18 = vrot.slane %v2245_v22, 5  ;;  %v2253_v54 = vrot.slane %v2251_v61, 5  ;;  %v10148_v61 = vld [vmem:[#allocation2 + $0x44] sm:$0x1] }
 0x228   : > { %v1836_v53 = vrot.slane %v12205_v10, 5  ;;  %v12206_v12 = vshrl.u32 %v9627_v42, 16  ;;  %v12207_v4 = vcombine.low %v10033_v40, %v10037_v38  ;;  %v12208_v49 = vcombine.low %v9796_v5, %v9798_v32 }
 0x229   : > { %v2235_v41 = vrot.slane %v2234_v9, 4  ;;  %v1842_v46 = vrot.slane %v1840_v57, 5  ;;  %v12209_v1 = vshll.u32 %v9627_v42, 16  ;;  %v2248_v16 = vor.u32 %v2247_v18, %v2244_v37  ;;  %v8523_v57 = vld [vmem:[#allocation8 + $0x230] sm:$0xff]  }
 0x22a   : > { %v1847_v15 = vrot.slane %v12206_v12, 4  ;;  %3652 = vmatprep.mubr.bf16.mxu1 %v12207_v4  ;;  %3750 = vmatmul.mubr.bf16.vlgmr.msra.gmra.mxu0 %v12208_v49  ;;  %v1837_v29 = vor.u32 %v1836_v53, %v1833_v36  ;;  %v1854_v45 = vshll.u32 %v10076_v58, 16  ;;  %v7228_v48 = vrot.slane %v2030_v13, 9  ;;  %v10168_v4 = vld [vmem:[#allocation2 + $0x4c] sm:$0x1] }
 0x22b   : > { %v1850_v23 = vrot.slane %v12209_v1, 5  ;;  %3757 = vmatprep.mubr.bf16.mxu0 %v7313_v21  ;;  %v2092_v40 = vrot.slane %v10127_v0, 5  ;;  %v2240_v38 = vsel %vm9601_vm12, %v2235_v41, %v2239_v50  ;;  %v7229_v22 = vrot.slane %v2031_v62, 9  ;;  %v10171_v1 = vld [vmem:[#allocation2 + $0x3c] sm:$0x1] }
 0x22c   : > { %v1838_v5 = vrot.slane %v1837_v29, 4  ;;  %v2249_v60 = vrot.slane %v2248_v16, 4  ;;  %v1856_v42 = vrot.slane %v1854_v45, 5  ;;  %v2096_v21 = vrot.slane %v10142_v6, 5 }
 0x22d   : > { %v1851_v32 = vor.u32 %v1850_v23, %v1847_v15  ;;  %v10152_v36 = vsel %vm9568_vm11, %v7228_v48, %v2092_v40  ;;  %v2256_v10 = vshrl.u32 %v9964_v56, 16  ;;  %v2259_v50 = vshll.u32 %v9964_v56, 16 }
 0x22e   : > { %v1843_v58 = vsel %vm9601_vm12, %v1838_v5, %v1842_v46  ;;  %v2254_v53 = vsel %vm9601_vm12, %v2249_v60, %v2253_v54  ;;  %v2097_v13 = vsel %vm9568_vm11, %v7229_v22, %v2096_v21  ;;  %v2265_v37 = vshll.u32 %v10148_v61, 16 }
 0x22f   : > { %v1852_v9 = vrot.slane %v1851_v32, 4  ;;  %v2270_v18 = vshrl.u32 %v9966_v3, 16  ;;  %v7314_v12 = vcombine.low %v2240_v38, %v2254_v53  ;;  %v7298_v62 = vcombine.low %v10152_v36, %v2097_v13  ;;  %3653 = vmatmul.mubr.bf16.vlgmr.msra.gmra.mxu1 %v10097_v7  ;;  %v2032_v38 = vld [vmem:[#allocation2 + $0x38] sm:$0xe]  ;;  %v8525_v32 = vld [vmem:[#allocation8 + $0x228] sm:$0xff]  }
 0x230   : > { %v2258_v49 = vrot.slane %v2256_v10, 4  ;;  %v2261_v41 = vrot.slane %v2259_v50, 5  ;;  %v2267_v29 = vrot.slane %v2265_v37, 5  ;;  %8263 = vmatpush3.bf16.msra.mxu1 %v9820_v8  ;;  %3660 = vmatprep.mubr.bf16.mxu1 %v7297_v11  ;;  %v2273_v23 = vshll.u32 %v9966_v3, 16  ;;  %v10195_v37 = vld [vmem:[#allocation2 + $0x64] sm:$0x1] }
 0x231   : > { %v1857_v15 = vsel %vm9601_vm12, %v1852_v9, %v1856_v42  ;;  %v2272_v46 = vrot.slane %v2270_v18, 4  ;;  %v2279_v16 = vshll.u32 %v10168_v4, 16  ;;  %v12210_v45 = vshrl.u32 %v9671_v59, 16  ;;  %8264 = vmatprep.subr.bf16.mxu1 %v8523_v57  ;;  %v2033_v42 = vld [vmem:[#allocation2 + $0x40] sm:$0xe] }
 0x232   : > { %v7289_v54 = vcombine.low %v1843_v58, %v1857_v15  ;;  %v12211_v7 = vshll.u32 %v9671_v59, 16  ;;  %v12212_v5 = vcombine.low %v9872_v28, %v9874_v43  ;;  %v2262_v8 = vor.u32 %v2261_v41, %v2258_v49  ;;  %v10192_v28 = vld [vmem:[#allocation2 + $0x44] sm:$0x1] }
 0x233   : > { %v1861_v48 = vrot.slane %v12210_v45, 4  ;;  %v1868_v2 = vshll.u32 %v10127_v0, 16  ;;  %v12213_v24 = vshrl.u32 %v9661_v31, 16  ;;  %v12214_v22 = vshll.u32 %v9661_v31, 16  ;;  %v8527_v49 = vld [vmem:[#allocation8 + $0x220] sm:$0xff]  }
 0x234   : > { %v1864_v40 = vrot.slane %v12211_v7, 5  ;;  %3758 = vmatmul.mubr.bf16.gmra.mxu0 %v12212_v5  ;;  %v2275_v59 = vrot.slane %v2273_v23, 5  ;;  %v2281_v36 = vrot.slane %v2279_v16, 5  ;;  %v1882_v58 = vshll.u32 %v10142_v6, 16  ;;  %8265 = vmatpush3.bf16.msra.mxu1 %v8523_v57  ;;  %v10209_v45 = vld [vmem:[#allocation2 + $0x6c] sm:$0x1] }
 0x235   : > { %v1875_v11 = vrot.slane %v12213_v24, 4  ;;  %v1878_v60 = vrot.slane %v12214_v22, 5  ;;  %3765 = vmatprep.mubr.bf16.mxu0 %v7314_v12  ;;  %v2263_v43 = vrot.slane %v2262_v8, 4  ;;  %v1870_v9 = vrot.slane %v1868_v2, 5  ;;  %8266 = vmatprep.subr.bf16.mxu1 %v8525_v32 }
 0x236   : > { %v1865_v21 = vor.u32 %v1864_v40, %v1861_v48  ;;  %v7230_v50 = vrot.slane %v2032_v38, 9  ;;  %v2276_v0 = vor.u32 %v2275_v59, %v2272_v46  ;;  %v1884_v13 = vrot.slane %v1882_v58, 5 }
 0x237   : > { %v1879_v10 = vor.u32 %v1878_v60, %v1875_v11  ;;  %v2100_v31 = vrot.slane %v10171_v1, 5  ;;  %v2268_v18 = vsel %vm9601_vm12, %v2263_v43, %v2267_v29  ;;  %v7231_v6 = vrot.slane %v2033_v42, 9  ;;  %3661 = vmatmul.mubr.bf16.gmra.mxu1 %v7289_v54  ;;  %v10219_v60 = vld [vmem:[#allocation2 + $0x5c] sm:$0x1] }
 0x238   : > { %v1866_v53 = vrot.slane %v1865_v21, 4  ;;  %v2104_v15 = vrot.slane %v10192_v28, 5  ;;  %v2277_v41 = vrot.slane %v2276_v0, 4  ;;  %v2284_v23 = vshrl.u32 %v10024_v30, 16  ;;  %3668 = vmatprep.mubr.bf16.mxu1 %v7298_v62  ;;  %8267 = vmatpush3.bf16.msra.mxu1 %v8525_v32  ;;  %v8529_v62 = vld [vmem:[#allocation8 + $0x218] sm:$0xff]  }
 0x239   : > { %v1880_v12 = vrot.slane %v1879_v10, 4  ;;  %v2101_v46 = vsel %vm9568_vm11, %v7230_v50, %v2100_v31  ;;  %v2287_v48 = vshll.u32 %v10024_v30, 16  ;;  %v2293_v7 = vshll.u32 %v10195_v37, 16  ;;  %8268 = vmatprep.subr.bf16.mxu1 %v8527_v49  ;;  %v10230_v0 = vld [vmem:[#allocation2 + $0x64] sm:$0x1] }
 0x23a   : > { %v1871_v57 = vsel %vm9601_vm12, %v1866_v53, %v1870_v9  ;;  %v2105_v29 = vsel %vm9568_vm11, %v7231_v6, %v2104_v15  ;;  %v2282_v40 = vsel %vm9601_vm12, %v2277_v41, %v2281_v36  ;;  %v2286_v54 = vrot.slane %v2284_v23, 4 }
 0x23b   : > { %v1885_v16 = vsel %vm9601_vm12, %v1880_v12, %v1884_v13  ;;  %v7299_v5 = vcombine.low %v2101_v46, %v2105_v29  ;;  %v12215_v8 = vcombine.low %v9911_v52, %v9913_v27  ;;  %v7315_v2 = vcombine.low %v2268_v18, %v2282_v40  ;;  %v2034_v27 = vld [vmem:[#allocation2 + $0x58] sm:$0xe] }
 0x23c   : > { %v7290_v38 = vcombine.low %v1871_v57, %v1885_v16  ;;  %v2289_v24 = vrot.slane %v2287_v48, 5  ;;  %v2295_v11 = vrot.slane %v2293_v7, 5  ;;  %v2298_v22 = vshrl.u32 %v10026_v33, 16  ;;  %8269 = vmatpush3.bf16.msra.mxu1 %v8527_v49  ;;  %v10236_v48 = vld [vmem:[#allocation2 + $0x74] sm:$0x1] }
 0x23d   : > { %3766 = vmatmul.mubr.bf16.gmra.mxu0 %v12215_v8  ;;  %v2301_v42 = vshll.u32 %v10026_v33, 16  ;;  %v2307_v59 = vshll.u32 %v10209_v45, 16  ;;  %v12216_v32 = vshrl.u32 %v9761_v26, 16  ;;  %v12217_v21 = vshll.u32 %v9761_v26, 16  ;;  %v2035_v26 = vld [vmem:[#allocation2 + $0x60] sm:$0xe]  ;;  %8270 = vmatprep.subr.bf16.mxu1 %v8529_v62 }
 0x23e   : > { %3773 = vmatprep.mubr.bf16.mxu0 %v7315_v2  ;;  %v2290_v58 = vor.u32 %v2289_v24, %v2286_v54  ;;  %v2300_v43 = vrot.slane %v2298_v22, 4  ;;  %v1896_v9 = vshll.u32 %v10171_v1, 16  ;;  %v12218_v10 = vshrl.u32 %v9774_v19, 16  ;;  %v8531_v1 = vld [vmem:[#allocation8 + $0x210] sm:$0xff]  }
 0x23f   : > { %v1889_v36 = vrot.slane %v12216_v32, 4  ;;  %v1892_v52 = vrot.slane %v12217_v21, 5  ;;  %v2303_v53 = vrot.slane %v2301_v42, 5  ;;  %v2309_v13 = vrot.slane %v2307_v59, 5  ;;  %3669 = vmatmul.mubr.bf16.gmra.mxu1 %v7290_v38  ;;  %v8533_v59 = vld [vmem:[#allocation8 + $0x208] sm:$0xff]  }
 0x240   : > { %v1903_v50 = vrot.slane %v12218_v10, 4  ;;  %v12219_v18 = vshll.u32 %v9774_v19, 16  ;;  %v2291_v6 = vrot.slane %v2290_v58, 4  ;;  %v1898_v15 = vrot.slane %v1896_v9, 5  ;;  %3676 = vmatprep.mubr.bf16.mxu1 %v7299_v5  ;;  %8271 = vmatpush3.bf16.msra.mxu1 %v8529_v62 }
 0x241   : > { %v1893_v31 = vor.u32 %v1892_v52, %v1889_v36  ;;  %v1910_v41 = vshll.u32 %v10192_v28, 16  ;;  %v7232_v57 = vrot.slane %v2034_v27, 9  ;;  %v2304_v46 = vor.u32 %v2303_v53, %v2300_v43  ;;  %8272 = vmatprep.subr.bf16.mxu1 %v8531_v1 }
 0x242   : > { %v1906_v12 = vrot.slane %v12219_v18, 5  ;;  %v2108_v29 = vrot.slane %v10219_v60, 5  ;;  %v2296_v19 = vsel %vm9601_vm12, %v2291_v6, %v2295_v11  ;;  %v7233_v7 = vrot.slane %v2035_v26, 9  ;;  %v10250_v11 = vld [vmem:[#allocation2 + $0x7c] sm:$0x1] }
 0x243   : > { %v1894_v23 = vrot.slane %v1893_v31, 4  ;;  %v1912_v49 = vrot.slane %v1910_v41, 5  ;;  %v2112_v40 = vrot.slane %v10230_v0, 5  ;;  %v2305_v28 = vrot.slane %v2304_v46, 4  ;;  %v8535_v41 = vld [vmem:[#allocation8 + $0x200] sm:$0xff]  }
 0x244   : > { %v1907_v16 = vor.u32 %v1906_v12, %v1903_v50  ;;  %v2109_v2 = vsel %vm9568_vm11, %v7232_v57, %v2108_v29  ;;  %v12220_v38 = vcombine.low %v9964_v56, %v9966_v3  ;;  %v2312_v5 = vshrl.u32 %v10041_v35, 16  ;;  %v10262_v50 = vld [vmem:[#allocation2 + $0x6c] sm:$0x1]  ;;  %8273 = vmatpush3.bf16.msra.mxu1 %v8531_v1 }
 0x245   : > { %v1899_v54 = vsel %vm9601_vm12, %v1894_v23, %v1898_v15  ;;  %v2113_v24 = vsel %vm9568_vm11, %v7233_v7, %v2112_v40  ;;  %v2315_v22 = vshll.u32 %v10041_v35, 16  ;;  %v2321_v42 = vshll.u32 %v10236_v48, 16  ;;  %v2036_v15 = vld [vmem:[#allocation2 + $0x68] sm:$0xe]  ;;  %8274 = vmatprep.subr.bf16.mxu1 %v8533_v59 }
 0x246   : > { %v1908_v8 = vrot.slane %v1907_v16, 4  ;;  %3774 = vmatmul.mubr.bf16.gmra.mxu0 %v12220_v38  ;;  %v2310_v62 = vsel %vm9601_vm12, %v2305_v28, %v2309_v13  ;;  %v7300_v3 = vcombine.low %v2109_v2, %v2113_v24  ;;  %v2326_v32 = vshrl.u32 %v10044_v47, 16  ;;  %v12221_v13 = vld [vmem:[#allocation36_spill] sm:$0xff]  ;;  %v10277_v24 = vld [vmem:[#allocation2 + $0x80] sm:$0xf] }
 0x247   : > { %v7316_v36 = vcombine.low %v2296_v19, %v2310_v62  ;;  %v2314_v52 = vrot.slane %v2312_v5, 4  ;;  %v2317_v27 = vrot.slane %v2315_v22, 5  ;;  %v2323_v58 = vrot.slane %v2321_v42, 5  ;;  %v2037_v19 = vld [vmem:[#allocation2 + $0x70] sm:$0xe] }
 0x248   : > { %v1913_v56 = vsel %vm9601_vm12, %v1908_v8, %v1912_v49  ;;  %v2328_v43 = vrot.slane %v2326_v32, 4  ;;  %v2329_v9 = vshll.u32 %v10044_v47, 16  ;;  %v2335_v10 = vshll.u32 %v10250_v11, 16  ;;  %v10279_v5 = vld [vmem:[#allocation2 + $0x84] sm:$0x1]  ;;  %8275 = vmatpush3.bf16.msra.mxu1 %v8533_v59 }
 0x249   : > { %v7291_v21 = vcombine.low %v1899_v54, %v1913_v56  ;;  %3781 = vmatprep.mubr.bf16.mxu0 %v7316_v36  ;;  %v2318_v53 = vor.u32 %v2317_v27, %v2314_v52  ;;  %v12222_v31 = vshrl.u32 %v12221_v13, 16  ;;  %v12223_v12 = vshll.u32 %v12221_v13, 16  ;;  %v10274_v54 = vld [vmem:[#allocation2 + $0x74] sm:$0x1]  ;;  %v10286_v56 = vld [vmem:[#allocation2 + $0x88] sm:$0xf]  ;;  %8276 = vmatprep.subr.bf16.mxu1 %v8535_v41 }
 0x24a   : > { %v1924_v6 = vshll.u32 %v10219_v60, 16  ;;  %v2331_v57 = vrot.slane %v2329_v9, 5  ;;  %v2337_v46 = vrot.slane %v2335_v10, 5  ;;  %v12224_v23 = vshrl.u32 %v9896_v63, 16  ;;  %v10302_v9 = vld [vmem:[#allocation2 + $0x8c] sm:$0x1] }
 0x24b   : > { %v1917_v18 = vrot.slane %v12222_v31, 4  ;;  %v1920_v26 = vrot.slane %v12223_v12, 5  ;;  %v12225_v1 = vshll.u32 %v9896_v63, 16  ;;  %3677 = vmatmul.mubr.bf16.gmra.mxu1 %v7291_v21  ;;  %v2319_v49 = vrot.slane %v2318_v53, 4 }
 0x24c   : > { %v1931_v16 = vrot.slane %v12224_v23, 4  ;;  %v1926_v40 = vrot.slane %v1924_v6, 5  ;;  %v1938_v28 = vshll.u32 %v10230_v0, 16  ;;  %3684 = vmatprep.mubr.bf16.mxu1 %v7300_v3  ;;  %v2332_v60 = vor.u32 %v2331_v57, %v2328_v43  ;;  %8277 = vmatpush3.bf16.msra.mxu1 %v8535_v41  ;;  %v2039_v57 = vld [vmem:[#allocation2 + $0x80] sm:$0xe] }
 0x24d   : > { %v1934_v29 = vrot.slane %v12225_v1, 5  ;;  %v1921_v7 = vor.u32 %v1920_v26, %v1917_v18  ;;  %v7234_v2 = vrot.slane %v2036_v15, 9  ;;  %v2116_v38 = vrot.slane %v10262_v50, 5 }
 0x24e   : > { %v12226_v63 = vcombine.low %v10024_v30, %v10026_v33  ;;  %v2324_v0 = vsel %vm9601_vm12, %v2319_v49, %v2323_v58  ;;  %v1940_v42 = vrot.slane %v1938_v28, 5  ;;  %v7235_v62 = vrot.slane %v2037_v19, 9  ;;  %v2038_v19 = vld [vmem:[#allocation2 + $0x78] sm:$0xe] }
 0x24f   : > { %v1935_v8 = vor.u32 %v1934_v29, %v1931_v16  ;;  %v1922_v22 = vrot.slane %v1921_v7, 4  ;;  %v2333_v3 = vrot.slane %v2332_v60, 4  ;;  %v2117_v36 = vsel %vm9568_vm11, %v7234_v2, %v2116_v38  ;;  %v1798_v2 = vld [vmem:[#allocation2 + $0x7c] sm:$0x1] }
 0x250   : > { %3782 = vmatmul.mubr.bf16.gmra.mxu0 %v12226_v63  ;;  %v2120_v59 = vrot.slane %v10274_v54, 5  ;;  %v2340_v33 = vshrl.u32 %v10277_v24, 16  ;;  %v2343_v21 = vshll.u32 %v10277_v24, 16  ;;  %v2349_v52 = vshll.u32 %v10279_v5, 16 }
 0x251   : > { %v1936_v32 = vrot.slane %v1935_v8, 4  ;;  %v1927_v30 = vsel %vm9601_vm12, %v1922_v22, %v1926_v40  ;;  %v2338_v27 = vsel %vm9601_vm12, %v2333_v3, %v2337_v46  ;;  %v2354_v10 = vshrl.u32 %v10286_v56, 16  ;;  %v1799_v22 = vld [vmem:[#allocation2 + $0x84] sm:$0x1] }
 0x252   : > { %v2121_v43 = vsel %vm9568_vm11, %v7235_v62, %v2120_v59  ;;  %v7317_v53 = vcombine.low %v2324_v0, %v2338_v27  ;;  %v2342_v18 = vrot.slane %v2340_v33, 4  ;;  %v2345_v12 = vrot.slane %v2343_v21, 5  ;;  %v813_v21 = vld [vmem:[#allocation2 + $0x94] sm:$0x1] }
 0x253   : > { %v1941_v58 = vsel %vm9601_vm12, %v1936_v32, %v1940_v42  ;;  %v7301_v31 = vcombine.low %v2117_v36, %v2121_v43  ;;  %v2351_v26 = vrot.slane %v2349_v52, 5  ;;  %v2356_v6 = vrot.slane %v2354_v10, 4  ;;  %v754_v36 = vld [vmem:[#allocation2 + $0x98] sm:$0x1] }
 0x254   : > { %v7292_v13 = vcombine.low %v1927_v30, %v1941_v58  ;;  %v2357_v15 = vshll.u32 %v10286_v56, 16  ;;  %3789 = vmatprep.mubr.bf16.mxu0 %v7317_v53  ;;  %v2363_v46 = vshll.u32 %v10302_v9, 16  ;;  %v12227_v23 = vshrl.u32 %v9921_v34, 16  ;;  %v816_v58 = vld [vmem:[#allocation2 + $0x9c] sm:$0x1] }
 0x255   : > { %v12228_v1 = vshll.u32 %v9921_v34, 16  ;;  %v1952_v29 = vshll.u32 %v10262_v50, 16  ;;  %v2346_v49 = vor.u32 %v2345_v12, %v2342_v18  ;;  %v12229_v40 = vshrl.u32 %v9941_v51, 16 }
 0x256   : > { %3685 = vmatmul.mubr.bf16.gmra.mxu1 %v7292_v13  ;;  %v1945_v16 = vrot.slane %v12227_v23, 4  ;;  %v2359_v7 = vrot.slane %v2357_v15, 5  ;;  %v12230_v60 = vshll.u32 %v9941_v51, 16  ;;  %v12231_v38 = vcombine.low %v10041_v35, %v10044_v47  ;;  %v10330_v13 = vld [vmem:[#allocation2 + $0x90] sm:$0xf] }
 0x257   : > { %v1948_v41 = vrot.slane %v12228_v1, 5  ;;  %3692 = vmatprep.mubr.bf16.mxu1 %v7301_v31  ;;  %v1959_v28 = vrot.slane %v12229_v40, 4  ;;  %v2365_v63 = vrot.slane %v2363_v46, 5  ;;  %v1954_v0 = vrot.slane %v1952_v29, 5 }
 0x258   : > { %v1962_v8 = vrot.slane %v12230_v60, 5  ;;  %3790 = vmatmul.mubr.bf16.gmra.mxu0 %v12231_v38  ;;  %v1966_v50 = vshll.u32 %v10274_v54, 16  ;;  %v2347_v42 = vrot.slane %v2346_v49, 4  ;;  %v2360_v62 = vor.u32 %v2359_v7, %v2356_v6  ;;  %v12236_v7 = vld [vmem:[#allocation42_spill] sm:$0xff] }
 0x259   : > { %v1949_v34 = vor.u32 %v1948_v41, %v1945_v16  ;;  %v7236_v32 = vrot.slane %v2038_v19, 9  ;;  %v2124_v51 = vrot.slane %v1798_v2, 5  ;;  %v7237_v33 = vrot.slane %v2039_v57, 9  ;;  %v12233_v16 = vld [vmem:[#allocation37_spill] sm:$0xff] }
 0x25a   : > { %v1963_v3 = vor.u32 %v1962_v8, %v1959_v28  ;;  %v1968_v30 = vrot.slane %v1966_v50, 5  ;;  %v2352_v35 = vsel %vm9601_vm12, %v2347_v42, %v2351_v26  ;;  %v2361_v47 = vrot.slane %v2360_v62, 4  ;;  %v12240_v50 = vld [vmem:[#allocation45_spill] sm:$0xff] }
 0x25b   : > { %v1950_v59 = vrot.slane %v1949_v34, 4  ;;  %v2128_v27 = vrot.slane %v1799_v22, 5  ;;  %v2125_v43 = vsel %vm9568_vm11, %v7236_v32, %v2124_v51  ;;  %v7310_v10 = vcombine.low %v10277_v24, %v10286_v56  ;;  %v12239_v34 = vld [vmem:[#allocation38_spill] sm:$0xff] }
 0x25c   : > { %v1964_v52 = vrot.slane %v1963_v3, 4  ;;  %v755_v53 = vsel %vm9196_vm2, 0, %v754_v36  ;;  %v2366_v31 = vsel %vm9601_vm12, %v2361_v47, %v2365_v63  ;;  %v814_v6 = vsel %vm9203_vm4, 0, %v813_v21 }
 0x25d   : > { %v1955_v54 = vsel %vm9601_vm12, %v1950_v59, %v1954_v0  ;;  %v2129_v12 = vsel %vm9568_vm11, %v7237_v33, %v2128_v27  ;;  %756 = vst [vmem:[#allocation2 + $0x98] sm:$0x1] %v755_v53  ;;  %v7318_v15 = vcombine.low %v2352_v35, %v2366_v31  ;;  %815 = vst [vmem:[#allocation2 + $0x94] sm:$0x1] %v814_v6  ;;  %v817_v57 = vsel %vm9203_vm4, 0, %v816_v58 }
 0x25e   : > { %v1969_v18 = vsel %vm9601_vm12, %v1964_v52, %v1968_v30  ;;  %v7302_v56 = vcombine.low %v2125_v43, %v2129_v12  ;;  %818 = vst [vmem:[#allocation2 + $0x9c] sm:$0x1] %v817_v57  ;;  %v2368_v46 = vshrl.u32 %v10330_v13, 16  ;;  %v2371_v23 = vshll.u32 %v10330_v13, 16 }
 0x25f   : > { %v7293_v24 = vcombine.low %v1955_v54, %v1969_v18  ;;  %v12234_v1 = vshrl.u32 %v12233_v16, 16  ;;  %v12235_v29 = vshll.u32 %v12233_v16, 16  ;;  %3797 = vmatprep.mubr.bf16.mxu0 %v7318_v15  ;;  %v1980_v49 = vshll.u32 %v1798_v2, 16  ;;  %v1800_v54 = vld [vmem:[#allocation2 + $0x8c] sm:$0x1] }
 0x260   : > { %v12237_v40 = vshrl.u32 %v12236_v7, 16  ;;  %v12238_v60 = vshll.u32 %v12236_v7, 16  ;;  %v1994_v38 = vshll.u32 %v1799_v22, 16  ;;  %3798 = vmatmul.mubr.bf16.gmra.mxu0 %v7310_v10  ;;  %v1264_v0 = vrot.slane %v12239_v34, 4  ;;  %v2040_v18 = vld [vmem:[#allocation2 + $0x88] sm:$0xe] }
 0x261   : > { %v1973_v41 = vrot.slane %v12234_v1, 4  ;;  %v1976_v19 = vrot.slane %v12235_v29, 5  ;;  %3693 = vmatmul.mubr.bf16.gmra.mxu1 %v7293_v24  ;;  %v2013_v42 = vshrl.u32 %v12240_v50, 16  ;;  %v2016_v62 = vshll.u32 %v12240_v50, 16  ;;  %v2395_v1 = vld [vmem:[#allocation2 + $0x10] sm:$0xe] }
 0x262   : > { %v1987_v28 = vrot.slane %v12237_v40, 4  ;;  %v1990_v8 = vrot.slane %v12238_v60, 5  ;;  %3700 = vmatprep.mubr.bf16.mxu1 %v7302_v56  ;;  %v2370_v32 = vrot.slane %v2368_v46, 4  ;;  %v2373_v36 = vrot.slane %v2371_v23, 5  ;;  %v2041_v46 = vld [vmem:[#allocation2 + $0x90] sm:$0xe] }
 0x263   : > { %v1977_v63 = vor.u32 %v1976_v19, %v1973_v41  ;;  %v1982_v59 = vrot.slane %v1980_v49, 5  ;;  %v1996_v33 = vrot.slane %v1994_v38, 5  ;;  %v12241_v22 = vshrl.u32 %v10046_v44, 16  ;;  %v2396_v29 = vld [vmem:[#allocation2 + $0x18] sm:$0xe] }
 0x264   : > { %v1991_v3 = vor.u32 %v1990_v8, %v1987_v28  ;;  %v10355_v30 = vld [vmem:[#allocation2 + $0x98] sm:$0xf]  ;;  %v2004_v35 = vrot.slane %v2002_v25, 5  ;;  %v1393_v47 = vld [vmem:[#allocation2 + $0x94] sm:$0x1]  ;;  %v2374_v53 = vor.u32 %v2373_v36, %v2370_v32  ;;  %v2008_v6 = vshll.u32 %v1800_v54, 16 }
 0x265   : > { %v1978_v2 = vrot.slane %v1977_v63, 4  ;;  %v2001_v21 = vrot.slane %v12241_v22, 4  ;;  %v2382_v52 = vshrl.u32 %v10355_v30, 16  ;;  %v2385_v27 = vshll.u32 %v10355_v30, 16  ;;  %v10369_v12 = vld [vmem:[#allocation2 + $0x9c] sm:$0x1] }
 0x266   : > { %v1992_v51 = vrot.slane %v1991_v3, 4  ;;  %v1394_v43 = vsel %vm9196_vm2, %v1264_v0, %v1393_v47  ;;  %v2015_v15 = vrot.slane %v2013_v42, 4  ;;  %v2018_v24 = vrot.slane %v2016_v62, 5  ;;  %v8769_v38 = vld [vmem:[#allocation2 + $0x14] sm:$0x1] }
 0x267   : > { %v1983_v58 = vsel %vm9601_vm12, %v1978_v2, %v1982_v59  ;;  %1395 = vst [vmem:[#allocation2 + $0x94] sm:$0x1] %v1394_v43  ;;  %v2384_v31 = vrot.slane %v2382_v52, 4  ;;  %v2387_v44 = vrot.slane %v2385_v27, 5  ;;  %v2005_v26 = vor.u32 %v2004_v35, %v2001_v21  ;;  %v8770_v62 = vld [vmem:[#allocation2 + $0x1c] sm:$0x1] }
 0x268   : > { %v1997_v10 = vsel %vm9601_vm12, %v1992_v51, %v1996_v33  ;;  %v2391_v57 = vshll.u32 %v10369_v12, 16  ;;  %v7238_v23 = vrot.slane %v2040_v18, 9  ;;  %v2132_v16 = vrot.slane %v1800_v54, 5  ;;  %v2398_v54 = vld [vmem:[#allocation2 + $0x28] sm:$0xe]  ;;  %v12243_v18 = vld [vmem:[#allocation44_spill] sm:$0xff] }
 0x269   : > { %v7294_v25 = vcombine.low %v1983_v58, %v1997_v10  ;;  %v2388_v56 = vor.u32 %v2387_v44, %v2384_v31  ;;  %v2019_v41 = vor.u32 %v2018_v24, %v2015_v15  ;;  %v2375_v19 = vrot.slane %v2374_v53, 4  ;;  %v2397_v58 = vld [vmem:[#allocation2 + $0x20] sm:$0xe]  ;;  %v2399_v53 = vld [vmem:[#allocation2 + $0x30] sm:$0xe]  ;;  %v12242_v44 = vld [vmem:[#allocation43_spill] sm:$0xff] }
 0x26a   : > { %v7239_v49 = vrot.slane %v2041_v46, 9  ;;  %v2006_v7 = vrot.slane %v2005_v26, 4  ;;  %v2010_v40 = vrot.slane %v2008_v6, 5  ;;  %v2393_v60 = vrot.slane %v2391_v57, 5  ;;  %v2400_v31 = vld [vmem:[#allocation2 + $0x38] sm:$0xe] }
 0x26b   : > { %3701 = vmatmul.mubr.bf16.gmra.mxu1 %v7294_v25  ;;  %v2389_v28 = vrot.slane %v2388_v56, 4  ;;  %v7240_v8 = vrot.slane %v2395_v1, 9  ;;  %v2445_v63 = vrot.slane %v8769_v38, 5  ;;  %v2133_v50 = vsel %vm9568_vm11, %v7238_v23, %v2132_v16 }
 0x26c   : > { %v7241_v42 = vrot.slane %v2396_v29, 9  ;;  %v2449_v3 = vrot.slane %v8770_v62, 5  ;;  %v2020_v2 = vrot.slane %v2019_v41, 4  ;;  %v2011_v51 = vsel %vm9601_vm12, %v2006_v7, %v2010_v40  ;;  %v2402_v7 = vld [vmem:[#allocation2 + $0x48] sm:$0xe] }
 0x26d   : > { %v2394_v22 = vsel %vm9601_vm12, %v2389_v28, %v2393_v60  ;;  %v2446_v52 = vsel %vm9568_vm11, %v7240_v8, %v2445_v63  ;;  %v2453_v25 = vrot.slane %v12242_v44, 5  ;;  %v2457_v26 = vrot.slane %v12243_v18, 5  ;;  %v2404_v40 = vld [vmem:[#allocation2 + $0x68] sm:$0xe] }
 0x26e   : > { %v10372_v34 = vld [vmem:[#allocation2 + $0x94] sm:$0x1]  ;;  %v2450_v27 = vsel %vm9568_vm11, %v7241_v42, %v2449_v3  ;;  %v7311_v24 = vcombine.low %v10330_v13, %v10355_v30  ;;  %v7242_v57 = vrot.slane %v2397_v58, 9  ;;  %v7243_v46 = vrot.slane %v2398_v54, 9  ;;  %v2401_v13 = vld [vmem:[#allocation2 + $0x40] sm:$0xe] }
 0x26f   : > { %v1801_v0 = vld [vmem:[#allocation2 + $0x94] sm:$0x1]  ;;  %v2377_v32 = vshll.u32 %v10372_v34, 16  ;;  %v7320_v56 = vcombine.low %v2446_v52, %v2450_v27  ;;  %v7244_v23 = vrot.slane %v2399_v53, 9  ;;  %v2461_v16 = vrot.slane %v10094_v39, 5 }
 0x270   : > { %v2136_v36 = vrot.slane %v1801_v0, 5  ;;  %v2022_v59 = vshll.u32 %v1801_v0, 16  ;;  %v7245_v1 = vrot.slane %v2400_v31, 9  ;;  %v2465_v41 = vrot.slane %v10107_v20, 5  ;;  %v2403_v39 = vld [vmem:[#allocation2 + $0x60] sm:$0xe] }
 0x271   : > { %v2379_v33 = vrot.slane %v2377_v32, 5  ;;  %v2454_v29 = vsel %vm9568_vm11, %v7242_v57, %v2453_v25  ;;  %v2462_v30 = vsel %vm9568_vm11, %v7244_v23, %v2461_v16  ;;  %v7246_v20 = vrot.slane %v2401_v13, 9  ;;  %v2410_v53 = vld [vmem:[#allocation2 + $0x98] sm:$0xe] }
 0x272   : > { %v2137_v21 = vsel %vm9568_vm11, %v7239_v49, %v2136_v36  ;;  %v2024_v35 = vrot.slane %v2022_v59, 5  ;;  %v2466_v49 = vsel %vm9568_vm11, %v7245_v1, %v2465_v41  ;;  %v2469_v8 = vrot.slane %v10148_v61, 5  ;;  %v2405_v36 = vld [vmem:[#allocation2 + $0x70] sm:$0xe]  ;;  %v2407_v59 = vld [vmem:[#allocation2 + $0x80] sm:$0xe] }
 0x273   : > { %v7303_v47 = vcombine.low %v2133_v50, %v2137_v21  ;;  %v2380_v43 = vsel %vm9601_vm12, %v2375_v19, %v2379_v33  ;;  %v2458_v19 = vsel %vm9568_vm11, %v7243_v46, %v2457_v26  ;;  %v7322_v60 = vcombine.low %v2462_v30, %v2466_v49 }
 0x274   : > { %v2025_v10 = vsel %vm9601_vm12, %v2020_v2, %v2024_v35  ;;  %v7319_v6 = vcombine.low %v2380_v43, %v2394_v22  ;;  %v7321_v28 = vcombine.low %v2454_v29, %v2458_v19  ;;  %v7247_v38 = vrot.slane %v2402_v7, 9  ;;  %v2406_v2 = vld [vmem:[#allocation2 + $0x78] sm:$0xe] }
 0x275   : > { %3708 = vmatprep.mubr.bf16.mxu1 %v7303_v47  ;;  %v7295_v15 = vcombine.low %v2011_v51, %v2025_v10  ;;  %v2473_v63 = vrot.slane %v10168_v4, 5  ;;  %v7248_v0 = vrot.slane %v2403_v39, 9  ;;  %v2477_v50 = vrot.slane %v10195_v37, 5  ;;  %v2408_v37 = vld [vmem:[#allocation2 + $0x88] sm:$0xe] }
 0x276   : > { %3805 = vmatprep.mubr.bf16.mxu0 %v7319_v6  ;;  %v7249_v42 = vrot.slane %v2404_v40, 9  ;;  %v2481_v62 = vrot.slane %v10209_v45, 5  ;;  %v2470_v3 = vsel %vm9568_vm11, %v7246_v20, %v2469_v8  ;;  %v7250_v33 = vrot.slane %v2405_v36, 9  ;;  %v2409_v10 = vld [vmem:[#allocation2 + $0x90] sm:$0xe] }
 0x277   : > { %3709 = vmatmul.mubr.bf16.gmra.mxu1 %v7295_v15  ;;  %3806 = vmatmul.mubr.bf16.gmra.mxu0 %v7311_v24  ;;  %v2474_v32 = vsel %vm9568_vm11, %v7247_v38, %v2473_v63  ;;  %v2478_v61 = vsel %vm9568_vm11, %v7248_v0, %v2477_v50  ;;  %v2485_v22 = vrot.slane %v10236_v48, 5  ;;  %v7251_v21 = vrot.slane %v2406_v2, 9 }
 0x278   : > { %8278 = vmatprep.mubr.bf16.mxu1 %v7320_v56  ;;  %v2482_v4 = vsel %vm9568_vm11, %v7249_v42, %v2481_v62  ;;  %v7323_v51 = vcombine.low %v2470_v3, %v2474_v32  ;;  %v2489_v35 = vrot.slane %v10250_v11, 5  ;;  %v7252_v47 = vrot.slane %v2407_v59, 9 }
 0x279   : > { %v7324_v45 = vcombine.low %v2478_v61, %v2482_v4  ;;  %v2493_v52 = vrot.slane %v10279_v5, 5  ;;  %v7253_v27 = vrot.slane %v2408_v37, 9  ;;  %v2497_v58 = vrot.slane %v10302_v9, 5 }
 0x27a   : > { %v2486_v54 = vsel %vm9568_vm11, %v7250_v33, %v2485_v22  ;;  %v2490_v43 = vsel %vm9568_vm11, %v7251_v21, %v2489_v35  ;;  %v7254_v44 = vrot.slane %v2409_v10, 9  ;;  %v2501_v9 = vrot.slane %v10372_v34, 5 }
 0x27b   : > { %v2494_v48 = vsel %vm9568_vm11, %v7252_v47, %v2493_v52  ;;  %v2498_v11 = vsel %vm9568_vm11, %v7253_v27, %v2497_v58  ;;  %v7325_v5 = vcombine.low %v2486_v54, %v2490_v43  ;;  %v7255_v18 = vrot.slane %v2410_v53, 9 }
 0x27c   : > { %v7326_v25 = vcombine.low %v2494_v48, %v2498_v11  ;;  %v2505_v26 = vrot.slane %v10369_v12, 5  ;;  %v2502_v56 = vsel %vm9568_vm11, %v7254_v44, %v2501_v9  ;;  %v10438_v12 = vld [vmem:[%s12070_s6] ss:$0 sm:$0xff] }
 0x27e   : > { %v2506_v57 = vsel %vm9568_vm11, %v7255_v18, %v2505_v26 }
 0x27f   : > { %8279 = vmatmul.mubr.bf16.vlgmr.msra.gmra.mxu1 %v7321_v28  ;;  %v7327_v23 = vcombine.low %v2502_v56, %v2506_v57 }
 0x280   : > { %8282 = vmatprep.mubr.bf16.mxu1 %v7322_v60 }
 0x287   : > { %8283 = vmatmul.mubr.bf16.gmra.mxu1 %v7323_v51 }
 0x288   : > { %8286 = vmatprep.mubr.bf16.mxu1 %v7324_v45 }
 0x289   : > { %v7766_v31 = vpop.f32.mrf.mxu0 }
 0x28b   : > { %v7767_v6 = vpop.f32.mrf.mxu0 }
 0x28c   : > { %v7768_v15 = vadd.f32 %v7767_v6, %v7766_v31 }
 0x28d   : > { %v7769_v24 = vpop.f32.mrf.mxu0 }
 0x28f   : > { %8287 = vmatmul.mubr.bf16.gmra.mxu1 %v7325_v5  ;;  %v7770_v46 = vpop.f32.mrf.mxu0 }
 0x290   : > { %8290 = vmatprep.mubr.bf16.mxu1 %v7326_v25  ;;  %v7771_v60 = vadd.f32 %v7770_v46, %v7769_v24 }
 0x294   : > { %v7702_v16 = vpop.f32.mrf.mxu1  ;;  %v7772_v1 = vpop.f32.mrf.mxu0 }
 0x296   : > { %v7703_v34 = vpop.f32.mrf.mxu1  ;;  %v7773_v41 = vpop.f32.mrf.mxu0 }
 0x297   : > { %8291 = vmatmul.mubr.bf16.gmra.mxu1 %v7327_v23  ;;  %v7704_v29 = vadd.f32 %v7703_v34, %v7702_v16  ;;  %v7774_v19 = vadd.f32 %v7773_v41, %v7772_v1 }
 0x298   : > { %v7705_v13 = vpop.f32.mrf.mxu1  ;;  %v7775_v30 = vpop.f32.mrf.mxu0 }
 0x299   : > { %v3461_v49 = vadd.f32 %v7704_v29, %v10438_v12 }
 0x29a   : > { %v7706_v7 = vpop.f32.mrf.mxu1  ;;  %v7776_v39 = vpop.f32.mrf.mxu0 }
 0x29b   : > { %v7707_v40 = vadd.f32 %v7706_v7, %v7705_v13  ;;  %v10441_v28 = vadd.f32 %v7768_v15, %v3461_v49  ;;  %v7777_v37 = vadd.f32 %v7776_v39, %v7775_v30 }
 0x29c   : > { %v7708_v20 = vpop.f32.mrf.mxu1 }
 0x29d   : > { %v3464_v8 = vadd.f32 %v7707_v40, %v10438_v12  ;;  %v7778_v38 = vpop.f32.mrf.mxu0 }
 0x29e   : > { %v7709_v63 = vpop.f32.mrf.mxu1 }
 0x29f   : > { %v7710_v0 = vadd.f32 %v7709_v63, %v7708_v20  ;;  %v7779_v50 = vpop.f32.mrf.mxu0  ;;  %v10444_v42 = vadd.f32 %v7771_v60, %v3464_v8 }
 0x2a0   : > { %v7780_v62 = vadd.f32 %v7779_v50, %v7778_v38  ;;  %v7711_v3 = vpop.f32.mrf.mxu1 }
 0x2a1   : > { %v3469_v32 = vadd.f32 %v7710_v0, %v10438_v12  ;;  %v7781_v36 = vpop.f32.mrf.mxu0 }
 0x2a2   : > { %v7712_v61 = vpop.f32.mrf.mxu1 }
 0x2a3   : > { %v7713_v4 = vadd.f32 %v7712_v61, %v7711_v3  ;;  %v10447_v2 = vadd.f32 %v7774_v19, %v3469_v32  ;;  %v7782_v33 = vpop.f32.mrf.mxu0 }
 0x2a4   : > { %v7714_v59 = vpop.f32.mrf.mxu1  ;;  %v7783_v10 = vadd.f32 %v7782_v33, %v7781_v36 }
 0x2a5   : > { %v3472_v51 = vadd.f32 %v7713_v4, %v10438_v12 }
 0x2a6   : > { %v7715_v45 = vpop.f32.mrf.mxu1 }
 0x2a7   : > { %v7716_v22 = vadd.f32 %v7715_v45, %v7714_v59  ;;  %v10450_v21 = vadd.f32 %v7777_v37, %v3472_v51 }
 0x2a8   : > { %v7717_v35 = vpop.f32.mrf.mxu1 }
 0x2a9   : > { %v3477_v47 = vadd.f32 %v7716_v22, %v10438_v12 }
 0x2aa   : > { %v7718_v27 = vpop.f32.mrf.mxu1 }
 0x2ab   : > { %v7784_v52 = vpop.f32.mrf.mxu0  ;;  %v7719_v58 = vadd.f32 %v7718_v27, %v7717_v35  ;;  %v10453_v54 = vadd.f32 %v7780_v62, %v3477_v47 }
 0x2ad   : > { %v7785_v43 = vpop.f32.mrf.mxu0  ;;  %v3480_v11 = vadd.f32 %v7719_v58, %v10438_v12 }
 0x2ae   : > { %v7786_v48 = vadd.f32 %v7785_v43, %v7784_v52 }
 0x2af   : > { %v10456_v53 = vadd.f32 %v7783_v10, %v3480_v11  ;;  %v7787_v5 = vpop.f32.mrf.mxu0 }
 0x2b0   : > { %v7720_v31 = vpop.f32.mrf.mxu1 }
 0x2b1   : > { %v7788_v26 = vpop.f32.mrf.mxu0 }
 0x2b2   : > { %v7721_v44 = vpop.f32.mrf.mxu1  ;;  %v7789_v56 = vadd.f32 %v7788_v26, %v7787_v5 }
 0x2b3   : > { %v7722_v25 = vadd.f32 %v7721_v44, %v7720_v31 }
 0x2b4   : > { %v7723_v9 = vpop.f32.mrf.mxu1 }
 0x2b5   : > { %v3485_v18 = vadd.f32 %v7722_v25, %v10438_v12 }
 0x2b6   : > { %v7724_v6 = vpop.f32.mrf.mxu1 }
 0x2b7   : > { %v7725_v15 = vadd.f32 %v7724_v6, %v7723_v9  ;;  %v10459_v24 = vadd.f32 %v7786_v48, %v3485_v18 }
 0x2b9   : > { %v3488_v57 = vadd.f32 %v7725_v15, %v10438_v12 }
 0x2bb   : > { %v10462_v46 = vadd.f32 %v7789_v56, %v3488_v57 }
 0x2be   : > { %v7726_v23 = vpop.f32.mrf.mxu1 }
 0x2c0   : > { %v7727_v16 = vpop.f32.mrf.mxu1  ;;  %v7790_v1 = vpop.f32.mrf.mxu0 }
 0x2c1   : > { %v7728_v34 = vadd.f32 %v7727_v16, %v7726_v23 }
 0x2c2   : > { %v7729_v41 = vpop.f32.mrf.mxu1  ;;  %v7791_v29 = vpop.f32.mrf.mxu0 }
 0x2c3   : > { %v3493_v19 = vadd.f32 %v7728_v34, %v10438_v12  ;;  %v7792_v13 = vadd.f32 %v7791_v29, %v7790_v1 }
 0x2c4   : > { %v7730_v30 = vpop.f32.mrf.mxu1  ;;  %v7793_v49 = vpop.f32.mrf.mxu0 }
 0x2c5   : > { %v7731_v7 = vadd.f32 %v7730_v30, %v7729_v41  ;;  %v10465_v39 = vadd.f32 %v7792_v13, %v3493_v19 }
 0x2c6   : > { %v7794_v40 = vpop.f32.mrf.mxu0 }
 0x2c7   : > { %v3496_v20 = vadd.f32 %v7731_v7, %v10438_v12  ;;  %v7795_v60 = vadd.f32 %v7794_v40, %v7793_v49 }
 0x2c9   : > { %v10468_v8 = vadd.f32 %v7795_v60, %v3496_v20  ;;  %v7796_v38 = vpop.f32.mrf.mxu0 }
 0x2cb   : > { %12244 = vst [vmem:[#allocation36_spill] sm:$0xff] %v10468_v8  ;;  %v7797_v63 = vpop.f32.mrf.mxu0 }
 0x2cc   : > { %v7798_v0 = vadd.f32 %v7797_v63, %v7796_v38 }
 0x2cd   : > { %v7799_v50 = vpop.f32.mrf.mxu0 }
 0x2ce   : > { %v7732_v62 = vpop.f32.mrf.mxu1 }
 0x2cf   : > { %v7800_v36 = vpop.f32.mrf.mxu0 }
 0x2d0   : > { %v7733_v3 = vpop.f32.mrf.mxu1  ;;  %v7801_v45 = vadd.f32 %v7800_v36, %v7799_v50 }
 0x2d1   : > { %v7734_v32 = vadd.f32 %v7733_v3, %v7732_v62 }
 0x2d2   : > { %v7735_v61 = vpop.f32.mrf.mxu1 }
 0x2d3   : > { %v3501_v4 = vadd.f32 %v7734_v32, %v10438_v12 }
 0x2d4   : > { %v7736_v59 = vpop.f32.mrf.mxu1 }
 0x2d5   : > { %v7737_v37 = vadd.f32 %v7736_v59, %v7735_v61  ;;  %v10471_v51 = vadd.f32 %v7798_v0, %v3501_v4  ;;  %v7802_v33 = vpop.f32.mrf.mxu0 }
 0x2d7   : > { %12245 = vst [vmem:[#allocation19_spill] sm:$0xff] %v10471_v51  ;;  %v3504_v22 = vadd.f32 %v7737_v37, %v10438_v12  ;;  %v7803_v35 = vpop.f32.mrf.mxu0 }
 0x2d8   : > { %v7804_v47 = vadd.f32 %v7803_v35, %v7802_v33  ;;  %v7738_v52 = vpop.f32.mrf.mxu1 }
 0x2d9   : > { %v10474_v27 = vadd.f32 %v7801_v45, %v3504_v22  ;;  %v7805_v58 = vpop.f32.mrf.mxu0 }
 0x2da   : > { %v7739_v43 = vpop.f32.mrf.mxu1 }
 0x2db   : > { %12246 = vst [vmem:[#allocation37_spill] sm:$0xff] %v10474_v27  ;;  %v7806_v10 = vpop.f32.mrf.mxu0  ;;  %v7740_v48 = vadd.f32 %v7739_v43, %v7738_v52 }
 0x2dc   : > { %v7807_v11 = vadd.f32 %v7806_v10, %v7805_v58  ;;  %v7741_v31 = vpop.f32.mrf.mxu1 }
 0x2dd   : > { %v3509_v5 = vadd.f32 %v7740_v48, %v10438_v12 }
 0x2de   : > { %v7742_v44 = vpop.f32.mrf.mxu1 }
 0x2df   : > { %v7743_v25 = vadd.f32 %v7742_v44, %v7741_v31  ;;  %v10477_v9 = vadd.f32 %v7804_v47, %v3509_v5 }
 0x2e0   : > { %v7808_v18 = vpop.f32.mrf.mxu0 }
 0x2e1   : > { %12247 = vst [vmem:[#allocation42_spill] sm:$0xff] %v10477_v9  ;;  %v3512_v26 = vadd.f32 %v7743_v25, %v10438_v12 }
 0x2e2   : > { %v7809_v6 = vpop.f32.mrf.mxu0 }
 0x2e3   : > { %v10480_v15 = vadd.f32 %v7807_v11, %v3512_v26  ;;  %v7810_v19 = vadd.f32 %v7809_v6, %v7808_v18 }
 0x2e4   : > { %v10482_v56 = vpop.f32.mrf.mxu0 }
 0x2e5   : > { %12248 = vst [vmem:[#allocation38_spill] sm:$0xff] %v10480_v15 }
 0x2e6   : > { %v10484_v57 = vpop.f32.mrf.mxu0 }
 0x2e7   : > { %v7744_v23 = vpop.f32.mrf.mxu1 }
 0x2e9   : > { %v7745_v1 = vpop.f32.mrf.mxu1 }
 0x2ea   : > { %v10486_v16 = vpop.f32.mrf.mxu0  ;;  %v7746_v34 = vadd.f32 %v7745_v1, %v7744_v23 }
 0x2eb   : > { %v10490_v29 = vpop.f32.mrf.mxu1 }
 0x2ec   : > { %v10488_v41 = vpop.f32.mrf.mxu0  ;;  %v3517_v13 = vadd.f32 %v7746_v34, %v10438_v12 }
 0x2ed   : > { %v10495_v49 = vpop.f32.mrf.mxu1 }
 0x2ee   : > { %v10493_v30 = vpop.f32.mrf.mxu0  ;;  %v10499_v40 = vadd.f32 %v7810_v19, %v3517_v13 }
 0x2ef   : > { %v7830_v20 = vpop.f32.mrf.mxu1 }
 0x2f0   : > { %v10497_v7 = vpop.f32.mrf.mxu0  ;;  %12249 = vst [vmem:[#allocation45_spill] sm:$0xff] %v10499_v40 }
 0x2f1   : > { %v7831_v38 = vpop.f32.mrf.mxu1 }
 0x2f2   : > { %v7832_v63 = vadd.f32 %v7831_v38, %v7830_v20 }
 0x2f3   : > { %v7833_v50 = vpop.f32.mrf.mxu1 }
 0x2f4   : > { %v10501_v60 = vpop.f32.mrf.mxu0  ;;  %v3655_v62 = vadd.f32 %v7832_v63, %v10441_v28 }
 0x2f5   : > { %v7834_v32 = vpop.f32.mrf.mxu1 }
 0x2f6   : > { %v7901_v0 = vpop.f32.mrf.mxu0 }
 0x2f7   : > { %v7836_v61 = vpop.f32.mrf.mxu1 }
 0x2f8   : > { %v10504_v3 = vpop.f32.mrf.mxu0 }
 0x2f9   : > { %v7837_v59 = vpop.f32.mrf.mxu1 }
 0x2fa   : > { %v10506_v36 = vpop.f32.mrf.mxu0 }
 0x2fb   : > { %v7839_v37 = vpop.f32.mrf.mxu1 }
 0x2fd   : > { %v10508_v4 = vpop.f32.mrf.mxu0  ;;  %v7840_v45 = vpop.f32.mrf.mxu1 }
 0x2ff   : > { %v10510_v33 = vpop.f32.mrf.mxu0  ;;  %v7842_v22 = vpop.f32.mrf.mxu1 }
 0x301   : > { %v10512_v35 = vpop.f32.mrf.mxu0  ;;  %v7843_v47 = vpop.f32.mrf.mxu1 }
 0x303   : > { %v7845_v52 = vpop.f32.mrf.mxu1  ;;  %v10514_v58 = vpop.f32.mrf.mxu0 }
 0x305   : > { %v7846_v28 = vpop.f32.mrf.mxu1 }
 0x306   : > { %v10516_v10 = vpop.f32.mrf.mxu0 }
 0x308   : > { %v10518_v31 = vpop.f32.mrf.mxu0 }
 0x30a   : > { %v10522_v25 = vpop.f32.mrf.mxu0 }
 0x30b   : > { %v7848_v43 = vpop.f32.mrf.mxu1 }
 0x30c   : > { %v10528_v6 = vpop.f32.mrf.mxu0 }
 0x30d   : > { %v7849_v48 = vpop.f32.mrf.mxu1 }
 0x30f   : > { %v7851_v11 = vpop.f32.mrf.mxu1 }
 0x310   : > { %v10532_v1 = vpop.f32.mrf.mxu0 }
 0x311   : > { %v7852_v5 = vpop.f32.mrf.mxu1  ;;  %12250 = vst [vmem:[#allocation43_spill] sm:$0xff] %v10532_v1 }
 0x312   : > { %v10538_v13 = vpop.f32.mrf.mxu0 }
 0x313   : > { %12251 = vst [vmem:[#allocation44_spill] sm:$0xff] %v10538_v13 }
 0x314   : > { %v10544_v63 = vpop.f32.mrf.mxu0 }
 0x315   : > { %12253 = vst [vmem:[#allocation47_spill] sm:$0xff] %v10544_v63 }
 0x316   : > { %v10520_v44 = vpop.f32.mrf.mxu1  ;;  %v10548_v14 = vpop.f32.mrf.mxu0 }
 0x317   : > { %12255 = vst [vmem:[#allocation49_spill] sm:$0xff] %v10548_v14  ;;  %v7838_v14 = vadd.f32 %v7837_v59, %v7836_v61 }
 0x318   : > { %v10524_v18 = vpop.f32.mrf.mxu1  ;;  %v10554_v15 = vpop.f32.mrf.mxu0 }
 0x319   : > { %12258 = vst [vmem:[#allocation52_spill] sm:$0xff] %v10554_v15  ;;  %v7844_v15 = vadd.f32 %v7843_v47, %v7842_v22 }
 0x31a   : > { %v10526_v26 = vpop.f32.mrf.mxu1  ;;  %v10558_v27 = vpop.f32.mrf.mxu0 }
 0x31b   : > { %12260 = vst [vmem:[#allocation54_spill] sm:$0xff] %v10558_v27 }
 0x31c   : > { %v10530_v23 = vpop.f32.mrf.mxu1  ;;  %v10562_v8 = vpop.f32.mrf.mxu0 }
 0x31d   : > { %12262 = vst [vmem:[#allocation56_spill] sm:$0xff] %v10562_v8  ;;  %v3663_v8 = vadd.f32 %v7838_v14, %v10447_v2  ;;  %v7905_v14 = vadd.f32 %v10506_v36, %v10504_v3 }
 0x31e   : > { %v10568_v1 = vpop.f32.mrf.mxu0 }
 0x320   : > { %v10576_v27 = vpop.f32.mrf.mxu0 }
 0x321   : > { %v10534_v34 = vpop.f32.mrf.mxu1 }
 0x322   : > { %v10587_v2 = vpop.f32.mrf.mxu0 }
 0x323   : > { %v10536_v19 = vpop.f32.mrf.mxu1 }
 0x324   : > { %v10606_v3 = vpop.f32.mrf.mxu0 }
 0x325   : > { %v10540_v20 = vpop.f32.mrf.mxu1 }
 0x327   : > { %v10542_v38 = vpop.f32.mrf.mxu1 }
 0x328   : > { %12252 = vst [vmem:[#allocation46_spill] sm:$0xff] %v10542_v38 }
 0x32b   : > { %v10546_v55 = vpop.f32.mrf.mxu1 }
 0x32c   : > { %12254 = vst [vmem:[#allocation48_spill] sm:$0xff] %v10546_v55  ;;  %v7835_v55 = vadd.f32 %v7834_v32, %v7833_v50  ;;  %v7899_v50 = vadd.f32 %v10497_v7, %v10493_v30  ;;  %v7902_v32 = vadd.f32 %v7901_v0, %v10501_v60 }
 0x32d   : > { %v10550_v17 = vpop.f32.mrf.mxu1 }
 0x32e   : > { %12256 = vst [vmem:[#allocation50_spill] sm:$0xff] %v10550_v17 }
 0x32f   : > { %v10552_v40 = vpop.f32.mrf.mxu1 }
 0x330   : > { %12257 = vst [vmem:[#allocation51_spill] sm:$0xff] %v10552_v40  ;;  %v7841_v40 = vadd.f32 %v7840_v45, %v7839_v37  ;;  %v7749_v37 = vadd.f32 %v10495_v49, %v10490_v29  ;;  %v3760_v45 = vadd.f32 %v7902_v32, %v3663_v8 }
 0x331   : > { %v10556_v9 = vpop.f32.mrf.mxu1 }
 0x332   : > { %12259 = vst [vmem:[#allocation53_spill] sm:$0xff] %v10556_v9  ;;  %v7896_v9 = vadd.f32 %v10488_v41, %v10486_v16  ;;  %v3666_v61 = vadd.f32 %v7841_v40, %v10450_v21  ;;  %v3671_v16 = vadd.f32 %v7844_v15, %v10453_v54  ;;  %v7847_v41 = vadd.f32 %v7846_v28, %v7845_v52 }
 0x333   : > { %v7908_v21 = vadd.f32 %v10510_v33, %v10508_v4  ;;  %v10595_v54 = vadd.f32 %v10484_v57, %v10482_v56  ;;  %v10602_v60 = vadd.f32 %v7749_v37, %v10438_v12  ;;  %v7856_v33 = vadd.f32 %v10524_v18, %v10520_v44 }
 0x334   : > { %v3752_v59 = vadd.f32 %v7896_v9, %v3655_v62  ;;  %v7853_v9 = vadd.f32 %v7852_v5, %v7851_v11  ;;  %v3763_v29 = vadd.f32 %v7905_v14, %v3666_v61  ;;  %v3674_v8 = vadd.f32 %v7847_v41, %v10456_v53  ;;  %v10634_v11 = vpop.f32.mrf.mxu0  ;;  %v12265_v61 = vld [vmem:[#allocation43_spill] sm:$0xff] }
 0x335   : > { %v3768_v62 = vadd.f32 %v7908_v21, %v3671_v16  ;;  %v7911_v53 = vadd.f32 %v10514_v58, %v10512_v35  ;;  %v7917_v35 = vadd.f32 %v10528_v6, %v10522_v25  ;;  %v7859_v58 = vadd.f32 %v10530_v23, %v10526_v26  ;;  %v12264_v25 = vld [vmem:[#allocation46_spill] sm:$0xff]  ;;  %v12267_v16 = vld [vmem:[#allocation36_spill] sm:$0xff]  ;;  %v12268_v41 = vld [vmem:[#allocation19_spill] sm:$0xff] }
 0x336   : > { %v3682_v4 = vadd.f32 %v7853_v9, %v10462_v46  ;;  %v7862_v46 = vadd.f32 %v10536_v19, %v10534_v34  ;;  %v7865_v6 = vadd.f32 %v12264_v25, %v10540_v20  ;;  %v12269_v20 = vld [vmem:[#allocation48_spill] sm:$0xff] }
 0x337   : > { %v10560_v51 = vpop.f32.mrf.mxu1  ;;  %v3771_v18 = vadd.f32 %v7911_v53, %v3674_v8  ;;  %v12271_v8 = vld [vmem:[#allocation47_spill] sm:$0xff] }
 0x338   : > { %12261 = vst [vmem:[#allocation55_spill] sm:$0xff] %v10560_v51  ;;  %v3658_v51 = vadd.f32 %v7835_v55, %v10444_v42  ;;  %v7850_v55 = vadd.f32 %v7849_v48, %v7848_v43  ;;  %v3779_v23 = vadd.f32 %v7917_v35, %v3682_v4  ;;  %v7932_v35 = vadd.f32 %v10587_v2, %v10576_v27  ;;  %v12278_v25 = vld [vmem:[#allocation51_spill] sm:$0xff] }
 0x339   : > { %v10564_v13 = vpop.f32.mrf.mxu1 }
 0x33a   : > { %12263 = vst [vmem:[#allocation57_spill] sm:$0xff] %v10564_v13  ;;  %v3755_v7 = vadd.f32 %v7899_v50, %v3658_v51  ;;  %v3679_v51 = vadd.f32 %v7850_v55, %v10459_v24  ;;  %v7914_v24 = vadd.f32 %v10518_v31, %v10516_v10  ;;  %v3695_v55 = vadd.f32 %v7862_v46, %v12268_v41  ;;  %v8537_v41 = vld [vmem:[#allocation9 + $0x38] sm:$0xff]  }
 0x33b   : > { %v10566_v63 = vpop.f32.mrf.mxu1 }
 0x33c   : > { %v3776_v10 = vadd.f32 %v7914_v24, %v3679_v51  ;;  %v12272_v51 = vld [vmem:[#allocation49_spill] sm:$0xff] }
 0x33d   : > { %v10570_v17 = vpop.f32.mrf.mxu1 }
 0x33f   : > { %v8280_v38 = vpop.f32.mrf.mxu1 }
 0x340   : > { %v10597_v15 = vadd.f32 %v8280_v38, %v3760_v45 }
 0x341   : > { %v3848_v13 = vpop.f32.mrf.mxu1 }
 0x342   : > { %v10589_v30 = vadd.f32 %v3848_v13, %v3752_v59  ;;  %v3941_v47 = vmul.f32 %v10597_v15, %v10597_v15  ;;  %v3687_v13 = vadd.f32 %v7856_v33, %v10465_v39  ;;  %v12266_v59 = vld [vmem:[#allocation44_spill] sm:$0xff]  ;;  %v3690_v39 = vadd.f32 %v7859_v58, %v12267_v16  ;;  %v12277_v58 = vld [vmem:[#allocation42_spill] sm:$0xff]  ;;  %v8536_v16 = vld [vmem:[#allocation9 + $0x78] sm:$0xff]  }
 0x343   : > { %v8281_v42 = vpop.f32.mrf.mxu1  ;;  %v7920_v37 = vadd.f32 %v12266_v59, %v12265_v61  ;;  %v12276_v33 = vld [vmem:[#allocation56_spill] sm:$0xff]  ;;  %7958 = vmatprep.subr.bf16.mxu0 %v8536_v16 }
 0x344   : > { %v3939_v56 = vmul.f32 %v10589_v30, %v10589_v30  ;;  %v10610_v57 = vadd.f32 %v8281_v42, %v3763_v29  ;;  %v12270_v42 = vld [vmem:[#allocation50_spill] sm:$0xff]  ;;  %7959 = vmatpush3.bf16.msra.mxu0 %v8537_v41 }
 0x345   : > { %v3851_v40 = vpop.f32.mrf.mxu1  ;;  %v7868_v14 = vadd.f32 %v12270_v42, %v12269_v20  ;;  %v3784_v24 = vadd.f32 %v7920_v37, %v3687_v13 }
 0x346   : > { %v10599_v49 = vadd.f32 %v3851_v40, %v3755_v7  ;;  %v3942_v31 = vmul.f32 %v10610_v57, %v10610_v57  ;;  %v10655_v7 = vpop.f32.mrf.mxu0 }
 0x347   : > { %v8284_v0 = vpop.f32.mrf.mxu1  ;;  %v3703_v46 = vadd.f32 %v7868_v14, %v12277_v58  ;;  %v7935_v58 = vadd.f32 %v10634_v11, %v10606_v3 }
 0x348   : > { %v3913_v36 = vadd.f32 %v10599_v49, %v10589_v30  ;;  %v3940_v12 = vmul.f32 %v10599_v49, %v10599_v49  ;;  %v10642_v26 = vadd.f32 %v8284_v0, %v3776_v10  ;;  %v7923_v0 = vadd.f32 %v12272_v51, %v12271_v8 }
 0x349   : > { %v3864_v22 = vpop.f32.mrf.mxu1 }
 0x34a   : > { %v3914_v52 = vadd.f32 %v3913_v36, %v10597_v15  ;;  %v3955_v28 = vadd.f32 %v3940_v12, %v3939_v56  ;;  %v10626_v43 = vadd.f32 %v3864_v22, %v3768_v62  ;;  %v12273_v62 = vld [vmem:[#allocation52_spill] sm:$0xff]  ;;  %v12274_v56 = vld [vmem:[#allocation54_spill] sm:$0xff]  ;;  %v12275_v12 = vld [vmem:[#allocation37_spill] sm:$0xff]  ;;  %v7929_v22 = vadd.f32 %v10568_v1, %v12276_v33 }
 0x34b   : > { %v8285_v48 = vpop.f32.mrf.mxu1  ;;  %v7926_v36 = vadd.f32 %v12274_v56, %v12273_v62  ;;  %v3698_v53 = vadd.f32 %v7865_v6, %v12275_v12  ;;  %v3787_v13 = vadd.f32 %v7923_v0, %v3690_v39  ;;  %v12279_v6 = vld [vmem:[#allocation53_spill] sm:$0xff]  ;;  %v3617_v39 = vadd.f32 %v10595_v54, %v10602_v60  ;;  %v12282_v62 = vld [vmem:[#allocation38_spill] sm:$0xff]  ;;  %v8546_v33 = vld [vmem:[#allocation9 + $0xf0] sm:$0xff]  }
 0x34c   : > { %v3956_v5 = vadd.f32 %v3955_v28, %v3941_v47  ;;  %v3915_v44 = vadd.f32 %v3914_v52, %v10610_v57  ;;  %v3943_v38 = vmul.f32 %v10626_v43, %v10626_v43  ;;  %v10657_v9 = vadd.f32 %v8285_v48, %v3779_v23  ;;  %v8544_v0 = vld [vmem:[#allocation9 + $0xf8] sm:$0xff]  }
 0x34d   : > { %v3867_v34 = vpop.f32.mrf.mxu1  ;;  %v3945_v47 = vmul.f32 %v10642_v26, %v10642_v26  ;;  %v3792_v10 = vadd.f32 %v7926_v36, %v3695_v55  ;;  %v7871_v23 = vadd.f32 %v12279_v6, %v12278_v25  ;;  %v8538_v55 = vld [vmem:[#allocation9 + $0x70] sm:$0xff]   ;;  %v12283_v60 = vld [vmem:[#allocation45_spill] sm:$0xff]  ;;  %v7877_v36 = vadd.f32 %v10570_v17, %v10566_v63  ;;  %8022 = vmatprep.subr.bf16.mxu1 %v8544_v0  ;;  %v8550_v6 = vld [vmem:[#allocation9 + $0xe8] sm:$0xff]  }
 0x34e   : > { %v3916_v19 = vadd.f32 %v3915_v44, %v10626_v43  ;;  %v3957_v50 = vadd.f32 %v3956_v5, %v3942_v31  ;;  %v10647_v32 = vadd.f32 %v3867_v34, %v3771_v18  ;;  %v7937_v5 = vpop.f32.mrf.mxu0  ;;  %v3946_v44 = vmul.f32 %v10657_v9, %v10657_v9  ;;  %v12280_v34 = vld [vmem:[#allocation55_spill] sm:$0xff]  ;;  %7960 = vmatprep.subr.bf16.mxu0 %v8538_v55  ;;  %v8543_v0 = vld [vmem:[#allocation9 + $0x20] sm:$0xff]  }
 0x34f   : > { %v8288_v45 = vpop.f32.mrf.mxu1  ;;  %v3706_v54 = vadd.f32 %v7871_v23, %v12282_v62  ;;  %v7938_v17 = vadd.f32 %v7937_v5, %v10655_v7  ;;  %v3714_v23 = vadd.f32 %v7877_v36, %v3617_v39  ;;  %v8551_v55 = vld [vmem:[#allocation9 + $0xa8] sm:$0xff]   ;;  %v8548_v62 = vld [vmem:[#allocation9 + $0x58] sm:$0xff]  }
 0x350   : > { %v3958_v21 = vadd.f32 %v3957_v50, %v3943_v38  ;;  %v3917_v40 = vadd.f32 %v3916_v19, %v10647_v32  ;;  %v3944_v29 = vmul.f32 %v10647_v32, %v10647_v32  ;;  %v12281_v19 = vld [vmem:[#allocation57_spill] sm:$0xff]  ;;  %v10684_v2 = vadd.f32 %v8288_v45, %v3792_v10 }
 0x351   : > { %v3880_v4 = vpop.f32.mrf.mxu1  ;;  %v7874_v27 = vadd.f32 %v12281_v19, %v12280_v34  ;;  %v3795_v38 = vadd.f32 %v7929_v22, %v3698_v53  ;;  %v3800_v45 = vadd.f32 %v7932_v35, %v3703_v46  ;;  %v8540_v35 = vld [vmem:[#allocation9 + $0x68] sm:$0xff]   ;;  %v3803_v7 = vadd.f32 %v7935_v58, %v3706_v54  ;;  %v8549_v58 = vld [vmem:[#allocation9 + $0x18] sm:$0xff]  }
 0x352   : > { %v3918_v52 = vadd.f32 %v3917_v40, %v10642_v26  ;;  %v3959_v28 = vadd.f32 %v3958_v21, %v3944_v29  ;;  %v10675_v48 = vadd.f32 %v3880_v4, %v3784_v24  ;;  %v7939_v21 = vpop.f32.mrf.mxu0  ;;  %v3949_v12 = vmul.f32 %v10684_v2, %v10684_v2  ;;  %v8539_v24 = vld [vmem:[#allocation9 + $0x30] sm:$0xff]   ;;  %v8545_v4 = vld [vmem:[#allocation9 + $0xb8] sm:$0xff]   ;;  %v8541_v34 = vld [vmem:[#allocation9 + $0x28] sm:$0xff]  }
 0x353   : > { %v8289_v31 = vpop.f32.mrf.mxu1  ;;  %v3711_v56 = vadd.f32 %v7874_v27, %v12283_v60  ;;  %8023 = vmatpush3.bf16.msra.mxu1 %v8545_v4  ;;  %7961 = vmatpush3.bf16.msra.mxu0 %v8539_v24 }
 0x354   : > { %v3919_v1 = vadd.f32 %v3918_v52, %v10657_v9  ;;  %v3960_v18 = vadd.f32 %v3959_v28, %v3945_v47  ;;  %v3947_v20 = vmul.f32 %v10675_v48, %v10675_v48  ;;  %v10692_v42 = vadd.f32 %v8289_v31, %v3795_v38  ;;  %v8547_v31 = vld [vmem:[#allocation9 + $0xb0] sm:$0xff]   ;;  %8024 = vmatprep.subr.bf16.mxu1 %v8546_v33 }
 0x355   : > { %v3883_v50 = vpop.f32.mrf.mxu1  ;;  %v3808_v3 = vadd.f32 %v7938_v17, %v3711_v56  ;;  %7962 = vmatprep.subr.bf16.mxu0 %v8540_v35 }
 0x356   : > { %v3920_v61 = vrot.slane %v3919_v1, 4  ;;  %v3961_v59 = vadd.f32 %v3960_v18, %v3946_v44  ;;  %v10686_v37 = vadd.f32 %v3883_v50, %v3787_v13  ;;  %v3950_v63 = vmul.f32 %v10692_v42, %v10692_v42  ;;  %v7940_v44 = vpop.f32.mrf.mxu0 }
 0x357   : > { %v8292_v14 = vpop.f32.mrf.mxu1  ;;  %8025 = vmatpush3.bf16.msra.mxu1 %v8547_v31  ;;  %7963 = vmatpush3.bf16.msra.mxu0 %v8541_v34 }
 0x358   : > { %v3921_v40 = vadd.f32 %v3920_v61, %v3919_v1  ;;  %v3962_v29 = vrot.slane %v3961_v59, 4  ;;  %v3926_v8 = vadd.f32 %v10686_v37, %v10675_v48  ;;  %v3948_v51 = vmul.f32 %v10686_v37, %v10686_v37  ;;  %v8542_v61 = vld [vmem:[#allocation9 + $0x60] sm:$0xff]   ;;  %8026 = vmatprep.subr.bf16.mxu1 %v8550_v6 }
 0x359   : > { %v3896_v53 = vpop.f32.mrf.mxu1  ;;  %v10716_v16 = vadd.f32 %v8292_v14, %v3808_v3  ;;  %7964 = vmatprep.subr.bf16.mxu0 %v8542_v61  ;;  %v8561_v61 = vld [vmem:[#allocation9 + $0x8] sm:$0xff]  }
 0x35a   : > { %v3922_v22 = vrot.slane %v3921_v40, 2  ;;  %v3963_v47 = vadd.f32 %v3962_v29, %v3961_v59  ;;  %v3927_v52 = vadd.f32 %v3926_v8, %v10684_v2  ;;  %v3968_v28 = vadd.f32 %v3948_v51, %v3947_v20 }
 0x35b   : > { %v10710_v46 = vadd.f32 %v3896_v53, %v3800_v45  ;;  %v8293_v10 = vpop.f32.mrf.mxu1  ;;  %v7941_v59 = vadd.f32 %v7940_v44, %v7939_v21  ;;  %v3953_v54 = vmul.f32 %v10716_v16, %v10716_v16  ;;  %8027 = vmatpush3.bf16.msra.mxu1 %v8551_v55  ;;  %7965 = vmatpush3.bf16.msra.mxu0 %v8543_v0  ;;  %v8554_v44 = vld [vmem:[#allocation9 + $0x50] sm:$0xff]   ;;  %v8567_v55 = vld [vmem:[#allocation9 + $0x40] sm:$0xff]   ;;  %v8570_v0 = vld [vmem:[#allocation9 + $0x178] sm:$0xff]  }
 0x35c   : > { %v3923_v1 = vadd.f32 %v3922_v22, %v3921_v40  ;;  %v3964_v18 = vrot.slane %v3963_v47, 2  ;;  %v3969_v13 = vadd.f32 %v3968_v28, %v3949_v12  ;;  %v3928_v25 = vadd.f32 %v3927_v52, %v10692_v42  ;;  %v8552_v40 = vld [vmem:[#allocation9 + $0xe0] sm:$0xff]   ;;  %v8556_v22 = vld [vmem:[#allocation9 + $0xd8] sm:$0xff]   ;;  %7966 = vmatprep.subr.bf16.mxu0 %v8548_v62 }
 0x35d   : > { %v3951_v11 = vmul.f32 %v10710_v46, %v10710_v46  ;;  %v3899_v5 = vpop.f32.mrf.mxu1  ;;  %v3811_v29 = vadd.f32 %v7941_v59, %v3714_v23  ;;  %v8553_v12 = vld [vmem:[#allocation9 + $0xa0] sm:$0xff]   ;;  %8028 = vmatprep.subr.bf16.mxu1 %v8552_v40  ;;  %v8558_v23 = vld [vmem:[#allocation9 + $0xd0] sm:$0xff]  }
 0x35e   : > { %v3924_v19 = vrot.slane %v3923_v1, 1  ;;  %v3965_v27 = vadd.f32 %v3964_v18, %v3963_v47  ;;  %v3929_v38 = vadd.f32 %v3928_v25, %v10710_v46  ;;  %v3970_v50 = vadd.f32 %v3969_v13, %v3950_v63  ;;  %v8557_v13 = vld [vmem:[#allocation9 + $0x98] sm:$0xff]   ;;  %v8564_v40 = vld [vmem:[#allocation9 + $0xc0] sm:$0xff]  }
 0x35f   : > { %v10718_v41 = vadd.f32 %v3899_v5, %v3803_v7  ;;  %v10727_v60 = vadd.f32 %v8293_v10, %v3811_v29  ;;  %8029 = vmatpush3.bf16.msra.mxu1 %v8553_v12  ;;  %7967 = vmatpush3.bf16.msra.mxu0 %v8549_v58  ;;  %v8560_v5 = vld [vmem:[#allocation9 + $0x48] sm:$0xff]   ;;  %v8565_v62 = vld [vmem:[#allocation9 + $0x80] sm:$0xff]  }
 0x360   : > { %v3925_v39 = vadd.f32 %v3924_v19, %v3923_v1  ;;  %v3966_v20 = vrot.slane %v3965_v27, 1  ;;  %v3971_v45 = vadd.f32 %v3970_v50, %v3951_v11  ;;  %8030 = vmatprep.subr.bf16.mxu1 %v8556_v22  ;;  %v8555_v11 = vld [vmem:[#allocation9 + $0x10] sm:$0xff]   ;;  %7968 = vmatprep.subr.bf16.mxu0 %v8554_v44 }
 0x361   : > { %v3930_v8 = vadd.f32 %v3929_v38, %v10718_v41  ;;  %v3952_v51 = vmul.f32 %v10718_v41, %v10718_v41  ;;  %v3954_v1 = vmul.f32 %v10727_v60, %v10727_v60  ;;  %v8559_v19 = vld [vmem:[#allocation9 + $0x90] sm:$0xff]   ;;  %v8562_v38 = vld [vmem:[#allocation9 + $0xc8] sm:$0xff]  }
 0x362   : > { %v3967_v21 = vadd.f32 %v3966_v20, %v3965_v27  ;;  %v10723_v14 = vmul.f32 0.015625, %v3925_v39  ;;  %v8563_v20 = vld [vmem:[#allocation9 + $0x88] sm:$0xff]  }
 0x363   : > { %v3931_v56 = vadd.f32 %v3930_v8, %v10716_v16  ;;  %v3972_v36 = vadd.f32 %v3971_v45, %v3952_v51  ;;  %8031 = vmatpush3.bf16.msra.mxu1 %v8557_v13  ;;  %7969 = vmatpush3.bf16.msra.mxu0 %v8555_v11  ;;  %v8568_v8 = vld [vmem:[#allocation9] sm:$0xff]  }
 0x364   : > { %v3983_v53 = vmul.f32 0.015625, %v3967_v21  ;;  %v3985_v24 = vmul.f32 %v10723_v14, %v10723_v14  ;;  %v3989_v4 = vsub.f32 %v10589_v30, %v10723_v14  ;;  %v3990_v33 = vsub.f32 %v10599_v49, %v10723_v14  ;;  %8032 = vmatprep.subr.bf16.mxu1 %v8558_v23  ;;  %7970 = vmatprep.subr.bf16.mxu0 %v8560_v5 }
 0x365   : > { %v3991_v47 = vsub.f32 %v10597_v15, %v10723_v14  ;;  %v3992_v52 = vsub.f32 %v10610_v57, %v10723_v14  ;;  %v3993_v28 = vsub.f32 %v10626_v43, %v10723_v14  ;;  %v3994_v35 = vsub.f32 %v10647_v32, %v10723_v14 }
 0x366   : > { %v3987_v17 = vsub.f32 %v3983_v53, %v3985_v24  ;;  %v3995_v63 = vsub.f32 %v10642_v26, %v10723_v14  ;;  %v3996_v10 = vsub.f32 %v10657_v9, %v10723_v14  ;;  %v3932_v31 = vadd.f32 %v3931_v56, %v10727_v60  ;;  %v8571_v56 = vld [vmem:[#allocation9 + $0x1f8] sm:$0xff]  }
 0x367   : > { %v3973_v18 = vadd.f32 %v3972_v36, %v3953_v54  ;;  %8033 = vmatpush3.bf16.msra.mxu1 %v8559_v19  ;;  %7971 = vmatpush3.bf16.msra.mxu0 %v8561_v61 }
 0x368   : > { %v4005_v25 = vadd.f32 1e-05, %v3987_v17  ;;  %v3933_v6 = vrot.slane %v3932_v31, 4  ;;  %8034 = vmatprep.subr.bf16.mxu1 %v8562_v38  ;;  %7972 = vmatprep.subr.bf16.mxu0 %v8567_v55  ;;  %v10764_v17 = vld [vmem:[%s12071_s7] ss:$0 sm:$0xff] }
 0x369   : > { %v3974_v3 = vadd.f32 %v3973_v18, %v3954_v1 }
 0x36a   : > { %8700 = vrsqrt.f32 %v4005_v25  ;;  %v3934_v7 = vadd.f32 %v3933_v6, %v3932_v31 }
 0x36b   : > { %v3975_v34 = vrot.slane %v3974_v3, 4  ;;  %8035 = vmatpush3.bf16.msra.mxu1 %v8563_v20  ;;  %7973 = vmatpush3.bf16.msra.mxu0 %v8568_v8 }
 0x36c   : > { %v3935_v27 = vrot.slane %v3934_v7, 2  ;;  %8036 = vmatprep.subr.bf16.mxu1 %v8564_v40  ;;  %8086 = vmatprep.subr.bf16.mxu0 %v8570_v0 }
 0x36d   : > { %v3976_v50 = vadd.f32 %v3975_v34, %v3974_v3  ;;  %v10787_v3 = vld [vmem:[%s12072_s8] ss:$0 sm:$0xff] }
 0x36e   : > { %v3936_v59 = vadd.f32 %v3935_v27, %v3934_v7 }
 0x36f   : > { %v3977_v39 = vrot.slane %v3976_v50, 2  ;;  %8037 = vmatpush3.bf16.msra.mxu1 %v8565_v62 }
 0x370   : > { %v3937_v45 = vrot.slane %v3936_v59, 1  ;;  %8150 = vmatprep.subr.bf16.mxu1 %v8571_v56 }
 0x371   : > { %v3978_v29 = vadd.f32 %v3977_v39, %v3976_v50 }
 0x372   : > { %v3938_v51 = vadd.f32 %v3937_v45, %v3936_v59 }
 0x373   : > { %v3979_v21 = vrot.slane %v3978_v29, 1 }
 0x374   : > { %v10751_v54 = vmul.f32 0.015625, %v3938_v51 }
 0x375   : > { %v3980_v36 = vadd.f32 %v3979_v21, %v3978_v29 }
 0x376   : > { %v3986_v12 = vmul.f32 %v10751_v54, %v10751_v54  ;;  %v3997_v53 = vsub.f32 %v10675_v48, %v10751_v54  ;;  %v3998_v24 = vsub.f32 %v10686_v37, %v10751_v54  ;;  %v3999_v22 = vsub.f32 %v10684_v2, %v10751_v54 }
 0x377   : > { %v8701_v58 = vpop.eup %8700  ;;  %v3984_v31 = vmul.f32 0.015625, %v3980_v36  ;;  %v4000_v44 = vsub.f32 %v10692_v42, %v10751_v54  ;;  %v4001_v1 = vsub.f32 %v10710_v46, %v10751_v54  ;;  %v4002_v18 = vsub.f32 %v10718_v41, %v10751_v54 }
 0x378   : > { %v4009_v13 = vmul.f32 %v8701_v58, %v3989_v4  ;;  %v4010_v25 = vmul.f32 %v8701_v58, %v3990_v33  ;;  %v4011_v6 = vmul.f32 %v8701_v58, %v3991_v47  ;;  %v4012_v23 = vmul.f32 %v8701_v58, %v3992_v52 }
 0x379   : > { %v4013_v30 = vmul.f32 %v8701_v58, %v3993_v28  ;;  %v4014_v49 = vmul.f32 %v8701_v58, %v3994_v35  ;;  %v4015_v15 = vmul.f32 %v8701_v58, %v3995_v63  ;;  %v4016_v57 = vmul.f32 %v8701_v58, %v3996_v10 }
 0x37a   : > { %v4031_v4 = vmul.f32 %v10764_v17, %v4009_v13  ;;  %v4032_v33 = vmul.f32 %v10764_v17, %v4010_v25  ;;  %v4033_v47 = vmul.f32 %v10764_v17, %v4011_v6  ;;  %v4034_v43 = vmul.f32 %v10764_v17, %v4012_v23 }
 0x37b   : > { %v4035_v52 = vmul.f32 %v10764_v17, %v4013_v30  ;;  %v4036_v32 = vmul.f32 %v10764_v17, %v4014_v49  ;;  %v4037_v28 = vmul.f32 %v10764_v17, %v4015_v15  ;;  %v4038_v26 = vmul.f32 %v10764_v17, %v4016_v57 }
 0x37c   : > { %v10810_v35 = vadd.f32 %v10787_v3, %v4031_v4  ;;  %v10813_v9 = vadd.f32 %v10787_v3, %v4032_v33  ;;  %v10816_v14 = vadd.f32 %v10787_v3, %v4033_v47  ;;  %v10819_v63 = vadd.f32 %v10787_v3, %v4034_v43 }
 0x37d   : > { %v10822_v10 = vadd.f32 %v10787_v3, %v4035_v52  ;;  %v10825_v11 = vadd.f32 %v10787_v3, %v4036_v32  ;;  %v10828_v7 = vadd.f32 %v10787_v3, %v4037_v28  ;;  %v3988_v27 = vsub.f32 %v3984_v31, %v3986_v12  ;;  %v10849_v31 = vld [vmem:[#allocation2 + $0x4] sm:$0x1] }
 0x37e   : > { %v7403_v5 = vmul.f32 -1.442695, %v10810_v35  ;;  %v7404_v34 = vmul.f32 -1.442695, %v10813_v9  ;;  %v7405_v19 = vmul.f32 -1.442695, %v10816_v14  ;;  %v10834_v38 = vadd.f32 %v10787_v3, %v4038_v26 }
 0x37f   : > { %v7406_v50 = vmul.f32 -1.442695, %v10819_v63  ;;  %v4003_v61 = vsub.f32 %v10716_v16, %v10751_v54  ;;  %v7407_v59 = vmul.f32 -1.442695, %v10822_v10  ;;  %v4004_v55 = vsub.f32 %v10727_v60, %v10751_v54  ;;  %v10845_v16 = vld [vmem:[#allocation2] sm:$0xf] }
 0x380   : > { %8702 = vpow2.f32 %v7403_v5  ;;  %v7408_v39 = vmul.f32 -1.442695, %v10825_v11  ;;  %v7409_v20 = vmul.f32 -1.442695, %v10828_v7  ;;  %v7410_v45 = vmul.f32 -1.442695, %v10834_v38 }
 0x381   : > { %8704 = vpow2.f32 %v7404_v34  ;;  %v4006_v40 = vadd.f32 1e-05, %v3988_v27  ;;  %v4517_v60 = vshrl.u32 %v10845_v16, 16  ;;  %v4520_v8 = vshll.u32 %v10845_v16, 16  ;;  %v10885_v27 = vld [vmem:[#allocation2] sm:$0xe] }
 0x382   : > { %8706 = vpow2.f32 %v7405_v19  ;;  %v4790_v4 = vrot.slane %v10849_v31, 5  ;;  %v4526_v52 = vshll.u32 %v10849_v31, 16 }
 0x383   : > { %8708 = vpow2.f32 %v7406_v50  ;;  %v4519_v13 = vrot.slane %v4517_v60, 4  ;;  %v4522_v25 = vrot.slane %v4520_v8, 5 }
 0x384   : > { %8710 = vpow2.f32 %v7407_v59 }
 0x385   : > { %8712 = vpow2.f32 %v7408_v39  ;;  %v4523_v43 = vor.u32 %v4522_v25, %v4519_v13 }
 0x386   : > { %8714 = vpow2.f32 %v7409_v20 }
 0x387   : > { %8716 = vpow2.f32 %v7410_v45  ;;  %v10915_v13 = vrot.slane %v4523_v43, 4 }
 0x388   : > { %8718 = vrsqrt.f32 %v4006_v40 }
 0x38d   : > { %v8703_v29 = vpop.eup %8702 }
 0x38e   : > { %v8705_v51 = vpop.eup %8704  ;;  %v4117_v0 = vadd.f32 1.0, %v8703_v29 }
 0x38f   : > { %v8707_v21 = vpop.eup %8706  ;;  %v4118_v62 = vadd.f32 1.0, %v8705_v51  ;;  %v7435_v51 = vrot.slane %v10885_v27, 9 }
 0x390   : > { %v8709_v56 = vpop.eup %8708  ;;  %v4119_v36 = vadd.f32 1.0, %v8707_v21  ;;  %8720 = vrcp.f32 %v4117_v0 }
 0x391   : > { %v8711_v12 = vpop.eup %8710  ;;  %v4120_v58 = vadd.f32 1.0, %v8709_v56  ;;  %8722 = vrcp.f32 %v4118_v62  ;;  %v10911_v56 = vrot.slane %v4526_v52, 5 }
 0x392   : > { %v8713_v6 = vpop.eup %8712  ;;  %v4121_v23 = vadd.f32 1.0, %v8711_v12  ;;  %8724 = vrcp.f32 %v4119_v36 }
 0x393   : > { %v8715_v30 = vpop.eup %8714  ;;  %v4122_v49 = vadd.f32 1.0, %v8713_v6  ;;  %8726 = vrcp.f32 %v4120_v58 }
 0x394   : > { %v8717_v15 = vpop.eup %8716  ;;  %v4123_v57 = vadd.f32 1.0, %v8715_v30  ;;  %8728 = vrcp.f32 %v4121_v23 }
 0x395   : > { %v8719_v33 = vpop.eup %8718  ;;  %v4124_v47 = vadd.f32 1.0, %v8717_v15  ;;  %8730 = vrcp.f32 %v4122_v49 }
 0x396   : > { %8732 = vrcp.f32 %v4123_v57  ;;  %v4017_v32 = vmul.f32 %v8719_v33, %v3997_v53  ;;  %v4018_v28 = vmul.f32 %v8719_v33, %v3998_v24  ;;  %v4019_v26 = vmul.f32 %v8719_v33, %v3999_v22  ;;  %v4492_v22 = vld [vmem:[#allocation2 + $0x50] sm:$0xf] }
 0x397   : > { %8734 = vrcp.f32 %v4124_v47  ;;  %v4020_v5 = vmul.f32 %v8719_v33, %v4000_v44  ;;  %v4021_v34 = vmul.f32 %v8719_v33, %v4001_v1  ;;  %v4022_v48 = vmul.f32 %v8719_v33, %v4002_v18 }
 0x398   : > { %v4023_v53 = vmul.f32 %v8719_v33, %v4003_v61  ;;  %v4024_v37 = vmul.f32 %v8719_v33, %v4004_v55  ;;  %v4039_v24 = vmul.f32 %v10764_v17, %v4017_v32  ;;  %v4040_v2 = vmul.f32 %v10764_v17, %v4018_v28 }
 0x399   : > { %v4041_v19 = vmul.f32 %v10764_v17, %v4019_v26  ;;  %v4042_v42 = vmul.f32 %v10764_v17, %v4020_v5  ;;  %v4043_v44 = vmul.f32 %v10764_v17, %v4021_v34  ;;  %v4044_v46 = vmul.f32 %v10764_v17, %v4022_v48 }
 0x39a   : > { %v4045_v1 = vmul.f32 %v10764_v17, %v4023_v53  ;;  %v4046_v41 = vmul.f32 %v10764_v17, %v4024_v37  ;;  %v10880_v54 = vadd.f32 %v10787_v3, %v4039_v24  ;;  %v10883_v18 = vadd.f32 %v10787_v3, %v4040_v2 }
 0x39b   : > { %v10888_v50 = vadd.f32 %v10787_v3, %v4041_v19  ;;  %v10891_v61 = vadd.f32 %v10787_v3, %v4042_v42  ;;  %v10894_v59 = vadd.f32 %v10787_v3, %v4043_v44  ;;  %v4629_v55 = vshrl.u32 %v4492_v22, 16 }
 0x39c   : > { %v10897_v17 = vadd.f32 %v10787_v3, %v4046_v41  ;;  %v7411_v39 = vmul.f32 -1.442695, %v10880_v54  ;;  %v7412_v20 = vmul.f32 -1.442695, %v10883_v18  ;;  %v4632_v45 = vshll.u32 %v4492_v22, 16 }
 0x39d   : > { %v8721_v40 = vpop.eup %8720  ;;  %v10902_v29 = vadd.f32 %v10787_v3, %v4044_v46  ;;  %v7413_v60 = vmul.f32 -1.442695, %v10888_v50  ;;  %v7414_v8 = vmul.f32 -1.442695, %v10891_v61  ;;  %v10908_v21 = vadd.f32 %v10787_v3, %v4045_v1 }
 0x39e   : > { %v8723_v0 = vpop.eup %8722  ;;  %8736 = vpow2.f32 %v7411_v39  ;;  %v7415_v62 = vmul.f32 -1.442695, %v10894_v59  ;;  %v4165_v12 = vmul.f32 %v8721_v40, %v10810_v35  ;;  %v10918_v23 = vrot.slane %v4629_v55, 4  ;;  %v4394_v39 = vld [vmem:[#allocation2 + $0x10] sm:$0xf] }
 0x39f   : > { %v8725_v36 = vpop.eup %8724  ;;  %v4166_v58 = vmul.f32 %v8723_v0, %v10813_v9  ;;  %8738 = vpow2.f32 %v7412_v20  ;;  %v10920_v3 = vrot.slane %v4632_v45, 5  ;;  %v7416_v35 = vmul.f32 -1.442695, %v10902_v29  ;;  %v4406_v0 = vld [vmem:[#allocation2 + $0x20] sm:$0xf] }
 0x3a0   : > { %v8727_v25 = vpop.eup %8726  ;;  %v4167_v6 = vmul.f32 %v8725_v36, %v10816_v14  ;;  %8740 = vpow2.f32 %v7413_v60  ;;  %v7417_v47 = vmul.f32 -1.442695, %v10908_v21  ;;  %v10927_v52 = vpack.c.bf16 %v4165_v12, %v4165_v12 }
 0x3a1   : > { %v8729_v30 = vpop.eup %8728  ;;  %v4168_v49 = vmul.f32 %v8727_v25, %v10819_v63  ;;  %v7653_v15 = vpack.c.bf16 %v4166_v58, %v4166_v58  ;;  %8742 = vpow2.f32 %v7414_v8  ;;  %v4400_v8 = vld [vmem:[#allocation2 + $0x18] sm:$0xf] }
 0x3a2   : > { %v8731_v57 = vpop.eup %8730  ;;  %v4169_v9 = vmul.f32 %v8729_v30, %v10822_v10  ;;  %v7654_v33 = vpack.c.bf16 %v4167_v6, %v4167_v6  ;;  %8744 = vpow2.f32 %v7415_v62  ;;  %v4230_v60 = vshrl.u32 %v10927_v52, 16  ;;  %v4412_v30 = vld [vmem:[#allocation2 + $0x28] sm:$0xf] }
 0x3a3   : > { %v8733_v14 = vpop.eup %8732  ;;  %v4170_v43 = vmul.f32 %v8731_v57, %v10825_v11  ;;  %v7655_v32 = vpack.c.bf16 %v4168_v49, %v4168_v49  ;;  %v4238_v28 = vshrl.u32 %v7653_v15, 16  ;;  %v4241_v34 = vshll.u32 %v7653_v15, 16 }
 0x3a4   : > { %v8735_v26 = vpop.eup %8734  ;;  %v4171_v63 = vmul.f32 %v8733_v14, %v10828_v7  ;;  %v7656_v5 = vpack.c.bf16 %v4169_v9, %v4169_v9  ;;  %v4246_v48 = vshrl.u32 %v7654_v33, 16  ;;  %v4249_v11 = vshll.u32 %v7654_v33, 16 }
 0x3a5   : > { %v4172_v53 = vmul.f32 %v8735_v26, %v10834_v38  ;;  %v7657_v10 = vpack.c.bf16 %v4170_v43, %v4170_v43  ;;  %v10931_v37 = vrot.slane %v4238_v28, 7  ;;  %v4254_v24 = vshrl.u32 %v7655_v32, 16 }
 0x3a6   : > { %v7658_v2 = vpack.c.bf16 %v4171_v63, %v4171_v63  ;;  %v10933_v22 = vrot.slane %v4246_v48, 7  ;;  %v4262_v19 = vshrl.u32 %v7656_v5, 16  ;;  %v4257_v46 = vshll.u32 %v7655_v32, 16  ;;  %v4418_v63 = vld [vmem:[#allocation2 + $0x30] sm:$0xf] }
 0x3a7   : > { %v4243_v42 = vor.u32 %v4241_v34, %v10931_v37  ;;  %v10936_v44 = vrot.slane %v4254_v24, 7  ;;  %v7418_v7 = vmul.f32 -1.442695, %v10897_v17  ;;  %v4265_v38 = vshll.u32 %v7656_v5, 16  ;;  %v4421_v5 = vld [vmem:[#allocation2 + $0x34] sm:$0x1] }
 0x3a8   : > { %v4251_v1 = vor.u32 %v4249_v11, %v10933_v22  ;;  %v10940_v41 = vrot.slane %v4262_v19, 7  ;;  %v4270_v55 = vshrl.u32 %v7657_v10, 16  ;;  %v10942_v20 = vpack.c.bf16 %v4172_v53, %v4172_v53 }
 0x3a9   : > { %v4259_v45 = vor.u32 %v4257_v46, %v10936_v44  ;;  %v4278_v40 = vshrl.u32 %v7658_v2, 16  ;;  %v4273_v12 = vshll.u32 %v7657_v10, 16  ;;  %v4395_v25 = vsel %vm9538_vm8, %v4243_v42, %v4394_v39  ;;  %v4424_v10 = vld [vmem:[#allocation2 + $0x38] sm:$0xf] }
 0x3aa   : > { %v4267_v62 = vor.u32 %v4265_v38, %v10940_v41  ;;  %v4272_v36 = vrot.slane %v4270_v55, 7  ;;  %v4281_v15 = vshll.u32 %v7658_v2, 16  ;;  %v4401_v57 = vsel %vm9538_vm8, %v4251_v1, %v4400_v8  ;;  %4396 = vst [vmem:[#allocation2 + $0x10] sm:$0xf] %v4395_v25  ;;  %v4508_v1 = vld [vmem:[#allocation2 + $0x54] sm:$0x1] }
 0x3ab   : > { %v8737_v6 = vpop.eup %8736  ;;  %v10949_v49 = vrot.slane %v4278_v40, 7  ;;  %v4407_v9 = vsel %vm9538_vm8, %v4259_v45, %v4406_v0  ;;  %4402 = vst [vmem:[#allocation2 + $0x18] sm:$0xf] %v4401_v57  ;;  %8746 = vpow2.f32 %v7416_v35  ;;  %v4233_v55 = vshll.u32 %v10927_v52, 16  ;;  %v4748_v45 = vld [vmem:[#allocation2 + $0x50] sm:$0xe] }
 0x3ac   : > { %v8739_v33 = vpop.eup %8738  ;;  %v4275_v14 = vor.u32 %v4273_v12, %v4272_v36  ;;  %v4276_v43 = vrot.slane %v4272_v36, 4  ;;  %v4413_v32 = vsel %vm9538_vm8, %v4267_v62, %v4412_v30  ;;  %4408 = vst [vmem:[#allocation2 + $0x20] sm:$0xf] %v4407_v9  ;;  %8748 = vpow2.f32 %v7417_v47  ;;  %v4397_v8 = vld [vmem:[#allocation2 + $0x14] sm:$0x1] }
 0x3ad   : > { %v8741_v28 = vpop.eup %8740  ;;  %v4283_v26 = vor.u32 %v4281_v15, %v10949_v49  ;;  %4414 = vst [vmem:[#allocation2 + $0x28] sm:$0xf] %v4413_v32  ;;  %v4125_v34 = vadd.f32 1.0, %v8737_v6  ;;  %v4126_v48 = vadd.f32 1.0, %v8739_v33  ;;  %8750 = vpow2.f32 %v7418_v7  ;;  %v8771_v15 = vld [vmem:[#allocation2 + $0x8] sm:$0xf] }
 0x3ae   : > { %v8743_v53 = vpop.eup %8742  ;;  %v4419_v24 = vsel %vm9538_vm8, %v4275_v14, %v4418_v63  ;;  %v4422_v11 = vsel %vm9196_vm2, %v4276_v43, %v4421_v5  ;;  %v4127_v19 = vadd.f32 1.0, %v8741_v28  ;;  %v4232_v47 = vrot.slane %v4230_v60, 7  ;;  %v4391_v60 = vld [vmem:[#allocation2 + $0xc] sm:$0x1] }
 0x3af   : > { %v8745_v35 = vpop.eup %8744  ;;  %4423 = vst [vmem:[#allocation2 + $0x34] sm:$0x1] %v4422_v11  ;;  %v4425_v42 = vsel %vm9538_vm8, %v4283_v26, %v4424_v10  ;;  %4420 = vst [vmem:[#allocation2 + $0x30] sm:$0xf] %v4419_v24  ;;  %v4128_v46 = vadd.f32 1.0, %v8743_v53  ;;  %8752 = vrcp.f32 %v4125_v34  ;;  %v4244_v39 = vrot.slane %v10931_v37, 4 }
 0x3b0   : > { %4426 = vst [vmem:[#allocation2 + $0x38] sm:$0xf] %v4425_v42  ;;  %v4129_v38 = vadd.f32 1.0, %v8745_v35  ;;  %8754 = vrcp.f32 %v4126_v48  ;;  %v4286_v7 = vshrl.u32 %v10942_v20, 16  ;;  %v4236_v40 = vrot.slane %v4232_v47, 4 }
 0x3b1   : > { %8756 = vrcp.f32 %v4127_v19  ;;  %v4638_v0 = vshll.u32 %v4508_v1, 16  ;;  %v4235_v62 = vor.u32 %v4233_v55, %v4232_v47  ;;  %v10967_v36 = vld [vmem:[#allocation2 + $0x10] sm:$0xf]  ;;  %v4252_v12 = vrot.slane %v10933_v22, 4 }
 0x3b2   : > { %8758 = vrcp.f32 %v4128_v46  ;;  %v4398_v25 = vsel %vm9196_vm2, %v4244_v39, %v4397_v8  ;;  %v4392_v52 = vsel %vm9196_vm2, %v4236_v40, %v4391_v60  ;;  %v10974_v37 = vld [vmem:[#allocation2 + $0x18] sm:$0xf]  ;;  %v7443_v6 = vrot.slane %v4748_v45, 9  ;;  %v10978_v9 = vld [vmem:[#allocation2 + $0x10] sm:$0xf] }
 0x3b3   : > { %8760 = vrcp.f32 %v4129_v38  ;;  %4399 = vst [vmem:[#allocation2 + $0x14] sm:$0x1] %v4398_v25  ;;  %v4822_v30 = vrot.slane %v4508_v1, 5  ;;  %v4389_v57 = vsel %vm9538_vm8, %v4235_v62, %v8771_v15  ;;  %4393 = vst [vmem:[#allocation2 + $0xc] sm:$0x1] %v4392_v52  ;;  %v4635_v22 = vor.u32 %v10920_v3, %v10918_v23 }
 0x3b4   : > { %4390 = vst [vmem:[#allocation2 + $0x8] sm:$0xf] %v4389_v57  ;;  %v4899_v33 = vshrl.u32 %v10967_v36, 16  ;;  %v4902_v14 = vshll.u32 %v10967_v36, 16  ;;  %v10990_v32 = vsel %vm9568_vm11, %v7435_v51, %v4790_v4  ;;  %v10992_v28 = vld [vmem:[#allocation2 + $0x20] sm:$0xf] }
 0x3b5   : > { %v4403_v3 = vld [vmem:[#allocation2 + $0x1c] sm:$0x1]  ;;  %v10998_v63 = vrot.slane %v4286_v7, 7  ;;  %v4913_v5 = vshrl.u32 %v10974_v37, 16  ;;  %v11003_v27 = vld [vmem:[#allocation2 + $0x18] sm:$0xf]  ;;  %v11012_v53 = vsel %vm9568_vm11, %v7443_v6, %v4822_v30  ;;  %v7508_v57 = vcombine.low %v10974_v37, %v10992_v28 }
 0x3b6   : > { %v4404_v31 = vsel %vm9196_vm2, %v4252_v12, %v4403_v3  ;;  %v11005_v34 = vrot.slane %v4638_v0, 5  ;;  %v4916_v4 = vshll.u32 %v10974_v37, 16  ;;  %v4545_v51 = vshrl.u32 %v10978_v9, 16  ;;  %v11028_v45 = vld [vmem:[#allocation2 + $0x10] sm:$0xe] }
 0x3b7   : > { %4405 = vst [vmem:[#allocation2 + $0x1c] sm:$0x1] %v4404_v31  ;;  %v4548_v48 = vshll.u32 %v10978_v9, 16  ;;  %v4289_v10 = vshll.u32 %v10942_v20, 16  ;;  %v4927_v24 = vshrl.u32 %v10992_v28, 16  ;;  %v11017_v19 = vrot.slane %v4635_v22, 4 }
 0x3b8   : > { %v8747_v35 = vpop.eup %8746  ;;  %v11019_v42 = vrot.slane %v4899_v33, 4  ;;  %v11021_v46 = vrot.slane %v4902_v14, 5  ;;  %v4559_v47 = vshrl.u32 %v11003_v27, 16  ;;  %v4562_v1 = vshll.u32 %v11003_v27, 16 }
 0x3b9   : > { %v8749_v38 = vpop.eup %8748  ;;  %v4130_v55 = vadd.f32 1.0, %v8747_v35  ;;  %v11025_v39 = vrot.slane %v4913_v5, 4  ;;  %v4930_v20 = vshll.u32 %v10992_v28, 16  ;;  %v11031_v7 = vor.u32 %v4289_v10, %v10998_v63 }
 0x3ba   : > { %v8751_v40 = vpop.eup %8750  ;;  %v4131_v8 = vadd.f32 1.0, %v8749_v38  ;;  %v11033_v0 = vld [vmem:[#allocation2 + $0xc] sm:$0x1]  ;;  %v11035_v62 = vrot.slane %v4916_v4, 5  ;;  %v11037_v60 = vrot.slane %v4545_v51, 4  ;;  %v11039_v12 = vrot.slane %v4548_v48, 5 }
 0x3bb   : > { %v4132_v52 = vadd.f32 1.0, %v8751_v40  ;;  %8762 = vrcp.f32 %v4130_v55  ;;  %v11041_v6 = vld [vmem:[#allocation2 + $0x8] sm:$0xf]  ;;  %v11043_v15 = vrot.slane %v4927_v24, 4  ;;  %v11049_v14 = vld [vmem:[#allocation2 + $0x14] sm:$0x1] }
 0x3bc   : > { %v8753_v25 = vpop.eup %8752  ;;  %v4741_v30 = vld [vmem:[#allocation2 + $0x8] sm:$0xe]  ;;  %8764 = vrcp.f32 %v4131_v8  ;;  %v11051_v3 = vrot.slane %v4559_v47, 4  ;;  %v11053_v5 = vrot.slane %v4562_v1, 5  ;;  %v7507_v51 = vcombine.low %v11041_v6, %v10967_v36 }
 0x3bd   : > { %v8755_v22 = vpop.eup %8754  ;;  %v7436_v48 = vrot.slane %v4741_v30, 9  ;;  %v4794_v37 = vrot.slane %v11033_v0, 5  ;;  %v11060_v24 = vrot.slane %v4930_v20, 5  ;;  %v11062_v35 = vld [vmem:[#allocation2 + $0x8] sm:$0xf]  ;;  %v4551_v47 = vor.u32 %v11039_v12, %v11037_v60 }
 0x3be   : > { %v8757_v31 = vpop.eup %8756  ;;  %v4174_v4 = vmul.f32 %v8755_v22, %v10883_v18  ;;  %8766 = vrcp.f32 %v4132_v52  ;;  %6636 = vmatprep.mubr.bf16.mxu1 %v7507_v51  ;;  %v4554_v55 = vshll.u32 %v11049_v14, 16  ;;  %v4173_v40 = vmul.f32 %v8753_v25, %v10880_v54 }
 0x3bf   : > { %v8759_v28 = vpop.eup %8758  ;;  %v4175_v10 = vmul.f32 %v8757_v31, %v10888_v50  ;;  %v4565_v8 = vor.u32 %v11053_v5, %v11051_v3  ;;  %v4795_v12 = vsel %vm9568_vm11, %v7436_v48, %v4794_v37  ;;  %v4531_v52 = vshrl.u32 %v11062_v35, 16  ;;  %v8577_v37 = vld [vmem:[#allocation9 + $0x1f0] sm:$0xff]  }
 0x3c0   : > { %v8761_v38 = vpop.eup %8760  ;;  %v4176_v18 = vmul.f32 %v8759_v28, %v10891_v61  ;;  %v7661_v36 = vpack.c.bf16 %v4174_v4, %v4174_v4  ;;  %v4885_v31 = vshrl.u32 %v11041_v6, 16  ;;  %v8574_v28 = vld [vmem:[#allocation9 + $0x1b8] sm:$0xff]   ;;  %v7499_v48 = vcombine.low %v10990_v32, %v4795_v12 }
 0x3c1   : > { %v4177_v50 = vmul.f32 %v8761_v38, %v10894_v59  ;;  %v7662_v20 = vpack.c.bf16 %v4175_v10, %v4175_v10  ;;  %v4534_v11 = vshll.u32 %v11062_v35, 16  ;;  %v11091_v1 = vpack.c.bf16 %v4173_v40, %v4173_v40 }
 0x3c2   : > { %v7663_v30 = vpack.c.bf16 %v4176_v18, %v4176_v18  ;;  %v4302_v60 = vshrl.u32 %v7661_v36, 16  ;;  %v4305_v59 = vshll.u32 %v7661_v36, 16  ;;  %6637 = vmatmul.mubr.bf16.vlgmr.msra.gmra.mxu1 %v7499_v48  ;;  %v11099_v40 = vrot.slane %v4885_v31, 4 }
 0x3c3   : > { %v7664_v61 = vpack.c.bf16 %v4177_v50, %v4177_v50  ;;  %v4310_v22 = vshrl.u32 %v7662_v20, 16  ;;  %v4313_v25 = vshll.u32 %v7662_v20, 16  ;;  %v4533_v50 = vrot.slane %v4531_v52, 4  ;;  %6644 = vmatprep.mubr.bf16.mxu1 %v7508_v57  ;;  %8151 = vmatpush3.bf16.msra.mxu1 %v8574_v28 }
 0x3c4   : > { %v11078_v54 = vrot.slane %v4302_v60, 7  ;;  %v4318_v51 = vshrl.u32 %v7663_v30, 16  ;;  %v4321_v5 = vshll.u32 %v7663_v30, 16  ;;  %v4442_v60 = vld [vmem:[#allocation2 + $0x60] sm:$0xf]  ;;  %v4540_v30 = vshll.u32 %v11033_v0, 16  ;;  %8152 = vmatprep.subr.bf16.mxu1 %v8577_v37 }
 0x3c5   : > { %v11080_v3 = vrot.slane %v4310_v22, 7  ;;  %v4326_v10 = vshrl.u32 %v7664_v61, 16  ;;  %v4329_v33 = vshll.u32 %v7664_v61, 16  ;;  %v4448_v22 = vld [vmem:[#allocation2 + $0x68] sm:$0xf]  ;;  %v4536_v52 = vrot.slane %v4534_v11, 5 }
 0x3c6   : > { %v4307_v38 = vor.u32 %v4305_v59, %v11078_v54  ;;  %v11084_v18 = vrot.slane %v4318_v51, 7  ;;  %v4503_v59 = vld [vmem:[#allocation2 + $0x1c] sm:$0x1]  ;;  %v8580_v51 = vld [vmem:[#allocation9 + $0x1b0] sm:$0xff]   ;;  %v4552_v48 = vrot.slane %v4551_v47, 4  ;;  %v4566_v47 = vrot.slane %v4565_v8, 4 }
 0x3c7   : > { %v4315_v36 = vor.u32 %v4313_v25, %v11080_v3  ;;  %v11088_v20 = vrot.slane %v4326_v10, 7  ;;  %v4454_v10 = vld [vmem:[#allocation2 + $0x70] sm:$0xf]  ;;  %v4537_v28 = vor.u32 %v4536_v52, %v4533_v50  ;;  %v4568_v37 = vshll.u32 %v4503_v59, 16  ;;  %8153 = vmatpush3.bf16.msra.mxu1 %v8580_v51  ;;  %v8586_v50 = vld [vmem:[#allocation9 + $0x1a8] sm:$0xff]  }
 0x3c8   : > { %v4323_v32 = vor.u32 %v4321_v5, %v11084_v18  ;;  %v4443_v12 = vsel %vm9538_vm8, %v4307_v38, %v4442_v60  ;;  %v8763_v25 = vpop.eup %8762  ;;  %v8583_v5 = vld [vmem:[#allocation9 + $0x1e8] sm:$0xff]   ;;  %v4460_v38 = vld [vmem:[#allocation2 + $0x78] sm:$0xf]  ;;  %v4542_v60 = vrot.slane %v4540_v30, 5  ;;  %v12288_v8 = vshll.u32 %v11041_v6, 16 }
 0x3c9   : > { %v4331_v61 = vor.u32 %v4329_v33, %v11088_v20  ;;  %v4449_v0 = vsel %vm9538_vm8, %v4315_v36, %v4448_v22  ;;  %4444 = vst [vmem:[#allocation2 + $0x60] sm:$0xf] %v4443_v12  ;;  %v8765_v23 = vpop.eup %8764  ;;  %v4178_v11 = vmul.f32 %v8763_v25, %v10902_v29  ;;  %v4743_v33 = vld [vmem:[#allocation2 + $0x18] sm:$0xe]  ;;  %v4538_v22 = vrot.slane %v4537_v28, 4  ;;  %8154 = vmatprep.subr.bf16.mxu1 %v8583_v5  ;;  %v8589_v25 = vld [vmem:[#allocation9 + $0x1e0] sm:$0xff]  }
 0x3ca   : > { %v4455_v57 = vsel %vm9538_vm8, %v4323_v32, %v4454_v10  ;;  %4450 = vst [vmem:[#allocation2 + $0x68] sm:$0xf] %v4449_v0  ;;  %v4179_v4 = vmul.f32 %v8765_v23, %v10908_v21  ;;  %v4556_v29 = vrot.slane %v4554_v55, 5  ;;  %v4798_v32 = vrot.slane %v11049_v14, 5  ;;  %v8573_v5 = vld [vmem:[#allocation9 + $0x138] sm:$0xff]  }
 0x3cb   : > { %v4461_v31 = vsel %vm9538_vm8, %v4331_v61, %v4460_v38  ;;  %4456 = vst [vmem:[#allocation2 + $0x70] sm:$0xf] %v4455_v57  ;;  %v7665_v36 = vpack.c.bf16 %v4178_v11, %v4178_v11  ;;  %v8767_v30 = vpop.eup %8766  ;;  %v4570_v52 = vrot.slane %v4568_v37, 5  ;;  %v7438_v21 = vrot.slane %v4743_v33, 9  ;;  %v11127_v38 = vld [vmem:[#allocation2 + $0x28] sm:$0xf]  ;;  %8155 = vmatpush3.bf16.msra.mxu1 %v8586_v50 }
 0x3cc   : > { %4462 = vst [vmem:[#allocation2 + $0x78] sm:$0xf] %v4461_v31  ;;  %v7666_v12 = vpack.c.bf16 %v4179_v4, %v4179_v4  ;;  %v4802_v23 = vrot.slane %v4503_v59, 5  ;;  %v11112_v61 = vrot.slane %v12288_v8, 5  ;;  %v4543_v0 = vsel %vm9601_vm12, %v4538_v22, %v4542_v60  ;;  %v8576_v60 = vld [vmem:[#allocation9 + $0x170] sm:$0xff]   ;;  %8156 = vmatprep.subr.bf16.mxu1 %v8589_v25  ;;  %v8595_v50 = vld [vmem:[#allocation9 + $0x1d8] sm:$0xff]  }
 0x3cd   : > { %v4334_v10 = vshrl.u32 %v7665_v36, 16  ;;  %v4557_v14 = vsel %vm9601_vm12, %v4552_v48, %v4556_v29  ;;  %v12289_v4 = vsel %vm9601_vm12, %v10915_v13, %v10911_v56  ;;  %v7483_v51 = vcombine.low %v10845_v16, %v11062_v35  ;;  %v11138_v31 = vld [vmem:[#allocation2 + $0x30] sm:$0xf]  ;;  %v11151_v25 = vld [vmem:[#allocation2 + $0x20] sm:$0xf] }
 0x3ce   : > { %v4342_v55 = vshrl.u32 %v7666_v12, 16  ;;  %v7491_v59 = vcombine.low %v12289_v4, %v4543_v0  ;;  %v4571_v6 = vsel %vm9601_vm12, %v4566_v47, %v4570_v52  ;;  %v4180_v11 = vmul.f32 %v8767_v30, %v10897_v17  ;;  %v8592_v17 = vld [vmem:[#allocation9 + $0x1a0] sm:$0xff]  }
 0x3cf   : > { %v4336_v57 = vrot.slane %v4334_v10, 7  ;;  %v4337_v48 = vshll.u32 %v7665_v36, 16  ;;  %v4345_v28 = vshll.u32 %v7666_v12, 16  ;;  %v7492_v56 = vcombine.low %v4557_v14, %v4571_v6  ;;  %v4466_v36 = vld [vmem:[#allocation2 + $0x80] sm:$0xf]  ;;  %8157 = vmatpush3.bf16.msra.mxu1 %v8592_v17 }
 0x3d0   : > { %v11130_v33 = vrot.slane %v4342_v55, 7  ;;  %6539 = vmatprep.mubr.bf16.mxu0 %v7491_v59  ;;  %v12290_v13 = vrot.slane %v11028_v45, 9  ;;  %v4803_v35 = vsel %vm9568_vm11, %v7438_v21, %v4802_v23  ;;  %v4941_v29 = vshrl.u32 %v11127_v38, 16  ;;  %v4469_v30 = vld [vmem:[#allocation2 + $0x84] sm:$0x1]  ;;  %v8579_v23 = vld [vmem:[#allocation9 + $0x130] sm:$0xff]   ;;  %8158 = vmatprep.subr.bf16.mxu1 %v8595_v50 }
 0x3d1   : > { %v4339_v47 = vor.u32 %v4337_v48, %v4336_v57  ;;  %v4340_v37 = vrot.slane %v4336_v57, 4  ;;  %6540 = vmatmul.mubr.bf16.vlgmr.msra.gmra.mxu0 %v7483_v51  ;;  %v4919_v52 = vor.u32 %v11035_v62, %v11025_v39  ;;  %v4933_v21 = vor.u32 %v11060_v24, %v11043_v15  ;;  %v4472_v10 = vld [vmem:[#allocation2 + $0x88] sm:$0xf]  ;;  %v4409_v4 = vld [vmem:[#allocation2 + $0x24] sm:$0x1]  ;;  %v8598_v59 = vld [vmem:[#allocation9 + $0x198] sm:$0xff]  }
 0x3d2   : > { %v4799_v16 = vsel %vm9568_vm11, %v12290_v13, %v4798_v32  ;;  %v4347_v45 = vor.u32 %v4345_v28, %v11130_v33  ;;  %v12291_v32 = vor.u32 %v11021_v46, %v11019_v42  ;;  %8087 = vmatpush3.bf16.msra.mxu0 %v8573_v5  ;;  %6547 = vmatprep.mubr.bf16.mxu0 %v7492_v56  ;;  %v4294_v8 = vshrl.u32 %v11091_v1, 16  ;;  %v11160_v39 = vld [vmem:[#allocation2 + $0x28] sm:$0xf]  ;;  %v4415_v57 = vld [vmem:[#allocation2 + $0x2c] sm:$0x1]  ;;  %v8588_v17 = vld [vmem:[#allocation9 + $0x160] sm:$0xff]  }
 0x3d3   : > { %v7500_v22 = vcombine.low %v4799_v16, %v4803_v35  ;;  %v4467_v0 = vsel %vm9538_vm8, %v4339_v47, %v4466_v36  ;;  %v4470_v42 = vsel %vm9196_vm2, %v4340_v37, %v4469_v30  ;;  %v7509_v46 = vcombine.low %v11127_v38, %v11138_v31  ;;  %8088 = vmatprep.subr.bf16.mxu0 %v8576_v60  ;;  %v8582_v62 = vld [vmem:[#allocation9 + $0x168] sm:$0xff]   ;;  %v4430_v35 = vld [vmem:[#allocation2 + $0x40] sm:$0xf]  ;;  %v8604_v47 = vld [vmem:[#allocation9 + $0x190] sm:$0xff]  }
 0x3d4   : > { %v11145_v12 = vrot.slane %v12291_v32, 4  ;;  %v11162_v15 = vpack.c.bf16 %v4180_v11, %v4180_v11  ;;  %4471 = vst [vmem:[#allocation2 + $0x84] sm:$0x1] %v4470_v42  ;;  %v4473_v24 = vsel %vm9538_vm8, %v4347_v45, %v4472_v10  ;;  %4468 = vst [vmem:[#allocation2 + $0x80] sm:$0xf] %v4467_v0  ;;  %v4891_v14 = vor.u32 %v11112_v61, %v11099_v40  ;;  %v8601_v40 = vld [vmem:[#allocation9 + $0x1d0] sm:$0xff]  }
 0x3d5   : > { %6645 = vmatmul.mubr.bf16.gmra.mxu1 %v7500_v22  ;;  %v4944_v55 = vshll.u32 %v11127_v38, 16  ;;  %4474 = vst [vmem:[#allocation2 + $0x88] sm:$0xf] %v4473_v24  ;;  %v11169_v51 = vrot.slane %v4941_v29, 4  ;;  %v4268_v5 = vrot.slane %v10940_v41, 4  ;;  %v12292_v6 = vrot.slane %v10936_v44, 4 }
 0x3d6   : > { %6652 = vmatprep.mubr.bf16.mxu1 %v7509_v46  ;;  %v4573_v48 = vshrl.u32 %v11151_v25, 16  ;;  %v4955_v61 = vshrl.u32 %v11138_v31, 16  ;;  %8089 = vmatpush3.bf16.msra.mxu0 %v8579_v23  ;;  %v4576_v38 = vshll.u32 %v11151_v25, 16  ;;  %v4587_v28 = vshrl.u32 %v11160_v39, 16  ;;  %v8585_v60 = vld [vmem:[#allocation9 + $0x128] sm:$0xff]   ;;  %v8591_v46 = vld [vmem:[#allocation9 + $0x120] sm:$0xff]  }
 0x3d7   : > { %v4410_v11 = vsel %vm9196_vm2, %v12292_v6, %v4409_v4  ;;  %v4590_v41 = vshll.u32 %v11160_v39, 16  ;;  %v4958_v44 = vshll.u32 %v11138_v31, 16  ;;  %v7484_v56 = vcombine.low %v10978_v9, %v11003_v27  ;;  %8090 = vmatprep.subr.bf16.mxu0 %v8582_v62  ;;  %v11188_v50 = vld [vmem:[#allocation2 + $0x30] sm:$0xf]  ;;  %8159 = vmatpush3.bf16.msra.mxu1 %v8598_v59  ;;  %v4744_v45 = vld [vmem:[#allocation2 + $0x20] sm:$0xe] }
 0x3d8   : > { %4411 = vst [vmem:[#allocation2 + $0x24] sm:$0x1] %v4410_v11  ;;  %v4416_v13 = vsel %vm9196_vm2, %v4268_v5, %v4415_v57  ;;  %v4575_v16 = vrot.slane %v4573_v48, 4  ;;  %v11186_v37 = vrot.slane %v4944_v55, 5  ;;  %v4578_v36 = vrot.slane %v4576_v38, 5  ;;  %8160 = vmatprep.subr.bf16.mxu1 %v8601_v40  ;;  %v8607_v32 = vld [vmem:[#allocation9 + $0x1c8] sm:$0xff]  }
 0x3d9   : > { %4417 = vst [vmem:[#allocation2 + $0x2c] sm:$0x1] %v4416_v13  ;;  %v4589_v22 = vrot.slane %v4587_v28, 4  ;;  %v4592_v29 = vrot.slane %v4590_v41, 5  ;;  %v4297_v31 = vshll.u32 %v11091_v1, 16  ;;  %v11191_v9 = vrot.slane %v4919_v52, 4  ;;  %6548 = vmatmul.mubr.bf16.gmra.mxu0 %v7484_v56 }
 0x3da   : > { %v11193_v27 = vrot.slane %v4933_v21, 4  ;;  %v4431_v30 = vsel %vm9538_vm8, %v11031_v7, %v4430_v35  ;;  %v11198_v23 = vrot.slane %v4294_v8, 7  ;;  %v4350_v10 = vshrl.u32 %v11162_v15, 16  ;;  %8091 = vmatpush3.bf16.msra.mxu0 %v8585_v60  ;;  %v4427_v52 = vld [vmem:[#allocation2 + $0x3c] sm:$0x1]  ;;  %v8610_v48 = vld [vmem:[#allocation9 + $0x188] sm:$0xff]  }
 0x3db   : > { %v11201_v0 = vrot.slane %v4891_v14, 4  ;;  %v4579_v42 = vor.u32 %v4578_v36, %v4575_v16  ;;  %4432 = vst [vmem:[#allocation2 + $0x40] sm:$0xf] %v4431_v30  ;;  %v11203_v21 = vld [vmem:[#allocation2 + $0x38] sm:$0xf]  ;;  %v4593_v62 = vor.u32 %v4592_v29, %v4589_v22  ;;  %v4284_v55 = vrot.slane %v10949_v49, 4  ;;  %8092 = vmatprep.subr.bf16.mxu0 %v8588_v17  ;;  %8161 = vmatpush3.bf16.msra.mxu1 %v8604_v47 }
 0x3dc   : > { %v4745_v24 = vld [vmem:[#allocation2 + $0x28] sm:$0xe]  ;;  %v4601_v7 = vshrl.u32 %v11188_v50, 16  ;;  %v4604_v8 = vshll.u32 %v11188_v50, 16  ;;  %v8594_v4 = vld [vmem:[#allocation9 + $0x158] sm:$0xff]   ;;  %v4947_v14 = vor.u32 %v11186_v37, %v11169_v51  ;;  %v11210_v59 = vrot.slane %v4955_v61, 4  ;;  %8162 = vmatprep.subr.bf16.mxu1 %v8607_v32 }
 0x3dd   : > { %v11212_v5 = vrot.slane %v4958_v44, 5  ;;  %v7439_v6 = vrot.slane %v4744_v45, 9  ;;  %v11214_v11 = vld [vmem:[#allocation2 + $0x38] sm:$0xf]  ;;  %v4428_v40 = vsel %vm9196_vm2, %v4284_v55, %v4427_v52  ;;  %v4615_v41 = vshrl.u32 %v11203_v21, 16  ;;  %v8612_v60 = vld [vmem:[#allocation9 + $0x1c0] sm:$0xff]  }
 0x3de   : > { %v8597_v57 = vld [vmem:[#allocation9 + $0x118] sm:$0xff]   ;;  %v4603_v38 = vrot.slane %v4601_v7, 4  ;;  %v4606_v28 = vrot.slane %v4604_v8, 5  ;;  %v4580_v61 = vrot.slane %v4579_v42, 4  ;;  %v7440_v13 = vrot.slane %v4745_v24, 9  ;;  %8093 = vmatpush3.bf16.msra.mxu0 %v8591_v46  ;;  %v8600_v29 = vld [vmem:[#allocation9 + $0x150] sm:$0xff]  }
 0x3df   : > { %v4504_v49 = vld [vmem:[#allocation2 + $0x24] sm:$0x1]  ;;  %4429 = vst [vmem:[#allocation2 + $0x3c] sm:$0x1] %v4428_v40  ;;  %v4506_v16 = vld [vmem:[#allocation2 + $0x34] sm:$0x1]  ;;  %8094 = vmatprep.subr.bf16.mxu0 %v8594_v4  ;;  %8163 = vmatpush3.bf16.msra.mxu1 %v8610_v48  ;;  %v4961_v46 = vor.u32 %v11212_v5, %v11210_v59 }
 0x3e0   : > { %v4582_v56 = vshll.u32 %v4504_v49, 16  ;;  %v4806_v44 = vrot.slane %v4504_v49, 5  ;;  %v4505_v35 = vld [vmem:[#allocation2 + $0x2c] sm:$0x1]  ;;  %v4594_v17 = vrot.slane %v4593_v62, 4  ;;  %v4607_v47 = vor.u32 %v4606_v28, %v4603_v38  ;;  %v8613_v24 = vld [vmem:[#allocation9 + $0x180] sm:$0xff]   ;;  %8164 = vmatprep.subr.bf16.mxu1 %v8612_v60 }
 0x3e1   : > { %v4617_v36 = vrot.slane %v4615_v41, 4  ;;  %v4618_v22 = vshll.u32 %v11203_v21, 16  ;;  %v4596_v30 = vshll.u32 %v4505_v35, 16  ;;  %v4810_v42 = vrot.slane %v4505_v35, 5  ;;  %v4746_v52 = vld [vmem:[#allocation2 + $0x30] sm:$0xe] }
 0x3e2   : > { %v4584_v45 = vrot.slane %v4582_v56, 5  ;;  %v4807_v32 = vsel %vm9568_vm11, %v7439_v6, %v4806_v44  ;;  %v11224_v55 = vld [vmem:[#allocation2 + $0x40] sm:$0xf]  ;;  %v4969_v62 = vshrl.u32 %v11214_v11, 16  ;;  %v4610_v7 = vshll.u32 %v4506_v16, 16  ;;  %v11227_v4 = vld [vmem:[#allocation9 + $0x238] sm:$0xff]   ;;  %8095 = vmatpush3.bf16.msra.mxu0 %v8597_v57 }
 0x3e3   : > { %v4620_v8 = vrot.slane %v4618_v22, 5  ;;  %v4598_v6 = vrot.slane %v4596_v30, 5  ;;  %v4811_v48 = vsel %vm9568_vm11, %v7440_v13, %v4810_v42  ;;  %v4972_v40 = vshll.u32 %v11214_v11, 16  ;;  %v4747_v38 = vld [vmem:[#allocation2 + $0x38] sm:$0xe]  ;;  %v8603_v28 = vld [vmem:[#allocation9 + $0x110] sm:$0xff]   ;;  %8096 = vmatprep.subr.bf16.mxu0 %v8600_v29  ;;  %8165 = vmatpush3.bf16.msra.mxu1 %v8613_v24 }
 0x3e4   : > { %v4585_v49 = vsel %vm9601_vm12, %v4580_v61, %v4584_v45  ;;  %v7501_v41 = vcombine.low %v4807_v32, %v4811_v48  ;;  %v4608_v56 = vrot.slane %v4607_v47, 4  ;;  %v7441_v44 = vrot.slane %v4746_v52, 9  ;;  %v8606_v60 = vld [vmem:[#allocation9 + $0x148] sm:$0xff]   ;;  %v4436_v30 = vld [vmem:[#allocation2 + $0x58] sm:$0xf]  ;;  %8326 = vmatprep.subr.bf16.mxu1 %v11227_v4 }
 0x3e5   : > { %v4814_v35 = vrot.slane %v4506_v16, 5  ;;  %v4599_v22 = vsel %vm9601_vm12, %v4594_v17, %v4598_v6  ;;  %v7510_v61 = vcombine.low %v11214_v11, %v11224_v55  ;;  %v7485_v13 = vcombine.low %v11151_v25, %v11160_v39  ;;  %v11243_v29 = vld [vmem:[#allocation2 + $0x60] sm:$0xf]  ;;  %v11302_v5 = vld [vmem:[#allocation2 + $0x68] sm:$0xf] }
 0x3e6   : > { %v4621_v45 = vor.u32 %v4620_v8, %v4617_v36  ;;  %v7493_v57 = vcombine.low %v4585_v49, %v4599_v22  ;;  %6653 = vmatmul.mubr.bf16.gmra.mxu1 %v7501_v41  ;;  %v4507_v32 = vld [vmem:[#allocation2 + $0x3c] sm:$0x1]  ;;  %v4612_v47 = vrot.slane %v4610_v7, 5  ;;  %v7442_v42 = vrot.slane %v4747_v38, 9  ;;  %8097 = vmatpush3.bf16.msra.mxu0 %v8603_v28  ;;  %v8609_v36 = vld [vmem:[#allocation9 + $0x108] sm:$0xff]   ;;  %v8614_v7 = vld [vmem:[#allocation9 + $0x140] sm:$0xff]  }
 0x3e7   : > { %v4299_v16 = vor.u32 %v4297_v31, %v11198_v23  ;;  %v4983_v11 = vshrl.u32 %v11224_v55, 16  ;;  %6660 = vmatprep.mubr.bf16.mxu1 %v7510_v61  ;;  %v4624_v39 = vshll.u32 %v4507_v32, 16  ;;  %v4818_v17 = vrot.slane %v4507_v32, 5  ;;  %8098 = vmatprep.subr.bf16.mxu0 %v8606_v60  ;;  %v11277_v60 = vld [vmem:[#allocation2 + $0x68] sm:$0xf]  ;;  %v8616_v22 = vld [vmem:[#allocation9 + $0x100] sm:$0xff]  }
 0x3e8   : > { %v4622_v25 = vrot.slane %v4621_v45, 4  ;;  %6555 = vmatprep.mubr.bf16.mxu0 %v7493_v57  ;;  %v4986_v52 = vshll.u32 %v11224_v55, 16  ;;  %v4613_v24 = vsel %vm9601_vm12, %v4608_v56, %v4612_v47  ;;  %v4815_v1 = vsel %vm9568_vm11, %v7441_v44, %v4814_v35  ;;  %v4439_v56 = vld [vmem:[#allocation2 + $0x5c] sm:$0x1]  ;;  %v4445_v32 = vld [vmem:[#allocation2 + $0x64] sm:$0x1] }
 0x3e9   : > { %v4437_v31 = vsel %vm9538_vm8, %v4299_v16, %v4436_v30  ;;  %6556 = vmatmul.mubr.bf16.gmra.mxu0 %v7485_v13  ;;  %v4626_v8 = vrot.slane %v4624_v39, 5  ;;  %v4819_v49 = vsel %vm9568_vm11, %v7442_v42, %v4818_v17  ;;  %v5011_v6 = vshrl.u32 %v11243_v29, 16 }
 0x3ea   : > { %4438 = vst [vmem:[#allocation2 + $0x58] sm:$0xf] %v4437_v31  ;;  %v4300_v55 = vrot.slane %v11198_v23, 4  ;;  %v11260_v48 = vrot.slane %v4350_v10, 7  ;;  %v11266_v28 = vrot.slane %v4947_v14, 4  ;;  %v5014_v41 = vshll.u32 %v11243_v29, 16  ;;  %8099 = vmatpush3.bf16.msra.mxu0 %v8609_v36 }
 0x3eb   : > { %v11269_v44 = vrot.slane %v4969_v62, 4  ;;  %v11271_v35 = vrot.slane %v4972_v40, 5  ;;  %v4627_v23 = vsel %vm9601_vm12, %v4622_v25, %v4626_v8  ;;  %v11279_v51 = vrot.slane %v4983_v11, 4  ;;  %v11283_v62 = vld [vmem:[#allocation2 + $0x70] sm:$0xf]  ;;  %8100 = vmatprep.subr.bf16.mxu0 %v8614_v7 }
 0x3ec   : > { %v4440_v10 = vsel %vm9196_vm2, %v4300_v55, %v4439_v56  ;;  %v11281_v37 = vrot.slane %v4986_v52, 5  ;;  %v7494_v14 = vcombine.low %v4613_v24, %v4627_v23  ;;  %v7502_v61 = vcombine.low %v4815_v1, %v4819_v49  ;;  %v11285_v40 = vld [vmem:[#allocation2 + $0x60] sm:$0xf] }
 0x3ed   : > { %4441 = vst [vmem:[#allocation2 + $0x5c] sm:$0x1] %v4440_v10  ;;  %v11290_v13 = vrot.slane %v4961_v46, 4  ;;  %v11292_v45 = vrot.slane %v5011_v6, 4  ;;  %v7486_v30 = vcombine.low %v11188_v50, %v11203_v21  ;;  %v4308_v57 = vrot.slane %v11078_v54, 4 }
 0x3ee   : > { %6563 = vmatprep.mubr.bf16.mxu0 %v7494_v14  ;;  %6661 = vmatmul.mubr.bf16.gmra.mxu1 %v7502_v61  ;;  %v11297_v47 = vrot.slane %v5014_v41, 5  ;;  %v5025_v42 = vshrl.u32 %v11277_v60, 16  ;;  %v5028_v16 = vshll.u32 %v11277_v60, 16  ;;  %v4316_v59 = vrot.slane %v11080_v3, 4  ;;  %v4451_v50 = vld [vmem:[#allocation2 + $0x6c] sm:$0x1] }
 0x3ef   : > { %v5039_v46 = vshrl.u32 %v11283_v62, 16  ;;  %v5042_v11 = vshll.u32 %v11283_v62, 16  ;;  %v4446_v54 = vsel %vm9196_vm2, %v4308_v57, %v4445_v32  ;;  %v4657_v21 = vshrl.u32 %v11285_v40, 16  ;;  %8101 = vmatpush3.bf16.msra.mxu0 %v8616_v22 }
 0x3f0   : > { %v4975_v25 = vor.u32 %v11271_v35, %v11269_v44  ;;  %v4989_v39 = vor.u32 %v11281_v37, %v11279_v51  ;;  %v4641_v36 = vsel %vm9601_vm12, %v11017_v19, %v11005_v34  ;;  %4447 = vst [vmem:[#allocation2 + $0x64] sm:$0x1] %v4446_v54  ;;  %v4452_v24 = vsel %vm9196_vm2, %v4316_v59, %v4451_v50  ;;  %v4751_v59 = vld [vmem:[#allocation2 + $0x68] sm:$0xe]  ;;  %v11396_v51 = vld [vmem:[#allocation2 + $0x80] sm:$0xf] }
 0x3f1   : > { %v4860_v3 = vld [vmem:[#allocation2 + $0x58] sm:$0xf]  ;;  %8294 = vmatprep.subr.bf16.mxu0 %v11227_v4  ;;  %6564 = vmatmul.mubr.bf16.gmra.mxu0 %v7486_v30  ;;  %4453 = vst [vmem:[#allocation2 + $0x6c] sm:$0x1] %v4452_v24  ;;  %v4660_v7 = vshll.u32 %v11285_v40, 16  ;;  %v4671_v8 = vshrl.u32 %v11302_v5, 16  ;;  %v7512_v23 = vcombine.low %v11277_v60, %v11283_v62 }
 0x3f2   : > { %v11313_v17 = vld [vmem:[#allocation2 + $0x58] sm:$0xf]  ;;  %v7511_v1 = vcombine.low %v4860_v3, %v11243_v29  ;;  %v11327_v19 = vrot.slane %v5025_v42, 4  ;;  %v11329_v6 = vrot.slane %v5028_v16, 5  ;;  %v11331_v56 = vrot.slane %v5039_v46, 4 }
 0x3f3   : > { %v4749_v52 = vld [vmem:[#allocation2 + $0x58] sm:$0xe]  ;;  %v4643_v31 = vshrl.u32 %v11313_v17, 16  ;;  %v4646_v49 = vshll.u32 %v11313_v17, 16  ;;  %v11333_v29 = vrot.slane %v5042_v11, 5  ;;  %v4659_v61 = vrot.slane %v4657_v21, 4 }
 0x3f4   : > { %v7444_v34 = vrot.slane %v4749_v52, 9  ;;  %6668 = vmatprep.mubr.bf16.mxu1 %v7511_v1  ;;  %v4509_v55 = vld [vmem:[#allocation2 + $0x5c] sm:$0x1]  ;;  %v4750_v30 = vld [vmem:[#allocation2 + $0x60] sm:$0xe]  ;;  %v4997_v57 = vshrl.u32 %v4860_v3, 16 }
 0x3f5   : > { %v4645_v41 = vrot.slane %v4643_v31, 4  ;;  %v4648_v10 = vrot.slane %v4646_v49, 5  ;;  %v4652_v22 = vshll.u32 %v4509_v55, 16  ;;  %v4826_v14 = vrot.slane %v4509_v55, 5 }
 0x3f6   : > { %v4662_v32 = vrot.slane %v4660_v7, 5  ;;  %v4673_v42 = vrot.slane %v4671_v8, 4  ;;  %v4674_v16 = vshll.u32 %v11302_v5, 16  ;;  %v5000_v54 = vshll.u32 %v4860_v3, 16 }
 0x3f7   : > { %v4649_v50 = vor.u32 %v4648_v10, %v4645_v41  ;;  %v4654_v46 = vrot.slane %v4652_v22, 5  ;;  %v4827_v11 = vsel %vm9568_vm11, %v7444_v34, %v4826_v14  ;;  %v4510_v60 = vld [vmem:[#allocation2 + $0x64] sm:$0x1]  ;;  %v7445_v1 = vrot.slane %v4750_v30, 9  ;;  %v11345_v14 = vld [vmem:[#allocation2 + $0x78] sm:$0xf] }
 0x3f8   : > { %v7503_v52 = vcombine.low %v11012_v53, %v4827_v11  ;;  %v4663_v62 = vor.u32 %v4662_v32, %v4659_v61  ;;  %v4676_v24 = vrot.slane %v4674_v16, 5  ;;  %v4511_v31 = vld [vmem:[#allocation2 + $0x6c] sm:$0x1]  ;;  %v4666_v49 = vshll.u32 %v4510_v60, 16  ;;  %v11347_v61 = vld [vmem:[#allocation2 + $0x70] sm:$0xf] }
 0x3f9   : > { %v4650_v21 = vrot.slane %v4649_v50, 4  ;;  %v4830_v7 = vrot.slane %v4510_v60, 5  ;;  %v7446_v8 = vrot.slane %v4751_v59, 9  ;;  %v4680_v3 = vshll.u32 %v4511_v31, 16  ;;  %v8772_v50 = vld [vmem:[#allocation2 + $0x50] sm:$0xf] }
 0x3fa   : > { %6669 = vmatmul.mubr.bf16.gmra.mxu1 %v7503_v52  ;;  %v4664_v55 = vrot.slane %v4663_v62, 4  ;;  %v4677_v38 = vor.u32 %v4676_v24, %v4673_v42  ;;  %v4834_v41 = vrot.slane %v4511_v31, 5  ;;  %v4999_v10 = vrot.slane %v4997_v57, 4  ;;  %v11349_v42 = vld [vmem:[#allocation2 + $0x80] sm:$0xf] }
 0x3fb   : > { %v5017_v34 = vor.u32 %v11297_v47, %v11292_v45  ;;  %v4655_v53 = vsel %vm9601_vm12, %v4650_v21, %v4654_v46  ;;  %6676 = vmatprep.mubr.bf16.mxu1 %v7512_v23  ;;  %v4668_v22 = vrot.slane %v4666_v49, 5  ;;  %v5002_v30 = vrot.slane %v5000_v54, 5  ;;  %v11365_v46 = vld [vmem:[#allocation2 + $0x78] sm:$0xf]  ;;  %v4457_v62 = vld [vmem:[#allocation2 + $0x74] sm:$0x1] }
 0x3fc   : > { %v7495_v32 = vcombine.low %v4641_v36, %v4655_v53  ;;  %v4678_v16 = vrot.slane %v4677_v38, 4  ;;  %v4682_v59 = vrot.slane %v4680_v3, 5  ;;  %v7487_v57 = vcombine.low %v8772_v50, %v11313_v17 }
 0x3fd   : > { %v4669_v45 = vsel %vm9601_vm12, %v4664_v55, %v4668_v22  ;;  %v4831_v47 = vsel %vm9568_vm11, %v7445_v1, %v4830_v7  ;;  %v4835_v23 = vsel %vm9568_vm11, %v7446_v8, %v4834_v41  ;;  %v5031_v36 = vor.u32 %v11329_v6, %v11327_v19  ;;  %v4752_v22 = vld [vmem:[#allocation2 + $0x70] sm:$0xe] }
 0x3fe   : > { %6571 = vmatprep.mubr.bf16.mxu0 %v7495_v32  ;;  %v5045_v38 = vor.u32 %v11333_v29, %v11331_v56  ;;  %v4683_v54 = vsel %vm9601_vm12, %v4678_v16, %v4682_v59  ;;  %v4324_v17 = vrot.slane %v11084_v18, 4  ;;  %v7513_v52 = vcombine.low %v11345_v14, %v11349_v42  ;;  %v4463_v29 = vld [vmem:[#allocation2 + $0x7c] sm:$0x1]  ;;  %v11409_v59 = vld [vmem:[#allocation2 + $0x88] sm:$0xf] }
 0x3ff   : > { %6572 = vmatmul.mubr.bf16.gmra.mxu0 %v7487_v57  ;;  %v7496_v11 = vcombine.low %v4669_v45, %v4683_v54  ;;  %v4332_v60 = vrot.slane %v11088_v20, 4  ;;  %v4685_v19 = vshrl.u32 %v11347_v61, 16  ;;  %v5003_v6 = vor.u32 %v5002_v30, %v4999_v10  ;;  %v4475_v30 = vld [vmem:[#allocation2 + $0x8c] sm:$0x1]  ;;  %v4754_v54 = vld [vmem:[#allocation2 + $0x80] sm:$0xe] }
 0x400   : > { %v7504_v24 = vcombine.low %v4831_v47, %v4835_v23  ;;  %v4458_v56 = vsel %vm9196_vm2, %v4324_v17, %v4457_v62  ;;  %v4688_v18 = vshll.u32 %v11347_v61, 16  ;;  %v5053_v1 = vshrl.u32 %v11345_v14, 16  ;;  %v4514_v47 = vld [vmem:[#allocation2 + $0x84] sm:$0x1] }
 0x401   : > { %6579 = vmatprep.mubr.bf16.mxu0 %v7496_v11  ;;  %4459 = vst [vmem:[#allocation2 + $0x74] sm:$0x1] %v4458_v56  ;;  %v4464_v21 = vsel %vm9196_vm2, %v4332_v60, %v4463_v29  ;;  %v4687_v31 = vrot.slane %v4685_v19, 4  ;;  %v4699_v20 = vshrl.u32 %v11365_v46, 16  ;;  %v11381_v49 = vrot.slane %v4975_v25, 4 }
 0x402   : > { %v11386_v7 = vrot.slane %v4989_v39, 4  ;;  %6677 = vmatmul.mubr.bf16.gmra.mxu1 %v7504_v24  ;;  %4465 = vst [vmem:[#allocation2 + $0x7c] sm:$0x1] %v4464_v21  ;;  %v4690_v8 = vrot.slane %v4688_v18, 5  ;;  %v4702_v55 = vshll.u32 %v11365_v46, 16  ;;  %v11389_v3 = vrot.slane %v5017_v34, 4 }
 0x403   : > { %6684 = vmatprep.mubr.bf16.mxu1 %v7513_v52  ;;  %v7488_v41 = vcombine.low %v11285_v40, %v11302_v5  ;;  %v4701_v10 = vrot.slane %v4699_v20, 4  ;;  %v12293_v44 = vshll.u32 %v11162_v15, 16  ;;  %v4478_v25 = vld [vmem:[#allocation2 + $0x90] sm:$0xf]  ;;  %v11398_v37 = vrot.slane %v5003_v6, 4 }
 0x404   : > { %v11400_v39 = vrot.slane %v5031_v36, 4  ;;  %v11402_v53 = vrot.slane %v5045_v38, 4  ;;  %v4704_v34 = vrot.slane %v4702_v55, 5  ;;  %v11404_v32 = vrot.slane %v5053_v1, 4  ;;  %v4753_v5 = vld [vmem:[#allocation2 + $0x78] sm:$0xe] }
 0x405   : > { %v4355_v35 = vor.u32 %v12293_v44, %v11260_v48  ;;  %v4691_v40 = vor.u32 %v4690_v8, %v4687_v31  ;;  %v4348_v16 = vrot.slane %v11130_v33, 4  ;;  %v5056_v50 = vshll.u32 %v11345_v14, 16  ;;  %v11422_v20 = vld [vmem:[#allocation2 + $0x88] sm:$0xf] }
 0x406   : > { %v5067_v57 = vshrl.u32 %v11349_v42, 16  ;;  %v4705_v45 = vor.u32 %v4704_v34, %v4701_v10  ;;  %v4713_v23 = vshrl.u32 %v11396_v51, 16  ;;  %v5070_v36 = vshll.u32 %v11349_v42, 16 }
 0x407   : > { %v4479_v15 = vsel %vm9538_vm8, %v4355_v35, %v4478_v25  ;;  %6580 = vmatmul.mubr.bf16.gmra.mxu0 %v7488_v41  ;;  %v7447_v38 = vrot.slane %v4752_v22, 9  ;;  %v4476_v58 = vsel %vm9196_vm2, %v4348_v16, %v4475_v30  ;;  %v4716_v33 = vshll.u32 %v11396_v51, 16 }
 0x408   : > { %4480 = vst [vmem:[#allocation2 + $0x90] sm:$0xf] %v4479_v15  ;;  %v4512_v17 = vld [vmem:[#allocation2 + $0x74] sm:$0x1]  ;;  %v7448_v11 = vrot.slane %v4753_v5, 9  ;;  %v4715_v14 = vrot.slane %v4713_v23, 4 }
 0x409   : > { %4477 = vst [vmem:[#allocation2 + $0x8c] sm:$0x1] %v4476_v58  ;;  %v4727_v52 = vshrl.u32 %v11409_v59, 16  ;;  %v4730_v60 = vshll.u32 %v11409_v59, 16  ;;  %v4513_v62 = vld [vmem:[#allocation2 + $0x7c] sm:$0x1] }
 0x40a   : > { %v4692_v19 = vrot.slane %v4691_v40, 4  ;;  %v4694_v6 = vshll.u32 %v4512_v17, 16  ;;  %v4838_v42 = vrot.slane %v4512_v17, 5  ;;  %v4718_v24 = vrot.slane %v4716_v33, 5  ;;  %v4755_v40 = vld [vmem:[#allocation2 + $0x88] sm:$0xe] }
 0x40b   : > { %v4706_v56 = vrot.slane %v4705_v45, 4  ;;  %v4708_v29 = vshll.u32 %v4513_v62, 16  ;;  %v4842_v18 = vrot.slane %v4513_v62, 5  ;;  %v4722_v1 = vshll.u32 %v4514_v47, 16  ;;  %v11446_v17 = vld [vmem:[#allocation2 + $0x14] sm:$0x1] }
 0x40c   : > { %v4696_v21 = vrot.slane %v4694_v6, 5  ;;  %v4839_v31 = vsel %vm9568_vm11, %v7447_v38, %v4838_v42  ;;  %v4719_v8 = vor.u32 %v4718_v24, %v4715_v14  ;;  %v4729_v55 = vrot.slane %v4727_v52, 4  ;;  %v11438_v38 = vld [vmem:[#allocation2 + $0x10] sm:$0xf]  ;;  %v11454_v42 = vld [vmem:[#allocation2 + $0x1c] sm:$0x1] }
 0x40d   : > { %v4710_v41 = vrot.slane %v4708_v29, 5  ;;  %v4843_v10 = vsel %vm9568_vm11, %v7448_v11, %v4842_v18  ;;  %v4732_v44 = vrot.slane %v4730_v60, 5  ;;  %v7449_v35 = vrot.slane %v4754_v54, 9 }
 0x40e   : > { %v11426_v25 = vrot.slane %v5056_v50, 5  ;;  %v4697_v34 = vsel %vm9601_vm12, %v4692_v19, %v4696_v21  ;;  %v7505_v22 = vcombine.low %v4839_v31, %v4843_v10  ;;  %v4846_v5 = vrot.slane %v4514_v47, 5  ;;  %v11440_v50 = vld [vmem:[#allocation2 + $0x18] sm:$0xf]  ;;  %v4868_v31 = vld [vmem:[#allocation2 + $0xc] sm:$0x1] }
 0x40f   : > { %v11430_v30 = vld [vmem:[#allocation2 + $0x90] sm:$0xf]  ;;  %v11432_v15 = vrot.slane %v5067_v57, 4  ;;  %v4711_v16 = vsel %vm9601_vm12, %v4706_v56, %v4710_v41  ;;  %v4720_v23 = vrot.slane %v4719_v8, 4  ;;  %v11442_v58 = vrot.slane %v5070_v36, 5 }
 0x410   : > { %v7514_v45 = vcombine.low %v11422_v20, %v11430_v30  ;;  %v7497_v33 = vcombine.low %v4697_v34, %v4711_v16  ;;  %6685 = vmatmul.mubr.bf16.gmra.mxu1 %v7505_v22  ;;  %v7489_v47 = vcombine.low %v11347_v61, %v11365_v46  ;;  %v4515_v57 = vld [vmem:[#allocation2 + $0x8c] sm:$0x1]  ;;  %v4733_v54 = vor.u32 %v4732_v44, %v4729_v55  ;;  %v4869_v44 = vld [vmem:[#allocation2 + $0x14] sm:$0x1]  ;;  %v5109_v16 = vld [vmem:[#allocation2 + $0x10] sm:$0xe] }
 0x411   : > { %v4724_v11 = vrot.slane %v4722_v1, 5  ;;  %v4736_v14 = vshll.u32 %v4515_v57, 16  ;;  %v4847_v52 = vsel %vm9568_vm11, %v7449_v35, %v4846_v5  ;;  %v7450_v60 = vrot.slane %v4755_v40, 9  ;;  %v5108_v35 = vld [vmem:[#allocation2 + $0x8] sm:$0xe] }
 0x412   : > { %6692 = vmatprep.mubr.bf16.mxu1 %v7514_v45  ;;  %6587 = vmatprep.mubr.bf16.mxu0 %v7497_v33  ;;  %v4734_v62 = vrot.slane %v4733_v54, 4  ;;  %v4850_v36 = vrot.slane %v4515_v57, 5  ;;  %v5253_v19 = vshrl.u32 %v11438_v38, 16  ;;  %v5256_v6 = vshll.u32 %v11438_v38, 16 }
 0x413   : > { %6588 = vmatmul.mubr.bf16.gmra.mxu0 %v7489_v47  ;;  %v4725_v61 = vsel %vm9601_vm12, %v4720_v23, %v4724_v11  ;;  %v4738_v46 = vrot.slane %v4736_v14, 5  ;;  %v5262_v24 = vshll.u32 %v11446_v17, 16  ;;  %v5267_v56 = vshrl.u32 %v11440_v50, 16  ;;  %v11470_v11 = vld [vmem:[#allocation2 + $0x20] sm:$0xf] }
 0x414   : > { %v4851_v29 = vsel %vm9568_vm11, %v7450_v60, %v4850_v36  ;;  %v5255_v18 = vrot.slane %v5253_v19, 4  ;;  %v5258_v1 = vrot.slane %v5256_v6, 5  ;;  %v5270_v21 = vshll.u32 %v11440_v50, 16  ;;  %v11474_v36 = vld [vmem:[#allocation2 + $0x24] sm:$0x1] }
 0x415   : > { %v5059_v8 = vor.u32 %v11426_v25, %v11404_v32  ;;  %v5073_v55 = vor.u32 %v11442_v58, %v11432_v15  ;;  %v4739_v41 = vsel %vm9601_vm12, %v4734_v62, %v4738_v46  ;;  %v7506_v10 = vcombine.low %v4847_v52, %v4851_v29 }
 0x416   : > { %v7498_v34 = vcombine.low %v4725_v61, %v4739_v41  ;;  %v5259_v22 = vor.u32 %v5258_v1, %v5255_v18  ;;  %v5269_v40 = vrot.slane %v5267_v56, 4  ;;  %v5272_v5 = vrot.slane %v5270_v21, 5  ;;  %v11478_v61 = vld [vmem:[#allocation2 + $0x28] sm:$0xf]  ;;  %v11482_v56 = vld [vmem:[#allocation2 + $0x2c] sm:$0x1] }
 0x417   : > { %v5264_v45 = vrot.slane %v5262_v24, 5  ;;  %v5276_v23 = vshll.u32 %v11454_v42, 16  ;;  %v7531_v32 = vcombine.low %v11438_v38, %v11440_v50  ;;  %v4894_v25 = vshll.u32 %v4868_v31, 16 }
 0x418   : > { %6595 = vmatprep.mubr.bf16.mxu0 %v7498_v34  ;;  %6693 = vmatmul.mubr.bf16.gmra.mxu1 %v7506_v10  ;;  %v5260_v33 = vrot.slane %v5259_v22, 4  ;;  %v5273_v47 = vor.u32 %v5272_v5, %v5269_v40  ;;  %v4908_v57 = vshll.u32 %v4869_v44, 16  ;;  %v7451_v54 = vrot.slane %v5108_v35, 9  ;;  %v4870_v35 = vld [vmem:[#allocation2 + $0x1c] sm:$0x1] }
 0x419   : > { %v5278_v14 = vrot.slane %v5276_v23, 5  ;;  %v7490_v52 = vcombine.low %v11396_v51, %v11409_v59  ;;  %v5158_v60 = vrot.slane %v4868_v31, 5  ;;  %v7452_v62 = vrot.slane %v5109_v16, 9  ;;  %v5110_v5 = vld [vmem:[#allocation2 + $0x18] sm:$0xe]  ;;  %v8619_v16 = vld [vmem:[#allocation9 + $0x230] sm:$0xff]  }
 0x41a   : > { %v5265_v38 = vsel %vm9601_vm12, %v5260_v33, %v5264_v45  ;;  %v5274_v50 = vrot.slane %v5273_v47, 4  ;;  %v4896_v19 = vrot.slane %v4894_v25, 5  ;;  %v5162_v6 = vrot.slane %v4869_v44, 5  ;;  %v4871_v47 = vld [vmem:[#allocation2 + $0x24] sm:$0x1] }
 0x41b   : > { %6596 = vmatmul.mubr.bf16.gmra.mxu0 %v7490_v52  ;;  %v4910_v46 = vrot.slane %v4908_v57, 5  ;;  %v5159_v24 = vsel %vm9568_vm11, %v7451_v54, %v5158_v60  ;;  %v5281_v51 = vshrl.u32 %v11470_v11, 16  ;;  %v5284_v59 = vshll.u32 %v11470_v11, 16  ;;  %v5111_v52 = vld [vmem:[#allocation2 + $0x20] sm:$0xe] }
 0x41c   : > { %v5279_v29 = vsel %vm9601_vm12, %v5274_v50, %v5278_v14  ;;  %v4897_v18 = vsel %vm9601_vm12, %v11201_v0, %v4896_v19  ;;  %v5163_v1 = vsel %vm9568_vm11, %v7452_v62, %v5162_v6  ;;  %v5290_v21 = vshll.u32 %v11474_v36, 16  ;;  %v11507_v50 = vld [vmem:[#allocation2 + $0x30] sm:$0xf] }
 0x41d   : > { %v7539_v31 = vcombine.low %v5265_v38, %v5279_v29  ;;  %v7523_v41 = vcombine.low %v5159_v24, %v5163_v1  ;;  %v5283_v10 = vrot.slane %v5281_v51, 4  ;;  %v5286_v44 = vrot.slane %v5284_v59, 5  ;;  %v11509_v51 = vld [vmem:[#allocation2 + $0x34] sm:$0x1]  ;;  %v11511_v59 = vld [vmem:[#allocation9 + $0x228] sm:$0xff]  }
 0x41e   : > { %v4911_v34 = vsel %vm9601_vm12, %v11145_v12, %v4910_v46  ;;  %v5295_v22 = vshrl.u32 %v11478_v61, 16  ;;  %v5298_v40 = vshll.u32 %v11478_v61, 16  ;;  %v5304_v0 = vshll.u32 %v11482_v56, 16 }
 0x41f   : > { %v11500_v45 = vrot.slane %v5059_v8, 4  ;;  %v5081_v23 = vshrl.u32 %v11422_v20, 16  ;;  %v5084_v25 = vshll.u32 %v11422_v20, 16  ;;  %6830 = vmatprep.mubr.bf16.mxu1 %v7539_v31  ;;  %6733 = vmatprep.mubr.bf16.mxu0 %v7523_v41  ;;  %v5287_v33 = vor.u32 %v5286_v44, %v5283_v10 }
 0x420   : > { %v5095_v12 = vshrl.u32 %v11430_v30, 16  ;;  %v5098_v57 = vshll.u32 %v11430_v30, 16  ;;  %6831 = vmatmul.mubr.bf16.vlgmr.msra.gmra.mxu1 %v7531_v32  ;;  %v5297_v54 = vrot.slane %v5295_v22, 4  ;;  %v5300_v14 = vrot.slane %v5298_v40, 5  ;;  %v11522_v22 = vld [vmem:[#allocation2 + $0x3c] sm:$0x1] }
 0x421   : > { %v5288_v60 = vrot.slane %v5287_v33, 4  ;;  %v5292_v62 = vrot.slane %v5290_v21, 5  ;;  %v7515_v8 = vcombine.low %v4897_v18, %v4911_v34  ;;  %8334 = vmatpush3.bf16.msra.mxu1 %v11227_v4  ;;  %v4922_v38 = vshll.u32 %v4870_v35, 16  ;;  %v11515_v21 = vld [vmem:[#allocation2 + $0x38] sm:$0xf]  ;;  %v8629_v30 = vld [vmem:[#allocation9 + $0x208] sm:$0xff]  }
 0x422   : > { %v5301_v19 = vor.u32 %v5300_v14, %v5297_v54  ;;  %v5306_v6 = vrot.slane %v5304_v0, 5  ;;  %v4936_v46 = vshll.u32 %v4871_v47, 16  ;;  %v7453_v24 = vrot.slane %v5110_v5, 9  ;;  %8327 = vmatprep.subr.bf16.mxu1 %v8619_v16  ;;  %v4872_v33 = vld [vmem:[#allocation2 + $0x2c] sm:$0x1] }
 0x423   : > { %v5293_v32 = vsel %vm9601_vm12, %v5288_v60, %v5292_v62  ;;  %6734 = vmatmul.mubr.bf16.vlgmr.msra.gmra.mxu0 %v7515_v8  ;;  %v4924_v29 = vrot.slane %v4922_v38, 5  ;;  %v5166_v18 = vrot.slane %v4870_v35, 5  ;;  %v7454_v1 = vrot.slane %v5111_v52, 9  ;;  %v4873_v60 = vld [vmem:[#allocation2 + $0x34] sm:$0x1]  ;;  %v11534_v62 = vld [vmem:[#allocation9 + $0x220] sm:$0xff]  }
 0x424   : > { %v5302_v31 = vrot.slane %v5301_v19, 4  ;;  %8295 = vmatpush3.bf16.msra.mxu0 %v11227_v4  ;;  %v4938_v41 = vrot.slane %v4936_v46, 5  ;;  %v5170_v10 = vrot.slane %v4871_v47, 5  ;;  %v7532_v44 = vcombine.low %v11470_v11, %v11478_v61  ;;  %v5112_v46 = vld [vmem:[#allocation2 + $0x28] sm:$0xe] }
 0x425   : > { %v5167_v34 = vsel %vm9568_vm11, %v7453_v24, %v5166_v18  ;;  %v5309_v40 = vshrl.u32 %v11507_v50, 16  ;;  %v5312_v35 = vshll.u32 %v11507_v50, 16  ;;  %v5318_v0 = vshll.u32 %v11509_v51, 16  ;;  %8296 = vmatprep.subr.bf16.mxu0 %v8619_v16  ;;  %8335 = vmatpush3.bf16.msra.mxu1 %v8619_v16 }
 0x426   : > { %v5307_v4 = vsel %vm9601_vm12, %v5302_v31, %v5306_v6  ;;  %v5171_v5 = vsel %vm9568_vm11, %v7454_v1, %v5170_v10  ;;  %v5323_v11 = vshrl.u32 %v11515_v21, 16  ;;  %v5326_v61 = vshll.u32 %v11515_v21, 16  ;;  %8328 = vmatprep.subr.bf16.mxu1 %v11511_v59  ;;  %v5113_v31 = vld [vmem:[#allocation2 + $0x30] sm:$0xe] }
 0x427   : > { %v7540_v47 = vcombine.low %v5293_v32, %v5307_v4  ;;  %v7524_v54 = vcombine.low %v5167_v34, %v5171_v5  ;;  %v5311_v14 = vrot.slane %v5309_v40, 4  ;;  %v5314_v52 = vrot.slane %v5312_v35, 5 }
 0x428   : > { %v5320_v8 = vrot.slane %v5318_v0, 5  ;;  %v5325_v38 = vrot.slane %v5323_v11, 4  ;;  %v5328_v19 = vrot.slane %v5326_v61, 5  ;;  %v5332_v6 = vshll.u32 %v11522_v22, 16  ;;  %8297 = vmatpush3.bf16.msra.mxu0 %v8619_v16  ;;  %v11543_v16 = vld [vmem:[#allocation2 + $0x48] sm:$0xf] }
 0x429   : > { %6838 = vmatprep.mubr.bf16.mxu1 %v7540_v47  ;;  %6741 = vmatprep.mubr.bf16.mxu0 %v7524_v54  ;;  %v5315_v24 = vor.u32 %v5314_v52, %v5311_v14  ;;  %v4925_v32 = vsel %vm9601_vm12, %v11191_v9, %v4924_v29  ;;  %v4939_v18 = vsel %vm9601_vm12, %v11193_v27, %v4938_v41  ;;  %v4950_v1 = vshll.u32 %v4872_v33, 16  ;;  %v11546_v9 = vld [vmem:[#allocation2 + $0x40] sm:$0xf]  ;;  %v11550_v61 = vld [vmem:[#allocation9 + $0x218] sm:$0xff]  }
 0x42a   : > { %6839 = vmatmul.mubr.bf16.gmra.mxu1 %v7532_v44  ;;  %v5329_v10 = vor.u32 %v5328_v19, %v5325_v38  ;;  %v5334_v34 = vrot.slane %v5332_v6, 5  ;;  %v7516_v40 = vcombine.low %v4925_v32, %v4939_v18  ;;  %v4964_v35 = vshll.u32 %v4873_v60, 16  ;;  %8298 = vmatprep.subr.bf16.mxu0 %v11511_v59  ;;  %v4433_v38 = vld [vmem:[#allocation2 + $0x44] sm:$0x1] }
 0x42b   : > { %v5316_v0 = vrot.slane %v5315_v24, 4  ;;  %v4952_v4 = vrot.slane %v4950_v1, 5  ;;  %v7455_v5 = vrot.slane %v5112_v46, 9  ;;  %v5174_v11 = vrot.slane %v4872_v33, 5  ;;  %8336 = vmatpush3.bf16.msra.mxu1 %v11511_v59 }
 0x42c   : > { %v5330_v27 = vrot.slane %v5329_v10, 4  ;;  %6742 = vmatmul.mubr.bf16.gmra.mxu0 %v7516_v40  ;;  %v4966_v29 = vrot.slane %v4964_v35, 5  ;;  %v7456_v41 = vrot.slane %v5113_v31, 9  ;;  %v5178_v44 = vrot.slane %v4873_v60, 5  ;;  %8329 = vmatprep.subr.bf16.mxu1 %v11534_v62  ;;  %v4874_v31 = vld [vmem:[#allocation2 + $0x3c] sm:$0x1] }
 0x42d   : > { %v5321_v47 = vsel %vm9601_vm12, %v5316_v0, %v5320_v8  ;;  %v5175_v54 = vsel %vm9568_vm11, %v7455_v5, %v5174_v11  ;;  %v7533_v33 = vcombine.low %v11507_v50, %v11515_v21  ;;  %v4292_v14 = vrot.slane %v10998_v63, 4  ;;  %8299 = vmatpush3.bf16.msra.mxu0 %v11511_v59  ;;  %v11569_v50 = vld [vmem:[#allocation2 + $0x4c] sm:$0x1]  ;;  %v11573_v21 = vld [vmem:[#allocation9 + $0x210] sm:$0xff]   ;;  %v5114_v0 = vld [vmem:[#allocation2 + $0x38] sm:$0xe] }
 0x42e   : > { %v5335_v52 = vsel %vm9601_vm12, %v5330_v27, %v5334_v34  ;;  %v5179_v60 = vsel %vm9568_vm11, %v7456_v41, %v5178_v44  ;;  %v5337_v19 = vshrl.u32 %v11546_v9, 16  ;;  %v5340_v8 = vshll.u32 %v11546_v9, 16  ;;  %8300 = vmatprep.subr.bf16.mxu0 %v11534_v62  ;;  %v11588_v5 = vld [vmem:[#allocation2 + $0x60] sm:$0xf] }
 0x42f   : > { %v7541_v6 = vcombine.low %v5321_v47, %v5335_v52  ;;  %v7525_v46 = vcombine.low %v5175_v54, %v5179_v60  ;;  %v4434_v63 = vsel %vm9196_vm2, %v4292_v14, %v4433_v38  ;;  %v5351_v59 = vshrl.u32 %v11543_v16, 16  ;;  %8337 = vmatpush3.bf16.msra.mxu1 %v11534_v62  ;;  %v5115_v44 = vld [vmem:[#allocation2 + $0x40] sm:$0xe]  ;;  %v11609_v54 = vld [vmem:[#allocation2 + $0x64] sm:$0x1] }
 0x430   : > { %4435 = vst [vmem:[#allocation2 + $0x44] sm:$0x1] %v4434_v63  ;;  %v5339_v24 = vrot.slane %v5337_v19, 4  ;;  %v5342_v32 = vrot.slane %v5340_v8, 5  ;;  %v5354_v18 = vshll.u32 %v11543_v16, 16  ;;  %v5360_v1 = vshll.u32 %v11569_v50, 16  ;;  %8330 = vmatprep.subr.bf16.mxu1 %v11550_v61 }
 0x431   : > { %v11580_v10 = vrot.slane %v5081_v23, 4  ;;  %6846 = vmatprep.mubr.bf16.mxu1 %v7541_v6  ;;  %6749 = vmatprep.mubr.bf16.mxu0 %v7525_v46  ;;  %v5353_v34 = vrot.slane %v5351_v59, 4  ;;  %v4953_v40 = vsel %vm9601_vm12, %v11266_v28, %v4952_v4  ;;  %v4967_v35 = vsel %vm9601_vm12, %v11290_v13, %v4966_v29  ;;  %v11614_v38 = vld [vmem:[#allocation2 + $0x6c] sm:$0x1] }
 0x432   : > { %v11592_v11 = vrot.slane %v5084_v25, 5  ;;  %6847 = vmatmul.mubr.bf16.gmra.mxu1 %v7533_v33  ;;  %v5343_v23 = vor.u32 %v5342_v32, %v5339_v24  ;;  %v5356_v27 = vrot.slane %v5354_v18, 5  ;;  %v7517_v41 = vcombine.low %v4953_v40, %v4967_v35  ;;  %8301 = vmatpush3.bf16.msra.mxu0 %v11534_v62  ;;  %v11605_v25 = vld [vmem:[#allocation2 + $0x68] sm:$0xf]  ;;  %v8631_v40 = vld [vmem:[#allocation9 + $0x200] sm:$0xff]  }
 0x433   : > { %v11597_v28 = vrot.slane %v5095_v12, 4  ;;  %v11601_v13 = vrot.slane %v5098_v57, 5  ;;  %v11603_v4 = vrot.slane %v5360_v1, 5  ;;  %v4978_v20 = vshll.u32 %v4874_v31, 16  ;;  %8302 = vmatprep.subr.bf16.mxu0 %v11550_v61  ;;  %8338 = vmatpush3.bf16.msra.mxu1 %v11550_v61 }
 0x434   : > { %v5357_v29 = vor.u32 %v5356_v27, %v5353_v34  ;;  %6750 = vmatmul.mubr.bf16.gmra.mxu0 %v7517_v41  ;;  %v7457_v62 = vrot.slane %v5114_v0, 9  ;;  %v5182_v47 = vrot.slane %v4874_v31, 5  ;;  %v5365_v12 = vshrl.u32 %v11588_v5, 16  ;;  %8331 = vmatprep.subr.bf16.mxu1 %v11573_v21 }
 0x435   : > { %v5344_v57 = vrot.slane %v5343_v23, 4  ;;  %v4980_v33 = vrot.slane %v4978_v20, 5  ;;  %v7458_v14 = vrot.slane %v5115_v44, 9  ;;  %v5368_v52 = vshll.u32 %v11588_v5, 16  ;;  %v5116_v20 = vld [vmem:[#allocation2 + $0x58] sm:$0xe] }
 0x436   : > { %v5358_v60 = vrot.slane %v5357_v29, 4  ;;  %v5367_v19 = vrot.slane %v5365_v12, 4  ;;  %v5379_v8 = vshrl.u32 %v11605_v25, 16  ;;  %v5382_v6 = vshll.u32 %v11605_v25, 16  ;;  %8303 = vmatpush3.bf16.msra.mxu0 %v11550_v61  ;;  %v4876_v12 = vld [vmem:[#allocation2 + $0x5c] sm:$0x1] }
 0x437   : > { %v5087_v46 = vor.u32 %v11592_v11, %v11580_v10  ;;  %v11621_v63 = vld [vmem:[#allocation2 + $0x44] sm:$0x1]  ;;  %v7534_v24 = vcombine.low %v11546_v9, %v11543_v16  ;;  %v5370_v32 = vrot.slane %v5368_v52, 5  ;;  %v5374_v18 = vshll.u32 %v11609_v54, 16  ;;  %8304 = vmatprep.subr.bf16.mxu0 %v11573_v21  ;;  %8339 = vmatpush3.bf16.msra.mxu1 %v11573_v21  ;;  %v5119_v11 = vld [vmem:[#allocation2 + $0x70] sm:$0xe] }
 0x438   : > { %v4875_v59 = vld [vmem:[#allocation2 + $0x44] sm:$0x1]  ;;  %v5346_v1 = vshll.u32 %v11621_v63, 16  ;;  %v5183_v61 = vsel %vm9568_vm11, %v7457_v62, %v5182_v47  ;;  %v4981_v34 = vsel %vm9601_vm12, %v11381_v49, %v4980_v33  ;;  %8332 = vmatprep.subr.bf16.mxu1 %v8629_v30  ;;  %v5381_v35 = vrot.slane %v5379_v8, 4  ;;  %v11646_v8 = vld [vmem:[#allocation2 + $0x70] sm:$0xf] }
 0x439   : > { %v4992_v31 = vshll.u32 %v4875_v59, 16  ;;  %v5186_v16 = vrot.slane %v4875_v59, 5  ;;  %v5371_v9 = vor.u32 %v5370_v32, %v5367_v19  ;;  %v5384_v0 = vrot.slane %v5382_v6, 5  ;;  %v4877_v33 = vld [vmem:[#allocation2 + $0x64] sm:$0x1] }
 0x43a   : > { %v5348_v23 = vrot.slane %v5346_v1, 5  ;;  %v5363_v27 = vsel %vm9601_vm12, %v5358_v60, %v11603_v4  ;;  %v5388_v44 = vshll.u32 %v11614_v38, 16  ;;  %8305 = vmatpush3.bf16.msra.mxu0 %v11573_v21  ;;  %v5376_v62 = vrot.slane %v5374_v18, 5  ;;  %v5117_v21 = vld [vmem:[#allocation2 + $0x60] sm:$0xe] }
 0x43b   : > { %v4994_v41 = vrot.slane %v4992_v31, 5  ;;  %v5187_v49 = vsel %vm9568_vm11, %v7458_v14, %v5186_v16  ;;  %v5372_v29 = vrot.slane %v5371_v9, 4  ;;  %v5385_v47 = vor.u32 %v5384_v0, %v5381_v35  ;;  %8306 = vmatprep.subr.bf16.mxu0 %v8629_v30  ;;  %8340 = vmatpush3.bf16.msra.mxu1 %v8629_v30  ;;  %v11650_v18 = vld [vmem:[#allocation2 + $0x74] sm:$0x1]  ;;  %v11652_v16 = vld [vmem:[#allocation2 + $0x78] sm:$0xf] }
 0x43c   : > { %v5349_v52 = vsel %vm9601_vm12, %v5344_v57, %v5348_v23  ;;  %v7526_v4 = vcombine.low %v5183_v61, %v5187_v49  ;;  %v5390_v60 = vrot.slane %v5388_v44, 5  ;;  %8333 = vmatprep.subr.bf16.mxu1 %v8631_v40  ;;  %v5006_v57 = vshll.u32 %v4876_v12, 16  ;;  %v11656_v0 = vld [vmem:[#allocation2 + $0x7c] sm:$0x1] }
 0x43d   : > { %v4995_v19 = vsel %vm9601_vm12, %v11386_v7, %v4994_v41  ;;  %v7542_v14 = vcombine.low %v5349_v52, %v5363_v27  ;;  %v5377_v6 = vsel %vm9601_vm12, %v5372_v29, %v5376_v62  ;;  %v5386_v59 = vrot.slane %v5385_v47, 4 }
 0x43e   : > { %v7518_v32 = vcombine.low %v4981_v34, %v4995_v19  ;;  %6757 = vmatprep.mubr.bf16.mxu0 %v7526_v4  ;;  %v5020_v1 = vshll.u32 %v4877_v33, 16  ;;  %v7459_v31 = vrot.slane %v5116_v20, 9  ;;  %v5190_v61 = vrot.slane %v4876_v12, 5  ;;  %8307 = vmatpush3.bf16.msra.mxu0 %v8629_v30  ;;  %v4878_v19 = vld [vmem:[#allocation2 + $0x6c] sm:$0x1] }
 0x43f   : > { %6854 = vmatprep.mubr.bf16.mxu1 %v7542_v14  ;;  %v5391_v7 = vsel %vm9601_vm12, %v5386_v59, %v5390_v60  ;;  %v7460_v9 = vrot.slane %v5117_v21, 9  ;;  %v5194_v35 = vrot.slane %v4877_v33, 5  ;;  %v5393_v34 = vshrl.u32 %v11646_v8, 16  ;;  %8308 = vmatprep.subr.bf16.mxu0 %v8631_v40  ;;  %v4879_v14 = vld [vmem:[#allocation2 + $0x74] sm:$0x1] }
 0x440   : > { %6758 = vmatmul.mubr.bf16.gmra.mxu0 %v7518_v32  ;;  %6855 = vmatmul.mubr.bf16.gmra.mxu1 %v7534_v24  ;;  %v7543_v23 = vcombine.low %v5377_v6, %v5391_v7  ;;  %v5191_v27 = vsel %vm9568_vm11, %v7459_v31, %v5190_v61  ;;  %v5396_v41 = vshll.u32 %v11646_v8, 16  ;;  %v5402_v30 = vshll.u32 %v11650_v18, 16  ;;  %v11690_v7 = vld [vmem:[#allocation2 + $0x88] sm:$0xf] }
 0x441   : > { %v5195_v44 = vsel %vm9568_vm11, %v7460_v9, %v5194_v35  ;;  %v5395_v20 = vrot.slane %v5393_v34, 4  ;;  %v5407_v49 = vshrl.u32 %v11652_v16, 16  ;;  %v5410_v29 = vshll.u32 %v11652_v16, 16  ;;  %8341 = vmatpush3.bf16.msra.mxu1 %v8631_v40  ;;  %v11696_v34 = vld [vmem:[#allocation2 + $0x84] sm:$0x1] }
 0x442   : > { %v11670_v24 = vrot.slane %v5073_v55, 4  ;;  %6862 = vmatprep.mubr.bf16.mxu1 %v7543_v23  ;;  %v7527_v62 = vcombine.low %v5191_v27, %v5195_v44  ;;  %v5398_v47 = vrot.slane %v5396_v41, 5  ;;  %v5416_v12 = vshll.u32 %v11656_v0, 16  ;;  %8309 = vmatpush3.bf16.msra.mxu0 %v8631_v40  ;;  %v5118_v40 = vld [vmem:[#allocation2 + $0x68] sm:$0xe] }
 0x443   : > { %v5008_v33 = vrot.slane %v5006_v57, 5  ;;  %v5022_v52 = vrot.slane %v5020_v1, 5  ;;  %v5409_v4 = vrot.slane %v5407_v49, 4  ;;  %v5412_v60 = vrot.slane %v5410_v29, 5  ;;  %v11688_v1 = vld [vmem:[#allocation2 + $0x80] sm:$0xf] }
 0x444   : > { %v11676_v21 = vrot.slane %v5087_v46, 4  ;;  %v5101_v15 = vor.u32 %v11601_v13, %v11597_v28  ;;  %6765 = vmatprep.mubr.bf16.mxu0 %v7527_v62  ;;  %v7535_v58 = vcombine.low %v11588_v5, %v11605_v25  ;;  %v5399_v55 = vor.u32 %v5398_v47, %v5395_v20  ;;  %v11702_v44 = vld [vmem:[#allocation2 + $0x8c] sm:$0x1]  ;;  %v4881_v47 = vld [vmem:[#allocation2 + $0x84] sm:$0x1] }
 0x445   : > { %v5404_v6 = vrot.slane %v5402_v30, 5  ;;  %v5413_v59 = vor.u32 %v5412_v60, %v5409_v4  ;;  %v5009_v32 = vsel %vm9601_vm12, %v11398_v37, %v5008_v33  ;;  %v5023_v10 = vsel %vm9601_vm12, %v11389_v3, %v5022_v52  ;;  %v4880_v60 = vld [vmem:[#allocation2 + $0x7c] sm:$0x1] }
 0x446   : > { %v5400_v46 = vrot.slane %v5399_v55, 4  ;;  %v5418_v28 = vrot.slane %v5416_v12, 5  ;;  %v7519_v13 = vcombine.low %v5009_v32, %v5023_v10  ;;  %v5034_v57 = vshll.u32 %v4878_v19, 16  ;;  %v5121_v10 = vld [vmem:[#allocation2 + $0x80] sm:$0xe] }
 0x447   : > { %v5414_v5 = vrot.slane %v5413_v59, 4  ;;  %v5048_v25 = vshll.u32 %v4879_v14, 16  ;;  %v7461_v31 = vrot.slane %v5118_v40, 9  ;;  %v5198_v61 = vrot.slane %v4878_v19, 5 }
 0x448   : > { %v11692_v9 = vrot.slane %v5101_v15, 4  ;;  %6863 = vmatmul.mubr.bf16.gmra.mxu1 %v7535_v58  ;;  %v5405_v37 = vsel %vm9601_vm12, %v5400_v46, %v5404_v6  ;;  %6766 = vmatmul.mubr.bf16.gmra.mxu0 %v7519_v13  ;;  %v7462_v3 = vrot.slane %v5119_v11, 9  ;;  %v5202_v35 = vrot.slane %v4879_v14, 5  ;;  %v5120_v14 = vld [vmem:[#allocation2 + $0x78] sm:$0xe] }
 0x449   : > { %v5419_v23 = vsel %vm9601_vm12, %v5414_v5, %v5418_v28  ;;  %v5036_v27 = vrot.slane %v5034_v57, 5  ;;  %v5050_v41 = vrot.slane %v5048_v25, 5  ;;  %v5199_v30 = vsel %vm9568_vm11, %v7461_v31, %v5198_v61  ;;  %v11720_v31 = vld [vmem:[#allocation2 + $0x90] sm:$0xf] }
 0x44a   : > { %v7544_v20 = vcombine.low %v5405_v37, %v5419_v23  ;;  %v5203_v49 = vsel %vm9568_vm11, %v7462_v3, %v5202_v35  ;;  %v5421_v29 = vshrl.u32 %v11688_v1, 16  ;;  %v5424_v62 = vshll.u32 %v11688_v1, 16  ;;  %v11722_v3 = vld [vmem:[#allocation2 + $0x98] sm:$0xf] }
 0x44b   : > { %v7528_v12 = vcombine.low %v5199_v30, %v5203_v49  ;;  %v5430_v33 = vshll.u32 %v11696_v34, 16  ;;  %v5435_v52 = vshrl.u32 %v11690_v7, 16  ;;  %v5438_v4 = vshll.u32 %v11690_v7, 16 }
 0x44c   : > { %6870 = vmatprep.mubr.bf16.mxu1 %v7544_v20  ;;  %v5423_v19 = vrot.slane %v5421_v29, 4  ;;  %v5426_v15 = vrot.slane %v5424_v62, 5  ;;  %v5444_v58 = vshll.u32 %v11702_v44, 16  ;;  %v5037_v55 = vsel %vm9601_vm12, %v11400_v39, %v5036_v27 }
 0x44d   : > { %6773 = vmatprep.mubr.bf16.mxu0 %v7528_v12  ;;  %v7536_v40 = vcombine.low %v11646_v8, %v11652_v16  ;;  %v5437_v6 = vrot.slane %v5435_v52, 4  ;;  %v5440_v59 = vrot.slane %v5438_v4, 5  ;;  %v5051_v32 = vsel %vm9601_vm12, %v11402_v53, %v5050_v41  ;;  %v4882_v52 = vld [vmem:[#allocation2 + $0x8c] sm:$0x1]  ;;  %v5478_v4 = vld [vmem:[#allocation2 + $0x20] sm:$0xe] }
 0x44e   : > { %v5427_v11 = vor.u32 %v5426_v15, %v5423_v19  ;;  %v5432_v46 = vrot.slane %v5430_v33, 5  ;;  %v7520_v28 = vcombine.low %v5037_v55, %v5051_v32  ;;  %v5062_v13 = vshll.u32 %v4880_v60, 16  ;;  %v11738_v15 = vld [vmem:[#allocation2 + $0x9c] sm:$0x1]  ;;  %v5479_v55 = vld [vmem:[#allocation2 + $0x28] sm:$0xe] }
 0x44f   : > { %v5441_v57 = vor.u32 %v5440_v59, %v5437_v6  ;;  %v5076_v5 = vshll.u32 %v4881_v47, 16  ;;  %v7463_v25 = vrot.slane %v5120_v14, 9  ;;  %v5206_v39 = vrot.slane %v4880_v60, 5 }
 0x450   : > { %6871 = vmatmul.mubr.bf16.gmra.mxu1 %v7536_v40  ;;  %v5428_v61 = vrot.slane %v5427_v11, 4  ;;  %v5446_v8 = vrot.slane %v5444_v58, 5  ;;  %6774 = vmatmul.mubr.bf16.gmra.mxu0 %v7520_v28  ;;  %v7464_v16 = vrot.slane %v5121_v10, 9  ;;  %v5210_v37 = vrot.slane %v4881_v47, 5  ;;  %v4481_v47 = vld [vmem:[#allocation2 + $0x94] sm:$0x1] }
 0x451   : > { %v5442_v53 = vrot.slane %v5441_v57, 4  ;;  %v5064_v35 = vrot.slane %v5062_v13, 5  ;;  %v5078_v23 = vrot.slane %v5076_v5, 5  ;;  %v5207_v27 = vsel %vm9568_vm11, %v7463_v25, %v5206_v39  ;;  %v5123_v28 = vld [vmem:[#allocation2 + $0x90] sm:$0xe] }
 0x452   : > { %v5433_v41 = vsel %vm9601_vm12, %v5428_v61, %v5432_v46  ;;  %v5211_v30 = vsel %vm9568_vm11, %v7464_v16, %v5210_v37  ;;  %v4356_v20 = vrot.slane %v11260_v48, 4  ;;  %v5449_v49 = vshrl.u32 %v11720_v31, 16  ;;  %v5122_v46 = vld [vmem:[#allocation2 + $0x88] sm:$0xe]  ;;  %v5484_v5 = vld [vmem:[#allocation2 + $0x60] sm:$0xe] }
 0x453   : > { %v5447_v29 = vsel %vm9601_vm12, %v5442_v53, %v5446_v8  ;;  %v7529_v62 = vcombine.low %v5207_v27, %v5211_v30  ;;  %v5452_v12 = vshll.u32 %v11720_v31, 16  ;;  %v5463_v33 = vshrl.u32 %v11722_v3, 16  ;;  %v5485_v25 = vld [vmem:[#allocation2 + $0x68] sm:$0xe]  ;;  %v5476_v16 = vld [vmem:[#allocation2 + $0x10] sm:$0xe] }
 0x454   : > { %v7545_v60 = vcombine.low %v5433_v41, %v5447_v29  ;;  %v4482_v19 = vsel %vm9196_vm2, %v4356_v20, %v4481_v47  ;;  %v5451_v48 = vrot.slane %v5449_v49, 4  ;;  %v5466_v58 = vshll.u32 %v11722_v3, 16 }
 0x455   : > { %6781 = vmatprep.mubr.bf16.mxu0 %v7529_v62  ;;  %v7537_v14 = vcombine.low %v11688_v1, %v11690_v7  ;;  %4483 = vst [vmem:[#allocation2 + $0x94] sm:$0x1] %v4482_v19  ;;  %v5454_v40 = vrot.slane %v5452_v12, 5  ;;  %v5465_v6 = vrot.slane %v5463_v33, 4  ;;  %v5472_v59 = vshll.u32 %v11738_v15, 16 }
 0x456   : > { %6878 = vmatprep.mubr.bf16.mxu1 %v7545_v60  ;;  %v5468_v32 = vrot.slane %v5466_v58, 5  ;;  %v5065_v2 = vsel %vm9601_vm12, %v11500_v45, %v5064_v35  ;;  %v5079_v10 = vsel %vm9601_vm12, %v11670_v24, %v5078_v23  ;;  %v5090_v11 = vshll.u32 %v4882_v52, 16  ;;  %v5477_v23 = vld [vmem:[#allocation2 + $0x18] sm:$0xe] }
 0x457   : > { %v7469_v13 = vrot.slane %v5478_v4, 9  ;;  %v5534_v1 = vrot.slane %v11474_v36, 5  ;;  %v5455_v7 = vor.u32 %v5454_v40, %v5451_v48  ;;  %v7521_v57 = vcombine.low %v5065_v2, %v5079_v10  ;;  %v5487_v58 = vld [vmem:[#allocation2 + $0x78] sm:$0xe] }
 0x458   : > { %v7470_v39 = vrot.slane %v5479_v55, 9  ;;  %v5538_v61 = vrot.slane %v11482_v56, 5  ;;  %6879 = vmatmul.mubr.bf16.gmra.mxu1 %v7537_v14  ;;  %v5469_v8 = vor.u32 %v5468_v32, %v5465_v6  ;;  %v5474_v45 = vrot.slane %v5472_v59, 5 }
 0x459   : > { %6782 = vmatmul.mubr.bf16.gmra.mxu0 %v7521_v57  ;;  %v5092_v37 = vrot.slane %v5090_v11, 5  ;;  %v7465_v24 = vrot.slane %v5122_v46, 9  ;;  %v5214_v53 = vrot.slane %v4882_v52, 5  ;;  %v7466_v35 = vrot.slane %v5123_v28, 9 }
 0x45a   : > { %v5456_v27 = vrot.slane %v5455_v7, 4  ;;  %v5470_v41 = vrot.slane %v5469_v8, 4  ;;  %v7475_v36 = vrot.slane %v5484_v5, 9  ;;  %v5558_v30 = vrot.slane %v11609_v54, 5 }
 0x45b   : > { %v7476_v20 = vrot.slane %v5485_v25, 9  ;;  %v5562_v49 = vrot.slane %v11614_v38, 5  ;;  %v7467_v29 = vrot.slane %v5476_v16, 9  ;;  %v5526_v56 = vrot.slane %v11446_v17, 5  ;;  %v5486_v38 = vld [vmem:[#allocation2 + $0x70] sm:$0xe] }
 0x45c   : > { %v11755_v62 = vld [vmem:[#allocation2 + $0x94] sm:$0x1]  ;;  %v7468_v12 = vrot.slane %v5477_v23, 9  ;;  %v5530_v33 = vrot.slane %v11454_v42, 5  ;;  %v5215_v60 = vsel %vm9568_vm11, %v7465_v24, %v5214_v53  ;;  %v11763_v54 = vsel %vm9568_vm11, %v7469_v13, %v5534_v1  ;;  %v5480_v13 = vld [vmem:[#allocation2 + $0x30] sm:$0xe] }
 0x45d   : > { %v4883_v47 = vld [vmem:[#allocation2 + $0x94] sm:$0x1]  ;;  %v5458_v52 = vshll.u32 %v11755_v62, 16  ;;  %v5539_v17 = vsel %vm9568_vm11, %v7470_v39, %v5538_v61  ;;  %v5559_v48 = vsel %vm9568_vm11, %v7475_v36, %v5558_v30  ;;  %v5093_v42 = vsel %vm9601_vm12, %v11676_v21, %v5092_v37  ;;  %v5481_v1 = vld [vmem:[#allocation2 + $0x38] sm:$0xe] }
 0x45e   : > { %v5104_v4 = vshll.u32 %v4883_v47, 16  ;;  %v5218_v19 = vrot.slane %v4883_v47, 5  ;;  %v5475_v14 = vsel %vm9601_vm12, %v5470_v41, %v5474_v45  ;;  %v5563_v32 = vsel %vm9568_vm11, %v7476_v20, %v5562_v49  ;;  %v5488_v39 = vld [vmem:[#allocation2 + $0x80] sm:$0xe]  ;;  %v5489_v61 = vld [vmem:[#allocation2 + $0x88] sm:$0xe] }
 0x45f   : > { %v5460_v55 = vrot.slane %v5458_v52, 5  ;;  %v5527_v2 = vsel %vm9568_vm11, %v7467_v29, %v5526_v56  ;;  %v5531_v10 = vsel %vm9568_vm11, %v7468_v12, %v5530_v33  ;;  %v7477_v21 = vrot.slane %v5486_v38, 9  ;;  %v5483_v41 = vld [vmem:[#allocation2 + $0x48] sm:$0xe]  ;;  %v5490_v36 = vld [vmem:[#allocation2 + $0x90] sm:$0xe] }
 0x460   : > { %v5106_v40 = vrot.slane %v5104_v4, 5  ;;  %v5219_v6 = vsel %vm9568_vm11, %v7466_v35, %v5218_v19  ;;  %v7548_v28 = vcombine.low %v11763_v54, %v5539_v17  ;;  %v5566_v7 = vrot.slane %v11650_v18, 5  ;;  %v5491_v30 = vld [vmem:[#allocation2 + $0x98] sm:$0xe] }
 0x461   : > { %v7530_v59 = vcombine.low %v5215_v60, %v5219_v6  ;;  %v5461_v11 = vsel %vm9601_vm12, %v5456_v27, %v5460_v55  ;;  %v7478_v57 = vrot.slane %v5487_v58, 9  ;;  %v5570_v8 = vrot.slane %v11656_v0, 5  ;;  %v5482_v27 = vld [vmem:[#allocation2 + $0x40] sm:$0xe] }
 0x462   : > { %v5107_v46 = vsel %vm9601_vm12, %v11692_v9, %v5106_v40  ;;  %v7546_v5 = vcombine.low %v5461_v11, %v5475_v14  ;;  %v7538_v45 = vcombine.low %v11720_v31, %v11722_v3  ;;  %v7551_v16 = vcombine.low %v5559_v48, %v5563_v32 }
 0x463   : > { %6789 = vmatprep.mubr.bf16.mxu0 %v7530_v59  ;;  %v7522_v25 = vcombine.low %v5093_v42, %v5107_v46  ;;  %v7547_v26 = vcombine.low %v5527_v2, %v5531_v10  ;;  %v7471_v9 = vrot.slane %v5480_v13, 9  ;;  %v5542_v37 = vrot.slane %v11509_v51, 5  ;;  %v11823_v59 = vld [vmem:[%s12074_s10] ss:$0 sm:$0xff] }
 0x464   : > { %6886 = vmatprep.mubr.bf16.mxu1 %v7546_v5  ;;  %v7472_v24 = vrot.slane %v5481_v1, 9  ;;  %v5546_v18 = vrot.slane %v11522_v22, 5  ;;  %v7479_v53 = vrot.slane %v5488_v39, 9  ;;  %v5574_v35 = vrot.slane %v11696_v34, 5 }
 0x465   : > { %6790 = vmatmul.mubr.bf16.gmra.mxu0 %v7522_v25  ;;  %6887 = vmatmul.mubr.bf16.gmra.mxu1 %v7538_v45  ;;  %v7480_v23 = vrot.slane %v5489_v61, 9  ;;  %v5578_v0 = vrot.slane %v11702_v44, 5  ;;  %v5567_v31 = vsel %vm9568_vm11, %v7477_v21, %v5566_v7  ;;  %v5571_v3 = vsel %vm9568_vm11, %v7478_v57, %v5570_v8 }
 0x466   : > { %8310 = vmatprep.mubr.bf16.mxu0 %v7547_v26  ;;  %8318 = vmatprep.mubr.bf16.mxu1 %v7551_v16  ;;  %v5543_v51 = vsel %vm9568_vm11, %v7471_v9, %v5542_v37  ;;  %v5547_v22 = vsel %vm9568_vm11, %v7472_v24, %v5546_v18  ;;  %v5575_v34 = vsel %vm9568_vm11, %v7479_v53, %v5574_v35  ;;  %v5550_v20 = vrot.slane %v11621_v63, 5 }
 0x467   : > { %v5579_v44 = vsel %vm9568_vm11, %v7480_v23, %v5578_v0  ;;  %v5554_v49 = vrot.slane %v11569_v50, 5  ;;  %v5586_v29 = vrot.slane %v11738_v15, 5  ;;  %v7552_v56 = vcombine.low %v5567_v31, %v5571_v3 }
 0x468   : > { %v7549_v47 = vcombine.low %v5543_v51, %v5547_v22  ;;  %v7473_v12 = vrot.slane %v5482_v27, 9  ;;  %v7474_v33 = vrot.slane %v5483_v41, 9  ;;  %v5582_v52 = vrot.slane %v11755_v62, 5 }
 0x469   : > { %v7553_v4 = vcombine.low %v5575_v34, %v5579_v44  ;;  %v7481_v60 = vrot.slane %v5490_v36, 9  ;;  %v7482_v19 = vrot.slane %v5491_v30, 9 }
 0x46a   : > { %v5551_v63 = vsel %vm9568_vm11, %v7473_v12, %v5550_v20  ;;  %v5555_v50 = vsel %vm9568_vm11, %v7474_v33, %v5554_v49 }
 0x46b   : > { %v5583_v15 = vsel %vm9568_vm11, %v7481_v60, %v5582_v52  ;;  %v5587_v54 = vsel %vm9568_vm11, %v7482_v19, %v5586_v29  ;;  %v7550_v62 = vcombine.low %v5551_v63, %v5555_v50 }
 0x46c   : > { %v7554_v17 = vcombine.low %v5583_v15, %v5587_v54 }
 0x46d   : > { %8311 = vmatmul.mubr.bf16.vlgmr.msra.gmra.mxu0 %v7548_v28  ;;  %8319 = vmatmul.mubr.bf16.vlgmr.msra.gmra.mxu1 %v7552_v56 }
 0x46e   : > { %8314 = vmatprep.mubr.bf16.mxu0 %v7549_v47  ;;  %8322 = vmatprep.mubr.bf16.mxu1 %v7553_v4 }
 0x475   : > { %8315 = vmatmul.mubr.bf16.gmra.mxu0 %v7550_v62  ;;  %8323 = vmatmul.mubr.bf16.gmra.mxu1 %v7554_v17 }
 0x482   : > { %v8038_v38 = vpop.f32.mrf.mxu1 }
 0x484   : > { %v8039_v48 = vpop.f32.mrf.mxu1 }
 0x485   : > { %v8040_v42 = vadd.f32 %v8039_v48, %v8038_v38 }
 0x486   : > { %v8041_v58 = vpop.f32.mrf.mxu1 }
 0x488   : > { %v8042_v55 = vpop.f32.mrf.mxu1 }
 0x489   : > { %v8043_v14 = vadd.f32 %v8042_v55, %v8041_v58 }
 0x491   : > { %v7974_v40 = vpop.f32.mrf.mxu0 }
 0x493   : > { %v7975_v32 = vpop.f32.mrf.mxu0 }
 0x494   : > { %v7976_v43 = vadd.f32 %v7975_v32, %v7974_v40 }
 0x495   : > { %v8044_v6 = vpop.f32.mrf.mxu1  ;;  %v7977_v10 = vpop.f32.mrf.mxu0 }
 0x496   : > { %v6542_v21 = vadd.f32 %v7976_v43, %v11823_v59 }
 0x497   : > { %v8045_v2 = vpop.f32.mrf.mxu1  ;;  %v7978_v28 = vpop.f32.mrf.mxu0 }
 0x498   : > { %v8046_v11 = vadd.f32 %v8045_v2, %v8044_v6  ;;  %v7979_v13 = vadd.f32 %v7978_v28, %v7977_v10  ;;  %v11826_v1 = vadd.f32 %v8040_v42, %v6542_v21 }
 0x499   : > { %v8047_v46 = vpop.f32.mrf.mxu1  ;;  %v7980_v57 = vpop.f32.mrf.mxu0 }
 0x49a   : > { %v6545_v5 = vadd.f32 %v7979_v13, %v11823_v59 }
 0x49b   : > { %v8048_v7 = vpop.f32.mrf.mxu1  ;;  %v7981_v39 = vpop.f32.mrf.mxu0 }
 0x49c   : > { %v8049_v25 = vadd.f32 %v8048_v7, %v8047_v46  ;;  %v7982_v61 = vadd.f32 %v7981_v39, %v7980_v57  ;;  %v11829_v8 = vadd.f32 %v8043_v14, %v6545_v5 }
 0x49d   : > { %v7983_v45 = vpop.f32.mrf.mxu0 }
 0x49e   : > { %v6550_v16 = vadd.f32 %v7982_v61, %v11823_v59 }
 0x49f   : > { %v7984_v26 = vpop.f32.mrf.mxu0 }
 0x4a0   : > { %v7985_v9 = vadd.f32 %v7984_v26, %v7983_v45  ;;  %v11832_v37 = vadd.f32 %v8046_v11, %v6550_v16 }
 0x4a2   : > { %v6553_v24 = vadd.f32 %v7985_v9, %v11823_v59 }
 0x4a4   : > { %v11835_v18 = vadd.f32 %v8049_v25, %v6553_v24 }
 0x4a6   : > { %v8050_v53 = vpop.f32.mrf.mxu1 }
 0x4a8   : > { %v8051_v35 = vpop.f32.mrf.mxu1 }
 0x4a9   : > { %v8052_v23 = vadd.f32 %v8051_v35, %v8050_v53  ;;  %v7986_v0 = vpop.f32.mrf.mxu0 }
 0x4aa   : > { %v8053_v31 = vpop.f32.mrf.mxu1 }
 0x4ab   : > { %v7987_v3 = vpop.f32.mrf.mxu0 }
 0x4ac   : > { %v8054_v51 = vpop.f32.mrf.mxu1  ;;  %v7988_v22 = vadd.f32 %v7987_v3, %v7986_v0 }
 0x4ad   : > { %v8055_v27 = vadd.f32 %v8054_v51, %v8053_v31  ;;  %v7989_v41 = vpop.f32.mrf.mxu0 }
 0x4ae   : > { %v8056_v34 = vpop.f32.mrf.mxu1  ;;  %v6558_v44 = vadd.f32 %v7988_v22, %v11823_v59 }
 0x4af   : > { %v7990_v36 = vpop.f32.mrf.mxu0 }
 0x4b0   : > { %v8057_v30 = vpop.f32.mrf.mxu1  ;;  %v7991_v20 = vadd.f32 %v7990_v36, %v7989_v41  ;;  %v11838_v49 = vadd.f32 %v8052_v23, %v6558_v44 }
 0x4b1   : > { %v8058_v29 = vadd.f32 %v8057_v30, %v8056_v34  ;;  %v7992_v56 = vpop.f32.mrf.mxu0 }
 0x4b2   : > { %v8059_v47 = vpop.f32.mrf.mxu1  ;;  %v6561_v12 = vadd.f32 %v7991_v20, %v11823_v59 }
 0x4b3   : > { %v7993_v33 = vpop.f32.mrf.mxu0 }
 0x4b4   : > { %v8060_v52 = vpop.f32.mrf.mxu1  ;;  %v7994_v4 = vadd.f32 %v7993_v33, %v7992_v56  ;;  %v11841_v60 = vadd.f32 %v8055_v27, %v6561_v12 }
 0x4b5   : > { %v8061_v19 = vadd.f32 %v8060_v52, %v8059_v47  ;;  %v7995_v63 = vpop.f32.mrf.mxu0 }
 0x4b6   : > { %12294 = vst [vmem:[#allocation46_spill] sm:$0xff] %v11841_v60  ;;  %v6566_v50 = vadd.f32 %v7994_v4, %v11823_v59 }
 0x4b7   : > { %v7996_v15 = vpop.f32.mrf.mxu0 }
 0x4b8   : > { %v7997_v54 = vadd.f32 %v7996_v15, %v7995_v63  ;;  %v11844_v62 = vadd.f32 %v8058_v29, %v6566_v50 }
 0x4ba   : > { %v8062_v17 = vpop.f32.mrf.mxu1  ;;  %v6569_v38 = vadd.f32 %v7997_v54, %v11823_v59 }
 0x4bc   : > { %v8063_v48 = vpop.f32.mrf.mxu1  ;;  %v11847_v58 = vadd.f32 %v8061_v19, %v6569_v38 }
 0x4bd   : > { %v8064_v42 = vadd.f32 %v8063_v48, %v8062_v17 }
 0x4be   : > { %12295 = vst [vmem:[#allocation43_spill] sm:$0xff] %v11847_v58  ;;  %v8065_v55 = vpop.f32.mrf.mxu1 }
 0x4bf   : > { %v7998_v14 = vpop.f32.mrf.mxu0 }
 0x4c0   : > { %v8066_v40 = vpop.f32.mrf.mxu1 }
 0x4c1   : > { %v8067_v6 = vadd.f32 %v8066_v40, %v8065_v55  ;;  %v7999_v32 = vpop.f32.mrf.mxu0 }
 0x4c2   : > { %v8068_v43 = vpop.f32.mrf.mxu1  ;;  %v8000_v2 = vadd.f32 %v7999_v32, %v7998_v14 }
 0x4c3   : > { %v8001_v10 = vpop.f32.mrf.mxu0 }
 0x4c4   : > { %v6574_v21 = vadd.f32 %v8000_v2, %v11823_v59  ;;  %v8069_v11 = vpop.f32.mrf.mxu1 }
 0x4c5   : > { %v8070_v46 = vadd.f32 %v8069_v11, %v8068_v43  ;;  %v8002_v28 = vpop.f32.mrf.mxu0 }
 0x4c6   : > { %v8071_v13 = vpop.f32.mrf.mxu1  ;;  %v8003_v7 = vadd.f32 %v8002_v28, %v8001_v10  ;;  %v11850_v57 = vadd.f32 %v8064_v42, %v6574_v21 }
 0x4c7   : > { %v8004_v5 = vpop.f32.mrf.mxu0 }
 0x4c8   : > { %v6577_v25 = vadd.f32 %v8003_v7, %v11823_v59  ;;  %v8072_v39 = vpop.f32.mrf.mxu1 }
 0x4c9   : > { %v8073_v61 = vadd.f32 %v8072_v39, %v8071_v13  ;;  %v8005_v45 = vpop.f32.mrf.mxu0 }
 0x4ca   : > { %v8006_v16 = vadd.f32 %v8005_v45, %v8004_v5  ;;  %v11853_v26 = vadd.f32 %v8067_v6, %v6577_v25 }
 0x4cb   : > { %v8007_v9 = vpop.f32.mrf.mxu0 }
 0x4cc   : > { %v6582_v24 = vadd.f32 %v8006_v16, %v11823_v59 }
 0x4cd   : > { %v8008_v53 = vpop.f32.mrf.mxu0 }
 0x4ce   : > { %v8009_v35 = vadd.f32 %v8008_v53, %v8007_v9  ;;  %v11856_v23 = vadd.f32 %v8070_v46, %v6582_v24 }
 0x4d0   : > { %v8074_v0 = vpop.f32.mrf.mxu1  ;;  %v6585_v31 = vadd.f32 %v8009_v35, %v11823_v59 }
 0x4d2   : > { %v8075_v3 = vpop.f32.mrf.mxu1  ;;  %v11859_v27 = vadd.f32 %v8073_v61, %v6585_v31 }
 0x4d3   : > { %v8076_v51 = vadd.f32 %v8075_v3, %v8074_v0  ;;  %v8010_v22 = vpop.f32.mrf.mxu0 }
 0x4d4   : > { %12296 = vst [vmem:[#allocation44_spill] sm:$0xff] %v11859_v27  ;;  %v8077_v41 = vpop.f32.mrf.mxu1 }
 0x4d5   : > { %v8011_v34 = vpop.f32.mrf.mxu0 }
 0x4d6   : > { %v8078_v44 = vpop.f32.mrf.mxu1  ;;  %v8012_v36 = vadd.f32 %v8011_v34, %v8010_v22 }
 0x4d7   : > { %v8079_v30 = vadd.f32 %v8078_v44, %v8077_v41  ;;  %v8013_v20 = vpop.f32.mrf.mxu0 }
 0x4d8   : > { %v8080_v29 = vpop.f32.mrf.mxu1  ;;  %v6590_v56 = vadd.f32 %v8012_v36, %v11823_v59 }
 0x4d9   : > { %v8014_v47 = vpop.f32.mrf.mxu0 }
 0x4da   : > { %v8081_v12 = vpop.f32.mrf.mxu1  ;;  %v8015_v33 = vadd.f32 %v8014_v47, %v8013_v20  ;;  %v11862_v52 = vadd.f32 %v8076_v51, %v6590_v56 }
 0x4db   : > { %v8082_v4 = vadd.f32 %v8081_v12, %v8080_v29  ;;  %v8016_v19 = vpop.f32.mrf.mxu0 }
 0x4dc   : > { %12297 = vst [vmem:[#allocation36_spill] sm:$0xff] %v11862_v52  ;;  %v8083_v63 = vpop.f32.mrf.mxu1  ;;  %v6593_v50 = vadd.f32 %v8015_v33, %v11823_v59 }
 0x4dd   : > { %v8017_v15 = vpop.f32.mrf.mxu0 }
 0x4de   : > { %v8084_v54 = vpop.f32.mrf.mxu1  ;;  %v8018_v17 = vadd.f32 %v8017_v15, %v8016_v19  ;;  %v11865_v38 = vadd.f32 %v8079_v30, %v6593_v50 }
 0x4df   : > { %v8085_v48 = vadd.f32 %v8084_v54, %v8083_v63  ;;  %v8019_v42 = vpop.f32.mrf.mxu0 }
 0x4e0   : > { %12298 = vst [vmem:[#allocation19_spill] sm:$0xff] %v11865_v38  ;;  %v11867_v55 = vpop.f32.mrf.mxu1  ;;  %v6598_v14 = vadd.f32 %v8018_v17, %v11823_v59 }
 0x4e1   : > { %v8020_v40 = vpop.f32.mrf.mxu0 }
 0x4e2   : > { %v11870_v6 = vpop.f32.mrf.mxu1  ;;  %v8021_v32 = vadd.f32 %v8020_v40, %v8019_v42  ;;  %v11872_v43 = vadd.f32 %v8082_v4, %v6598_v14 }
 0x4e3   : > { %v8102_v2 = vpop.f32.mrf.mxu0 }
 0x4e4   : > { %12299 = vst [vmem:[#allocation48_spill] sm:$0xff] %v11872_v43  ;;  %v11874_v10 = vpop.f32.mrf.mxu1  ;;  %v6601_v21 = vadd.f32 %v8021_v32, %v11823_v59 }
 0x4e5   : > { %v8103_v11 = vpop.f32.mrf.mxu0 }
 0x4e6   : > { %v11877_v46 = vpop.f32.mrf.mxu1  ;;  %v11879_v28 = vadd.f32 %v8085_v48, %v6601_v21  ;;  %v8104_v58 = vadd.f32 %v8103_v11, %v8102_v2  ;;  %v8168_v2 = vadd.f32 %v11870_v6, %v11867_v55 }
 0x4e7   : > { %v8105_v13 = vpop.f32.mrf.mxu0  ;;  %v8171_v11 = vadd.f32 %v11877_v46, %v11874_v10 }
 0x4e8   : > { %12300 = vst [vmem:[#allocation50_spill] sm:$0xff] %v11879_v28  ;;  %v6736_v27 = vadd.f32 %v8104_v58, %v11826_v1 }
 0x4e9   : > { %v8106_v7 = vpop.f32.mrf.mxu0 }
 0x4ea   : > { %v11881_v5 = vpop.f32.mrf.mxu1  ;;  %v8107_v52 = vadd.f32 %v8106_v7, %v8105_v13 }
 0x4ec   : > { %v11883_v25 = vpop.f32.mrf.mxu1  ;;  %v8108_v39 = vpop.f32.mrf.mxu0 }
 0x4ed   : > { %v8174_v1 = vadd.f32 %v11883_v25, %v11881_v5 }
 0x4ee   : > { %v11885_v61 = vpop.f32.mrf.mxu1  ;;  %v8109_v45 = vpop.f32.mrf.mxu0 }
 0x4ef   : > { %v8110_v43 = vadd.f32 %v8109_v45, %v8108_v39  ;;  %v6833_v45 = vadd.f32 %v8168_v2, %v6736_v27 }
 0x4f0   : > { %v11887_v16 = vpop.f32.mrf.mxu1  ;;  %v8111_v9 = vpop.f32.mrf.mxu0 }
 0x4f2   : > { %v11889_v24 = vpop.f32.mrf.mxu1  ;;  %v8112_v59 = vpop.f32.mrf.mxu0 }
 0x4f4   : > { %v11891_v53 = vpop.f32.mrf.mxu1  ;;  %v8114_v35 = vpop.f32.mrf.mxu0 }
 0x4f6   : > { %v8115_v0 = vpop.f32.mrf.mxu0  ;;  %v11893_v31 = vpop.f32.mrf.mxu1 }
 0x4f7   : > { %12301 = vst [vmem:[#allocation47_spill] sm:$0xff] %v11893_v31 }
 0x4f8   : > { %v11895_v3 = vpop.f32.mrf.mxu0  ;;  %v11899_v22 = vpop.f32.mrf.mxu1 }
 0x4f9   : > { %12302 = vst [vmem:[#allocation49_spill] sm:$0xff] %v11899_v22 }
 0x4fa   : > { %v11897_v51 = vpop.f32.mrf.mxu0 }
 0x4fb   : > { %v8119_v25 = vadd.f32 %v11897_v51, %v11895_v3 }
 0x500   : > { %v8120_v41 = vpop.f32.mrf.mxu0  ;;  %v11901_v34 = vpop.f32.mrf.mxu1 }
 0x502   : > { %v8121_v44 = vpop.f32.mrf.mxu0  ;;  %v11903_v36 = vpop.f32.mrf.mxu1 }
 0x503   : > { %12303 = vst [vmem:[#allocation52_spill] sm:$0xff] %v11903_v36  ;;  %v8122_v39 = vadd.f32 %v8121_v44, %v8120_v41  ;;  %v12317_v44 = vld [vmem:[#allocation44_spill] sm:$0xff] }
 0x504   : > { %v11905_v30 = vpop.f32.mrf.mxu0  ;;  %v11907_v20 = vpop.f32.mrf.mxu1 }
 0x505   : > { %12304 = vst [vmem:[#allocation54_spill] sm:$0xff] %v11905_v30  ;;  %12305 = vst [vmem:[#allocation37_spill] sm:$0xff] %v11907_v20  ;;  %v6744_v30 = vadd.f32 %v8110_v43, %v11832_v37  ;;  %v8177_v37 = vadd.f32 %v11887_v16, %v11885_v61 }
 0x506   : > { %v11909_v29 = vpop.f32.mrf.mxu0  ;;  %v11911_v56 = vpop.f32.mrf.mxu1 }
 0x507   : > { %12306 = vst [vmem:[#allocation56_spill] sm:$0xff] %v11909_v29  ;;  %12307 = vst [vmem:[#allocation42_spill] sm:$0xff] %v11911_v56  ;;  %v6841_v5 = vadd.f32 %v8174_v1, %v6744_v30 }
 0x508   : > { %v8190_v47 = vpop.f32.mrf.mxu1  ;;  %v8126_v12 = vpop.f32.mrf.mxu0 }
 0x50a   : > { %v8191_v33 = vpop.f32.mrf.mxu1  ;;  %v8127_v4 = vpop.f32.mrf.mxu0 }
 0x50c   : > { %v11913_v19 = vpop.f32.mrf.mxu1  ;;  %v8129_v63 = vpop.f32.mrf.mxu0 }
 0x50d   : > { %12308 = vst [vmem:[#allocation51_spill] sm:$0xff] %v11913_v19  ;;  %v8116_v19 = vadd.f32 %v8115_v0, %v8114_v35  ;;  %v8192_v35 = vadd.f32 %v8191_v33, %v8190_v47 }
 0x50e   : > { %v11915_v50 = vpop.f32.mrf.mxu1  ;;  %v8130_v15 = vpop.f32.mrf.mxu0 }
 0x50f   : > { %12309 = vst [vmem:[#allocation53_spill] sm:$0xff] %v11915_v50  ;;  %v6752_v58 = vadd.f32 %v8116_v19, %v11838_v49 }
 0x510   : > { %v8196_v54 = vpop.f32.mrf.mxu1  ;;  %v8132_v17 = vpop.f32.mrf.mxu0 }
 0x512   : > { %v8197_v48 = vpop.f32.mrf.mxu1  ;;  %v8133_v42 = vpop.f32.mrf.mxu0 }
 0x514   : > { %v11917_v14 = vpop.f32.mrf.mxu1  ;;  %v8135_v40 = vpop.f32.mrf.mxu0 }
 0x515   : > { %12310 = vst [vmem:[#allocation55_spill] sm:$0xff] %v11917_v14  ;;  %v8113_v14 = vadd.f32 %v8112_v59, %v8111_v9  ;;  %v8198_v9 = vadd.f32 %v8197_v48, %v8196_v54 }
 0x516   : > { %v8200_v32 = vpop.f32.mrf.mxu1  ;;  %v8136_v21 = vpop.f32.mrf.mxu0 }
 0x517   : > { %v6747_v13 = vadd.f32 %v8113_v14, %v11835_v18  ;;  %v8137_v55 = vadd.f32 %v8136_v21, %v8135_v40  ;;  %v8180_v18 = vadd.f32 %v11891_v53, %v11889_v24  ;;  %v12322_v14 = vld [vmem:[#allocation21_spill] sm:$0xff] }
 0x518   : > { %v11919_v22 = vpop.f32.mrf.mxu1 }
 0x519   : > { %12311 = vst [vmem:[#allocation57_spill] sm:$0xff] %v11919_v22  ;;  %v8138_v31 = vpop.f32.mrf.mxu0  ;;  %v8134_v22 = vadd.f32 %v8133_v42, %v8132_v17  ;;  %v6844_v16 = vadd.f32 %v8177_v37, %v6747_v13  ;;  %v11952_v24 = vadd.f32 %v8180_v18, %v6752_v58  ;;  %v6779_v3 = vadd.f32 %v8137_v55, %v12317_v44  ;;  %v12323_v13 = vld [vmem:[#allocation29_spill] sm:$0xff]  ;;  %v12324_v58 = vld [vmem:[#allocation36_spill] sm:$0xff] }
 0x51a   : > { %v11921_v38 = vpop.f32.mrf.mxu1  ;;  %v12325_v37 = vld [vmem:[#allocation20_spill] sm:$0xff] }
 0x51b   : > { %12312 = vst [vmem:[#allocation38_spill] sm:$0xff] %v11921_v38  ;;  %v8139_v56 = vpop.f32.mrf.mxu0  ;;  %v6739_v38 = vadd.f32 %v8107_v52, %v11829_v8  ;;  %v8131_v8 = vadd.f32 %v8130_v15, %v8129_v63  ;;  %v6776_v43 = vadd.f32 %v8134_v22, %v11856_v23  ;;  %v6760_v23 = vadd.f32 %v8122_v39, %v11844_v62  ;;  %v12315_v22 = vld [vmem:[#allocation54_spill] sm:$0xff]  ;;  %v12321_v15 = vld [vmem:[#allocation48_spill] sm:$0xff] }
 0x51c   : > { %v11923_v20 = vpop.f32.mrf.mxu1  ;;  %v8140_v47 = vadd.f32 %v8139_v56, %v8138_v31 }
 0x51d   : > { %12313 = vst [vmem:[#allocation45_spill] sm:$0xff] %v11923_v20  ;;  %v11925_v60 = vpop.f32.mrf.mxu0  ;;  %v8128_v20 = vadd.f32 %v8127_v4, %v8126_v12  ;;  %v6836_v49 = vadd.f32 %v8171_v11, %v6739_v38  ;;  %v6771_v27 = vadd.f32 %v8131_v8, %v11853_v26  ;;  %v12316_v38 = vld [vmem:[#allocation56_spill] sm:$0xff]  ;;  %v6873_v51 = vadd.f32 %v8198_v9, %v6776_v43  ;;  %v12320_v4 = vld [vmem:[#allocation55_spill] sm:$0xff] }
 0x51e   : > { %v11929_v50 = vpop.f32.mrf.mxu1  ;;  %v8125_v41 = vadd.f32 %v12316_v38, %v12315_v22  ;;  %v8201_v19 = vadd.f32 %v8200_v32, %v12320_v4  ;;  %v6784_v39 = vadd.f32 %v8140_v47, %v12324_v58  ;;  %v12333_v38 = vld [vmem:[#allocation30_spill] sm:$0xff] }
 0x51f   : > { %v11927_v28 = vpop.f32.mrf.mxu0  ;;  %v6768_v10 = vadd.f32 %v8128_v20, %v11850_v57  ;;  %v12314_v57 = vld [vmem:[#allocation52_spill] sm:$0xff]  ;;  %v12318_v20 = vld [vmem:[#allocation51_spill] sm:$0xff]  ;;  %v12336_v47 = vld [vmem:[#allocation22_spill] sm:$0xff] }
 0x520   : > { %v8186_v53 = vadd.f32 %v12314_v57, %v11901_v34  ;;  %v6876_v56 = vadd.f32 %v8201_v19, %v6779_v3  ;;  %v8143_v32 = vadd.f32 %v11927_v28, %v11925_v60  ;;  %v12328_v60 = vld [vmem:[#allocation43_spill] sm:$0xff]  ;;  %v12329_v9 = vld [vmem:[#allocation57_spill] sm:$0xff]  ;;  %v12332_v57 = vld [vmem:[#allocation46_spill] sm:$0xff] }
 0x521   : > { %v6865_v26 = vadd.f32 %v8192_v35, %v6768_v10  ;;  %v6763_v28 = vadd.f32 %v8125_v41, %v12328_v60  ;;  %v12331_v35 = vld [vmem:[#allocation23_spill] sm:$0xff]  ;;  %v12335_v41 = vld [vmem:[#allocation42_spill] sm:$0xff] }
 0x522   : > { %v6857_v2 = vadd.f32 %v8186_v53, %v6760_v23  ;;  %v6755_v53 = vadd.f32 %v8119_v25, %v12332_v57  ;;  %v12349_v60 = vld [vmem:[#allocation34_spill] sm:$0xff] }
 0x525   : > { %v8144_v29 = vpop.f32.mrf.mxu0  ;;  %v8208_v36 = vpop.f32.mrf.mxu1 }
 0x527   : > { %v8145_v7 = vpop.f32.mrf.mxu0  ;;  %v8209_v52 = vpop.f32.mrf.mxu1 }
 0x528   : > { %v8146_v59 = vadd.f32 %v8145_v7, %v8144_v29  ;;  %v12319_v29 = vld [vmem:[#allocation53_spill] sm:$0xff]  ;;  %v8210_v11 = vadd.f32 %v8209_v52, %v8208_v36  ;;  %v12326_v52 = vld [vmem:[#allocation28_spill] sm:$0xff] }
 0x529   : > { %v8147_v6 = vpop.f32.mrf.mxu0  ;;  %v8211_v46 = vpop.f32.mrf.mxu1  ;;  %v8195_v62 = vadd.f32 %v12319_v29, %v12318_v20 }
 0x52a   : > { %v6792_v34 = vadd.f32 %v8146_v59, %v12321_v15  ;;  %v12330_v59 = vld [vmem:[#allocation38_spill] sm:$0xff]  ;;  %v12340_v15 = vld [vmem:[#allocation49_spill] sm:$0xff] }
 0x52b   : > { %v8148_v61 = vpop.f32.mrf.mxu0  ;;  %v8212_v0 = vpop.f32.mrf.mxu1  ;;  %v6868_v42 = vadd.f32 %v8195_v62, %v6771_v27 }
 0x52c   : > { %v8149_v54 = vadd.f32 %v8148_v61, %v8147_v6  ;;  %v6889_v10 = vadd.f32 %v8210_v11, %v6792_v34  ;;  %v8204_v61 = vadd.f32 %v12330_v59, %v12329_v9  ;;  %v8213_v22 = vadd.f32 %v8212_v0, %v8211_v46  ;;  %v12338_v46 = vld [vmem:[#allocation31_spill] sm:$0xff] }
 0x52d   : > { %v8312_v30 = vpop.f32.mrf.mxu0  ;;  %v8320_v12 = vpop.f32.mrf.mxu1 }
 0x52e   : > { %v6938_v33 = vadd.f32 %v8312_v30, %v6841_v5  ;;  %v6970_v63 = vadd.f32 %v8320_v12, %v6873_v51  ;;  %v12334_v30 = vld [vmem:[#allocation37_spill] sm:$0xff]  ;;  %v6881_v62 = vadd.f32 %v8204_v61, %v6784_v39  ;;  %v12345_v39 = vld [vmem:[#allocation32_spill] sm:$0xff] }
 0x52f   : > { %v6929_v17 = vpop.f32.mrf.mxu0  ;;  %v6961_v48 = vpop.f32.mrf.mxu1  ;;  %v8189_v20 = vadd.f32 %v12335_v41, %v12334_v30 }
 0x530   : > { %v6994_v40 = vadd.f32 %v6938_v33, %v12322_v14  ;;  %v6930_v21 = vadd.f32 %v6929_v17, %v6833_v45  ;;  %v7002_v7 = vadd.f32 %v6970_v63, %v12323_v13  ;;  %v6962_v31 = vadd.f32 %v6961_v48, %v6865_v26  ;;  %v12327_v45 = vld [vmem:[#allocation50_spill] sm:$0xff]  ;;  %v12339_v63 = vld [vmem:[#allocation47_spill] sm:$0xff]  ;;  %v12341_v17 = vld [vmem:[#allocation25_spill] sm:$0xff] }
 0x531   : > { %v8313_v1 = vpop.f32.mrf.mxu0  ;;  %v8321_v8 = vpop.f32.mrf.mxu1  ;;  %v6795_v18 = vadd.f32 %v8149_v54, %v12327_v45  ;;  %v8183_v34 = vadd.f32 %v12340_v15, %v12339_v63  ;;  %v6860_v14 = vadd.f32 %v8189_v20, %v6763_v28 }
 0x532   : > { %7010 = vst [vmem:[%s11969_s5 + $0x10] sm:$0xff] %v6994_v40  ;;  %v6992_v43 = vadd.f32 %v6930_v21, %v12325_v37  ;;  %v6941_v36 = vadd.f32 %v8313_v1, %v6844_v16  ;;  %7018 = vst [vmem:[%s11969_s5 + $0x50] sm:$0xff] %v7002_v7  ;;  %v7000_v55 = vadd.f32 %v6962_v31, %v12326_v52  ;;  %v12342_v40 = vld [vmem:[#allocation45_spill] sm:$0xff] }
 0x533   : > { %v6973_v6 = vadd.f32 %v8321_v8, %v6876_v56  ;;  %v6932_v5 = vpop.f32.mrf.mxu0  ;;  %v6964_v23 = vpop.f32.mrf.mxu1  ;;  %v6892_v4 = vadd.f32 %v8213_v22, %v6795_v18  ;;  %v8207_v21 = vadd.f32 %v11929_v50, %v12342_v40  ;;  %v12344_v56 = vld [vmem:[#allocation24_spill] sm:$0xff] }
 0x534   : > { %7008 = vst [vmem:[%s11969_s5] sm:$0xff] %v6992_v43  ;;  %v6995_v27 = vadd.f32 %v6941_v36, %v12331_v35  ;;  %v6933_v16 = vadd.f32 %v6932_v5, %v6836_v49  ;;  %7016 = vst [vmem:[%s11969_s5 + $0x40] sm:$0xff] %v7000_v55  ;;  %v6965_v3 = vadd.f32 %v6964_v23, %v6868_v42  ;;  %v12337_v49 = vld [vmem:[#allocation19_spill] sm:$0xff] }
 0x535   : > { %v7003_v44 = vadd.f32 %v6973_v6, %v12333_v38  ;;  %v8316_v51 = vpop.f32.mrf.mxu0  ;;  %v8324_v29 = vpop.f32.mrf.mxu1  ;;  %v6787_v33 = vadd.f32 %v8143_v32, %v12337_v49  ;;  %v12346_v36 = vld [vmem:[#allocation27_spill] sm:$0xff] }
 0x536   : > { %7011 = vst [vmem:[%s11969_s5 + $0x18] sm:$0xff] %v6995_v27  ;;  %v6993_v12 = vadd.f32 %v6933_v16, %v12336_v47  ;;  %v6954_v26 = vadd.f32 %v8316_v51, %v6857_v2  ;;  %v7001_v25 = vadd.f32 %v6965_v3, %v12338_v46  ;;  %v6986_v0 = vadd.f32 %v8324_v29, %v6889_v10  ;;  %v12343_v2 = vld [vmem:[#allocation33_spill] sm:$0xff]  ;;  %v12347_v6 = vld [vmem:[#allocation35_spill] sm:$0xff]  ;;  %v12348_v10 = vld [vmem:[#allocation26_spill] sm:$0xff] }
 0x537   : > { %7019 = vst [vmem:[%s11969_s5 + $0x58] sm:$0xff] %v7003_v44  ;;  %v6945_v19 = vpop.f32.mrf.mxu0  ;;  %v6977_v54 = vpop.f32.mrf.mxu1  ;;  %v6884_v50 = vadd.f32 %v8207_v21, %v6787_v33 }
 0x538   : > { %7009 = vst [vmem:[%s11969_s5 + $0x8] sm:$0xff] %v6993_v12  ;;  %v6998_v48 = vadd.f32 %v6954_v26, %v12341_v17  ;;  %v6946_v42 = vadd.f32 %v6945_v19, %v11952_v24  ;;  %7017 = vst [vmem:[%s11969_s5 + $0x48] sm:$0xff] %v7001_v25  ;;  %v7006_v11 = vadd.f32 %v6986_v0, %v12343_v2 }
 0x539   : > { %v6978_v13 = vadd.f32 %v6977_v54, %v6881_v62  ;;  %v8317_v7 = vpop.f32.mrf.mxu0  ;;  %v8325_v31 = vpop.f32.mrf.mxu1  ;;  %v6852_v24 = vadd.f32 %v8183_v34, %v6755_v53 }
 0x53a   : > { %7014 = vst [vmem:[%s11969_s5 + $0x30] sm:$0xff] %v6998_v48  ;;  %v6996_v1 = vadd.f32 %v6946_v42, %v12344_v56  ;;  %v6957_v58 = vadd.f32 %v8317_v7, %v6860_v14  ;;  %7022 = vst [vmem:[%s11969_s5 + $0x70] sm:$0xff] %v7006_v11  ;;  %v6989_v8 = vadd.f32 %v8325_v31, %v6892_v4 }
 0x53b   : > { %v7004_v32 = vadd.f32 %v6978_v13, %v12345_v39  ;;  %v6948_v37 = vpop.f32.mrf.mxu0  ;;  %v6980_v43 = vpop.f32.mrf.mxu1 }
 0x53c   : > { %7012 = vst [vmem:[%s11969_s5 + $0x20] sm:$0xff] %v6996_v1  ;;  %v6999_v52 = vadd.f32 %v6957_v58, %v12346_v36  ;;  %v6949_v55 = vadd.f32 %v6948_v37, %v6852_v24  ;;  %v7007_v45 = vadd.f32 %v6989_v8, %v12347_v6  ;;  %v6981_v18 = vadd.f32 %v6980_v43, %v6884_v50 }
 0x53d   : > { %7020 = vst [vmem:[%s11969_s5 + $0x60] sm:$0xff] %v7004_v32 }
 0x53e   : > { %7015 = vst [vmem:[%s11969_s5 + $0x38] sm:$0xff] %v6999_v52  ;;  %v6997_v5 = vadd.f32 %v6949_v55, %v12348_v10  ;;  %7023 = vst [vmem:[%s11969_s5 + $0x78] sm:$0xff] %v7007_v45  ;;  %v7005_v28 = vadd.f32 %v6981_v18, %v12349_v60 }
 0x540   : > { %7013 = vst [vmem:[%s11969_s5 + $0x28] sm:$0xff] %v6997_v5  ;;  %7021 = vst [vmem:[%s11969_s5 + $0x68] sm:$0xff] %v7005_v28 }
 0x541   : > { %8892 = shalt.err (!%p8889_p10)
}
 0x542   : > { %s8893_s19 = scalar_lea.hbm %s12015_s21, 2048  ;;  %s8897_s1 = scalar_lea.hbm %s12075_s11, 4096 }
 0x543   : > { %p8894_p6 = scmp.ne.s32.totalorder %s12015_s21, %s8893_s19  ;;  %p8898_p3 = scmp.lt.s32.totalorder %s12015_s21, %s12075_s11 }
 0x544   : > { %p8899_p11 = scmp.lt.s32.totalorder %s8897_s1, %s8893_s19 }
 0x545   : > { %p8895_p4 = pnand %p8894_p6, %p12350_p1 }
 0x546   : > { %p8900_p5 = por %p8899_p11, %p8898_p3 }
 0x547   : > { %p8896_p8 = pneg %p8895_p4 }
 0x549   : > { %p8901_p7 = pnand %p8900_p5, %p8896_p8 }
 0x54b   : > { %8904 = shalt.err (!%p8901_p7)
}
 0x54c   : > { %s8961_s16 = smov 128   ;;  %s8962_s29 = smov 8  }
 0x54d   : > { %8356 = dma.vmem_to_hbm [thread:$0]  (%p12350_p1), %s12017_s25, 2048, %s12015_s21, %s7025_s28, %s8961_s16, %s8961_s16, %s8962_s29  }
 0x54e PF: > { %s7054_s27 = sand.u32 1, %s8939_s17   ;;  %p12351_p12 = scmp.ne.s32.totalorder %s12128_s24, 0 }
 0x54f   : > { %p12352_p9 = scmp.ge.s32.totalorder %s8951_s20, 2  ;;  %s7055_s15 = scalar_lea.sflag [#allocation5], %s7054_s27 }
 0x551   : > { %p8373_p13 = pnand %p12352_p9, %p12351_p12 }
 0x553   : > { %p8374_p0 = pneg %p8373_p13 }
 0x555   : > { %8934 = dma.done.wait (%p8374_p0), %s7055_s15, 2048  }
 0x556   : > { %8936 = vsyncadd (%p8374_p0), %s7055_s15, 4294965248  ;;  %s12353_s9 = sld [smem:[#allocation16_spill]]  ;;  %p26_p2 = scmp.ge.s32.totalorder %s9112_s30, 4  }
 0x557   : > { %s12354_s19 = sld [smem:[#allocation17_spill]]  ;;  %s12355_s17 = smov %s8943_s18 }
 0x558   : > { %s12357_s20 = smov %s9112_s30  ;;  %28 = sbr.rel (!%p26_p2) target bundleno = 11 (0xb), region = 124 }
 0x55c   : > { %s12356_s18 = smov %s12353_s9 }
 0x55d   :  { %7060 = vsyncpa [#allocation4], 1 }
 0x55e   :  { %7062 = vsyncpa [#allocation4 + $0x1], 1 }
 0x55f   :  { %7063 = vsyncpa [#allocation7], 1 }
 0x560   :  { %7064 = vsyncpa [#allocation10], 1 }
 0x561   :  { %7065 = vsyncpa [#allocation5], 1 }
 0x562   :  { %7067 = vsyncpa [#allocation5 + $0x1], 1 }

</bundles_post_ra>
